<compile_context>
chip_gen: v5e
topology: v5e:2x2
jax: 0.10.0
libtpu: 0.0.40
codegen_flags: <defaults>
</compile_context>

<pallas_src>
import functools

import jax
import jax.numpy as jnp
from jax.experimental import pallas as pl
from jax.experimental.pallas import tpu as pltpu

_LANE = 128
_SUBLANE = 8
_MXU_MIN_C = 32          # below this the VPU broadcast-FMA path wins (see header #3)
_HP = jax.lax.Precision.HIGHEST


# ----------------------------------------------------------------------------- kernel

def _patch_encoder_kernel(x_ref, w12t_ref, b12_ref, w3p_ref, b3p_ref, o_ref,
                          *, C, HW, HWC, flat, use_mxu):
    """One batch-block of the folded PatchEncoder.

    x_ref   : (TB, C*HW) if flat else (TB, C, HW)
    w12t_ref: (64, C)    fused conv1*bn1*conv2*bn2 weight (out-channels on sublanes)
    b12_ref : (64, 1)    fused bias
    w3p_ref : (64, 256)  Linear weight with bn3 scale and 1/HW folded in
    b3p_ref : (1, 256)   Linear bias with bn3 folded in
    o_ref   : (TB, 256)
    """
    tb = o_ref.shape[0]
    w12t = w12t_ref[...]                      # (64, C), f32
    b12 = b12_ref[...][None, :, :]            # (1, 64, 1)  (hoisted broadcast)

    n_chunks = HW // HWC
    pooled = None

    if use_mxu:
        # Hoisted once per block (JAX does not CSE broadcast_in_dim).
        w12b = jnp.broadcast_to(w12t[None, :, :], (tb, 64, C))   # (TB, 64, C)
    else:
        # Per-channel weight columns, hoisted out of the chunk loop.
        w_cols = [w12t[:, c:c + 1][None, :, :] for c in range(C)]  # (1, 64, 1) each

    for k in range(n_chunks):                 # static loop; usually 1 chunk
        if use_mxu:
            # Batched, natural-orientation MXU matmul: no in-kernel transpose of x.
            xk = x_ref[:, :, k * HWC:(k + 1) * HWC].astype(jnp.float32)   # (TB, C, HWC)
            h = jax.lax.dot_general(
                w12b, xk,
                dimension_numbers=(((2,), (1,)), ((0,), (0,))),
                precision=_HP,
                preferred_element_type=jnp.float32)                        # (TB, 64, HWC)
        else:
            # Tiny K = C: broadcast FMAs on the VPU (faster than the MXU at K<=~32).
            h = None
            for c in range(C):
                if flat:
                    start = c * HW + k * HWC                               # multiple of 128
                    xc = x_ref[:, start:start + HWC].astype(jnp.float32)   # (TB, HWC) dense
                    xc = xc[:, None, :]                                    # (TB, 1, HWC)
                else:
                    xc = x_ref[:, c:c + 1, k * HWC:(k + 1) * HWC].astype(jnp.float32)
                term = w_cols[c] * xc                                      # (TB, 64, HWC)
                h = term if h is None else h + term

        h = jnp.maximum(h + b12, 0.0)                                      # bias + ReLU
        # Lane-tile partial sums are VPU adds; only the final 128->1 reduce per (b, o)
        # goes through the XLU (TB*64 outputs per chunk).
        s = jnp.sum(h, axis=-1)                                            # (TB, 64)
        pooled = s if pooled is None else pooled + s

    # AdaptiveAvgPool2d's 1/HW and BN1d(256) are pre-folded into w3p / b3p.
    out = jnp.dot(pooled, w3p_ref[...], precision=_HP,
                  preferred_element_type=jnp.float32) + b3p_ref[...]
    o_ref[...] = jnp.maximum(out, 0.0).astype(o_ref.dtype)                 # lane-dense store


# ----------------------------------------------------------------------------- tiling

def _round_up(x, m):
    return ((x + m - 1) // m) * m


def _tpu_limits():
    """Best-effort chip introspection; conservative fallbacks if it is unavailable."""
    vmem_cap = 64 * 2 ** 20        # v7x per-core VMEM = smallest across generations
    n_cores = 1
    try:
        info = pltpu.get_tpu_info()
        for name in ("vmem_capacity_bytes", "vmem_bytes", "vmem_size_bytes"):
            v = getattr(info, name, None)
            if v:
                vmem_cap = int(v)
                break
        for name in ("num_cores", "num_tensorcores", "tensorcores_per_chip",
                     "cores_per_chip"):
            v = getattr(info, name, None)
            if v:
                n_cores = int(v)
                break
    except Exception:
        pass
    return vmem_cap, n_cores


def _pick_tiles(B, C, HW, use_flat, x_itemsize, *, max_tb=512):
    """Pick (TB, n_steps, HW chunk, vmem_limit) from a per-chip VMEM budget that
    includes the (TB, 64, HWC) f32 intermediate (review items #1/#5/#6/#7)."""
    vmem_cap, n_cores = _tpu_limits()
    budget = min(int(0.6 * vmem_cap), 80 * 2 ** 20)

    # HW chunk bounds the live f32 intermediate (only worth it for long, aligned HW).
    hwc = HW
    if HW % _LANE == 0 and HW > 512:
        for cand in (512, 256, _LANE):
            if HW % cand == 0:
                hwc = cand
                break

    c_pad = C if use_flat else _round_up(C, _SUBLANE)

    def footprint(tb):
        x_blk = 2 * tb * c_pad * HW * x_itemsize     # double-buffered input block
        h_blk = tb * 64 * hwc * 4                    # live f32 intermediate
        o_blk = 2 * tb * 256 * 4                     # double-buffered output block
        misc = tb * 64 * 4 + (64 * C + 64 * 256 + 512) * 4 + (1 << 20)
        return x_blk + h_blk + o_blk + misc

    b_pad = _round_up(B, _SUBLANE)
    tb = max(_SUBLANE, (min(max_tb, b_pad) // _SUBLANE) * _SUBLANE)
    while tb > _SUBLANE and footprint(tb) > budget:
        tb = max(_SUBLANE, ((tb // 2) // _SUBLANE) * _SUBLANE)

    # Multi-core chips (v7x): keep >= n_cores steps on the "parallel" axis when B allows.
    if n_cores > 1:
        while -(-b_pad // tb) < n_cores and tb > _SUBLANE:
            tb = max(_SUBLANE, ((tb // 2) // _SUBLANE) * _SUBLANE)

    n_steps = -(-B // tb)
    vmem_limit = int(min(max(footprint(tb) * 1.25, 32 * 2 ** 20), 0.9 * vmem_cap))
    return tb, n_steps, hwc, vmem_limit


# ----------------------------------------------------------------------------- wrapper

def _fold_bn(gamma, beta, mean, var, eps=1e-5):
    scale = gamma / jnp.sqrt(var + eps)
    shift = beta - mean * scale
    return scale, shift


def patch_encoder(x_nchw, params, *, input_dtype=jnp.float32, max_tb=512):
    """x_nchw: [B, C, H, W] float32 -> [B, 256] float32 (eval-mode BN)."""
    B, C, H, W = x_nchw.shape
    HW = H * W

    (w1, b1, bn1), (w2, b2, bn2), (w3, b3, bn3) = params
    s1, t1 = _fold_bn(*bn1)
    s2, t2 = _fold_bn(*bn2)
    s3, t3 = _fold_bn(*bn3)

    # Constant-fold conv1 -> bn1 -> conv2 -> bn2 into one (C, 64) linear map (f32, exact).
    w1s = w1.T * s1[None, :]                                         # (C, 64)
    w2s = w2.T * s2[None, :]                                         # (64, 64)
    w12 = jnp.dot(w1s, w2s, precision=_HP)                           # (C, 64)
    b12 = jnp.dot(b1 * s1 + t1, w2s, precision=_HP) + (b2 * s2 + t2) # (64,)
    # Fold bn3 and the 1/HW of AdaptiveAvgPool2d((1,1)) into the Linear.
    w3p = (w3.T * s3[None, :]) / HW                                  # (64, 256)
    b3p = (b3 * s3 + t3).reshape(1, 256)                             # (1, 256)

    use_mxu = C >= _MXU_MIN_C
    use_flat = (not use_mxu) and (HW % _LANE == 0)

    # Weights stay f32 (review #8); only x may be narrowed (it is the bandwidth-relevant
    # operand).  Free reshape of contiguous NCHW either way (no wrapper transpose).
    x = x_nchw.reshape(B, C * HW) if use_flat else x_nchw.reshape(B, C, HW)
    x = x.astype(input_dtype)
    w12t = w12.T.astype(jnp.float32)                                 # (64, C)
    b12c = b12.reshape(64, 1).astype(jnp.float32)
    w3p = w3p.astype(jnp.float32)
    b3p = b3p.astype(jnp.float32)

    tb, n_steps, hwc, vmem_limit = _pick_tiles(
        B, C, HW, use_flat, jnp.dtype(input_dtype).itemsize, max_tb=max_tb)
    Bp = tb * n_steps
    if Bp != B:
        # Padded rows compute ReLU(b12)-derived values that are discarded by out[:B].
        x = jnp.pad(x, ((0, Bp - B),) + ((0, 0),) * (x.ndim - 1))

    if use_flat:
        x_spec = pl.BlockSpec((tb, C * HW), lambda b: (b, 0))
    else:
        x_spec = pl.BlockSpec((tb, C, HW), lambda b: (b, 0, 0))

    kernel = functools.partial(_patch_encoder_kernel,
                               C=C, HW=HW, HWC=hwc, flat=use_flat, use_mxu=use_mxu)

    out = pl.pallas_call(
        kernel,
        out_shape=jax.ShapeDtypeStruct((Bp, 256), jnp.float32),
        grid_spec=pltpu.PrefetchScalarGridSpec(
            num_scalar_prefetch=0,
            grid=(n_steps,),
            in_specs=[
                x_spec,                                            # x block
                pl.BlockSpec((64, C), lambda b: (0, 0)),           # fused conv weight
                pl.BlockSpec((64, 1), lambda b: (0, 0)),           # fused conv bias
                pl.BlockSpec((64, 256), lambda b: (0, 0)),         # fused linear weight
                pl.BlockSpec((1, 256), lambda b: (0, 0)),          # fused linear bias
            ],
            out_specs=pl.BlockSpec((tb, 256), lambda b: (b, 0)),
        ),
        compiler_params=pltpu.CompilerParams(
            dimension_semantics=("parallel",),
            vmem_limit_bytes=vmem_limit),
    )(x, w12t, b12c, w3p, b3p)
    return out[:B]


# ----------------------------------------------------------------------------- test utils

def make_params(in_channel, key):
    """Deterministic synthetic parameters matching PatchEncoder.__init__ shapes."""
    ks = jax.random.split(key, 12)

    def conv_like(k, out_c, in_c):
        return 0.1 * jax.random.normal(k, (out_c, in_c), dtype=jnp.float32)

    def bn_like(k, c):
        k1, k2, k3 = jax.random.split(k, 3)
        gamma = 1.0 + 0.1 * jax.random.normal(k1, (c,), dtype=jnp.float32)
        beta = 0.1 * jax.random.normal(k2, (c,), dtype=jnp.float32)
        mean = 0.1 * jax.random.normal(k3, (c,), dtype=jnp.float32)
        var = jnp.ones((c,), dtype=jnp.float32)
        return (gamma, beta, mean, var)

    w1 = conv_like(ks[0], 64, in_channel)                      # Conv2d(C,64,1x1)
    b1 = 0.05 * jax.random.normal(ks[1], (64,), jnp.float32)
    bn1 = bn_like(ks[2], 64)
    w2 = conv_like(ks[3], 64, 64)                              # Conv2d(64,64,1x1)
    b2 = 0.05 * jax.random.normal(ks[4], (64,), jnp.float32)
    bn2 = bn_like(ks[5], 64)
    w3 = conv_like(ks[6], 256, 64)                             # Linear(64,256)
    b3 = 0.05 * jax.random.normal(ks[7], (256,), jnp.float32)
    bn3 = bn_like(ks[8], 256)
    return ((w1, b1, bn1), (w2, b2, bn2), (w3, b3, bn3))


def _reference(x_nchw, params):
    """Pure-JAX f32 reference of the unfused module (eval-mode BN)."""
    B, C, H, W = x_nchw.shape
    x = jnp.transpose(x_nchw, (0, 2, 3, 1)).reshape(B, H * W, C)
    (w1, b1, bn1), (w2, b2, bn2), (w3, b3, bn3) = params
    s1, t1 = _fold_bn(*bn1)
    s2, t2 = _fold_bn(*bn2)
    s3, t3 = _fold_bn(*bn3)
    h1 = jnp.dot(x, w1.T, precision=_HP) + b1
    h1 = h1 * s1 + t1
    h2 = jnp.dot(h1, w2.T, precision=_HP) + b2
    h2 = jnp.maximum(h2 * s2 + t2, 0.0)
    pooled = jnp.mean(h2, axis=1)
    out = jnp.dot(pooled, w3.T, precision=_HP) + b3
    return jnp.maximum(out * s3 + t3, 0.0)


if __name__ == "__main__":
    key = jax.random.PRNGKey(0)

    # (B, C, H, W) configs exercising all kernel paths:
    #   (16, 4, 16, 16): small C  -> VPU FMA path, flat (B, C*HW) layout (HW % 128 == 0)
    #   ( 8, 40,  8,  8): C >= 32 -> batched-MXU contraction path, 3-D layout
    #   ( 8, 4, 10, 10): HW not lane-aligned -> 3-D fallback, VPU path
    configs = [(16, 4, 16, 16), (8, 40, 8, 8), (8, 4, 10, 10)]

    for (B, C, H, W) in configs:
        key, k_x, k_p = jax.random.split(key, 3)
        x = jax.random.normal(k_x, (B, C, H, W), dtype=jnp.float32)
        params = make_params(C, k_p)

        out = jax.block_until_ready(patch_encoder(x, params))
        ref = _reference(x, params)

        assert out.shape == (B, 256), (out.shape, (B, C, H, W))
        err = float(jnp.max(jnp.abs(out - ref)))
        assert jnp.allclose(out, ref, atol=1e-4, rtol=1e-4), ((B, C, H, W), err)

    print("KERNEL_OK")
</pallas_src>

<mosaic_0001>
module attributes {stable_mosaic.version = 11 : i64} {
  func.func @_patch_encoder_kernel(%arg0: i32, %arg1: memref<16x1024xf32, #tpu.memory_space<vmem>>, %arg2: memref<64x4xf32, #tpu.memory_space<vmem>>, %arg3: memref<64x1xf32, #tpu.memory_space<vmem>>, %arg4: memref<64x256xf32, #tpu.memory_space<vmem>>, %arg5: memref<1x256xf32, #tpu.memory_space<vmem>>, %arg6: memref<16x256xf32, #tpu.memory_space<vmem>>) attributes {dimension_semantics = [#tpu.dimension_semantics<parallel>], iteration_bounds = array<i64: 1>, scalar_prefetch = 0 : i64, scratch_operands = 0 : i64, tpu.core_type = #tpu.core_type<tc>, window_params = [{transform_indices = @transform_0, window_bounds = array<i64: 16, 1024>}, {pipeline_mode = #tpu.pipeline_mode<synchronous>, transform_indices = @transform_1, window_bounds = array<i64: 64, 4>}, {pipeline_mode = #tpu.pipeline_mode<synchronous>, transform_indices = @transform_2, window_bounds = array<i64: 64, 1>}, {pipeline_mode = #tpu.pipeline_mode<synchronous>, transform_indices = @transform_3, window_bounds = array<i64: 64, 256>}, {pipeline_mode = #tpu.pipeline_mode<synchronous>, transform_indices = @transform_4, window_bounds = array<i64: 1, 256>}, {transform_indices = @transform_5, window_bounds = array<i64: 16, 256>}]} {
    %c0 = arith.constant 0 : index
    %c0_0 = arith.constant 0 : index
    %0 = vector.load %arg2[%c0, %c0_0] : memref<64x4xf32, #tpu.memory_space<vmem>>, vector<64x4xf32>
    %c0_1 = arith.constant 0 : index
    %c0_2 = arith.constant 0 : index
    %1 = vector.load %arg3[%c0_1, %c0_2] : memref<64x1xf32, #tpu.memory_space<vmem>>, vector<64x1xf32>
    %2 = vector.shape_cast %1 : vector<64x1xf32> to vector<1x64x1xf32>
    %3 = vector.extract_strided_slice %0 {offsets = [0, 0], sizes = [64, 1], strides = [1, 1]} : vector<64x4xf32> to vector<64x1xf32>
    %4 = vector.shape_cast %3 : vector<64x1xf32> to vector<1x64x1xf32>
    %5 = vector.extract_strided_slice %0 {offsets = [0, 1], sizes = [64, 1], strides = [1, 1]} : vector<64x4xf32> to vector<64x1xf32>
    %6 = vector.shape_cast %5 : vector<64x1xf32> to vector<1x64x1xf32>
    %7 = vector.extract_strided_slice %0 {offsets = [0, 2], sizes = [64, 1], strides = [1, 1]} : vector<64x4xf32> to vector<64x1xf32>
    %8 = vector.shape_cast %7 : vector<64x1xf32> to vector<1x64x1xf32>
    %9 = vector.extract_strided_slice %0 {offsets = [0, 3], sizes = [64, 1], strides = [1, 1]} : vector<64x4xf32> to vector<64x1xf32>
    %10 = vector.shape_cast %9 : vector<64x1xf32> to vector<1x64x1xf32>
    %c0_3 = arith.constant 0 : index
    %c0_4 = arith.constant 0 : index
    %11 = vector.load %arg1[%c0_3, %c0_4] : memref<16x1024xf32, #tpu.memory_space<vmem>>, vector<16x256xf32>
    %12 = vector.shape_cast %11 : vector<16x256xf32> to vector<16x1x256xf32>
    %13 = vector.broadcast %4 : vector<1x64x1xf32> to vector<16x64x256xf32>
    %14 = vector.broadcast %12 : vector<16x1x256xf32> to vector<16x64x256xf32>
    %15 = arith.mulf %13, %14 : vector<16x64x256xf32>
    %c0_5 = arith.constant 0 : index
    %c256 = arith.constant 256 : index
    %16 = vector.load %arg1[%c0_5, %c256] : memref<16x1024xf32, #tpu.memory_space<vmem>>, vector<16x256xf32>
    %17 = vector.shape_cast %16 : vector<16x256xf32> to vector<16x1x256xf32>
    %18 = vector.broadcast %6 : vector<1x64x1xf32> to vector<16x64x256xf32>
    %19 = vector.broadcast %17 : vector<16x1x256xf32> to vector<16x64x256xf32>
    %20 = arith.mulf %18, %19 : vector<16x64x256xf32>
    %21 = arith.addf %15, %20 : vector<16x64x256xf32>
    %c0_6 = arith.constant 0 : index
    %c512 = arith.constant 512 : index
    %22 = vector.load %arg1[%c0_6, %c512] : memref<16x1024xf32, #tpu.memory_space<vmem>>, vector<16x256xf32>
    %23 = vector.shape_cast %22 : vector<16x256xf32> to vector<16x1x256xf32>
    %24 = vector.broadcast %8 : vector<1x64x1xf32> to vector<16x64x256xf32>
    %25 = vector.broadcast %23 : vector<16x1x256xf32> to vector<16x64x256xf32>
    %26 = arith.mulf %24, %25 : vector<16x64x256xf32>
    %27 = arith.addf %21, %26 : vector<16x64x256xf32>
    %c0_7 = arith.constant 0 : index
    %c768 = arith.constant 768 : index
    %28 = vector.load %arg1[%c0_7, %c768] : memref<16x1024xf32, #tpu.memory_space<vmem>>, vector<16x256xf32>
    %29 = vector.shape_cast %28 : vector<16x256xf32> to vector<16x1x256xf32>
    %30 = vector.broadcast %10 : vector<1x64x1xf32> to vector<16x64x256xf32>
    %31 = vector.broadcast %29 : vector<16x1x256xf32> to vector<16x64x256xf32>
    %32 = arith.mulf %30, %31 : vector<16x64x256xf32>
    %33 = arith.addf %27, %32 : vector<16x64x256xf32>
    %34 = vector.broadcast %2 : vector<1x64x1xf32> to vector<16x64x256xf32>
    %35 = arith.addf %33, %34 : vector<16x64x256xf32>
    %cst = arith.constant 0.000000e+00 : f32
    %36 = vector.broadcast %cst : f32 to vector<16x64x256xf32>
    %37 = arith.maximumf %35, %36 : vector<16x64x256xf32>
    %cst_8 = arith.constant dense<0.000000e+00> : vector<16x64xf32>
    %38 = vector.multi_reduction <add>, %37, %cst_8 [2] : vector<16x64x256xf32> to vector<16x64xf32>
    %c0_9 = arith.constant 0 : index
    %c0_10 = arith.constant 0 : index
    %39 = vector.load %arg4[%c0_9, %c0_10] : memref<64x256xf32, #tpu.memory_space<vmem>>, vector<64x256xf32>
    %cst_11 = arith.constant dense<0.000000e+00> : vector<16x256xf32>
    %40 = tpu.matmul %38, %39, %cst_11 {dimension_numbers = #tpu.dot_dimension_numbers<[1], [0], [0], [1], [0, 0, 1, 1], [], []>, precision = #tpu.contract_precision<fp32>} : vector<16x64xf32>, vector<64x256xf32>, vector<16x256xf32> -> vector<16x256xf32>
    %c0_12 = arith.constant 0 : index
    %c0_13 = arith.constant 0 : index
    %41 = vector.load %arg5[%c0_12, %c0_13] : memref<1x256xf32, #tpu.memory_space<vmem>>, vector<1x256xf32>
    %42 = vector.broadcast %41 : vector<1x256xf32> to vector<16x256xf32>
    %43 = arith.addf %40, %42 : vector<16x256xf32>
    %cst_14 = arith.constant 0.000000e+00 : f32
    %44 = vector.broadcast %cst_14 : f32 to vector<16x256xf32>
    %45 = arith.maximumf %43, %44 : vector<16x256xf32>
    %c0_15 = arith.constant 0 : index
    %c0_16 = arith.constant 0 : index
    %46 = vector.load %arg6[%c0_15, %c0_16] : memref<16x256xf32, #tpu.memory_space<vmem>>, vector<16x256xf32>
    tpu.vector_store %arg6[%c0_15, %c0_16], %45 {strides = array<i32>} : memref<16x256xf32, #tpu.memory_space<vmem>>, vector<16x256xf32>,
    return
  }
  func.func @transform_0(%arg0: i32) -> (i32, i32) {
    %c0_i32 = arith.constant 0 : i32
    %c0_i32_0 = arith.constant 0 : i32
    return %arg0, %c0_i32 : i32, i32
  }
  func.func @transform_1(%arg0: i32) -> (i32, i32) {
    %c0_i32 = arith.constant 0 : i32
    %c0_i32_0 = arith.constant 0 : i32
    %c0_i32_1 = arith.constant 0 : i32
    return %c0_i32, %c0_i32_0 : i32, i32
  }
  func.func @transform_2(%arg0: i32) -> (i32, i32) {
    %c0_i32 = arith.constant 0 : i32
    %c0_i32_0 = arith.constant 0 : i32
    %c0_i32_1 = arith.constant 0 : i32
    return %c0_i32, %c0_i32_0 : i32, i32
  }
  func.func @transform_3(%arg0: i32) -> (i32, i32) {
    %c0_i32 = arith.constant 0 : i32
    %c0_i32_0 = arith.constant 0 : i32
    %c0_i32_1 = arith.constant 0 : i32
    return %c0_i32, %c0_i32_0 : i32, i32
  }
  func.func @transform_4(%arg0: i32) -> (i32, i32) {
    %c0_i32 = arith.constant 0 : i32
    %c0_i32_0 = arith.constant 0 : i32
    %c0_i32_1 = arith.constant 0 : i32
    return %c0_i32, %c0_i32_0 : i32, i32
  }
  func.func @transform_5(%arg0: i32) -> (i32, i32) {
    %c0_i32 = arith.constant 0 : i32
    %c0_i32_0 = arith.constant 0 : i32
    return %arg0, %c0_i32 : i32, i32
  }
}

</mosaic_0001>

<bundles_post_ra>
// kernel: tpu_custom_call.1
= control target key start
LH: loop header
LB: loop body
LE: loop exit
PB: predicated region body
PF: predicated region fallthrough
CT: control target
= control target key end

     0   :  { %10 = vsyncpa [#allocation3], 0  ;;  %s8861_s0 = inlined_call_operand.vmem [shape: f32[16,1024], index: 0, kind: input, shape index: {}]   ;;  %s8862_s1 = inlined_call_operand.vmem [shape: f32[64,4], index: 1, kind: input, shape index: {}]   ;;  %s8863_s2 = inlined_call_operand.vmem [shape: f32[64,1], index: 2, kind: input, shape index: {}]   ;;  %s8864_s3 = inlined_call_operand.hbm [shape: f32[64,256], index: 3, kind: input, shape index: {}]   ;;  %s8865_s4 = inlined_call_operand.vmem [shape: f32[1,256], index: 4, kind: input, shape index: {}]   ;;  %s8866_s5 = inlined_call_operand.hbm [shape: f32[16,256], index: 5, kind: output, shape index: {}]  }
   0x1   :  { %11 = vsyncpa [#allocation4], 0  ;;  %s22_s20 = sshll.u32 %s8864_s3, 4  ;;  %s4420_s21 = smov [#allocation2]   ;;  %s23_s20 = int_to_ptr.hbm [resolvable:$true] %s22_s20 }
   0x2   :  { %s24_s22 = sshll.u32 %s4420_s21, 4  ;;  %s4421_s23 = smov 256   ;;  %s25_s22 = int_to_ptr.vmem [resolvable:$true] %s24_s22 }
   0x3   :  { %s4422_s24 = smov 16  }
   0x4   :  { %30 = dma.hbm_to_vmem [thread:$0]  %s23_s20, 2048, %s25_s22, [#allocation3], %s4421_s23, %s4421_s23, %s4422_s24  }
   0x5   :  { %4416 = dma.done.wait [#allocation3], 2048  }
   0x6   :  { %4417 = vsyncadd [#allocation3], 4294965248  ;;  %v4423_v0 = vmov 1   ;;  %v4424_v1 = vmov 0   ;;  %v41_v2 = vld [vmem:[%s8862_s1 + $0x20] sm:$0xff]  ;;  %v39_v3 = vld [vmem:[%s8862_s1 + $0x10] sm:$0xff] }
   0x7   :  { %4341 = vset.pattern.permute.xlu0 %v4423_v0  ;;  %4339 = vset.pattern.permute.xlu2 %v4424_v1  ;;  %v38_v4 = vld [vmem:[%s8862_s1 + $0x8] sm:$0xff]  ;;  %v40_v6 = vld [vmem:[%s8862_s1 + $0x18] sm:$0xff]  ;;  %v43_v7 = vld [vmem:[%s8862_s1 + $0x30] sm:$0xff]  ;;  %v4425_v10 = vmov 2   ;;  %v4426_v11 = vmov 3   ;;  %vm65_vm0 = vcmask 1041409  }
   0x8   :  { %4338 = vset.pattern.permute.xlu1 %v4424_v1  ;;  %123 = vperm.xlu2 %4339, %v41_v2   ;;  %v42_v5 = vld [vmem:[%s8862_s1 + $0x28] sm:$0xff]  ;;  %v44_v8 = vld [vmem:[%s8862_s1 + $0x38] sm:$0xff]  ;;  %v37_v9 = vld [vmem:[%s8862_s1] sm:$0xff]  ;;  %vm68_vm1 = vcmask 1042434   ;;  %vm63_vm2 = vcmask 1040384   ;;  %vm71_vm3 = vcmask 1043459  }
   0x9   :  { %113 = vperm.xlu1 %4338, %v39_v3   ;;  %506 = vperm.xlu0 %4341, %v38_v4   ;;  %v46_v12 = vld [vmem:[%s8863_s2 + $0x8] sm:$0xff]  ;;  %v51_v13 = vld [vmem:[%s8863_s2 + $0x30] sm:$0xff]  ;;  %v45_v14 = vld [vmem:[%s8863_s2] sm:$0xff]  ;;  %vm74_vm4 = vcmask 1044484   ;;  %vm77_vm5 = vcmask 1045509   ;;  %vm3496_vm6 = vcmask 130112  }
   0xa   :  { %v47_v16 = vld [vmem:[%s8863_s2 + $0x10] sm:$0xff]  ;;  %v48_v17 = vld [vmem:[%s8863_s2 + $0x18] sm:$0xff]  ;;  %v54_v19 = vld [vmem:[%s8861_s0 + $0x8] sm:$0xff]  ;;  %vm80_vm7 = vcmask 1046534   ;;  %vm3500_vm8 = vcmask 195712   ;;  %vm83_vm9 = vcmask 1046528  }
   0xb   :  { %v49_v20 = vld [vmem:[%s8863_s2 + $0x20] sm:$0xff]  ;;  %v50_v21 = vld [vmem:[%s8863_s2 + $0x28] sm:$0xff]  ;;  %v4523_v23 = vrot.slane %v54_v19, 7  ;;  %v462_v24 = vld [vmem:[%s8861_s0 + $0x18] sm:$0xff]  ;;  %vm3504_vm10 = vcmask 261312   ;;  %vm3508_vm11 = vcmask 326912  }
   0xc   :  { %v4531_v25 = vld [vmem:[%s8861_s0] sm:$0xff]  ;;  %v4533_v26 = vrot.slane %v462_v24, 7  ;;  %v4538_v27 = vld [vmem:[%s8861_s0 + $0x10] sm:$0xff]  ;;  %v1110_v29 = vld [vmem:[%s8861_s0 + $0x28] sm:$0xff]  ;;  %vm3512_vm12 = vcmask 392512   ;;  %vm3516_vm13 = vcmask 458112  }
   0xd   :  { %9426 = vst [vmem:[#allocation11_spill] sm:$0xff] %v4523_v23  ;;  %v66_v28 = vsel %vm65_vm0, %v4531_v25, %v4523_v23  ;;  %v69_v30 = vsel %vm68_vm1, %v4531_v25, %v4523_v23  ;;  %v52_v31 = vld [vmem:[%s8863_s2 + $0x38] sm:$0xff]  ;;  %v64_v37 = vsel %vm63_vm2, %v4531_v25, %v4523_v23  ;;  %v4564_v38 = vrot.slane %v1110_v29, 7  ;;  %v4569_v40 = vld [vmem:[%s8861_s0 + $0x20] sm:$0xff]  ;;  %s4317_s20 = sshll.u32 %s8866_s5, 4  ;;  %s4318_s20 = int_to_ptr.hbm [resolvable:$true] %s4317_s20 }
   0xe   :  { %9427 = vst [vmem:[#allocation12_spill] sm:$0xff] %v4533_v26  ;;  %v67_v33 = vrot.slane %v66_v28, 1  ;;  %v472_v34 = vsel %vm65_vm0, %v4538_v27, %v4533_v26  ;;  %v70_v39 = vrot.slane %v69_v30, 2  ;;  %v471_v41 = vsel %vm63_vm2, %v4538_v27, %v4533_v26 }
   0xf   :  { %9428 = vst [vmem:[#allocation13_spill] sm:$0xff] %v4538_v27  ;;  %v473_v42 = vrot.slane %v472_v34, 1  ;;  %v474_v43 = vsel %vm68_vm1, %v4538_v27, %v4533_v26  ;;  %v4577_v44 = vperm.slane %v64_v37, 0  ;;  %v4579_v45 = vperm.slane %v64_v37, 1 }
  0x10   :  { %128 = vperm.xlu2 %4339, %v42_v5   ;;  %9432 = vst [vmem:[#allocation17_spill] sm:$0xff] %v4564_v38  ;;  %v4581_v46 = vperm.slane %v67_v33, 0  ;;  %v4583_v47 = vperm.slane %v67_v33, 1  ;;  %v1120_v48 = vsel %vm65_vm0, %v4569_v40, %v4564_v38  ;;  %v4588_v49 = vperm.slane %v70_v39, 0 }
  0x11   :  { %118 = vperm.xlu1 %4338, %v40_v6   ;;  %526 = vperm.xlu0 %4341, %v43_v7   ;;  %9433 = vst [vmem:[#allocation18_spill] sm:$0xff] %v4569_v40  ;;  %v4590_v50 = vperm.slane %v70_v39, 1  ;;  %v4592_v51 = vperm.slane %v471_v41, 0  ;;  %v475_v52 = vrot.slane %v474_v43, 2  ;;  %v4594_v53 = vperm.slane %v471_v41, 1 }
  0x12   :  { %9434 = vst [vmem:[#allocation19_spill] sm:$0xff] %v4581_v46  ;;  %v4596_v54 = vperm.slane %v473_v42, 0  ;;  %v4598_v55 = vperm.slane %v473_v42, 1  ;;  %v1122_v56 = vsel %vm68_vm1, %v4569_v40, %v4564_v38  ;;  %v1119_v58 = vsel %vm63_vm2, %v4569_v40, %v4564_v38 }
  0x13   :  { %9435 = vst [vmem:[#allocation20_spill] sm:$0xff] %v4583_v47  ;;  %v1121_v59 = vrot.slane %v1120_v48, 1  ;;  %vm3520_vm14 = vcmask 523712   ;;  %vm3753_vm15 = vcmask 1047559  }
  0x14   :  { %9436 = vst [vmem:[#allocation21_spill] sm:$0xff] %v4588_v49 }
  0x15   :  { %9437 = vst [vmem:[#allocation22_spill] sm:$0xff] %v4590_v50  ;;  %v4669_v19 = vperm.slane %v1121_v59, 1 }
  0x18   :  { %4340 = vset.pattern.permute.xlu2 %v4423_v0 }
  0x19   :  { %138 = vperm.xlu1 %4338, %v44_v8   ;;  %4344 = vset.pattern.permute.xlu0 %v4425_v10 }
  0x1a   :  { %502 = vperm.xlu2 %4340, %v37_v9   ;;  %1154 = vperm.xlu0 %4344, %v38_v4  }
  0x21   :  { %4342 = vset.pattern.permute.xlu1 %v4423_v0 }
  0x22   :  { %510 = vperm.xlu1 %4342, %v39_v3   ;;  %514 = vperm.xlu2 %4340, %v40_v6  }
  0x23   :  { %1174 = vperm.xlu0 %4344, %v43_v7  }
  0x2a   :  { %518 = vperm.xlu1 %4342, %v41_v2   ;;  %522 = vperm.xlu2 %4340, %v42_v5  }
  0x2b   :  { %4347 = vset.pattern.permute.xlu0 %v4426_v11 }
  0x2c   :  { %1802 = vperm.xlu0 %4347, %v38_v4  }
  0x32   :  { %530 = vperm.xlu1 %4342, %v44_v8   ;;  %4343 = vset.pattern.permute.xlu2 %v4425_v10 }
  0x33   :  { %1150 = vperm.xlu2 %4343, %v37_v9  }
  0x34   :  { %1822 = vperm.xlu0 %4347, %v43_v7  }
  0x3a   :  { %4345 = vset.pattern.permute.xlu1 %v4425_v10  ;;  %v4650_v10 = vperm.slane %v1119_v58, 0 }
  0x3b   :  { %1158 = vperm.xlu1 %4345, %v39_v3   ;;  %1162 = vperm.xlu2 %4343, %v40_v6  }
  0x3c   :  { %4349 = vset.pattern.permute.xlu0 %v4424_v1 }
  0x3d   :  { %103 = vperm.xlu0 %4349, %v37_v9  }
  0x43   :  { %1166 = vperm.xlu1 %4345, %v41_v2   ;;  %1170 = vperm.xlu2 %4343, %v42_v5  }
  0x45   :  { %108 = vperm.xlu0 %4349, %v38_v4  }
  0x4b   :  { %1178 = vperm.xlu1 %4345, %v44_v8   ;;  %4346 = vset.pattern.permute.xlu2 %v4426_v11 }
  0x4c   :  { %1798 = vperm.xlu2 %4346, %v37_v9  }
  0x4d   :  { %133 = vperm.xlu0 %4349, %v43_v7   ;;  %v1123_v7 = vrot.slane %v1122_v56, 2  ;;  %v4716_v56 = vld [vmem:[%s8861_s0 + $0x30] sm:$0xff] }
  0x4e   :  { %9453 = vst [vmem:[#allocation38_spill] sm:$0xff] %v4716_v56 }
  0x4f   :  { %v4687_v30 = vperm.slane %v1123_v7, 0 }
  0x51   :  { %9448 = vst [vmem:[#allocation33_spill] sm:$0xff] %v4687_v30 }
  0x53   :  { %4348 = vset.pattern.permute.xlu1 %v4426_v11 }
  0x54   :  { %1806 = vperm.xlu1 %4348, %v39_v3   ;;  %1810 = vperm.xlu2 %4346, %v40_v6   ;;  %v4640_v6 = vperm.slane %v475_v52, 1 }
  0x55   :  { %2412 = vperm.xlu0 %4349, %v46_v12   ;;  %v4654_v12 = vperm.slane %v1119_v58, 1 }
  0x56   :  { %9442 = vst [vmem:[#allocation27_spill] sm:$0xff] %v4640_v6 }
  0x5c   :  { %1814 = vperm.xlu1 %4348, %v41_v2   ;;  %1818 = vperm.xlu2 %4346, %v42_v5   ;;  %v4638_v5 = vperm.slane %v475_v52, 0 }
  0x5d   :  { %2437 = vperm.xlu0 %4349, %v51_v13  }
  0x5e   :  { %9441 = vst [vmem:[#allocation26_spill] sm:$0xff] %v4638_v5 }
  0x62   :  { %v4500_v15 = vpop.permute.xlu2 %123 }
  0x63   :  { %9423 = vst [vmem:[#allocation8_spill] sm:$0xff] %v4500_v15  ;;  %v4610_v60 = vmul.f32 %v4577_v44, %v4500_v15  ;;  %v4614_v61 = vmul.f32 %v4579_v45, %v4500_v15  ;;  %v4622_v0 = vmul.f32 %v4581_v46, %v4500_v15  ;;  %v4630_v2 = vmul.f32 %v4588_v49, %v4500_v15 }
  0x64   :  { %1826 = vperm.xlu1 %4348, %v44_v8   ;;  %4350 = vset.pattern.permute.xlu2 %v4424_v1  ;;  %v4634_v3 = vmul.f32 %v4590_v50, %v4500_v15 }
  0x65   :  { %2407 = vperm.xlu2 %4350, %v45_v14  }
  0x6a   :  { %v4509_v18 = vpop.permute.xlu2 %128 }
  0x6b   :  { %9424 = vst [vmem:[#allocation9_spill] sm:$0xff] %v4509_v18  ;;  %v215_v4 = vmul.f32 %v4577_v44, %v4509_v18  ;;  %v216_v11 = vmul.f32 %v4579_v45, %v4509_v18  ;;  %v232_v24 = vmul.f32 %v4583_v47, %v4509_v18 }
  0x6c   :  { %4351 = vset.pattern.permute.xlu1 %v4424_v1  ;;  %v4626_v1 = vmul.f32 %v4583_v47, %v4500_v15 }
  0x6d   :  { %2417 = vperm.xlu1 %4351, %v47_v16   ;;  %2422 = vperm.xlu2 %4350, %v48_v17   ;;  %v4664_v16 = vperm.slane %v1121_v59, 0  ;;  %v1758_v17 = vld [vmem:[%s8861_s0 + $0x38] sm:$0xff] }
  0x6e   :  { %v4703_v42 = vrot.slane %v1758_v17, 7 }
  0x70   :  { %9452 = vst [vmem:[#allocation37_spill] sm:$0xff] %v4703_v42 }
  0x74   :  { %v4521_v22 = vpop.permute.xlu2 %502 }
  0x75   :  { %9425 = vst [vmem:[#allocation10_spill] sm:$0xff] %v4521_v22  ;;  %2427 = vperm.xlu1 %4351, %v49_v20   ;;  %2432 = vperm.xlu2 %4350, %v50_v21   ;;  %v4644_v8 = vmul.f32 %v4592_v51, %v4521_v22  ;;  %v4648_v9 = vmul.f32 %v4594_v53, %v4521_v22 }
  0x76   :  { %v4658_v13 = vmul.f32 %v4596_v54, %v4521_v22  ;;  %v4662_v14 = vmul.f32 %v4598_v55, %v4521_v22  ;;  %v231_v21 = vmul.f32 %v4581_v46, %v4509_v18 }
  0x77   :  { %9443 = vst [vmem:[#allocation28_spill] sm:$0xff] %v4644_v8  ;;  %v1768_v8 = vsel %vm65_vm0, %v4716_v56, %v4703_v42 }
  0x78   :  { %9444 = vst [vmem:[#allocation29_spill] sm:$0xff] %v4648_v9 }
  0x79   :  { %9445 = vst [vmem:[#allocation30_spill] sm:$0xff] %v4658_v13 }
  0x7a   :  { %9446 = vst [vmem:[#allocation31_spill] sm:$0xff] %v4662_v14 }
  0x7b   :  { %v4552_v32 = vpop.permute.xlu1 %113  ;;  %v4559_v36 = vpop.permute.xlu0 %506 }
  0x7c   :  { %9429 = vst [vmem:[#allocation14_spill] sm:$0xff] %v4552_v32  ;;  %v4557_v35 = vpop.permute.xlu2 %514  ;;  %v4673_v20 = vmul.f32 %v4577_v44, %v4552_v32  ;;  %v4681_v28 = vmul.f32 %v4592_v51, %v4559_v36  ;;  %v4685_v29 = vmul.f32 %v4579_v45, %v4552_v32  ;;  %v4693_v33 = vmul.f32 %v4594_v53, %v4559_v36 }
  0x7d   :  { %9430 = vst [vmem:[#allocation15_spill] sm:$0xff] %v4557_v35  ;;  %2442 = vperm.xlu1 %4351, %v52_v31   ;;  %v4689_v31 = vperm.slane %v1123_v7, 1  ;;  %v603_v34 = vmul.f32 %v4592_v51, %v4557_v35  ;;  %v604_v37 = vmul.f32 %v4594_v53, %v4557_v35  ;;  %v619_v39 = vmul.f32 %v4596_v54, %v4557_v35 }
  0x7e   :  { %9431 = vst [vmem:[#allocation16_spill] sm:$0xff] %v4559_v36  ;;  %v620_v48 = vmul.f32 %v4598_v55, %v4557_v35  ;;  %v4711_v52 = vmul.f32 %v4581_v46, %v4552_v32  ;;  %v4734_v40 = vmul.f32 %v4583_v47, %v4552_v32  ;;  %v4738_v38 = vmul.f32 %v4588_v49, %v4552_v32 }
  0x7f   :  { %9447 = vst [vmem:[#allocation32_spill] sm:$0xff] %v4681_v28  ;;  %v4750_v28 = vmul.f32 %v4596_v54, %v4559_v36  ;;  %v4754_v14 = vmul.f32 %v4598_v55, %v4559_v36 }
  0x80   :  { %9449 = vst [vmem:[#allocation34_spill] sm:$0xff] %v4689_v31 }
  0x81   :  { %9450 = vst [vmem:[#allocation35_spill] sm:$0xff] %v4693_v33  ;;  %v4742_v33 = vmul.f32 %v4590_v50, %v4552_v32 }
  0x82   :  { %9457 = vst [vmem:[#allocation42_spill] sm:$0xff] %v4750_v28 }
  0x83   :  { %v4603_v57 = vpop.permute.xlu1 %118  ;;  %v4618_v63 = vpop.permute.xlu0 %526  ;;  %9458 = vst [vmem:[#allocation43_spill] sm:$0xff] %v4754_v14 }
  0x84   :  { %9438 = vst [vmem:[#allocation23_spill] sm:$0xff] %v4603_v57  ;;  %v4616_v62 = vpop.permute.xlu2 %522  ;;  %v211_v43 = vmul.f32 %v4577_v44, %v4603_v57  ;;  %v212_v58 = vmul.f32 %v4579_v45, %v4603_v57  ;;  %v227_v7 = vmul.f32 %v4581_v46, %v4603_v57  ;;  %v228_v17 = vmul.f32 %v4583_v47, %v4603_v57 }
  0x85   :  { %9439 = vst [vmem:[#allocation24_spill] sm:$0xff] %v4616_v62  ;;  %v607_v59 = vmul.f32 %v4592_v51, %v4616_v62  ;;  %v608_v18 = vmul.f32 %v4594_v53, %v4616_v62  ;;  %v4746_v57 = vmul.f32 %v4592_v51, %v4618_v63  ;;  %v623_v13 = vmul.f32 %v4596_v54, %v4616_v62 }
  0x86   :  { %9440 = vst [vmem:[#allocation25_spill] sm:$0xff] %v4618_v63  ;;  %v859_v9 = vadd.f32 %v603_v34, %v211_v43  ;;  %v4763_v32 = vmul.f32 %v4594_v53, %v4618_v63  ;;  %v860_v28 = vadd.f32 %v604_v37, %v212_v58  ;;  %v875_v26 = vadd.f32 %v619_v39, %v227_v7 }
  0x87   :  { %9456 = vst [vmem:[#allocation41_spill] sm:$0xff] %v4746_v57  ;;  %v624_v57 = vmul.f32 %v4598_v55, %v4616_v62  ;;  %v4767_v27 = vadd.f32 %v607_v59, %v215_v4  ;;  %v876_v14 = vadd.f32 %v620_v48, %v228_v17  ;;  %v1767_v34 = vsel %vm63_vm2, %v4716_v56, %v4703_v42 }
  0x88   :  { %9459 = vst [vmem:[#allocation44_spill] sm:$0xff] %v4763_v32  ;;  %v4772_v43 = vadd.f32 %v608_v18, %v216_v11  ;;  %v4776_v22 = vmul.f32 %v4596_v54, %v4618_v63  ;;  %v4780_v32 = vmul.f32 %v4598_v55, %v4618_v63  ;;  %v1769_v62 = vrot.slane %v1768_v8, 1 }
  0x89   :  { %v4784_v4 = vmul.f32 %v4638_v5, %v4559_v36  ;;  %v4788_v37 = vmul.f32 %v4640_v6, %v4559_v36  ;;  %v4790_v39 = vadd.f32 %v623_v13, %v231_v21  ;;  %v4804_v48 = vadd.f32 %v624_v57, %v232_v24 }
  0x8a   :  { %9460 = vst [vmem:[#allocation45_spill] sm:$0xff] %v4776_v22  ;;  %v4816_v59 = vperm.slane %v1767_v34, 0  ;;  %v4826_v24 = vperm.slane %v1767_v34, 1 }
  0x8b   :  { %v4701_v41 = vpop.permute.xlu1 %138  ;;  %9461 = vst [vmem:[#allocation46_spill] sm:$0xff] %v4780_v32 }
  0x8c   :  { %9451 = vst [vmem:[#allocation36_spill] sm:$0xff] %v4701_v41  ;;  %v4728_v35 = vpop.permute.xlu0 %1154  ;;  %v4794_v18 = vmul.f32 %v4577_v44, %v4701_v41  ;;  %v4798_v11 = vmul.f32 %v4579_v45, %v4701_v41  ;;  %v4802_v8 = vmul.f32 %v4581_v46, %v4701_v41  ;;  %v4820_v7 = vmul.f32 %v4583_v47, %v4701_v41 }
  0x8d   :  { %v4726_v15 = vpop.permute.xlu2 %1150  ;;  %9455 = vst [vmem:[#allocation40_spill] sm:$0xff] %v4728_v35  ;;  %v4830_v36 = vmul.f32 %v4650_v10, %v4728_v35  ;;  %v4834_v63 = vmul.f32 %v4654_v12, %v4728_v35 }
  0x8e   :  { %9454 = vst [vmem:[#allocation39_spill] sm:$0xff] %v4726_v15  ;;  %v4810_v13 = vmul.f32 %v4650_v10, %v4726_v15  ;;  %v4814_v21 = vmul.f32 %v4654_v12, %v4726_v15  ;;  %v4838_v32 = vmul.f32 %v4664_v16, %v4726_v15  ;;  %v4842_v22 = vmul.f32 %v4669_v19, %v4726_v15 }
  0x8f   :  { %9462 = vst [vmem:[#allocation47_spill] sm:$0xff] %v4784_v4  ;;  %v1770_v4 = vsel %vm68_vm1, %v4716_v56, %v4703_v42  ;;  %v4867_v56 = vmul.f32 %v4590_v50, %v4701_v41  ;;  %v4873_v42 = vmul.f32 %v4664_v16, %v4728_v35 }
  0x90   :  { %9463 = vst [vmem:[#allocation48_spill] sm:$0xff] %v4788_v37  ;;  %v4844_v37 = vperm.slane %v1769_v62, 0  ;;  %v1771_v47 = vrot.slane %v1770_v4, 2 }
  0x91   :  { %9465 = vst [vmem:[#allocation50_spill] sm:$0xff] %v4810_v13  ;;  %v4877_v13 = vmul.f32 %v4669_v19, %v4728_v35 }
  0x92   :  { %9466 = vst [vmem:[#allocation51_spill] sm:$0xff] %v4814_v21  ;;  %v4863_v21 = vmul.f32 %v4588_v49, %v4701_v41  ;;  %v4884_v49 = vmul.f32 %v4687_v30, %v4728_v35  ;;  %v4888_v41 = vmul.f32 %v4689_v31, %v4728_v35 }
  0x93   :  { %9469 = vst [vmem:[#allocation54_spill] sm:$0xff] %v4830_v36  ;;  %v4853_v36 = vperm.slane %v1769_v62, 1 }
  0x94   :  { %v4806_v58 = vpop.permute.xlu1 %510  ;;  %9470 = vst [vmem:[#allocation55_spill] sm:$0xff] %v4834_v63 }
  0x95   :  { %9464 = vst [vmem:[#allocation49_spill] sm:$0xff] %v4806_v58  ;;  %v4822_v17 = vpop.permute.xlu2 %1162  ;;  %v4824_v57 = vpop.permute.xlu0 %1174  ;;  %v601_v34 = vmul.f32 %v4592_v51, %v4806_v58 }
  0x96   :  { %9467 = vst [vmem:[#allocation52_spill] sm:$0xff] %v4822_v17  ;;  %v1251_v63 = vmul.f32 %v4650_v10, %v4822_v17  ;;  %v1252_v15 = vmul.f32 %v4654_v12, %v4822_v17  ;;  %v1268_v62 = vmul.f32 %v4669_v19, %v4822_v17  ;;  %v4904_v4 = vmul.f32 %v4654_v12, %v4824_v57 }
  0x97   :  { %9468 = vst [vmem:[#allocation53_spill] sm:$0xff] %v4824_v57  ;;  %v4880_v46 = vadd.f32 %v601_v34, %v4673_v20  ;;  %v4900_v20 = vmul.f32 %v4650_v10, %v4824_v57 }
  0x98   :  { %9471 = vst [vmem:[#allocation56_spill] sm:$0xff] %v4838_v32  ;;  %v602_v32 = vmul.f32 %v4594_v53, %v4806_v58  ;;  %v4908_v35 = vadd.f32 %v1252_v15, %v860_v28  ;;  %v633_v15 = vmul.f32 %v4638_v5, %v4806_v58 }
  0x99   :  { %9472 = vst [vmem:[#allocation57_spill] sm:$0xff] %v4842_v22  ;;  %v1267_v22 = vmul.f32 %v4664_v16, %v4822_v17  ;;  %v72_v17 = vsel %vm71_vm3, %v4531_v25, %v4523_v23  ;;  %v617_v25 = vmul.f32 %v4596_v54, %v4806_v58 }
  0x9a   :  { %9473 = vst [vmem:[#allocation58_spill] sm:$0xff] %v4844_v37 }
  0x9b   :  { %9474 = vst [vmem:[#allocation59_spill] sm:$0xff] %v4853_v36 }
  0x9c   :  { %9475 = vst [vmem:[#allocation60_spill] sm:$0xff] %v4873_v42  ;;  %v4893_v42 = vadd.f32 %v1251_v63, %v859_v9  ;;  %v4906_v34 = vpop.permute.xlu1 %518  ;;  %v4918_v9 = vadd.f32 %v1268_v62, %v876_v14  ;;  %v4936_v14 = vmul.f32 %v4669_v19, %v4824_v57  ;;  %v4938_v62 = vperm.slane %v1771_v47, 0 }
  0x9d   :  { %9476 = vst [vmem:[#allocation61_spill] sm:$0xff] %v4877_v13  ;;  %v4896_v13 = vadd.f32 %v602_v32, %v4685_v29  ;;  %v618_v32 = vmul.f32 %v4598_v55, %v4806_v58  ;;  %v4916_v63 = vpop.permute.xlu2 %1170  ;;  %v4922_v29 = vmul.f32 %v4664_v16, %v4824_v57  ;;  %v605_v28 = vmul.f32 %v4592_v51, %v4906_v34 }
  0x9e   :  { %9477 = vst [vmem:[#allocation62_spill] sm:$0xff] %v4884_v49  ;;  %v606_v23 = vmul.f32 %v4594_v53, %v4906_v34  ;;  %v73_v49 = vrot.slane %v72_v17, 3  ;;  %v621_v50 = vmul.f32 %v4596_v54, %v4906_v34  ;;  %v4951_v57 = vadd.f32 %v617_v25, %v4711_v52 }
  0x9f   :  { %9478 = vst [vmem:[#allocation63_spill] sm:$0xff] %v4888_v41  ;;  %v4910_v41 = vadd.f32 %v1267_v22, %v875_v26  ;;  %v634_v22 = vmul.f32 %v4640_v6, %v4806_v58  ;;  %v4928_v26 = vpop.permute.xlu0 %1802  ;;  %v622_v58 = vmul.f32 %v4598_v55, %v4906_v34  ;;  %v637_v31 = vmul.f32 %v4638_v5, %v4906_v34 }
  0xa0   :  { %9479 = vst [vmem:[#allocation64_spill] sm:$0xff] %v4900_v20  ;;  %v4944_v20 = vperm.slane %v1771_v47, 1  ;;  %v638_v47 = vmul.f32 %v4640_v6, %v4906_v34  ;;  %v4961_v17 = vadd.f32 %v633_v15, %v4738_v38  ;;  %v4975_v52 = vadd.f32 %v605_v28, %v4610_v60 }
  0xa1   :  { %9480 = vst [vmem:[#allocation65_spill] sm:$0xff] %v4904_v4  ;;  %v1256_v4 = vmul.f32 %v4654_v12, %v4916_v63  ;;  %v4964_v30 = vadd.f32 %v634_v22, %v4742_v33  ;;  %v4978_v25 = vadd.f32 %v606_v23, %v4614_v61  ;;  %v1272_v15 = vmul.f32 %v4669_v19, %v4916_v63 }
  0xa2   :  { %9481 = vst [vmem:[#allocation66_spill] sm:$0xff] %v4906_v34  ;;  %v4994_v60 = vmul.f32 %v4844_v37, %v4928_v26  ;;  %v4997_v23 = vadd.f32 %v621_v50, %v4622_v0  ;;  %v5002_v61 = vperm.slane %v73_v49, 0  ;;  %v5014_v28 = vperm.slane %v73_v49, 1 }
  0xa3   :  { %9482 = vst [vmem:[#allocation67_spill] sm:$0xff] %v4916_v63  ;;  %v4984_v33 = vadd.f32 %v1256_v4, %v4772_v43  ;;  %v5006_v43 = vmul.f32 %v4853_v36, %v4928_v26  ;;  %v5009_v4 = vadd.f32 %v637_v31, %v4630_v2  ;;  %v5022_v0 = vmul.f32 %v4938_v62, %v4928_v26  ;;  %v9502_v31 = vld [vmem:[#allocation13_spill] sm:$0xff] }
  0xa4   :  { %9483 = vst [vmem:[#allocation68_spill] sm:$0xff] %v4918_v9  ;;  %v4968_v9 = vmul.f32 %v4816_v59, %v4928_v26  ;;  %v4990_v22 = vpop.permute.xlu1 %530 }
  0xa5   :  { %9484 = vst [vmem:[#allocation69_spill] sm:$0xff] %v4922_v29  ;;  %v1255_v29 = vmul.f32 %v4650_v10, %v4916_v63 }
  0xa6   :  { %9485 = vst [vmem:[#allocation70_spill] sm:$0xff] %v4928_v26  ;;  %v5018_v50 = vpop.permute.xlu2 %1798 }
  0xa7   :  { %9486 = vst [vmem:[#allocation71_spill] sm:$0xff] %v4936_v14  ;;  %v4954_v14 = vadd.f32 %v618_v32, %v4734_v40  ;;  %v4972_v40 = vmul.f32 %v4826_v24, %v4928_v26  ;;  %v4981_v38 = vadd.f32 %v1255_v29, %v4767_v27  ;;  %v1271_v32 = vmul.f32 %v4664_v16, %v4916_v63  ;;  %v5016_v34 = vpop.permute.xlu0 %1822 }
  0xa8   :  { %9487 = vst [vmem:[#allocation72_spill] sm:$0xff] %v4938_v62  ;;  %v5000_v27 = vadd.f32 %v622_v58, %v4626_v1  ;;  %v5012_v29 = vadd.f32 %v638_v47, %v4634_v3  ;;  %v9498_v1 = vld [vmem:[#allocation10_spill] sm:$0xff]  ;;  %v9501_v3 = vld [vmem:[#allocation12_spill] sm:$0xff]  ;;  %v611_v47 = vmul.f32 %v4592_v51, %v4990_v22  ;;  %v5039_v63 = vmul.f32 %v4944_v20, %v4928_v26 }
  0xa9   :  { %9488 = vst [vmem:[#allocation73_spill] sm:$0xff] %v4944_v20  ;;  %v5026_v58 = vmul.f32 %v4638_v5, %v9498_v1  ;;  %v5030_v2 = vmul.f32 %v4640_v6, %v9498_v1  ;;  %v476_v49 = vsel %vm71_vm3, %v9502_v31, %v9501_v3  ;;  %v612_v1 = vmul.f32 %v4594_v53, %v4990_v22  ;;  %v9505_v51 = vld [vmem:[#allocation14_spill] sm:$0xff]  ;;  %v9521_v62 = vld [vmem:[#allocation28_spill] sm:$0xff] }
  0xaa   :  { %9489 = vst [vmem:[#allocation74_spill] sm:$0xff] %v4961_v17  ;;  %v628_v31 = vmul.f32 %v4598_v55, %v4990_v22  ;;  %v5055_v3 = vmul.f32 %v5002_v61, %v9505_v51  ;;  %v477_v53 = vrot.slane %v476_v49, 3  ;;  %v1910_v55 = vmul.f32 %v4853_v36, %v5018_v50 }
  0xab   :  { %9490 = vst [vmem:[#allocation75_spill] sm:$0xff] %v4964_v30  ;;  %v5042_v30 = vadd.f32 %v1271_v32, %v4790_v39  ;;  %v1893_v39 = vmul.f32 %v4816_v59, %v5018_v50  ;;  %v5063_v32 = vmul.f32 %v5014_v28, %v9505_v51  ;;  %v644_v26 = vmul.f32 %v4640_v6, %v4990_v22 }
  0xac   :  { %9491 = vst [vmem:[#allocation76_spill] sm:$0xff] %v4990_v22  ;;  %v5079_v51 = vmul.f32 %v4826_v24, %v5016_v34  ;;  %v5083_v49 = vmul.f32 %v4844_v37, %v5016_v34  ;;  %v5109_v17 = vperm.slane %v477_v53, 0 }
  0xad   :  { %9492 = vst [vmem:[#allocation77_spill] sm:$0xff] %v5002_v61  ;;  %v5075_v61 = vmul.f32 %v4816_v59, %v5016_v34 }
  0xae   :  { %9493 = vst [vmem:[#allocation78_spill] sm:$0xff] %v5009_v4  ;;  %v9522_v4 = vld [vmem:[#allocation29_spill] sm:$0xff] }
  0xaf   :  { %9494 = vst [vmem:[#allocation79_spill] sm:$0xff] %v5012_v29 }
  0xb0   :  { %9495 = vst [vmem:[#allocation80_spill] sm:$0xff] %v5014_v28  ;;  %v5087_v28 = vmul.f32 %v4853_v36, %v5016_v34 }
  0xb1   :  { %9496 = vst [vmem:[#allocation81_spill] sm:$0xff] %v5016_v34  ;;  %v5107_v34 = vadd.f32 %v644_v26, %v4867_v56  ;;  %v5123_v56 = vpop.permute.xlu0 %103 }
  0xb2   :  { %9497 = vst [vmem:[#allocation82_spill] sm:$0xff] %v5018_v50 }
  0xb3   :  { %9499 = vst [vmem:[#allocation83_spill] sm:$0xff] %v5026_v58  ;;  %v5045_v58 = vadd.f32 %v1272_v15, %v4804_v48  ;;  %v1894_v48 = vmul.f32 %v4826_v24, %v5018_v50  ;;  %v643_v15 = vmul.f32 %v4638_v5, %v4990_v22  ;;  %v5090_v5 = vadd.f32 %v611_v47, %v4794_v18 }
  0xb4   :  { %9500 = vst [vmem:[#allocation84_spill] sm:$0xff] %v5030_v2  ;;  %v627_v2 = vmul.f32 %v4596_v54, %v4990_v22  ;;  %v1909_v54 = vmul.f32 %v4844_v37, %v5018_v50  ;;  %v5093_v22 = vadd.f32 %v612_v1, %v4798_v11  ;;  %v5111_v18 = vperm.slane %v477_v53, 1  ;;  %v5113_v11 = vpop.permute.xlu2 %1810 }
  0xb5   :  { %9503 = vst [vmem:[#allocation13_spill] sm:$0xff] %v5042_v30  ;;  %v5104_v50 = vadd.f32 %v643_v15, %v4863_v21  ;;  %v1899_v26 = vmul.f32 %v4816_v59, %v5113_v11  ;;  %v1915_v47 = vmul.f32 %v4844_v37, %v5113_v11  ;;  %v205_v53 = vmul.f32 %v4577_v44, %v5123_v56  ;;  %v9523_v37 = vld [vmem:[#allocation30_spill] sm:$0xff] }
  0xb6   :  { %9504 = vst [vmem:[#allocation85_spill] sm:$0xff] %v5045_v58  ;;  %v5096_v6 = vadd.f32 %v627_v2, %v4802_v8  ;;  %v1900_v2 = vmul.f32 %v4826_v24, %v5113_v11  ;;  %v206_v15 = vmul.f32 %v4579_v45, %v5123_v56  ;;  %v9520_v58 = vld [vmem:[#allocation20_spill] sm:$0xff] }
  0xb7   :  { %9506 = vst [vmem:[#allocation86_spill] sm:$0xff] %v5055_v3  ;;  %v5101_v3 = vpop.permute.xlu1 %1158  ;;  %v222_v30 = vmul.f32 %v9520_v58, %v5123_v56  ;;  %v853_v29 = vadd.f32 %v9521_v62, %v205_v53 }
  0xb8   :  { %9507 = vst [vmem:[#allocation87_spill] sm:$0xff] %v5063_v32  ;;  %v5099_v32 = vadd.f32 %v628_v31, %v4820_v7  ;;  %v1249_v8 = vmul.f32 %v4650_v10, %v5101_v3  ;;  %v1250_v7 = vmul.f32 %v4654_v12, %v5101_v3  ;;  %v1265_v1 = vmul.f32 %v4664_v16, %v5101_v3 }
  0xb9   :  { %9508 = vst [vmem:[#allocation88_spill] sm:$0xff] %v5083_v49  ;;  %v1266_v21 = vmul.f32 %v4669_v19, %v5101_v3  ;;  %v1916_v31 = vmul.f32 %v4853_v36, %v5113_v11  ;;  %v854_v36 = vadd.f32 %v9522_v4, %v206_v15  ;;  %v9524_v49 = vld [vmem:[#allocation31_spill] sm:$0xff]  ;;  %v5193_v15 = vpop.permute.xlu0 %108 }
  0xba   :  { %9509 = vst [vmem:[#allocation89_spill] sm:$0xff] %v5087_v28  ;;  %v5151_v20 = vadd.f32 %v1250_v7, %v4896_v13  ;;  %v9527_v7 = vld [vmem:[#allocation51_spill] sm:$0xff] }
  0xbb   :  { %9510 = vst [vmem:[#allocation90_spill] sm:$0xff] %v5096_v6  ;;  %v5145_v6 = vadd.f32 %v1900_v2, %v4908_v35  ;;  %v5167_v13 = vadd.f32 %v1266_v21, %v4954_v14  ;;  %v1502_v4 = vadd.f32 %v9527_v7, %v854_v36  ;;  %v9528_v2 = vld [vmem:[#allocation56_spill] sm:$0xff]  ;;  %v9535_v14 = vld [vmem:[#allocation49_spill] sm:$0xff] }
  0xbc   :  { %9511 = vst [vmem:[#allocation91_spill] sm:$0xff] %v5099_v32  ;;  %v5142_v32 = vadd.f32 %v1899_v26, %v4893_v42  ;;  %v5158_v42 = vadd.f32 %v1915_v47, %v4910_v41  ;;  %v9525_v26 = vld [vmem:[#allocation68_spill] sm:$0xff]  ;;  %v9531_v41 = vld [vmem:[#allocation33_spill] sm:$0xff]  ;;  %v5185_v21 = vmul.f32 %v5109_v17, %v9535_v14  ;;  %v5189_v36 = vmul.f32 %v5111_v18, %v9535_v14 }
  0xbd   :  { %9512 = vst [vmem:[#allocation92_spill] sm:$0xff] %v5101_v3  ;;  %v5161_v35 = vadd.f32 %v1916_v31, %v9525_v26  ;;  %v5177_v47 = vmul.f32 %v9531_v41, %v5101_v3 }
  0xbe   :  { %9513 = vst [vmem:[#allocation93_spill] sm:$0xff] %v5104_v50 }
  0xbf   :  { %9514 = vst [vmem:[#allocation94_spill] sm:$0xff] %v5107_v34  ;;  %v9519_v34 = vld [vmem:[#allocation19_spill] sm:$0xff] }
  0xc0   :  { %9515 = vst [vmem:[#allocation95_spill] sm:$0xff] %v5109_v17  ;;  %v221_v50 = vmul.f32 %v9519_v34, %v5123_v56 }
  0xc1   :  { %9516 = vst [vmem:[#allocation96_spill] sm:$0xff] %v5111_v18  ;;  %v9541_v18 = vld [vmem:[#allocation35_spill] sm:$0xff] }
  0xc2   :  { %9517 = vst [vmem:[#allocation97_spill] sm:$0xff] %v5113_v11  ;;  %v5148_v11 = vadd.f32 %v1249_v8, %v4880_v46  ;;  %v869_v28 = vadd.f32 %v9523_v37, %v221_v50  ;;  %v5164_v46 = vadd.f32 %v1265_v1, %v4951_v57  ;;  %v9526_v8 = vld [vmem:[#allocation50_spill] sm:$0xff]  ;;  %v9529_v50 = vld [vmem:[#allocation57_spill] sm:$0xff] }
  0xc3   :  { %9518 = vst [vmem:[#allocation98_spill] sm:$0xff] %v5123_v56  ;;  %v870_v56 = vadd.f32 %v9524_v49, %v222_v30  ;;  %v1501_v62 = vadd.f32 %v9526_v8, %v853_v29  ;;  %v5173_v49 = vpop.permute.xlu1 %1166  ;;  %v9533_v57 = vld [vmem:[#allocation34_spill] sm:$0xff]  ;;  %v5191_v29 = vpop.permute.xlu2 %1818 }
  0xc4   :  { %v1517_v37 = vadd.f32 %v9528_v2, %v869_v28  ;;  %9530 = vst [vmem:[#allocation19_spill] sm:$0xff] %v5173_v49  ;;  %v5181_v1 = vmul.f32 %v9533_v57, %v5101_v3  ;;  %v1903_v26 = vmul.f32 %v4816_v59, %v5191_v29  ;;  %v1904_v8 = vmul.f32 %v4826_v24, %v5191_v29  ;;  %v9542_v3 = vld [vmem:[#allocation42_spill] sm:$0xff] }
  0xc5   :  { %v1518_v30 = vadd.f32 %v9529_v50, %v870_v56  ;;  %9532 = vst [vmem:[#allocation20_spill] sm:$0xff] %v5177_v47  ;;  %v2149_v28 = vadd.f32 %v1893_v39, %v1501_v62  ;;  %v2150_v56 = vadd.f32 %v1894_v48, %v1502_v4  ;;  %v1253_v7 = vmul.f32 %v4650_v10, %v5173_v49  ;;  %v9552_v47 = vld [vmem:[#allocation48_spill] sm:$0xff] }
  0xc6   :  { %9534 = vst [vmem:[#allocation28_spill] sm:$0xff] %v5181_v1  ;;  %v2165_v31 = vadd.f32 %v1909_v54, %v1517_v37  ;;  %v1254_v2 = vmul.f32 %v4654_v12, %v5173_v49  ;;  %v207_v39 = vmul.f32 %v4577_v44, %v5193_v15  ;;  %v208_v48 = vmul.f32 %v4579_v45, %v5193_v15 }
  0xc7   :  { %9536 = vst [vmem:[#allocation29_spill] sm:$0xff] %v5185_v21  ;;  %v2166_v53 = vadd.f32 %v1910_v55, %v1518_v30  ;;  %v223_v54 = vmul.f32 %v9519_v34, %v5193_v15  ;;  %v224_v55 = vmul.f32 %v9520_v58, %v5193_v15  ;;  %v5212_v62 = vadd.f32 %v1903_v26, %v4981_v38  ;;  %v9540_v30 = vld [vmem:[#allocation32_spill] sm:$0xff]  ;;  %v9543_v21 = vld [vmem:[#allocation43_spill] sm:$0xff]  ;;  %v9544_v38 = vld [vmem:[#allocation21_spill] sm:$0xff] }
  0xc8   :  { %9537 = vst [vmem:[#allocation30_spill] sm:$0xff] %v5189_v36  ;;  %v5215_v4 = vadd.f32 %v1904_v8, %v4984_v33  ;;  %v5218_v37 = vadd.f32 %v1253_v7, %v4975_v52  ;;  %v5221_v50 = vadd.f32 %v1254_v2, %v4978_v25  ;;  %v855_v14 = vadd.f32 %v9540_v30, %v207_v39  ;;  %v9545_v33 = vld [vmem:[#allocation22_spill] sm:$0xff]  ;;  %v9547_v39 = vld [vmem:[#allocation55_spill] sm:$0xff] }
  0xc9   :  { %9538 = vst [vmem:[#allocation31_spill] sm:$0xff] %v5191_v29  ;;  %v856_v17 = vadd.f32 %v9541_v18, %v208_v48  ;;  %v871_v36 = vadd.f32 %v9542_v3, %v223_v54  ;;  %v872_v1 = vadd.f32 %v9543_v21, %v224_v55  ;;  %v239_v26 = vmul.f32 %v9544_v38, %v5193_v15  ;;  %v9546_v7 = vld [vmem:[#allocation54_spill] sm:$0xff]  ;;  %v9548_v48 = vld [vmem:[#allocation60_spill] sm:$0xff]  ;;  %v9549_v54 = vld [vmem:[#allocation61_spill] sm:$0xff] }
  0xca   :  { %9539 = vst [vmem:[#allocation68_spill] sm:$0xff] %v5193_v15  ;;  %v240_v8 = vmul.f32 %v9545_v33, %v5193_v15  ;;  %v1269_v52 = vmul.f32 %v4664_v16, %v5173_v49  ;;  %v1270_v25 = vmul.f32 %v4669_v19, %v5173_v49  ;;  %v1503_v2 = vadd.f32 %v9546_v7, %v855_v14  ;;  %v9551_v30 = vld [vmem:[#allocation47_spill] sm:$0xff]  ;;  %v5253_v7 = vpop.permute.xlu0 %133 }
  0xcb   :  { %v1504_v18 = vadd.f32 %v9547_v39, %v856_v17  ;;  %v1519_v3 = vadd.f32 %v9548_v48, %v871_v36  ;;  %v1520_v21 = vadd.f32 %v9549_v54, %v872_v1  ;;  %v5239_v55 = vpop.permute.xlu1 %1178  ;;  %v887_v38 = vadd.f32 %v9551_v30, %v239_v26  ;;  %9553 = vst [vmem:[#allocation51_spill] sm:$0xff] %v5253_v7  ;;  %v5255_v39 = vpop.permute.xlu2 %2407  ;;  %v9558_v48 = vld [vmem:[#allocation44_spill] sm:$0xff] }
  0xcc   :  { %9550 = vst [vmem:[#allocation50_spill] sm:$0xff] %v5239_v55  ;;  %v888_v15 = vadd.f32 %v9552_v47, %v240_v8  ;;  %v5244_v33 = vadd.f32 %v1269_v52, %v4997_v23  ;;  %v5247_v29 = vadd.f32 %v1270_v25, %v5000_v27  ;;  %v2151_v14 = vadd.f32 %v4968_v9, %v1503_v2  ;;  %v9555_v27 = vld [vmem:[#allocation62_spill] sm:$0xff]  ;;  %v9556_v8 = vld [vmem:[#allocation63_spill] sm:$0xff] }
  0xcd   :  { %v2152_v17 = vadd.f32 %v4972_v40, %v1504_v18  ;;  %v2167_v36 = vadd.f32 %v4994_v60, %v1519_v3  ;;  %v2168_v1 = vadd.f32 %v5006_v43, %v1520_v21  ;;  %9554 = vst [vmem:[#allocation56_spill] sm:$0xff] %v5255_v39  ;;  %v1259_v47 = vmul.f32 %v4650_v10, %v5239_v55  ;;  %v9557_v18 = vld [vmem:[#allocation41_spill] sm:$0xff] }
  0xce   :  { %v1260_v23 = vmul.f32 %v4654_v12, %v5239_v55  ;;  %v1535_v26 = vadd.f32 %v9555_v27, %v887_v38  ;;  %v1536_v9 = vadd.f32 %v9556_v8, %v888_v15  ;;  %v2445_v40 = vadd.f32 %v5255_v39, %v2149_v28  ;;  %v9559_v3 = vld [vmem:[#allocation45_spill] sm:$0xff]  ;;  %v9561_v27 = vld [vmem:[#allocation64_spill] sm:$0xff] }
  0xcf   :  { %v2446_v60 = vadd.f32 %v5255_v39, %v2150_v56  ;;  %v2461_v43 = vadd.f32 %v5255_v39, %v2165_v31  ;;  %v2462_v52 = vadd.f32 %v5255_v39, %v2166_v53  ;;  %v217_v25 = vmul.f32 %v4577_v44, %v5253_v7  ;;  %v9560_v44 = vld [vmem:[#allocation46_spill] sm:$0xff] }
  0xd0   :  { %v218_v10 = vmul.f32 %v4579_v45, %v5253_v7  ;;  %v233_v12 = vmul.f32 %v9519_v34, %v5253_v7  ;;  %v234_v15 = vmul.f32 %v9520_v58, %v5253_v7  ;;  %v2701_v38 = vmax.f32 %v2445_v40, 0.0  ;;  %v9562_v40 = vld [vmem:[#allocation65_spill] sm:$0xff] }
  0xd1   :  { %v2702_v28 = vmax.f32 %v2446_v60, 0.0  ;;  %v2717_v2 = vmax.f32 %v2461_v43, 0.0  ;;  %v2718_v56 = vmax.f32 %v2462_v52, 0.0  ;;  %v865_v31 = vadd.f32 %v9557_v18, %v217_v25  ;;  %v9563_v43 = vld [vmem:[#allocation69_spill] sm:$0xff]  ;;  %v9564_v25 = vld [vmem:[#allocation71_spill] sm:$0xff] }
  0xd2   :  { %v866_v53 = vadd.f32 %v9558_v48, %v218_v10  ;;  %v881_v54 = vadd.f32 %v9559_v3, %v233_v12  ;;  %v882_v21 = vadd.f32 %v9560_v44, %v234_v15  ;;  %v5282_v34 = vadd.f32 %v1259_v47, %v5090_v5  ;;  %v5301_v47 = vpop.permute.xlu0 %2412  ;;  %v9568_v44 = vld [vmem:[#allocation88_spill] sm:$0xff] }
  0xd3   :  { %v2957_v30 = vadd.f32 %v2702_v28, %v2701_v38  ;;  %v5279_v45 = vadd.f32 %v2718_v56, %v2717_v2  ;;  %v5285_v58 = vadd.f32 %v1260_v23, %v5093_v22  ;;  %v1513_v8 = vadd.f32 %v9561_v27, %v865_v31  ;;  %v5291_v12 = vpop.permute.xlu1 %1806  ;;  %9566 = vst [vmem:[#allocation33_spill] sm:$0xff] %v5301_v47  ;;  %v5303_v23 = vpop.permute.xlu2 %2422 }
  0xd4   :  { %v1514_v60 = vadd.f32 %v9562_v40, %v866_v53  ;;  %v1529_v52 = vadd.f32 %v9563_v43, %v881_v54  ;;  %v1530_v10 = vadd.f32 %v9564_v25, %v882_v21  ;;  %9565 = vst [vmem:[#allocation57_spill] sm:$0xff] %v5291_v12  ;;  %v2183_v15 = vadd.f32 %v5022_v0, %v1535_v26  ;;  %v9569_v21 = vld [vmem:[#allocation89_spill] sm:$0xff] }
  0xd5   :  { %2958 = vadd.xlane.f32.xlu2 %v2957_v30  ;;  %v2184_v38 = vadd.f32 %v5039_v63, %v1536_v9  ;;  %v1285_v5 = vmul.f32 %v9531_v41, %v5173_v49  ;;  %v5299_v22 = vmul.f32 %v9533_v57, %v5173_v49  ;;  %9567 = vst [vmem:[#allocation34_spill] sm:$0xff] %v5303_v23 }
  0xd6   :  { %v1897_v28 = vmul.f32 %v4816_v59, %v5291_v12  ;;  %v1898_v2 = vmul.f32 %v4826_v24, %v5291_v12  ;;  %v2161_v0 = vadd.f32 %v5075_v61, %v1513_v8  ;;  %v2162_v63 = vadd.f32 %v5079_v51, %v1514_v60  ;;  %v9570_v60 = vld [vmem:[#allocation58_spill] sm:$0xff] }
  0xd7   :  { %v2447_v26 = vadd.f32 %v5301_v47, %v2151_v14  ;;  %v2448_v9 = vadd.f32 %v5301_v47, %v2152_v17  ;;  %v2451_v56 = vadd.f32 %v5303_v23, %v5142_v32  ;;  %v2452_v18 = vadd.f32 %v5303_v23, %v5145_v6 }
  0xd8   :  { %v5318_v31 = vadd.f32 %v1897_v28, %v5148_v11  ;;  %v5321_v48 = vadd.f32 %v1898_v2, %v5151_v20  ;;  %v2467_v61 = vadd.f32 %v5303_v23, %v5158_v42  ;;  %v2468_v51 = vadd.f32 %v5303_v23, %v5161_v35  ;;  %v9572_v28 = vld [vmem:[#allocation59_spill] sm:$0xff]  ;;  %v9573_v2 = vld [vmem:[#allocation78_spill] sm:$0xff] }
  0xd9   :  { %v2703_v14 = vmax.f32 %v2447_v26, 0.0  ;;  %v2704_v17 = vmax.f32 %v2448_v9, 0.0  ;;  %v2707_v53 = vmax.f32 %v2451_v56, 0.0  ;;  %v2708_v3 = vmax.f32 %v2452_v18, 0.0 }
  0xda   :  { %v2723_v32 = vmax.f32 %v2467_v61, 0.0  ;;  %v2724_v54 = vmax.f32 %v2468_v51, 0.0  ;;  %v2177_v6 = vadd.f32 %v9568_v44, %v1529_v52  ;;  %v2178_v11 = vadd.f32 %v9569_v21, %v1530_v10  ;;  %v5342_v26 = vpop.permute.xlu0 %2437 }
  0xdb   :  { %v2960_v30 = vadd.f32 %v2704_v17, %v2703_v14  ;;  %v2966_v27 = vadd.f32 %v2708_v3, %v2707_v53  ;;  %v2463_v20 = vadd.f32 %v5301_v47, %v2167_v36  ;;  %v2464_v8 = vadd.f32 %v5301_v47, %v2168_v1  ;;  %v5337_v25 = vpop.permute.xlu1 %1814  ;;  %9574 = vst [vmem:[#allocation35_spill] sm:$0xff] %v5342_v26  ;;  %v5344_v9 = vpop.permute.xlu2 %2432 }
  0xdc   :  { %v5331_v42 = vadd.f32 %v2724_v54, %v2723_v32  ;;  %v2479_v35 = vadd.f32 %v5301_v47, %v2183_v15  ;;  %v2480_v40 = vadd.f32 %v5301_v47, %v2184_v38  ;;  %v1913_v43 = vmul.f32 %v9570_v60, %v5291_v12  ;;  %9571 = vst [vmem:[#allocation32_spill] sm:$0xff] %v5337_v25 }
  0xdd   :  { %2961 = vadd.xlane.f32.xlu0 %v2960_v30  ;;  %2967 = vadd.xlane.f32.xlu2 %v2966_v27  ;;  %v2719_v52 = vmax.f32 %v2463_v20, 0.0  ;;  %v2720_v10 = vmax.f32 %v2464_v8, 0.0  ;;  %v1914_v36 = vmul.f32 %v9572_v28, %v5291_v12  ;;  %v1541_v1 = vadd.f32 %v1285_v5, %v9573_v2  ;;  %9575 = vst [vmem:[#allocation42_spill] sm:$0xff] %v5344_v9 }
  0xde   :  { %v1901_v15 = vmul.f32 %v4816_v59, %v5337_v25  ;;  %v1902_v38 = vmul.f32 %v4826_v24, %v5337_v25  ;;  %v2735_v56 = vmax.f32 %v2479_v35, 0.0  ;;  %v2736_v18 = vmax.f32 %v2480_v40, 0.0  ;;  %v9576_v35 = vld [vmem:[#allocation79_spill] sm:$0xff] }
  0xdf   :  { %v2455_v61 = vadd.f32 %v5344_v9, %v5212_v62  ;;  %v2456_v51 = vadd.f32 %v5344_v9, %v5215_v4  ;;  %v2457_v5 = vadd.f32 %v5342_v26, %v2161_v0  ;;  %v2458_v14 = vadd.f32 %v5342_v26, %v2162_v63 }
  0xe0   :  { %v5357_v17 = vadd.f32 %v1901_v15, %v5218_v37  ;;  %v5360_v53 = vadd.f32 %v1902_v38, %v5221_v50  ;;  %v2473_v3 = vadd.f32 %v5342_v26, %v2177_v6  ;;  %v2474_v32 = vadd.f32 %v5342_v26, %v2178_v11  ;;  %v9578_v15 = vld [vmem:[#allocation72_spill] sm:$0xff] }
  0xe1   :  { %v2711_v54 = vmax.f32 %v2455_v61, 0.0  ;;  %v2712_v44 = vmax.f32 %v2456_v51, 0.0  ;;  %v2713_v62 = vmax.f32 %v2457_v5, 0.0  ;;  %v2714_v21 = vmax.f32 %v2458_v14, 0.0  ;;  %v9581_v5 = vld [vmem:[#allocation91_spill] sm:$0xff] }
  0xe2   :  { %v2729_v30 = vmax.f32 %v2473_v3, 0.0  ;;  %v2730_v4 = vmax.f32 %v2474_v32, 0.0  ;;  %v5364_v27 = vadd.f32 %v2720_v10, %v2719_v52  ;;  %v5366_v0 = vadd.f32 %v2736_v18, %v2735_v56  ;;  %v9579_v56 = vld [vmem:[#allocation73_spill] sm:$0xff] }
  0xe3   :  { %v2972_v63 = vadd.f32 %v2712_v44, %v2711_v54  ;;  %v5368_v37 = vadd.f32 %v2714_v21, %v2713_v62  ;;  %v1917_v50 = vmul.f32 %v9570_v60, %v5337_v25  ;;  %v1918_v6 = vmul.f32 %v9572_v28, %v5337_v25  ;;  %v5380_v52 = vpop.permute.xlu1 %1826 }
  0xe4   :  { %v5374_v11 = vadd.f32 %v2730_v4, %v2729_v30  ;;  %v2169_v20 = vadd.f32 %v1913_v43, %v5164_v46  ;;  %v2170_v8 = vadd.f32 %v1914_v36, %v5167_v13  ;;  %v1542_v40 = vadd.f32 %v5299_v22, %v9576_v35  ;;  %9577 = vst [vmem:[#allocation43_spill] sm:$0xff] %v5380_v52  ;;  %v9584_v30 = vld [vmem:[#allocation85_spill] sm:$0xff]  ;;  %v9587_v35 = vld [vmem:[#allocation74_spill] sm:$0xff] }
  0xe5   :  { %2973 = vadd.xlane.f32.xlu0 %v2972_v63  ;;  %v5383_v10 = vadd.f32 %v1917_v50, %v5244_v33  ;;  %v5386_v2 = vadd.f32 %v1918_v6, %v5247_v29  ;;  %v1933_v38 = vmul.f32 %v9578_v15, %v5337_v25  ;;  %v1934_v46 = vmul.f32 %v9579_v56, %v5337_v25  ;;  %v9585_v4 = vld [vmem:[#allocation93_spill] sm:$0xff]  ;;  %v9586_v50 = vld [vmem:[#allocation94_spill] sm:$0xff] }
  0xe6   :  { %v1907_v13 = vmul.f32 %v4816_v59, %v5380_v52  ;;  %v1908_v22 = vmul.f32 %v4826_v24, %v5380_v52  ;;  %v1275_v43 = vmul.f32 %v4664_v16, %v5239_v55  ;;  %v1276_v33 = vmul.f32 %v4669_v19, %v5239_v55  ;;  %v9580_v16 = vld [vmem:[#allocation90_spill] sm:$0xff] }
  0xe7   :  { %v5400_v29 = vadd.f32 %v1933_v38, %v1541_v1  ;;  %v5402_v36 = vadd.f32 %v1934_v46, %v1542_v40  ;;  %v1923_v18 = vmul.f32 %v9570_v60, %v5380_v52  ;;  %v1924_v61 = vmul.f32 %v9572_v28, %v5380_v52  ;;  %v9582_v1 = vld [vmem:[#allocation31_spill] sm:$0xff]  ;;  %v9588_v40 = vld [vmem:[#allocation20_spill] sm:$0xff] }
  0xe8   :  { %v5409_v59 = vadd.f32 %v1907_v13, %v5282_v34  ;;  %v5412_v24 = vadd.f32 %v1908_v22, %v5285_v58  ;;  %v1531_v51 = vadd.f32 %v1275_v43, %v9580_v16  ;;  %v1532_v19 = vadd.f32 %v1276_v33, %v9581_v5  ;;  %v9589_v46 = vld [vmem:[#allocation75_spill] sm:$0xff]  ;;  %v9590_v13 = vld [vmem:[#allocation28_spill] sm:$0xff] }
  0xe9   :  { %v1919_v14 = vmul.f32 %v9570_v60, %v9582_v1  ;;  %v1920_v3 = vmul.f32 %v9572_v28, %v9582_v1  ;;  %v1291_v32 = vmul.f32 %v9531_v41, %v5239_v55  ;;  %v1292_v34 = vmul.f32 %v9533_v57, %v5239_v55  ;;  %v9583_v60 = vld [vmem:[#allocation13_spill] sm:$0xff] }
  0xea   :  { %v5424_v54 = vadd.f32 %v1923_v18, %v1531_v51  ;;  %v5426_v58 = vadd.f32 %v1924_v61, %v1532_v19  ;;  %v1939_v44 = vmul.f32 %v9578_v15, %v5380_v52  ;;  %v1940_v62 = vmul.f32 %v9579_v56, %v5380_v52  ;;  %v9607_v55 = vld [vmem:[#allocation9_spill] sm:$0xff] }
  0xeb   :  { %v2175_v21 = vadd.f32 %v1919_v14, %v9583_v60  ;;  %v2176_v28 = vadd.f32 %v1920_v3, %v9584_v30  ;;  %v1547_v63 = vadd.f32 %v1291_v32, %v9585_v4  ;;  %v1548_v6 = vadd.f32 %v1292_v34, %v9586_v50  ;;  %v5451_v5 = vpop.permute.xlu1 %2417  ;;  %v9592_v3 = vld [vmem:[#allocation98_spill] sm:$0xff]  ;;  %v9593_v32 = vld [vmem:[#allocation21_spill] sm:$0xff] }
  0xec   :  { %v1537_v38 = vadd.f32 %v9588_v40, %v9587_v35  ;;  %v1538_v22 = vadd.f32 %v9590_v13, %v9589_v46  ;;  %v1929_v43 = vmul.f32 %v9578_v15, %v5291_v12  ;;  %v1930_v33 = vmul.f32 %v9579_v56, %v5291_v12  ;;  %9591 = vst [vmem:[#allocation54_spill] sm:$0xff] %v5451_v5  ;;  %v9594_v60 = vld [vmem:[#allocation22_spill] sm:$0xff] }
  0xed   :  { %2982 = vadd.xlane.f32.xlu0 %v5279_v45  ;;  %v2471_v18 = vadd.f32 %v5344_v9, %v2175_v21  ;;  %v2472_v61 = vadd.f32 %v5344_v9, %v2176_v28  ;;  %v5447_v16 = vadd.f32 %v1939_v44, %v1547_v63  ;;  %v5449_v51 = vadd.f32 %v1940_v62, %v1548_v6  ;;  %v9595_v63 = vld [vmem:[#allocation83_spill] sm:$0xff]  ;;  %v9596_v6 = vld [vmem:[#allocation84_spill] sm:$0xff] }
  0xee   :  { %v2185_v19 = vadd.f32 %v1929_v43, %v1537_v38  ;;  %v2186_v14 = vadd.f32 %v1930_v33, %v1538_v22  ;;  %v237_v34 = vmul.f32 %v9593_v32, %v9592_v3  ;;  %v238_v30 = vmul.f32 %v9594_v60, %v9592_v3 }
  0xef   :  { %v2449_v45 = vadd.f32 %v5451_v5, %v5318_v31  ;;  %v2450_v21 = vadd.f32 %v5451_v5, %v5321_v48  ;;  %v2465_v44 = vadd.f32 %v5451_v5, %v2169_v20  ;;  %v2466_v62 = vadd.f32 %v5451_v5, %v2170_v8  ;;  %v9597_v31 = vld [vmem:[#allocation39_spill] sm:$0xff]  ;;  %v9598_v20 = vld [vmem:[#allocation82_spill] sm:$0xff] }
  0xf0   :  { %v2727_v28 = vmax.f32 %v2471_v18, 0.0  ;;  %v2728_v4 = vmax.f32 %v2472_v61, 0.0  ;;  %v885_v50 = vadd.f32 %v9595_v63, %v237_v34  ;;  %v886_v35 = vadd.f32 %v9596_v6, %v238_v30  ;;  %v9599_v34 = vld [vmem:[#allocation86_spill] sm:$0xff]  ;;  %v9600_v30 = vld [vmem:[#allocation29_spill] sm:$0xff] }
  0xf1   :  { %v2705_v40 = vmax.f32 %v2449_v45, 0.0  ;;  %v2706_v38 = vmax.f32 %v2450_v21, 0.0  ;;  %v2721_v46 = vmax.f32 %v2465_v44, 0.0  ;;  %v2722_v13 = vmax.f32 %v2466_v62, 0.0  ;;  %v9601_v62 = vld [vmem:[#allocation87_spill] sm:$0xff]  ;;  %v9603_v63 = vld [vmem:[#allocation17_spill] sm:$0xff] }
  0xf2   :  { %v5465_v22 = vadd.f32 %v2728_v4, %v2727_v28  ;;  %v1277_v43 = vmul.f32 %v9531_v41, %v9597_v31  ;;  %v1278_v48 = vmul.f32 %v9533_v57, %v9597_v31  ;;  %v1925_v8 = vmul.f32 %v9578_v15, %v9598_v20  ;;  %v9602_v28 = vld [vmem:[#allocation30_spill] sm:$0xff] }
  0xf3   :  { %v2963_v33 = vadd.f32 %v2706_v38, %v2705_v40  ;;  %v5473_v18 = vadd.f32 %v2722_v13, %v2721_v46  ;;  %v1926_v61 = vmul.f32 %v9579_v56, %v9598_v20  ;;  %v905_v45 = vadd.f32 %v9600_v30, %v9599_v34  ;;  %v9604_v6 = vld [vmem:[#allocation18_spill] sm:$0xff]  ;;  %v9605_v38 = vld [vmem:[#allocation37_spill] sm:$0xff] }
  0xf4   :  { %v1533_v21 = vadd.f32 %v1277_v43, %v885_v50  ;;  %v1534_v44 = vadd.f32 %v1278_v48, %v886_v35  ;;  %v5481_v4 = vadd.f32 %v9602_v28, %v9601_v62  ;;  %v1124_v52 = vsel %vm71_vm3, %v9604_v6, %v9603_v63  ;;  %v9606_v46 = vld [vmem:[#allocation38_spill] sm:$0xff]  ;;  %v5496_v43 = vpop.permute.xlu1 %2427 }
  0xf5   :  { %2964 = vadd.xlane.f32.xlu1 %v2963_v33  ;;  %2991 = vadd.xlane.f32.xlu0 %v5331_v42  ;;  %v1125_v40 = vrot.slane %v1124_v52, 3  ;;  %v1772_v13 = vsel %vm71_vm3, %v9606_v46, %v9605_v38  ;;  %v247_v50 = vmul.f32 %v9593_v32, %v9607_v55  ;;  %v5494_v35 = vmul.f32 %v9594_v60, %v9607_v55 }
  0xf6   :  { %9608 = vst [vmem:[#allocation55_spill] sm:$0xff] %v5496_v43  ;;  %v2481_v48 = vadd.f32 %v5451_v5, %v2185_v19  ;;  %v2482_v33 = vadd.f32 %v5451_v5, %v2186_v14  ;;  %v2181_v34 = vadd.f32 %v1925_v8, %v1533_v21  ;;  %v2182_v42 = vadd.f32 %v1926_v61, %v1534_v44 }
  0xf7   :  { %v2453_v52 = vadd.f32 %v5496_v43, %v5357_v17  ;;  %v2454_v30 = vadd.f32 %v5496_v43, %v5360_v53  ;;  %v2469_v62 = vadd.f32 %v5496_v43, %v5383_v10  ;;  %v2470_v28 = vadd.f32 %v5496_v43, %v5386_v2 }
  0xf8   :  { %v2485_v6 = vadd.f32 %v5496_v43, %v5400_v29  ;;  %v2486_v19 = vadd.f32 %v5496_v43, %v5402_v36  ;;  %v2737_v14 = vmax.f32 %v2481_v48, 0.0  ;;  %v2738_v8 = vmax.f32 %v2482_v33, 0.0 }
  0xf9   :  { %v2709_v61 = vmax.f32 %v2453_v52, 0.0  ;;  %v2710_v21 = vmax.f32 %v2454_v30, 0.0  ;;  %v2725_v17 = vmax.f32 %v2469_v62, 0.0  ;;  %v2726_v44 = vmax.f32 %v2470_v28, 0.0  ;;  %v9610_v62 = vld [vmem:[#allocation92_spill] sm:$0xff] }
  0xfa   :  { %v2741_v46 = vmax.f32 %v2485_v6, 0.0  ;;  %v2742_v53 = vmax.f32 %v2486_v19, 0.0  ;;  %v5512_v25 = vadd.f32 %v2738_v8, %v2737_v14  ;;  %v2477_v10 = vadd.f32 %v5255_v39, %v2181_v34  ;;  %v9611_v28 = vld [vmem:[#allocation24_spill] sm:$0xff]  ;;  %v9612_v6 = vld [vmem:[#allocation26_spill] sm:$0xff] }
  0xfb   :  { %v2969_v49 = vadd.f32 %v2710_v21, %v2709_v61  ;;  %v5515_v2 = vadd.f32 %v2726_v44, %v2725_v17  ;;  %v2478_v29 = vadd.f32 %v5255_v39, %v2182_v42  ;;  %v5518_v47 = vperm.slane %v1125_v40, 0  ;;  %v9613_v42 = vld [vmem:[#allocation27_spill] sm:$0xff] }
  0xfc   :  { %9609 = vst [vmem:[#allocation60_spill] sm:$0xff] %v5512_v25  ;;  %v5520_v36 = vadd.f32 %v2742_v53, %v2741_v46  ;;  %v2733_v48 = vmax.f32 %v2477_v10, 0.0  ;;  %v5522_v33 = vperm.slane %v1125_v40, 1  ;;  %v1773_v52 = vrot.slane %v1772_v13, 3  ;;  %v5532_v8 = vpop.permute.xlu1 %2442 }
  0xfd   :  { %2976 = vadd.xlane.f32.xlu1 %v5368_v37  ;;  %2970 = vadd.xlane.f32.xlu2 %v2969_v49  ;;  %v2734_v30 = vmax.f32 %v2478_v29, 0.0  ;;  %v1297_v34 = vmul.f32 %v5518_v47, %v9610_v62  ;;  %v639_v19 = vmul.f32 %v9612_v6, %v9611_v28  ;;  %v640_v14 = vmul.f32 %v9613_v42, %v9611_v28  ;;  %v9615_v37 = vld [vmem:[#allocation67_spill] sm:$0xff] }
  0xfe   :  { %3000 = vadd.xlane.f32.xlu0 %v5374_v11  ;;  %9614 = vst [vmem:[#allocation61_spill] sm:$0xff] %v5532_v8  ;;  %v1298_v40 = vmul.f32 %v5522_v33, %v9610_v62  ;;  %v5536_v13 = vperm.slane %v1773_v52, 0  ;;  %v5538_v49 = vperm.slane %v1773_v52, 1  ;;  %v1287_v61 = vmul.f32 %v9531_v41, %v9615_v37 }
  0xff   :  { %v2459_v21 = vadd.f32 %v5532_v8, %v5409_v59  ;;  %v2460_v17 = vadd.f32 %v5532_v8, %v5412_v24  ;;  %v2475_v11 = vadd.f32 %v5532_v8, %v5424_v54  ;;  %v2476_v44 = vadd.f32 %v5532_v8, %v5426_v58 }
 0x100   :  { %v2491_v46 = vadd.f32 %v5532_v8, %v5447_v16  ;;  %v2492_v53 = vadd.f32 %v5532_v8, %v5449_v51  ;;  %v5554_v10 = vadd.f32 %v2734_v30, %v2733_v48  ;;  %v1553_v29 = vadd.f32 %v1297_v34, %v905_v45 }
 0x101   :  { %v2715_v52 = vmax.f32 %v2459_v21, 0.0  ;;  %v2716_v59 = vmax.f32 %v2460_v17, 0.0  ;;  %v2731_v62 = vmax.f32 %v2475_v11, 0.0  ;;  %v2732_v43 = vmax.f32 %v2476_v44, 0.0  ;;  %v9618_v44 = vld [vmem:[#allocation52_spill] sm:$0xff] }
 0x102   :  { %v2747_v24 = vmax.f32 %v2491_v46, 0.0  ;;  %v2748_v26 = vmax.f32 %v2492_v53, 0.0  ;;  %v1554_v54 = vadd.f32 %v1298_v40, %v5481_v4  ;;  %v1945_v58 = vmul.f32 %v5536_v13, %v5291_v12 }
 0x103   :  { %v2978_v25 = vadd.f32 %v2716_v59, %v2715_v52  ;;  %v5559_v38 = vadd.f32 %v2732_v43, %v2731_v62  ;;  %v1946_v16 = vmul.f32 %v5538_v49, %v5291_v12  ;;  %v895_v51 = vadd.f32 %v639_v19, %v247_v50 }
 0x104   :  { %v5563_v48 = vadd.f32 %v2748_v26, %v2747_v24  ;;  %v2201_v45 = vadd.f32 %v1945_v58, %v1553_v29  ;;  %v896_v30 = vadd.f32 %v640_v14, %v5494_v35  ;;  %v1288_v34 = vmul.f32 %v9533_v57, %v9615_v37  ;;  %v9616_v35 = vld [vmem:[#allocation23_spill] sm:$0xff]  ;;  %v9619_v58 = vld [vmem:[#allocation97_spill] sm:$0xff] }
 0x105   :  { %2985 = vadd.xlane.f32.xlu1 %v5364_v27  ;;  %2979 = vadd.xlane.f32.xlu2 %v2978_v25  ;;  %v2202_v4 = vadd.f32 %v1946_v16, %v1554_v54  ;;  %v1543_v40 = vadd.f32 %v1287_v61, %v895_v51  ;;  %v1935_v43 = vmul.f32 %v9578_v15, %v9582_v1  ;;  %v9617_v61 = vld [vmem:[#allocation15_spill] sm:$0xff] }
 0x106   :  { %3009 = vadd.xlane.f32.xlu0 %v5366_v0  ;;  %v2497_v50 = vadd.f32 %v5451_v5, %v2201_v45  ;;  %v1544_v26 = vadd.f32 %v1288_v34, %v896_v30  ;;  %v1936_v62 = vmul.f32 %v9579_v56, %v9582_v1  ;;  %v243_v19 = vmul.f32 %v9593_v32, %v9616_v35 }
 0x107   :  { %v2498_v14 = vadd.f32 %v5451_v5, %v2202_v4  ;;  %v2191_v27 = vadd.f32 %v1935_v43, %v1543_v40  ;;  %v244_v25 = vmul.f32 %v9594_v60, %v9616_v35  ;;  %v635_v21 = vmul.f32 %v9612_v6, %v9617_v61  ;;  %v9620_v4 = vld [vmem:[#allocation77_spill] sm:$0xff] }
 0x108   :  { %v2753_v17 = vmax.f32 %v2497_v50, 0.0  ;;  %v2192_v0 = vadd.f32 %v1936_v62, %v1544_v26  ;;  %v636_v11 = vmul.f32 %v9613_v42, %v9617_v61  ;;  %v1283_v46 = vmul.f32 %v9531_v41, %v9618_v44  ;;  %v9621_v26 = vld [vmem:[#allocation80_spill] sm:$0xff] }
 0x109   :  { %v2754_v53 = vmax.f32 %v2498_v14, 0.0  ;;  %v2487_v29 = vadd.f32 %v5344_v9, %v2191_v27  ;;  %v891_v52 = vadd.f32 %v635_v21, %v243_v19  ;;  %v1284_v59 = vmul.f32 %v9533_v57, %v9618_v44  ;;  %v9622_v19 = vld [vmem:[#allocation95_spill] sm:$0xff] }
 0x10a   :  { %v2488_v24 = vadd.f32 %v5344_v9, %v2192_v0  ;;  %v892_v54 = vadd.f32 %v636_v11, %v244_v25  ;;  %v1931_v16 = vmul.f32 %v9578_v15, %v9619_v58  ;;  %v1932_v51 = vmul.f32 %v9579_v56, %v9619_v58  ;;  %v9623_v25 = vld [vmem:[#allocation96_spill] sm:$0xff] }
 0x10b   :  { %v5594_v45 = vadd.f32 %v2754_v53, %v2753_v17  ;;  %v2743_v30 = vmax.f32 %v2487_v29, 0.0  ;;  %v1539_v34 = vadd.f32 %v1283_v46, %v891_v52  ;;  %v263_v40 = vmul.f32 %v9620_v4, %v9607_v55 }
 0x10c   :  { %v2744_v43 = vmax.f32 %v2488_v24, 0.0  ;;  %v1540_v50 = vadd.f32 %v1284_v59, %v892_v54  ;;  %v264_v62 = vmul.f32 %v9621_v26, %v9607_v55  ;;  %v655_v14 = vmul.f32 %v9622_v19, %v9611_v28 }
 0x10d   :  { %2994 = vadd.xlane.f32.xlu1 %v5515_v2  ;;  %2988 = vadd.xlane.f32.xlu2 %v5473_v18  ;;  %v2187_v27 = vadd.f32 %v1931_v16, %v1539_v34  ;;  %v656_v21 = vmul.f32 %v9623_v25, %v9611_v28  ;;  %v1303_v17 = vmul.f32 %v5518_v47, %v9615_v37 }
 0x10e   :  { %3018 = vadd.xlane.f32.xlu0 %v5520_v36  ;;  %v5609_v0 = vadd.f32 %v2744_v43, %v2743_v30  ;;  %v2188_v11 = vadd.f32 %v1932_v51, %v1540_v50  ;;  %v911_v46 = vadd.f32 %v655_v14, %v263_v40  ;;  %v1304_v53 = vmul.f32 %v5522_v33, %v9615_v37  ;;  %v9624_v30 = vld [vmem:[#allocation10_spill] sm:$0xff]  ;;  %v9633_v37 = vld [vmem:[#allocation68_spill] sm:$0xff] }
 0x10f   :  { %v2483_v2 = vadd.f32 %v5303_v23, %v2187_v27  ;;  %v912_v29 = vadd.f32 %v656_v21, %v264_v62  ;;  %v1951_v18 = vmul.f32 %v5536_v13, %v9582_v1  ;;  %v1952_v52 = vmul.f32 %v5538_v49, %v9582_v1 }
 0x110   :  { %v2484_v59 = vadd.f32 %v5303_v23, %v2188_v11  ;;  %v1559_v24 = vadd.f32 %v1303_v17, %v911_v46  ;;  %v253_v36 = vmul.f32 %v9620_v4, %v9592_v3  ;;  %v254_v54 = vmul.f32 %v9621_v26, %v9592_v3 }
 0x111   :  { %v2739_v16 = vmax.f32 %v2483_v2, 0.0  ;;  %v1560_v51 = vadd.f32 %v1304_v53, %v912_v29  ;;  %v645_v34 = vmul.f32 %v9622_v19, %v9624_v30  ;;  %v646_v40 = vmul.f32 %v9623_v25, %v9624_v30 }
 0x112   :  { %v2740_v43 = vmax.f32 %v2484_v59, 0.0  ;;  %v2207_v50 = vadd.f32 %v1951_v18, %v1559_v24  ;;  %v1293_v62 = vmul.f32 %v5518_v47, %v9597_v31  ;;  %v1294_v14 = vmul.f32 %v5522_v33, %v9597_v31 }
 0x113   :  { %v2208_v27 = vadd.f32 %v1952_v52, %v1560_v51  ;;  %v901_v21 = vadd.f32 %v645_v34, %v253_v36  ;;  %v902_v17 = vadd.f32 %v646_v40, %v254_v54  ;;  %v1941_v11 = vmul.f32 %v5536_v13, %v9598_v20  ;;  %v9625_v54 = vld [vmem:[#allocation25_spill] sm:$0xff] }
 0x114   :  { %v5633_v46 = vadd.f32 %v2740_v43, %v2739_v16  ;;  %v2503_v53 = vadd.f32 %v5344_v9, %v2207_v50  ;;  %v1942_v2 = vmul.f32 %v5538_v49, %v9598_v20  ;;  %v249_v29 = vmul.f32 %v9593_v32, %v5253_v7  ;;  %v9626_v34 = vld [vmem:[#allocation53_spill] sm:$0xff] }
 0x115   :  { %3003 = vadd.xlane.f32.xlu1 %v5559_v38  ;;  %2997 = vadd.xlane.f32.xlu2 %v5465_v22  ;;  %v2504_v18 = vadd.f32 %v5344_v9, %v2208_v27  ;;  %v1549_v52 = vadd.f32 %v1293_v62, %v901_v21  ;;  %v1550_v59 = vadd.f32 %v1294_v14, %v902_v17  ;;  %v9627_v62 = vld [vmem:[#allocation81_spill] sm:$0xff] }
 0x116   :  { %3027 = vadd.xlane.f32.xlu0 %v5563_v48  ;;  %v2759_v24 = vmax.f32 %v2503_v53, 0.0  ;;  %v250_v36 = vmul.f32 %v9594_v60, %v5253_v7  ;;  %v641_v16 = vmul.f32 %v9612_v6, %v9625_v54  ;;  %v642_v32 = vmul.f32 %v9613_v42, %v9625_v54  ;;  %v9629_v53 = vld [vmem:[#allocation12_spill] sm:$0xff] }
 0x117   :  { %v2760_v38 = vmax.f32 %v2504_v18, 0.0  ;;  %v2197_v51 = vadd.f32 %v1941_v11, %v1549_v52  ;;  %v2198_v22 = vadd.f32 %v1942_v2, %v1550_v59  ;;  %v1289_v40 = vmul.f32 %v9531_v41, %v9626_v34  ;;  %v5663_v41 = vld [vmem:[%s8861_s0] sm:$0xff]  ;;  %v9628_v11 = vld [vmem:[#allocation11_spill] sm:$0xff] }
 0x118   :  { %v897_v43 = vadd.f32 %v641_v16, %v249_v29  ;;  %v898_v50 = vadd.f32 %v642_v32, %v250_v36  ;;  %v1290_v48 = vmul.f32 %v9533_v57, %v9626_v34  ;;  %v1937_v60 = vmul.f32 %v9578_v15, %v9627_v62  ;;  %v5671_v15 = vld [vmem:[%s8861_s0 + $0x10] sm:$0xff]  ;;  %v5679_v36 = vld [vmem:[%s8861_s0 + $0x20] sm:$0xff] }
 0x119   :  { %v3044_v14 = vadd.f32 %v2760_v38, %v2759_v24  ;;  %v2493_v6 = vadd.f32 %v5255_v39, %v2197_v51  ;;  %v2494_v27 = vadd.f32 %v5255_v39, %v2198_v22  ;;  %v1938_v42 = vmul.f32 %v9579_v56, %v9627_v62  ;;  %v5687_v32 = vld [vmem:[%s8861_s0 + $0x30] sm:$0xff]  ;;  %v9630_v38 = vld [vmem:[#allocation37_spill] sm:$0xff]  ;;  %v9631_v22 = vld [vmem:[#allocation60_spill] sm:$0xff] }
 0x11a   :  { %v1545_v21 = vadd.f32 %v1289_v40, %v897_v43  ;;  %v1546_v17 = vadd.f32 %v1290_v48, %v898_v50  ;;  %v75_v57 = vsel %vm74_vm4, %v5663_v41, %v9628_v11  ;;  %v478_v56 = vsel %vm74_vm4, %v5671_v15, %v9629_v53 }
 0x11b   :  { %v2749_v2 = vmax.f32 %v2493_v6, 0.0  ;;  %v2750_v29 = vmax.f32 %v2494_v27, 0.0  ;;  %v76_v18 = vrot.slane %v75_v57, 4  ;;  %v479_v52 = vrot.slane %v478_v56, 4 }
 0x11c   :  { %v2193_v59 = vadd.f32 %v1937_v60, %v1545_v21  ;;  %v2194_v24 = vadd.f32 %v1938_v42, %v1546_v17  ;;  %v1126_v16 = vsel %vm74_vm4, %v5679_v36, %v9603_v63  ;;  %v1774_v51 = vsel %vm74_vm4, %v5687_v32, %v9630_v38  ;;  %v9632_v60 = vld [vmem:[#allocation35_spill] sm:$0xff] }
 0x11d   :  { %3012 = vadd.xlane.f32.xlu1 %v9631_v22  ;;  %3006 = vadd.xlane.f32.xlu2 %v5554_v10  ;;  %v5694_v40 = vadd.f32 %v2750_v29, %v2749_v2  ;;  %v5696_v43 = vperm.slane %v76_v18, 0  ;;  %v5698_v50 = vperm.slane %v76_v18, 1  ;;  %v5700_v48 = vperm.slane %v479_v52, 0 }
 0x11e   :  { %3036 = vadd.xlane.f32.xlu0 %v5594_v45  ;;  %v2489_v6 = vadd.f32 %v9632_v60, %v2193_v59  ;;  %v2490_v27 = vadd.f32 %v9632_v60, %v2194_v24  ;;  %v5705_v42 = vperm.slane %v479_v52, 1  ;;  %v1127_v21 = vrot.slane %v1126_v16, 4 }
 0x11f   :  { %v269_v10 = vmul.f32 %v5696_v43, %v9592_v3  ;;  %v270_v17 = vmul.f32 %v5698_v50, %v9592_v3  ;;  %v661_v57 = vmul.f32 %v5700_v48, %v9624_v30  ;;  %v1775_v56 = vrot.slane %v1774_v51, 4 }
 0x120   :  { %v2745_v2 = vmax.f32 %v2489_v6, 0.0  ;;  %v2746_v29 = vmax.f32 %v2490_v27, 0.0  ;;  %v662_v45 = vmul.f32 %v5705_v42, %v9624_v30  ;;  %v5715_v18 = vperm.slane %v1127_v21, 0 }
 0x121   :  { %v917_v52 = vadd.f32 %v661_v57, %v269_v10  ;;  %v5717_v59 = vperm.slane %v1127_v21, 1  ;;  %v5719_v24 = vperm.slane %v1775_v56, 0  ;;  %v5721_v16 = vperm.slane %v1775_v56, 1 }
 0x122   :  { %v3023_v22 = vadd.f32 %v2746_v29, %v2745_v2  ;;  %v918_v3 = vadd.f32 %v662_v45, %v270_v17  ;;  %v1309_v9 = vmul.f32 %v5715_v18, %v9597_v31  ;;  %v259_v51 = vmul.f32 %v9620_v4, %v9616_v35 }
 0x123   :  { %v1310_v6 = vmul.f32 %v5717_v59, %v9597_v31  ;;  %v1957_v27 = vmul.f32 %v5719_v24, %v9598_v20  ;;  %v1958_v21 = vmul.f32 %v5721_v16, %v9598_v20  ;;  %v260_v10 = vmul.f32 %v9621_v26, %v9616_v35 }
 0x124   :  { %v1565_v57 = vadd.f32 %v1309_v9, %v917_v52  ;;  %v651_v17 = vmul.f32 %v9622_v19, %v9617_v61  ;;  %v652_v56 = vmul.f32 %v9623_v25, %v9617_v61  ;;  %v1299_v2 = vmul.f32 %v5518_v47, %v9618_v44 }
 0x125   :  { %3021 = vadd.xlane.f32.xlu1 %v5609_v0  ;;  %3015 = vadd.xlane.f32.xlu2 %v5633_v46  ;;  %v1566_v29 = vadd.f32 %v1310_v6, %v918_v3  ;;  %v1300_v45 = vmul.f32 %v5522_v33, %v9618_v44  ;;  %v1947_v9 = vmul.f32 %v5536_v13, %v9619_v58  ;;  %v9634_v46 = vld [vmem:[#allocation16_spill] sm:$0xff] }
 0x126   :  { %3045 = vadd.xlane.f32.xlu0 %v3044_v14  ;;  %v2213_v52 = vadd.f32 %v1957_v27, %v1565_v57  ;;  %v907_v20 = vadd.f32 %v651_v17, %v259_v51  ;;  %v908_v31 = vadd.f32 %v652_v56, %v260_v10  ;;  %v1948_v30 = vmul.f32 %v5538_v49, %v9619_v58 }
 0x127   :  { %v2214_v1 = vadd.f32 %v1958_v21, %v1566_v29  ;;  %v255_v0 = vmul.f32 %v9620_v4, %v9633_v37  ;;  %v256_v3 = vmul.f32 %v9621_v26, %v9633_v37  ;;  %v647_v6 = vmul.f32 %v9622_v19, %v9634_v46  ;;  %v9635_v21 = vld [vmem:[#allocation40_spill] sm:$0xff] }
 0x128   :  { %v2509_v28 = vadd.f32 %v5255_v39, %v2213_v52  ;;  %v1555_v55 = vadd.f32 %v1299_v2, %v907_v20  ;;  %v1556_v14 = vadd.f32 %v1300_v45, %v908_v31  ;;  %v648_v51 = vmul.f32 %v9623_v25, %v9634_v46  ;;  %v9636_v20 = vld [vmem:[#allocation70_spill] sm:$0xff] }
 0x129   :  { %v2510_v27 = vadd.f32 %v5255_v39, %v2214_v1  ;;  %v903_v10 = vadd.f32 %v647_v6, %v255_v0  ;;  %v1295_v57 = vmul.f32 %v5518_v47, %v9635_v21  ;;  %v1296_v17 = vmul.f32 %v5522_v33, %v9635_v21 }
 0x12a   :  { %v2765_v56 = vmax.f32 %v2509_v28, 0.0  ;;  %v2203_v29 = vadd.f32 %v1947_v9, %v1555_v55  ;;  %v2204_v5 = vadd.f32 %v1948_v30, %v1556_v14  ;;  %v904_v12 = vadd.f32 %v648_v51, %v256_v3 }
 0x12b   :  { %v2766_v8 = vmax.f32 %v2510_v27, 0.0  ;;  %v1551_v52 = vadd.f32 %v1295_v57, %v903_v10  ;;  %v1943_v31 = vmul.f32 %v5536_v13, %v9636_v20  ;;  %v1944_v2 = vmul.f32 %v5538_v49, %v9636_v20 }
 0x12c   :  { %v2499_v1 = vadd.f32 %v5303_v23, %v2203_v29  ;;  %v2500_v45 = vadd.f32 %v5303_v23, %v2204_v5  ;;  %v1552_v0 = vadd.f32 %v1296_v17, %v904_v12  ;;  %v275_v6 = vmul.f32 %v5696_v43, %v9616_v35  ;;  %v9637_v5 = vld [vmem:[#allocation33_spill] sm:$0xff] }
 0x12d   :  { %3030 = vadd.xlane.f32.xlu1 %v5694_v40  ;;  %3024 = vadd.xlane.f32.xlu2 %v3023_v22  ;;  %v3053_v55 = vadd.f32 %v2766_v8, %v2765_v56  ;;  %v2199_v28 = vadd.f32 %v1943_v31, %v1551_v52  ;;  %v276_v30 = vmul.f32 %v5698_v50, %v9616_v35 }
 0x12e   :  { %v2755_v9 = vmax.f32 %v2499_v1, 0.0  ;;  %v2756_v3 = vmax.f32 %v2500_v45, 0.0  ;;  %v2200_v14 = vadd.f32 %v1944_v2, %v1552_v0  ;;  %v667_v51 = vmul.f32 %v5700_v48, %v9617_v61 }
 0x12f   :  { %3054 = vadd.xlane.f32.xlu0 %v3053_v55  ;;  %v2495_v12 = vadd.f32 %v9637_v5, %v2199_v28  ;;  %v668_v27 = vmul.f32 %v5705_v42, %v9617_v61  ;;  %v1315_v40 = vmul.f32 %v5715_v18, %v9618_v44  ;;  %v1316_v8 = vmul.f32 %v5717_v59, %v9618_v44 }
 0x130   :  { %v3038_v22 = vadd.f32 %v2756_v3, %v2755_v9  ;;  %v2496_v10 = vadd.f32 %v9637_v5, %v2200_v14  ;;  %v923_v57 = vadd.f32 %v667_v51, %v275_v6  ;;  %v1963_v17 = vmul.f32 %v5719_v24, %v9619_v58 }
 0x131   :  { %v2751_v56 = vmax.f32 %v2495_v12, 0.0  ;;  %v924_v29 = vadd.f32 %v668_v27, %v276_v30  ;;  %v1964_v52 = vmul.f32 %v5721_v16, %v9619_v58  ;;  %v265_v31 = vmul.f32 %v9620_v4, %v5253_v7  ;;  %v9641_v58 = vld [vmem:[#allocation32_spill] sm:$0xff] }
 0x132   :  { %v2752_v2 = vmax.f32 %v2496_v10, 0.0  ;;  %v1571_v1 = vadd.f32 %v1315_v40, %v923_v57  ;;  %v266_v45 = vmul.f32 %v9621_v26, %v5253_v7  ;;  %v657_v0 = vmul.f32 %v9622_v19, %v9625_v54 }
 0x133   :  { %v1572_v6 = vadd.f32 %v1316_v8, %v924_v29  ;;  %v658_v55 = vmul.f32 %v9623_v25, %v9625_v54  ;;  %v1305_v28 = vmul.f32 %v5518_v47, %v9626_v34  ;;  %v1306_v30 = vmul.f32 %v5522_v33, %v9626_v34  ;;  %v9638_v8 = vld [vmem:[#allocation8_spill] sm:$0xff] }
 0x134   :  { %v3032_v9 = vadd.f32 %v2752_v2, %v2751_v56  ;;  %v2219_v3 = vadd.f32 %v1963_v17, %v1571_v1  ;;  %v913_v14 = vadd.f32 %v657_v0, %v265_v31  ;;  %v1953_v51 = vmul.f32 %v5536_v13, %v9627_v62  ;;  %v9639_v56 = vld [vmem:[#allocation66_spill] sm:$0xff]  ;;  %v9640_v1 = vld [vmem:[#allocation19_spill] sm:$0xff] }
 0x135   :  { %3039 = vadd.xlane.f32.xlu1 %v3038_v22  ;;  %v2220_v12 = vadd.f32 %v1964_v52, %v1572_v6  ;;  %v914_v27 = vadd.f32 %v658_v55, %v266_v45  ;;  %v1954_v40 = vmul.f32 %v5538_v49, %v9627_v62  ;;  %v261_v10 = vmul.f32 %v9620_v4, %v9638_v8 }
 0x136   :  { %3033 = vadd.xlane.f32.xlu2 %v3032_v9  ;;  %v2515_v57 = vadd.f32 %v5303_v23, %v2219_v3  ;;  %v1561_v29 = vadd.f32 %v1305_v28, %v913_v14  ;;  %v262_v17 = vmul.f32 %v9621_v26, %v9638_v8  ;;  %v653_v31 = vmul.f32 %v9622_v19, %v9639_v56 }
 0x137   :  { %v2516_v22 = vadd.f32 %v5303_v23, %v2220_v12  ;;  %v1562_v52 = vadd.f32 %v1306_v30, %v914_v27  ;;  %v654_v2 = vmul.f32 %v9623_v25, %v9639_v56  ;;  %v1301_v45 = vmul.f32 %v5518_v47, %v9640_v1 }
 0x138   :  { %v2771_v0 = vmax.f32 %v2515_v57, 0.0  ;;  %v2209_v6 = vadd.f32 %v1953_v51, %v1561_v29  ;;  %v909_v55 = vadd.f32 %v653_v31, %v261_v10  ;;  %v1302_v28 = vmul.f32 %v5522_v33, %v9640_v1 }
 0x139   :  { %v2772_v9 = vmax.f32 %v2516_v22, 0.0  ;;  %v2210_v3 = vadd.f32 %v1954_v40, %v1562_v52  ;;  %v910_v14 = vadd.f32 %v654_v2, %v262_v17  ;;  %v1949_v44 = vmul.f32 %v5536_v13, %v9641_v58 }
 0x13a   :  { %v2505_v30 = vadd.f32 %v9632_v60, %v2209_v6  ;;  %v1557_v12 = vadd.f32 %v1301_v45, %v909_v55  ;;  %v1950_v27 = vmul.f32 %v5538_v49, %v9641_v58  ;;  %v281_v57 = vmul.f32 %v5696_v43, %v5253_v7  ;;  %v9642_v55 = vld [vmem:[#allocation55_spill] sm:$0xff] }
 0x13b   :  { %v3062_v51 = vadd.f32 %v2772_v9, %v2771_v0  ;;  %v2506_v10 = vadd.f32 %v9632_v60, %v2210_v3  ;;  %v1558_v29 = vadd.f32 %v1302_v28, %v910_v14  ;;  %v282_v40 = vmul.f32 %v5698_v50, %v5253_v7 }
 0x13c   :  { %v2761_v17 = vmax.f32 %v2505_v30, 0.0  ;;  %v2205_v31 = vadd.f32 %v1949_v44, %v1557_v12  ;;  %v673_v22 = vmul.f32 %v5700_v48, %v9625_v54  ;;  %v674_v52 = vmul.f32 %v5705_v42, %v9625_v54 }
 0x13d   :  { %3063 = vadd.xlane.f32.xlu0 %v3062_v51  ;;  %v2762_v2 = vmax.f32 %v2506_v10, 0.0  ;;  %v2206_v45 = vadd.f32 %v1950_v27, %v1558_v29  ;;  %v1321_v0 = vmul.f32 %v5715_v18, %v9626_v34  ;;  %v1322_v6 = vmul.f32 %v5717_v59, %v9626_v34  ;;  %v9644_v34 = vld [vmem:[#allocation76_spill] sm:$0xff] }
 0x13e   :  { %v2501_v28 = vadd.f32 %v9642_v55, %v2205_v31  ;;  %v929_v9 = vadd.f32 %v673_v22, %v281_v57  ;;  %v930_v44 = vadd.f32 %v674_v52, %v282_v40  ;;  %v1969_v3 = vmul.f32 %v5719_v24, %v9627_v62 }
 0x13f   :  { %v3047_v14 = vadd.f32 %v2762_v2, %v2761_v17  ;;  %v2502_v30 = vadd.f32 %v9642_v55, %v2206_v45  ;;  %v1970_v12 = vmul.f32 %v5721_v16, %v9627_v62  ;;  %v271_v27 = vmul.f32 %v5696_v43, %v9633_v37  ;;  %v9643_v62 = vld [vmem:[#allocation36_spill] sm:$0xff] }
 0x140   :  { %v2757_v51 = vmax.f32 %v2501_v28, 0.0  ;;  %v1577_v10 = vadd.f32 %v1321_v0, %v929_v9  ;;  %v1578_v29 = vadd.f32 %v1322_v6, %v930_v44  ;;  %v272_v31 = vmul.f32 %v5698_v50, %v9633_v37 }
 0x141   :  { %3048 = vadd.xlane.f32.xlu1 %v3047_v14  ;;  %v2758_v57 = vmax.f32 %v2502_v30, 0.0  ;;  %v663_v40 = vmul.f32 %v5700_v48, %v9634_v46  ;;  %v664_v17 = vmul.f32 %v5705_v42, %v9634_v46  ;;  %v1311_v22 = vmul.f32 %v5715_v18, %v9635_v21 }
 0x142   :  { %v2225_v52 = vadd.f32 %v1969_v3, %v1577_v10  ;;  %v2226_v2 = vadd.f32 %v1970_v12, %v1578_v29  ;;  %v1312_v45 = vmul.f32 %v5717_v59, %v9635_v21  ;;  %v1959_v0 = vmul.f32 %v5719_v24, %v9636_v20 }
 0x143   :  { %v3041_v6 = vadd.f32 %v2758_v57, %v2757_v51  ;;  %v919_v28 = vadd.f32 %v663_v40, %v271_v27  ;;  %v920_v9 = vadd.f32 %v664_v17, %v272_v31  ;;  %v1960_v44 = vmul.f32 %v5721_v16, %v9636_v20  ;;  %v9645_v40 = vld [vmem:[#allocation50_spill] sm:$0xff] }
 0x144   :  { %v2521_v14 = vadd.f32 %v9632_v60, %v2225_v52  ;;  %v2522_v30 = vadd.f32 %v9632_v60, %v2226_v2  ;;  %v267_v3 = vmul.f32 %v9620_v4, %v9643_v62  ;;  %v268_v12 = vmul.f32 %v9621_v26, %v9643_v62 }
 0x145   :  { %3042 = vadd.xlane.f32.xlu2 %v3041_v6  ;;  %v1567_v10 = vadd.f32 %v1311_v22, %v919_v28  ;;  %v1568_v29 = vadd.f32 %v1312_v45, %v920_v9  ;;  %v659_v27 = vmul.f32 %v9622_v19, %v9644_v34  ;;  %v660_v51 = vmul.f32 %v9623_v25, %v9644_v34  ;;  %v9646_v45 = vld [vmem:[#allocation43_spill] sm:$0xff] }
 0x146   :  { %v2777_v31 = vmax.f32 %v2521_v14, 0.0  ;;  %v2778_v57 = vmax.f32 %v2522_v30, 0.0  ;;  %v1307_v17 = vmul.f32 %v5518_v47, %v9645_v40  ;;  %v1308_v4 = vmul.f32 %v5522_v33, %v9645_v40 }
 0x147   :  { %v2215_v52 = vadd.f32 %v1959_v0, %v1567_v10  ;;  %v2216_v2 = vadd.f32 %v1960_v44, %v1568_v29  ;;  %v915_v26 = vadd.f32 %v659_v27, %v267_v3  ;;  %v916_v6 = vadd.f32 %v660_v51, %v268_v12 }
 0x148   :  { %v3071_v22 = vadd.f32 %v2778_v57, %v2777_v31  ;;  %v1955_v28 = vmul.f32 %v5536_v13, %v9646_v45  ;;  %v1956_v19 = vmul.f32 %v5538_v49, %v9646_v45  ;;  %v78_v25 = vsel %vm77_vm5, %v5663_v41, %v9628_v11 }
 0x149   :  { %v2511_v47 = vadd.f32 %v9637_v5, %v2215_v52  ;;  %v2512_v9 = vadd.f32 %v9637_v5, %v2216_v2  ;;  %v1563_v33 = vadd.f32 %v1307_v17, %v915_v26  ;;  %v1564_v0 = vadd.f32 %v1308_v4, %v916_v6  ;;  %v9647_v17 = vld [vmem:[#allocation61_spill] sm:$0xff] }
 0x14a   :  { %3072 = vadd.xlane.f32.xlu0 %v3071_v22  ;;  %v79_v44 = vrot.slane %v78_v25, 5  ;;  %v480_v14 = vsel %vm77_vm5, %v5671_v15, %v9629_v53  ;;  %v1128_v13 = vsel %vm77_vm5, %v5679_v36, %v9603_v63  ;;  %v1776_v49 = vsel %vm77_vm5, %v5687_v32, %v9630_v38 }
 0x14b   :  { %v2767_v30 = vmax.f32 %v2511_v47, 0.0  ;;  %v2768_v3 = vmax.f32 %v2512_v9, 0.0  ;;  %v2211_v12 = vadd.f32 %v1955_v28, %v1563_v33  ;;  %v2212_v10 = vadd.f32 %v1956_v19, %v1564_v0 }
 0x14c   :  { %v5890_v29 = vperm.slane %v79_v44, 0  ;;  %v5892_v27 = vperm.slane %v79_v44, 1  ;;  %v481_v51 = vrot.slane %v480_v14, 5  ;;  %v1129_v31 = vrot.slane %v1128_v13, 5 }
 0x14d   :  { %v3056_v57 = vadd.f32 %v2768_v3, %v2767_v30  ;;  %v2507_v4 = vadd.f32 %v9647_v17, %v2211_v12  ;;  %v2508_v52 = vadd.f32 %v9647_v17, %v2212_v10  ;;  %v1777_v2 = vrot.slane %v1776_v49, 5 }
 0x14e   :  { %v287_v26 = vmul.f32 %v5890_v29, %v9633_v37  ;;  %v288_v6 = vmul.f32 %v5892_v27, %v9633_v37  ;;  %v5900_v22 = vperm.slane %v481_v51, 0  ;;  %v5902_v28 = vperm.slane %v481_v51, 1 }
 0x14f   :  { %3057 = vadd.xlane.f32.xlu1 %v3056_v57  ;;  %v2763_v19 = vmax.f32 %v2507_v4, 0.0  ;;  %v2764_v25 = vmax.f32 %v2508_v52, 0.0  ;;  %v5904_v47 = vperm.slane %v1129_v31, 0  ;;  %v5906_v9 = vperm.slane %v1129_v31, 1 }
 0x150   :  { %v679_v33 = vmul.f32 %v5900_v22, %v9634_v46  ;;  %v680_v0 = vmul.f32 %v5902_v28, %v9634_v46  ;;  %v5912_v44 = vperm.slane %v1777_v2, 0  ;;  %v5914_v14 = vperm.slane %v1777_v2, 1 }
 0x151   :  { %v3050_v13 = vadd.f32 %v2764_v25, %v2763_v19  ;;  %v1327_v49 = vmul.f32 %v5904_v47, %v9635_v21  ;;  %v1328_v30 = vmul.f32 %v5906_v9, %v9635_v21  ;;  %v3491_v3 = vlaneseq }
 0x152   :  { %v935_v12 = vadd.f32 %v679_v33, %v287_v26  ;;  %v936_v10 = vadd.f32 %v680_v0, %v288_v6  ;;  %v1975_v51 = vmul.f32 %v5912_v44, %v9636_v20  ;;  %v1976_v31 = vmul.f32 %v5914_v14, %v9636_v20 }
 0x153   :  { %3051 = vadd.xlane.f32.xlu2 %v3050_v13  ;;  %v277_v57 = vmul.f32 %v5696_v43, %v9638_v8  ;;  %v278_v4 = vmul.f32 %v5698_v50, %v9638_v8  ;;  %v669_v52 = vmul.f32 %v5700_v48, %v9639_v56  ;;  %v670_v26 = vmul.f32 %v5705_v42, %v9639_v56 }
 0x154   :  { %v1583_v2 = vadd.f32 %v1327_v49, %v935_v12  ;;  %v1584_v19 = vadd.f32 %v1328_v30, %v936_v10  ;;  %v1317_v6 = vmul.f32 %v5715_v18, %v9640_v1  ;;  %v5934_v25 = vand.u32 127, %v3491_v3  ;;  %v9649_v12 = vld [vmem:[#allocation14_spill] sm:$0xff] }
 0x155   :  { %v925_v33 = vadd.f32 %v669_v52, %v277_v57  ;;  %v1318_v0 = vmul.f32 %v5717_v59, %v9640_v1  ;;  %v1965_v13 = vmul.f32 %v5719_v24, %v9641_v58  ;;  %v926_v46 = vadd.f32 %v670_v26, %v278_v4  ;;  %v9650_v57 = vld [vmem:[#allocation49_spill] sm:$0xff] }
 0x156   :  { %9648 = vst [vmem:[#allocation47_spill] sm:$0xff] %v5934_v25  ;;  %v2231_v20 = vadd.f32 %v1975_v51, %v1583_v2  ;;  %v2232_v21 = vadd.f32 %v1976_v31, %v1584_v19  ;;  %v1966_v49 = vmul.f32 %v5721_v16, %v9641_v58  ;;  %v273_v10 = vmul.f32 %v5696_v43, %v9649_v12  ;;  %v9651_v19 = vld [vmem:[#allocation92_spill] sm:$0xff] }
 0x157   :  { %v1573_v30 = vadd.f32 %v1317_v6, %v925_v33  ;;  %v274_v3 = vmul.f32 %v5698_v50, %v9649_v12  ;;  %v665_v52 = vmul.f32 %v5700_v48, %v9650_v57  ;;  %v1574_v51 = vadd.f32 %v1318_v0, %v926_v46 }
 0x158   :  { %v2527_v37 = vadd.f32 %v9637_v5, %v2231_v20  ;;  %v2528_v60 = vadd.f32 %v9637_v5, %v2232_v21  ;;  %v666_v31 = vmul.f32 %v5705_v42, %v9650_v57  ;;  %v1313_v26 = vmul.f32 %v5715_v18, %v9651_v19  ;;  %v9652_v21 = vld [vmem:[#allocation57_spill] sm:$0xff] }
 0x159   :  { %v2221_v4 = vadd.f32 %v1965_v13, %v1573_v30  ;;  %v921_v2 = vadd.f32 %v665_v52, %v273_v10  ;;  %v1314_v6 = vmul.f32 %v5717_v59, %v9651_v19  ;;  %v2222_v7 = vadd.f32 %v1966_v49, %v1574_v51  ;;  %v2959_v51 = vpop.xlane.xlu2 %2958 }
 0x15a   :  { %v2783_v33 = vmax.f32 %v2527_v37, 0.0  ;;  %v2784_v54 = vmax.f32 %v2528_v60, 0.0  ;;  %v922_v23 = vadd.f32 %v666_v31, %v274_v3  ;;  %v1961_v46 = vmul.f32 %v5719_v24, %v9652_v21 }
 0x15b   :  { %v2517_v20 = vadd.f32 %v9642_v55, %v2221_v4  ;;  %v1569_v61 = vadd.f32 %v1313_v26, %v921_v2  ;;  %v1962_v0 = vmul.f32 %v5721_v16, %v9652_v21  ;;  %v2518_v30 = vadd.f32 %v9642_v55, %v2222_v7 }
 0x15c   :  { %v3080_v13 = vadd.f32 %v2784_v54, %v2783_v33  ;;  %v1570_v10 = vadd.f32 %v1314_v6, %v922_v23  ;;  %v293_v52 = vmul.f32 %v5890_v29, %v9638_v8  ;;  %v294_v49 = vmul.f32 %v5892_v27, %v9638_v8  ;;  %v9653_v23 = vld [vmem:[#allocation54_spill] sm:$0xff] }
 0x15d   :  { %v2773_v37 = vmax.f32 %v2517_v20, 0.0  ;;  %v2217_v60 = vadd.f32 %v1961_v46, %v1569_v61  ;;  %v685_v3 = vmul.f32 %v5900_v22, %v9639_v56  ;;  %v2774_v31 = vmax.f32 %v2518_v30, 0.0 }
 0x15e   :  { %3081 = vadd.xlane.f32.xlu0 %v3080_v13  ;;  %v2218_v4 = vadd.f32 %v1962_v0, %v1570_v10  ;;  %v686_v54 = vmul.f32 %v5902_v28, %v9639_v56  ;;  %v1333_v7 = vmul.f32 %v5904_v47, %v9640_v1  ;;  %v1334_v61 = vmul.f32 %v5906_v9, %v9640_v1  ;;  %v2962_v13 = vpop.xlane.xlu0 %2961 }
 0x15f   :  { %v2513_v2 = vadd.f32 %v9653_v23, %v2217_v60  ;;  %v941_v26 = vadd.f32 %v685_v3, %v293_v52  ;;  %v1981_v6 = vmul.f32 %v5912_v44, %v9641_v58  ;;  %v3065_v33 = vadd.f32 %v2774_v31, %v2773_v37 }
 0x160   :  { %v2514_v20 = vadd.f32 %v9653_v23, %v2218_v4  ;;  %v942_v46 = vadd.f32 %v686_v54, %v294_v49  ;;  %v1982_v0 = vmul.f32 %v5914_v14, %v9641_v58  ;;  %v3493_v30 = vperm.slane %v2959_v51, %v5934_v25 }
 0x161   :  { %v2769_v10 = vmax.f32 %v2513_v2, 0.0  ;;  %v1589_v56 = vadd.f32 %v1333_v7, %v941_v26  ;;  %v5982_v52 = vadd.s32 4294967288, %v5934_v25  ;;  %3066 = vadd.xlane.f32.xlu1 %v3065_v33  ;;  %v5985_v37 = vadd.s32 4294967272, %v5934_v25 }
 0x162   :  { %v2770_v60 = vmax.f32 %v2514_v20, 0.0  ;;  %v1590_v3 = vadd.f32 %v1334_v61, %v942_v46  ;;  %v283_v4 = vmul.f32 %v5696_v43, %v9643_v62  ;;  %v675_v51 = vmul.f32 %v5700_v48, %v9644_v34 }
 0x163   :  { %9654 = vst [vmem:[#allocation48_spill] sm:$0xff] %v5982_v52  ;;  %v2237_v31 = vadd.f32 %v1981_v6, %v1589_v56  ;;  %v3495_v49 = vperm.slane %v2962_v13, %v5982_v52  ;;  %v284_v2 = vmul.f32 %v5698_v50, %v9643_v62  ;;  %v676_v26 = vmul.f32 %v5705_v42, %v9644_v34 }
 0x164   :  { %9655 = vst [vmem:[#allocation62_spill] sm:$0xff] %v5985_v37  ;;  %v3059_v54 = vadd.f32 %v2770_v60, %v2769_v10  ;;  %v2238_v7 = vadd.f32 %v1982_v0, %v1590_v3  ;;  %v931_v6 = vadd.f32 %v675_v51, %v283_v4  ;;  %v1323_v33 = vmul.f32 %v5715_v18, %v9645_v40  ;;  %v9656_v3 = vld [vmem:[#allocation9_spill] sm:$0xff] }
 0x165   :  { %v2533_v61 = vadd.f32 %v9642_v55, %v2237_v31  ;;  %v5998_v56 = vsel %vm3496_vm6, %v3495_v49, %v3493_v30  ;;  %v932_v46 = vadd.f32 %v676_v26, %v284_v2  ;;  %v1324_v0 = vmul.f32 %v5717_v59, %v9645_v40 }
 0x166   :  { %3060 = vadd.xlane.f32.xlu2 %v3059_v54  ;;  %v2534_v20 = vadd.f32 %v9642_v55, %v2238_v7  ;;  %v1971_v13 = vmul.f32 %v5719_v24, %v9646_v45  ;;  %v1579_v60 = vadd.f32 %v1323_v33, %v931_v6  ;;  %v1972_v30 = vmul.f32 %v5721_v16, %v9646_v45  ;;  %v9657_v54 = vld [vmem:[#allocation24_spill] sm:$0xff] }
 0x167   :  { %v2789_v10 = vmax.f32 %v2533_v61, 0.0  ;;  %v279_v31 = vmul.f32 %v5696_v43, %v9656_v3  ;;  %v1580_v4 = vadd.f32 %v1324_v0, %v932_v46  ;;  %v280_v51 = vmul.f32 %v5698_v50, %v9656_v3  ;;  %v9658_v61 = vld [vmem:[#allocation67_spill] sm:$0xff] }
 0x168   :  { %v2790_v49 = vmax.f32 %v2534_v20, 0.0  ;;  %v671_v7 = vmul.f32 %v5700_v48, %v9657_v54  ;;  %v2227_v2 = vadd.f32 %v1971_v13, %v1579_v60  ;;  %v672_v26 = vmul.f32 %v5705_v42, %v9657_v54  ;;  %v9659_v46 = vld [vmem:[#allocation31_spill] sm:$0xff] }
 0x169   :  { %v1319_v6 = vmul.f32 %v5715_v18, %v9658_v61  ;;  %v1320_v33 = vmul.f32 %v5717_v59, %v9658_v61  ;;  %v2228_v43 = vadd.f32 %v1972_v30, %v1580_v4  ;;  %v1967_v0 = vmul.f32 %v5719_v24, %v9659_v46 }
 0x16a   :  { %v3089_v55 = vadd.f32 %v2790_v49, %v2789_v10  ;;  %v927_v20 = vadd.f32 %v671_v7, %v279_v31  ;;  %v2523_v50 = vadd.f32 %v9647_v17, %v2227_v2  ;;  %v928_v58 = vadd.f32 %v672_v26, %v280_v51  ;;  %v6037_v31 = vpop.xlane.xlu2 %2967 }
 0x16b   :  { %v1968_v48 = vmul.f32 %v5721_v16, %v9659_v46  ;;  %v299_v42 = vmul.f32 %v5890_v29, %v9643_v62  ;;  %v2524_v18 = vadd.f32 %v9647_v17, %v2228_v43  ;;  %v300_v59 = vmul.f32 %v5892_v27, %v9643_v62 }
 0x16c   :  { %3090 = vadd.xlane.f32.xlu0 %v3089_v55  ;;  %v1575_v13 = vadd.f32 %v1319_v6, %v927_v20  ;;  %v691_v10 = vmul.f32 %v5900_v22, %v9644_v34  ;;  %v2779_v24 = vmax.f32 %v2523_v50, 0.0  ;;  %v1576_v60 = vadd.f32 %v1320_v33, %v928_v58  ;;  %v9660_v33 = vld [vmem:[#allocation42_spill] sm:$0xff] }
 0x16d   :  { %v692_v30 = vmul.f32 %v5902_v28, %v9644_v34  ;;  %v1339_v16 = vmul.f32 %v5904_v47, %v9645_v40  ;;  %v2780_v55 = vmax.f32 %v2524_v18, 0.0  ;;  %v1340_v51 = vmul.f32 %v5906_v9, %v9645_v40 }
 0x16e   :  { %v2223_v49 = vadd.f32 %v1967_v0, %v1575_v13  ;;  %v947_v4 = vadd.f32 %v691_v10, %v299_v42  ;;  %v2224_v7 = vadd.f32 %v1968_v48, %v1576_v60  ;;  %v1987_v26 = vmul.f32 %v5912_v44, %v9646_v45 }
 0x16f   :  { %v948_v2 = vadd.f32 %v692_v30, %v300_v59  ;;  %v1988_v58 = vmul.f32 %v5914_v14, %v9646_v45  ;;  %v3074_v6 = vadd.f32 %v2780_v55, %v2779_v24  ;;  %v289_v48 = vmul.f32 %v5890_v29, %v9649_v12 }
 0x170   :  { %v2519_v43 = vadd.f32 %v9660_v33, %v2223_v49  ;;  %v1595_v20 = vadd.f32 %v1339_v16, %v947_v4  ;;  %v2520_v0 = vadd.f32 %v9660_v33, %v2224_v7  ;;  %v290_v59 = vmul.f32 %v5892_v27, %v9649_v12 }
 0x171   :  { %v1596_v42 = vadd.f32 %v1340_v51, %v948_v2  ;;  %3075 = vadd.xlane.f32.xlu1 %v3074_v6  ;;  %v681_v10 = vmul.f32 %v5900_v22, %v9650_v57  ;;  %v682_v30 = vmul.f32 %v5902_v28, %v9650_v57  ;;  %v1329_v16 = vmul.f32 %v5904_v47, %v9651_v19 }
 0x172   :  { %v2775_v18 = vmax.f32 %v2519_v43, 0.0  ;;  %v2243_v13 = vadd.f32 %v1987_v26, %v1595_v20  ;;  %v2776_v24 = vmax.f32 %v2520_v0, 0.0  ;;  %v1330_v4 = vmul.f32 %v5906_v9, %v9651_v19  ;;  %v9661_v20 = vld [vmem:[#allocation98_spill] sm:$0xff] }
 0x173   :  { %v2244_v60 = vadd.f32 %v1988_v58, %v1596_v42  ;;  %v937_v49 = vadd.f32 %v681_v10, %v289_v48  ;;  %v1977_v51 = vmul.f32 %v5912_v44, %v9652_v21  ;;  %v938_v26 = vadd.f32 %v682_v30, %v290_v59  ;;  %v9662_v10 = vld [vmem:[#allocation10_spill] sm:$0xff] }
 0x174   :  { %v2539_v55 = vadd.f32 %v9647_v17, %v2243_v13  ;;  %v3068_v7 = vadd.f32 %v2776_v24, %v2775_v18  ;;  %v1978_v58 = vmul.f32 %v5914_v14, %v9652_v21  ;;  %v285_v0 = vmul.f32 %v5890_v29, %v9661_v20 }
 0x175   :  { %v2540_v2 = vadd.f32 %v9647_v17, %v2244_v60  ;;  %v1585_v43 = vadd.f32 %v1329_v16, %v937_v49  ;;  %v286_v42 = vmul.f32 %v5892_v27, %v9661_v20  ;;  %v1586_v13 = vadd.f32 %v1330_v4, %v938_v26  ;;  %v9663_v60 = vld [vmem:[#allocation39_spill] sm:$0xff] }
 0x176   :  { %v2795_v6 = vmax.f32 %v2539_v55, 0.0  ;;  %3069 = vadd.xlane.f32.xlu2 %v3068_v7  ;;  %v677_v18 = vmul.f32 %v5900_v22, %v9662_v10  ;;  %v678_v59 = vmul.f32 %v5902_v28, %v9662_v10  ;;  %v1325_v30 = vmul.f32 %v5904_v47, %v9663_v60  ;;  %v9664_v55 = vld [vmem:[#allocation82_spill] sm:$0xff] }
 0x177   :  { %v2796_v48 = vmax.f32 %v2540_v2, 0.0  ;;  %v2233_v24 = vadd.f32 %v1977_v51, %v1585_v43  ;;  %v1326_v16 = vmul.f32 %v5906_v9, %v9663_v60  ;;  %v1973_v49 = vmul.f32 %v5912_v44, %v9664_v55 }
 0x178   :  { %v2234_v7 = vadd.f32 %v1978_v58, %v1586_v13  ;;  %v933_v2 = vadd.f32 %v677_v18, %v285_v0  ;;  %v934_v4 = vadd.f32 %v678_v59, %v286_v42  ;;  %v6082_v26 = vadd.s32 4294967256, %v5934_v25 }
 0x179   :  { %v3098_v50 = vadd.f32 %v2796_v48, %v2795_v6  ;;  %v2529_v17 = vadd.f32 %v9653_v23, %v2233_v24  ;;  %v1974_v51 = vmul.f32 %v5914_v14, %v9664_v55  ;;  %v81_v58 = vsel %vm80_vm7, %v5663_v41, %v9628_v11 }
 0x17a   :  { %9665 = vst [vmem:[#allocation63_spill] sm:$0xff] %v6082_v26  ;;  %v2530_v43 = vadd.f32 %v9653_v23, %v2234_v7  ;;  %v1581_v45 = vadd.f32 %v1325_v30, %v933_v2  ;;  %v1582_v40 = vadd.f32 %v1326_v16, %v934_v4  ;;  %v82_v0 = vrot.slane %v81_v58, 6 }
 0x17b   :  { %3099 = vadd.xlane.f32.xlu0 %v3098_v50  ;;  %v2785_v6 = vmax.f32 %v2529_v17, 0.0  ;;  %v482_v42 = vsel %vm80_vm7, %v5671_v15, %v9629_v53  ;;  %v1130_v48 = vsel %vm80_vm7, %v5679_v36, %v9603_v63  ;;  %v1778_v41 = vsel %vm80_vm7, %v5687_v32, %v9630_v38 }
 0x17c   :  { %v2786_v13 = vmax.f32 %v2530_v43, 0.0  ;;  %v2229_v50 = vadd.f32 %v1973_v49, %v1581_v45  ;;  %v2230_v18 = vadd.f32 %v1974_v51, %v1582_v40  ;;  %v483_v59 = vrot.slane %v482_v42, 6 }
 0x17d   :  { %v6097_v24 = vperm.slane %v82_v0, 0  ;;  %v6099_v30 = vperm.slane %v82_v0, 1  ;;  %v1131_v16 = vrot.slane %v1130_v48, 6  ;;  %v1779_v0 = vrot.slane %v1778_v41, 6 }
 0x17e   :  { %v3083_v17 = vadd.f32 %v2786_v13, %v2785_v6  ;;  %v2525_v15 = vadd.f32 %v5255_v39, %v2229_v50  ;;  %v2526_v7 = vadd.f32 %v5255_v39, %v2230_v18  ;;  %v6106_v2 = vperm.slane %v483_v59, 0 }
 0x17f   :  { %9666 = vst [vmem:[#allocation41_spill] sm:$0xff] %v6097_v24  ;;  %v305_v36 = vmul.f32 %v6097_v24, %v9649_v12  ;;  %v306_v40 = vmul.f32 %v6099_v30, %v9649_v12  ;;  %v6112_v45 = vperm.slane %v483_v59, 1  ;;  %v6114_v49 = vperm.slane %v1131_v16, 0 }
 0x180   :  { %9667 = vst [vmem:[#allocation44_spill] sm:$0xff] %v6099_v30  ;;  %3084 = vadd.xlane.f32.xlu1 %v3083_v17  ;;  %v2781_v4 = vmax.f32 %v2525_v15, 0.0  ;;  %v2782_v32 = vmax.f32 %v2526_v7, 0.0  ;;  %v697_v51 = vmul.f32 %v6106_v2, %v9650_v57  ;;  %v6118_v43 = vperm.slane %v1131_v16, 1 }
 0x181   :  { %9668 = vst [vmem:[#allocation45_spill] sm:$0xff] %v6106_v2  ;;  %v698_v58 = vmul.f32 %v6112_v45, %v9650_v57  ;;  %v1345_v6 = vmul.f32 %v6114_v49, %v9651_v19  ;;  %v295_v42 = vmul.f32 %v5890_v29, %v9656_v3  ;;  %v296_v18 = vmul.f32 %v5892_v27, %v9656_v3 }
 0x182   :  { %9669 = vst [vmem:[#allocation46_spill] sm:$0xff] %v6118_v43  ;;  %v3077_v48 = vadd.f32 %v2782_v32, %v2781_v4  ;;  %v953_v13 = vadd.f32 %v697_v51, %v305_v36  ;;  %v1346_v50 = vmul.f32 %v6118_v43, %v9651_v19  ;;  %v6130_v16 = vperm.slane %v1779_v0, 0 }
 0x183   :  { %v954_v59 = vadd.f32 %v698_v58, %v306_v40  ;;  %v6132_v17 = vperm.slane %v1779_v0, 1  ;;  %v687_v15 = vmul.f32 %v5900_v22, %v9657_v54  ;;  %v688_v7 = vmul.f32 %v5902_v28, %v9657_v54  ;;  %v9672_v54 = vld [vmem:[#allocation15_spill] sm:$0xff] }
 0x184   :  { %9670 = vst [vmem:[#allocation64_spill] sm:$0xff] %v6130_v16  ;;  %3078 = vadd.xlane.f32.xlu2 %v3077_v48  ;;  %v1601_v41 = vadd.f32 %v1345_v6, %v953_v13  ;;  %v1335_v36 = vmul.f32 %v5904_v47, %v9658_v61  ;;  %v1336_v4 = vmul.f32 %v5906_v9, %v9658_v61 }
 0x185   :  { %9671 = vst [vmem:[#allocation65_spill] sm:$0xff] %v6132_v17  ;;  %v1602_v32 = vadd.f32 %v1346_v50, %v954_v59  ;;  %v1993_v40 = vmul.f32 %v6130_v16, %v9652_v21  ;;  %v1994_v51 = vmul.f32 %v6132_v17, %v9652_v21  ;;  %v943_v58 = vadd.f32 %v687_v15, %v295_v42  ;;  %v9673_v15 = vld [vmem:[#allocation52_spill] sm:$0xff] }
 0x186   :  { %v944_v0 = vadd.f32 %v688_v7, %v296_v18  ;;  %v1983_v6 = vmul.f32 %v5912_v44, %v9659_v46  ;;  %v1984_v48 = vmul.f32 %v5914_v14, %v9659_v46  ;;  %v291_v13 = vmul.f32 %v5890_v29, %v9616_v35 }
 0x187   :  { %v2249_v34 = vadd.f32 %v1993_v40, %v1601_v41  ;;  %v2250_v62 = vadd.f32 %v1994_v51, %v1602_v32  ;;  %v1591_v50 = vadd.f32 %v1335_v36, %v943_v58  ;;  %v292_v59 = vmul.f32 %v5892_v27, %v9616_v35  ;;  %v9674_v51 = vld [vmem:[#allocation97_spill] sm:$0xff] }
 0x188   :  { %v1592_v61 = vadd.f32 %v1336_v4, %v944_v0  ;;  %v683_v42 = vmul.f32 %v5900_v22, %v9672_v54  ;;  %v684_v18 = vmul.f32 %v5902_v28, %v9672_v54  ;;  %v1331_v7 = vmul.f32 %v5904_v47, %v9673_v15 }
 0x189   :  { %v2545_v46 = vadd.f32 %v9653_v23, %v2249_v34  ;;  %v2546_v3 = vadd.f32 %v9653_v23, %v2250_v62  ;;  %v2239_v41 = vadd.f32 %v1983_v6, %v1591_v50  ;;  %v1332_v36 = vmul.f32 %v5906_v9, %v9673_v15  ;;  %v6169_v34 = vpop.xlane.xlu0 %2973 }
 0x18a   :  { %v2240_v32 = vadd.f32 %v1984_v48, %v1592_v61  ;;  %v939_v40 = vadd.f32 %v683_v42, %v291_v13  ;;  %v940_v4 = vadd.f32 %v684_v18, %v292_v59  ;;  %v1979_v58 = vmul.f32 %v5912_v44, %v9674_v51 }
 0x18b   :  { %v2801_v0 = vmax.f32 %v2545_v46, 0.0  ;;  %v2802_v1 = vmax.f32 %v2546_v3, 0.0  ;;  %v2535_v8 = vadd.f32 %v9660_v33, %v2239_v41  ;;  %v1980_v21 = vmul.f32 %v5914_v14, %v9674_v51 }
 0x18c   :  { %v2536_v62 = vadd.f32 %v9660_v33, %v2240_v32  ;;  %v1587_v6 = vadd.f32 %v1331_v7, %v939_v40  ;;  %v1588_v50 = vadd.f32 %v1332_v36, %v940_v4  ;;  %v307_v61 = vmul.f32 %v6097_v24, %v9616_v35  ;;  %v9675_v40 = vld [vmem:[#allocation34_spill] sm:$0xff] }
 0x18d   :  { %v3107_v48 = vadd.f32 %v2802_v1, %v2801_v0  ;;  %v2791_v13 = vmax.f32 %v2535_v8, 0.0  ;;  %v308_v46 = vmul.f32 %v6099_v30, %v9616_v35  ;;  %v699_v3 = vmul.f32 %v6106_v2, %v9672_v54  ;;  %v2965_v0 = vpop.xlane.xlu1 %2964 }
 0x18e   :  { %v2792_v59 = vmax.f32 %v2536_v62, 0.0  ;;  %v2235_v42 = vadd.f32 %v1979_v58, %v1587_v6  ;;  %v2236_v18 = vadd.f32 %v1980_v21, %v1588_v50  ;;  %v700_v41 = vmul.f32 %v6112_v45, %v9672_v54 }
 0x18f   :  { %3108 = vadd.xlane.f32.xlu0 %v3107_v48  ;;  %v955_v7 = vadd.f32 %v699_v3, %v307_v61  ;;  %v1347_v36 = vmul.f32 %v6114_v49, %v9673_v15  ;;  %v1348_v8 = vmul.f32 %v6118_v43, %v9673_v15  ;;  %v1995_v1 = vmul.f32 %v6130_v16, %v9674_v51 }
 0x190   :  { %v3092_v32 = vadd.f32 %v2792_v59, %v2791_v13  ;;  %v2531_v4 = vadd.f32 %v9675_v40, %v2235_v42  ;;  %v2532_v58 = vadd.f32 %v9675_v40, %v2236_v18  ;;  %v956_v21 = vadd.f32 %v700_v41, %v308_v46 }
 0x191   :  { %v1603_v6 = vadd.f32 %v1347_v36, %v955_v7  ;;  %v1996_v50 = vmul.f32 %v6132_v17, %v9674_v51  ;;  %v6193_v61 = vadd.s32 4294967280, %v5934_v25  ;;  %v301_v46 = vmul.f32 %v6097_v24, %v9661_v20 }
 0x192   :  { %3093 = vadd.xlane.f32.xlu1 %v3092_v32  ;;  %v2787_v48 = vmax.f32 %v2531_v4, 0.0  ;;  %v2788_v3 = vmax.f32 %v2532_v58, 0.0  ;;  %v1604_v13 = vadd.f32 %v1348_v8, %v956_v21  ;;  %v302_v18 = vmul.f32 %v6099_v30, %v9661_v20  ;;  %v6213_v21 = vpop.xlane.xlu0 %2982 }
 0x193   :  { %9676 = vst [vmem:[#allocation69_spill] sm:$0xff] %v6193_v61  ;;  %v2251_v59 = vadd.f32 %v1995_v1, %v1603_v6  ;;  %v3499_v42 = vperm.slane %v2965_v0, %v6193_v61  ;;  %v693_v36 = vmul.f32 %v6106_v2, %v9662_v10  ;;  %v694_v32 = vmul.f32 %v6112_v45, %v9662_v10  ;;  %v9678_v61 = vld [vmem:[#allocation25_spill] sm:$0xff] }
 0x194   :  { %v3086_v41 = vadd.f32 %v2788_v3, %v2787_v48  ;;  %v2252_v7 = vadd.f32 %v1996_v50, %v1604_v13  ;;  %v1341_v4 = vmul.f32 %v6114_v49, %v9663_v60  ;;  %v1342_v58 = vmul.f32 %v6118_v43, %v9663_v60  ;;  %v9677_v13 = vld [vmem:[#allocation51_spill] sm:$0xff] }
 0x195   :  { %v2547_v8 = vadd.f32 %v9675_v40, %v2251_v59  ;;  %v6207_v1 = vsel %vm3500_vm8, %v3499_v42, %v5998_v56  ;;  %v949_v6 = vadd.f32 %v693_v36, %v301_v46  ;;  %v950_v50 = vadd.f32 %v694_v32, %v302_v18  ;;  %v9679_v36 = vld [vmem:[#allocation53_spill] sm:$0xff] }
 0x196   :  { %3087 = vadd.xlane.f32.xlu2 %v3086_v41  ;;  %v2548_v0 = vadd.f32 %v9675_v40, %v2252_v7  ;;  %v1989_v48 = vmul.f32 %v6130_v16, %v9664_v55  ;;  %v1990_v56 = vmul.f32 %v6132_v17, %v9664_v55  ;;  %v297_v59 = vmul.f32 %v5890_v29, %v9677_v13 }
 0x197   :  { %v2803_v3 = vmax.f32 %v2547_v8, 0.0  ;;  %v298_v42 = vmul.f32 %v5892_v27, %v9677_v13  ;;  %v1597_v33 = vadd.f32 %v1341_v4, %v949_v6  ;;  %v1598_v41 = vadd.f32 %v1342_v58, %v950_v50  ;;  %v9680_v6 = vld [vmem:[#allocation81_spill] sm:$0xff]  ;;  %v1760_v13 = vld [vmem:[%s8861_s0 + $0x78] sm:$0xff] }
 0x198   :  { %v2804_v62 = vmax.f32 %v2548_v0, 0.0  ;;  %v689_v46 = vmul.f32 %v5900_v22, %v9678_v61  ;;  %v690_v7 = vmul.f32 %v5902_v28, %v9678_v61  ;;  %v1337_v32 = vmul.f32 %v5904_v47, %v9679_v36 }
 0x199   :  { %v1338_v29 = vmul.f32 %v5906_v9, %v9679_v36  ;;  %v2245_v27 = vadd.f32 %v1989_v48, %v1597_v33  ;;  %v2246_v0 = vadd.f32 %v1990_v56, %v1598_v41  ;;  %v1985_v22 = vmul.f32 %v5912_v44, %v9680_v6  ;;  %v4356_v9 = vld [vmem:[%s8861_s0] sm:$0xff]  ;;  %v4357_v44 = vld [vmem:[%s8861_s0 + $0x10] sm:$0xff] }
 0x19a   :  { %v3110_v8 = vadd.f32 %v2804_v62, %v2803_v3  ;;  %v945_v4 = vadd.f32 %v689_v46, %v297_v59  ;;  %v946_v58 = vadd.f32 %v690_v7, %v298_v42  ;;  %v1986_v50 = vmul.f32 %v5914_v14, %v9680_v6  ;;  %v4358_v3 = vld [vmem:[%s8861_s0 + $0x20] sm:$0xff] }
 0x19b   :  { %v2541_v28 = vadd.f32 %v5255_v39, %v2245_v27  ;;  %v2542_v47 = vadd.f32 %v5255_v39, %v2246_v0  ;;  %v84_v33 = vsel %vm83_vm9, %v9628_v11, %v4356_v9  ;;  %v484_v14 = vsel %vm83_vm9, %v9629_v53, %v4357_v44  ;;  %v9683_v27 = vld [vmem:[#allocation35_spill] sm:$0xff] }
 0x19c   :  { %3111 = vadd.xlane.f32.xlu0 %v3110_v8  ;;  %v1593_v18 = vadd.f32 %v1337_v32, %v945_v4  ;;  %v1594_v62 = vadd.f32 %v1338_v29, %v946_v58  ;;  %v85_v48 = vrot.slane %v84_v33, 7  ;;  %v1132_v56 = vsel %vm83_vm9, %v9603_v63, %v4358_v3  ;;  %v6259_v8 = vpop.xlane.xlu0 %2991 }
 0x19d   :  { %v2797_v59 = vmax.f32 %v2541_v28, 0.0  ;;  %v2798_v42 = vmax.f32 %v2542_v47, 0.0  ;;  %v485_v11 = vrot.slane %v484_v14, 7  ;;  %v1133_v29 = vrot.slane %v1132_v56, 7  ;;  %v4359_v14 = vld [vmem:[%s8861_s0 + $0x30] sm:$0xff] }
 0x19e   :  { %v2241_v41 = vadd.f32 %v1985_v22, %v1593_v18  ;;  %v2242_v46 = vadd.f32 %v1986_v50, %v1594_v62  ;;  %v6255_v7 = vperm.slane %v85_v48, 0  ;;  %v6257_v32 = vperm.slane %v85_v48, 1 }
 0x19f   :  { %v3101_v53 = vadd.f32 %v2798_v42, %v2797_v59  ;;  %v6262_v4 = vperm.slane %v485_v11, 0  ;;  %v6264_v58 = vperm.slane %v485_v11, 1  ;;  %v6271_v50 = vperm.slane %v1133_v29, 0  ;;  %v2971_v11 = vpop.xlane.xlu2 %2970 }
 0x1a0   :  { %9681 = vst [vmem:[#allocation71_spill] sm:$0xff] %v6255_v7  ;;  %v2537_v0 = vadd.f32 %v9683_v27, %v2241_v41  ;;  %v2538_v63 = vadd.f32 %v9683_v27, %v2242_v46  ;;  %v323_v18 = vmul.f32 %v6255_v7, %v9616_v35  ;;  %v324_v22 = vmul.f32 %v6257_v32, %v9616_v35 }
 0x1a1   :  { %9682 = vst [vmem:[#allocation88_spill] sm:$0xff] %v6257_v32  ;;  %3102 = vadd.xlane.f32.xlu1 %v3101_v53  ;;  %v715_v47 = vmul.f32 %v6262_v4, %v9672_v54  ;;  %v716_v9 = vmul.f32 %v6264_v58, %v9672_v54  ;;  %v6277_v33 = vperm.slane %v1133_v29, 1  ;;  %v1363_v44 = vmul.f32 %v6271_v50, %v9673_v15 }
 0x1a2   :  { %9684 = vst [vmem:[#allocation89_spill] sm:$0xff] %v6262_v4  ;;  %v2793_v28 = vmax.f32 %v2537_v0, 0.0  ;;  %v2794_v48 = vmax.f32 %v2538_v63, 0.0  ;;  %v1780_v3 = vsel %vm83_vm9, %v9630_v38, %v4359_v14  ;;  %v6291_v29 = vadd.s32 4294967248, %v5934_v25 }
 0x1a3   :  { %9685 = vst [vmem:[#allocation58_spill] sm:$0xff] %v6264_v58  ;;  %v971_v56 = vadd.f32 %v715_v47, %v323_v18  ;;  %v972_v59 = vadd.f32 %v716_v9, %v324_v22  ;;  %v1364_v42 = vmul.f32 %v6277_v33, %v9673_v15  ;;  %v1781_v41 = vrot.slane %v1780_v3, 7  ;;  %v9698_v15 = vld [vmem:[#allocation70_spill] sm:$0xff] }
 0x1a4   :  { %9686 = vst [vmem:[#allocation59_spill] sm:$0xff] %v6271_v50  ;;  %v3095_v46 = vadd.f32 %v2794_v48, %v2793_v28  ;;  %v6294_v53 = vadd.s32 4294967264, %v5934_v25  ;;  %v9692_v18 = vperm.slane %v6037_v31, %v5985_v37  ;;  %v317_v48 = vmul.f32 %v6255_v7, %v9661_v20 }
 0x1a5   :  { %9687 = vst [vmem:[#allocation78_spill] sm:$0xff] %v6277_v33  ;;  %v1619_v0 = vadd.f32 %v1363_v44, %v971_v56  ;;  %v1620_v63 = vadd.f32 %v1364_v42, %v972_v59  ;;  %v6296_v62 = vperm.slane %v1781_v41, 0  ;;  %v6298_v38 = vperm.slane %v1781_v41, 1 }
 0x1a6   :  { %9688 = vst [vmem:[#allocation79_spill] sm:$0xff] %v6291_v29  ;;  %3096 = vadd.xlane.f32.xlu2 %v3095_v46  ;;  %v3505_v22 = vsel %vm3504_vm10, %v9692_v18, %v6207_v1  ;;  %v3507_v28 = vperm.slane %v2971_v11, %v6294_v53  ;;  %v318_v44 = vmul.f32 %v6257_v32, %v9661_v20 }
 0x1a7   :  { %9689 = vst [vmem:[#allocation72_spill] sm:$0xff] %v6294_v53  ;;  %v2011_v47 = vmul.f32 %v6296_v62, %v9674_v51  ;;  %v2012_v9 = vmul.f32 %v6298_v38, %v9674_v51  ;;  %v709_v1 = vmul.f32 %v6262_v4, %v9662_v10  ;;  %v710_v14 = vmul.f32 %v6264_v58, %v9662_v10 }
 0x1a8   :  { %9690 = vst [vmem:[#allocation73_spill] sm:$0xff] %v6296_v62  ;;  %v3509_v31 = vsel %vm3508_vm11, %v3507_v28, %v3505_v22  ;;  %v1357_v3 = vmul.f32 %v6271_v50, %v9663_v60  ;;  %v9693_v42 = vperm.slane %v6169_v34, %v6082_v26  ;;  %v1358_v11 = vmul.f32 %v6277_v33, %v9663_v60 }
 0x1a9   :  { %9691 = vst [vmem:[#allocation90_spill] sm:$0xff] %v6298_v38  ;;  %v2267_v56 = vadd.f32 %v2011_v47, %v1619_v0  ;;  %v2268_v59 = vadd.f32 %v2012_v9, %v1620_v63  ;;  %v965_v46 = vadd.f32 %v709_v1, %v317_v48  ;;  %v966_v18 = vadd.f32 %v710_v14, %v318_v44  ;;  %v9694_v47 = vld [vmem:[#allocation68_spill] sm:$0xff] }
 0x1aa   :  { %v6325_v41 = vsel %vm3512_vm12, %v9693_v42, %v3509_v31  ;;  %v2005_v22 = vmul.f32 %v6296_v62, %v9664_v55  ;;  %v2006_v28 = vmul.f32 %v6298_v38, %v9664_v55  ;;  %v303_v34 = vmul.f32 %v6097_v24, %v9694_v47  ;;  %v6339_v31 = vpop.xlane.xlu1 %2976  ;;  %v9695_v1 = vld [vmem:[#allocation16_spill] sm:$0xff] }
 0x1ab   :  { %v2563_v0 = vadd.f32 %v9675_v40, %v2267_v56  ;;  %v2564_v63 = vadd.f32 %v9675_v40, %v2268_v59  ;;  %v304_v9 = vmul.f32 %v6099_v30, %v9694_v47  ;;  %v1613_v48 = vadd.f32 %v1357_v3, %v965_v46  ;;  %v56_v56 = vld [vmem:[%s8861_s0 + $0x48] sm:$0xff]  ;;  %v9696_v40 = vld [vmem:[#allocation40_spill] sm:$0xff] }
 0x1ac   :  { %v1614_v44 = vadd.f32 %v1358_v11, %v966_v18  ;;  %v695_v14 = vmul.f32 %v6106_v2, %v9695_v1  ;;  %v696_v42 = vmul.f32 %v6112_v45, %v9695_v1  ;;  %v1343_v6 = vmul.f32 %v6114_v49, %v9696_v40  ;;  %v6355_v3 = vld [vmem:[%s8861_s0 + $0x40] sm:$0xff] }
 0x1ad   :  { %v2819_v59 = vmax.f32 %v2563_v0, 0.0  ;;  %v2820_v27 = vmax.f32 %v2564_v63, 0.0  ;;  %v1344_v36 = vmul.f32 %v6118_v43, %v9696_v40  ;;  %9697 = vst [vmem:[#allocation91_spill] sm:$0xff] %v6355_v3  ;;  %v2261_v11 = vadd.f32 %v2005_v22, %v1613_v48  ;;  %v464_v0 = vld [vmem:[%s8861_s0 + $0x58] sm:$0xff]  ;;  %v1112_v63 = vld [vmem:[%s8861_s0 + $0x68] sm:$0xff] }
 0x1ae   :  { %v2262_v46 = vadd.f32 %v2006_v28, %v1614_v44  ;;  %v951_v18 = vadd.f32 %v695_v14, %v303_v34  ;;  %v952_v61 = vadd.f32 %v696_v42, %v304_v9  ;;  %v1991_v54 = vmul.f32 %v6130_v16, %v9698_v15  ;;  %v6377_v14 = vld [vmem:[%s8861_s0 + $0x50] sm:$0xff] }
 0x1af   :  { %v3134_v51 = vadd.f32 %v2820_v27, %v2819_v59  ;;  %v1992_v22 = vmul.f32 %v6132_v17, %v9698_v15  ;;  %v6370_v28 = vrot.slane %v56_v56, 7  ;;  %v2557_v34 = vadd.f32 %v5255_v39, %v2261_v11  ;;  %9700 = vst [vmem:[#allocation85_spill] sm:$0xff] %v6377_v14  ;;  %v6382_v27 = vld [vmem:[%s8861_s0 + $0x60] sm:$0xff]  ;;  %v6387_v42 = vld [vmem:[%s8861_s0 + $0x70] sm:$0xff] }
 0x1b0   :  { %v2558_v9 = vadd.f32 %v5255_v39, %v2262_v46  ;;  %v1599_v48 = vadd.f32 %v1343_v6, %v951_v18  ;;  %v1600_v44 = vadd.f32 %v1344_v36, %v952_v61  ;;  %9701 = vst [vmem:[#allocation93_spill] sm:$0xff] %v6382_v27  ;;  %v6392_v36 = vrot.slane %v464_v0, 7 }
 0x1b1   :  { %9699 = vst [vmem:[#allocation13_spill] sm:$0xff] %v6370_v28  ;;  %3135 = vadd.xlane.f32.xlu0 %v3134_v51  ;;  %v87_v61 = vsel %vm65_vm0, %v6355_v3, %v6370_v28  ;;  %v6394_v6 = vrot.slane %v1112_v63, 7  ;;  %v6396_v56 = vrot.slane %v1760_v13, 7  ;;  %v2813_v59 = vmax.f32 %v2557_v34, 0.0 }
 0x1b2   :  { %9702 = vst [vmem:[#allocation94_spill] sm:$0xff] %v6392_v36  ;;  %v2814_v11 = vmax.f32 %v2558_v9, 0.0  ;;  %v2247_v46 = vadd.f32 %v1991_v54, %v1599_v48  ;;  %v2248_v18 = vadd.f32 %v1992_v22, %v1600_v44  ;;  %v88_v35 = vrot.slane %v87_v61, 1  ;;  %v2986_v43 = vpop.xlane.xlu1 %2985 }
 0x1b3   :  { %9703 = vst [vmem:[#allocation74_spill] sm:$0xff] %v6394_v6  ;;  %v487_v26 = vsel %vm65_vm0, %v6377_v14, %v6392_v36  ;;  %v1135_v51 = vsel %vm65_vm0, %v6382_v27, %v6394_v6  ;;  %v1783_v0 = vsel %vm65_vm0, %v6387_v42, %v6396_v56 }
 0x1b4   :  { %9704 = vst [vmem:[#allocation20_spill] sm:$0xff] %v6396_v56  ;;  %v3125_v63 = vadd.f32 %v2814_v11, %v2813_v59  ;;  %v2543_v13 = vadd.f32 %v9637_v5, %v2247_v46  ;;  %v2544_v34 = vadd.f32 %v9637_v5, %v2248_v18  ;;  %v488_v54 = vrot.slane %v487_v26, 1 }
 0x1b5   :  { %v6409_v22 = vperm.slane %v88_v35, 0  ;;  %v6411_v9 = vperm.slane %v88_v35, 1  ;;  %v1136_v48 = vrot.slane %v1135_v51, 1  ;;  %v1784_v44 = vrot.slane %v1783_v0, 1 }
 0x1b6   :  { %3126 = vadd.xlane.f32.xlu1 %v3125_v63  ;;  %v2799_v61 = vmax.f32 %v2543_v13, 0.0  ;;  %v2800_v53 = vmax.f32 %v2544_v34, 0.0  ;;  %v6413_v17 = vperm.slane %v488_v54, 0  ;;  %v6415_v16 = vperm.slane %v488_v54, 1 }
 0x1b7   :  { %9705 = vst [vmem:[#allocation75_spill] sm:$0xff] %v6409_v22  ;;  %v349_v59 = vmul.f32 %v6409_v22, %v9661_v20  ;;  %v350_v26 = vmul.f32 %v6411_v9, %v9661_v20  ;;  %v6421_v11 = vperm.slane %v1136_v48, 0  ;;  %v6423_v35 = vperm.slane %v1136_v48, 1 }
 0x1b8   :  { %9706 = vst [vmem:[#allocation28_spill] sm:$0xff] %v6411_v9  ;;  %v3104_v46 = vadd.f32 %v2800_v53, %v2799_v61  ;;  %v741_v18 = vmul.f32 %v6413_v17, %v9662_v10  ;;  %v742_v51 = vmul.f32 %v6415_v16, %v9662_v10  ;;  %v6429_v0 = vperm.slane %v1784_v44, 0 }
 0x1b9   :  { %9707 = vst [vmem:[#allocation21_spill] sm:$0xff] %v6413_v17  ;;  %v3515_v63 = vperm.slane %v6339_v31, %v6291_v29  ;;  %v1389_v13 = vmul.f32 %v6421_v11, %v9663_v60  ;;  %v6435_v34 = vperm.slane %v1784_v44, 1  ;;  %v3523_v54 = vperm.slane %v2986_v43, %v5982_v52  ;;  %v2980_v17 = vpop.xlane.xlu2 %2979  ;;  %v9733_v52 = vld [vmem:[#allocation46_spill] sm:$0xff] }
 0x1ba   :  { %9708 = vst [vmem:[#allocation22_spill] sm:$0xff] %v6415_v16  ;;  %3105 = vadd.xlane.f32.xlu2 %v3104_v46  ;;  %v997_v53 = vadd.f32 %v741_v18, %v349_v59  ;;  %v998_v48 = vadd.f32 %v742_v51, %v350_v26  ;;  %v1390_v61 = vmul.f32 %v6423_v35, %v9663_v60  ;;  %v6451_v43 = vadd.s32 4294967240, %v5934_v25 }
 0x1bb   :  { %9709 = vst [vmem:[#allocation83_spill] sm:$0xff] %v6421_v11  ;;  %v2037_v16 = vmul.f32 %v6429_v0, %v9664_v55  ;;  %v2038_v31 = vmul.f32 %v6435_v34, %v9664_v55  ;;  %v9713_v11 = vperm.slane %v6213_v21, %v5934_v25  ;;  %v3517_v46 = vsel %vm3516_vm13, %v3515_v63, %v6325_v41 }
 0x1bc   :  { %9710 = vst [vmem:[#allocation84_spill] sm:$0xff] %v6423_v35  ;;  %v1645_v59 = vadd.f32 %v1389_v13, %v997_v53  ;;  %v1646_v26 = vadd.f32 %v1390_v61, %v998_v48  ;;  %v3519_v18 = vperm.slane %v2980_v17, %v6451_v43  ;;  %v321_v51 = vmul.f32 %v6255_v7, %v9649_v12  ;;  %v9716_v61 = vld [vmem:[#allocation57_spill] sm:$0xff] }
 0x1bd   :  { %9711 = vst [vmem:[#allocation86_spill] sm:$0xff] %v6429_v0  ;;  %v6448_v44 = vsel %vm3496_vm6, %v3523_v54, %v9713_v11  ;;  %v322_v21 = vmul.f32 %v6257_v32, %v9649_v12  ;;  %v713_v11 = vmul.f32 %v6262_v4, %v9650_v57  ;;  %v6462_v54 = vpop.xlane.xlu0 %3000  ;;  %v714_v53 = vmul.f32 %v6264_v58, %v9650_v57 }
 0x1be   :  { %9712 = vst [vmem:[#allocation29_spill] sm:$0xff] %v6435_v34  ;;  %v2293_v25 = vadd.f32 %v2037_v16, %v1645_v59  ;;  %v2294_v13 = vadd.f32 %v2038_v31, %v1646_v26  ;;  %v1361_v41 = vmul.f32 %v6271_v50, %v9651_v19  ;;  %v6469_v17 = vsel %vm3520_vm14, %v3519_v18, %v3517_v46 }
 0x1bf   :  { %9714 = vst [vmem:[#allocation87_spill] sm:$0xff] %v6451_v43  ;;  %v969_v63 = vadd.f32 %v713_v11, %v321_v51  ;;  %v1362_v48 = vmul.f32 %v6277_v33, %v9651_v19  ;;  %v2009_v12 = vmul.f32 %v6296_v62, %v9716_v61  ;;  %v970_v31 = vadd.f32 %v714_v53, %v322_v21 }
 0x1c0   :  { %9715 = vst [vmem:[#allocation30_spill] sm:$0xff] %v6469_v17  ;;  %v2589_v34 = vadd.f32 %v5255_v39, %v2293_v25  ;;  %v2590_v16 = vadd.f32 %v5255_v39, %v2294_v13  ;;  %v2010_v59 = vmul.f32 %v6298_v38, %v9716_v61  ;;  %v319_v46 = vmul.f32 %v6255_v7, %v9694_v47 }
 0x1c1   :  { %v1617_v26 = vadd.f32 %v1361_v41, %v969_v63  ;;  %v320_v18 = vmul.f32 %v6257_v32, %v9694_v47  ;;  %v711_v51 = vmul.f32 %v6262_v4, %v9695_v1  ;;  %v1618_v19 = vadd.f32 %v1362_v48, %v970_v31 }
 0x1c2   :  { %v2845_v11 = vmax.f32 %v2589_v34, 0.0  ;;  %v2846_v17 = vmax.f32 %v2590_v16, 0.0  ;;  %v712_v25 = vmul.f32 %v6264_v58, %v9695_v1  ;;  %v1359_v53 = vmul.f32 %v6271_v50, %v9696_v40 }
 0x1c3   :  { %v2265_v21 = vadd.f32 %v2009_v12, %v1617_v26  ;;  %v967_v13 = vadd.f32 %v711_v51, %v319_v46  ;;  %v1360_v41 = vmul.f32 %v6277_v33, %v9696_v40  ;;  %v2266_v61 = vadd.f32 %v2010_v59, %v1618_v19  ;;  %v9717_v12 = vld [vmem:[#allocation8_spill] sm:$0xff] }
 0x1c4   :  { %v3173_v63 = vadd.f32 %v2846_v17, %v2845_v11  ;;  %v968_v57 = vadd.f32 %v712_v25, %v320_v18  ;;  %v2007_v0 = vmul.f32 %v6296_v62, %v9698_v15  ;;  %v2008_v16 = vmul.f32 %v6298_v38, %v9698_v15  ;;  %v9718_v17 = vld [vmem:[#allocation66_spill] sm:$0xff]  ;;  %v9719_v25 = vld [vmem:[#allocation19_spill] sm:$0xff] }
 0x1c5   :  { %v2561_v34 = vadd.f32 %v9653_v23, %v2265_v21  ;;  %v1615_v48 = vadd.f32 %v1359_v53, %v967_v13  ;;  %v325_v31 = vmul.f32 %v6255_v7, %v9717_v12  ;;  %v2562_v26 = vadd.f32 %v9653_v23, %v2266_v61  ;;  %v6507_v13 = vpop.xlane.xlu0 %3009 }
 0x1c6   :  { %3174 = vadd.xlane.f32.xlu0 %v3173_v63  ;;  %v1616_v46 = vadd.f32 %v1360_v41, %v968_v57  ;;  %v326_v19 = vmul.f32 %v6257_v32, %v9717_v12  ;;  %v717_v59 = vmul.f32 %v6262_v4, %v9718_v17  ;;  %v718_v11 = vmul.f32 %v6264_v58, %v9718_v17  ;;  %v2989_v41 = vpop.xlane.xlu2 %2988 }
 0x1c7   :  { %v2817_v18 = vmax.f32 %v2561_v34, 0.0  ;;  %v2263_v51 = vadd.f32 %v2007_v0, %v1615_v48  ;;  %v1365_v21 = vmul.f32 %v6271_v50, %v9719_v25  ;;  %9720 = vst [vmem:[#allocation17_spill] sm:$0xff] %v6507_v13  ;;  %v2818_v53 = vmax.f32 %v2562_v26, 0.0  ;;  %v9721_v34 = vld [vmem:[#allocation32_spill] sm:$0xff]  ;;  %v6570_v26 = vpop.xlane.xlu1 %2994 }
 0x1c8   :  { %v2264_v63 = vadd.f32 %v2008_v16, %v1616_v46  ;;  %v973_v61 = vadd.f32 %v717_v59, %v325_v31  ;;  %v1366_v57 = vmul.f32 %v6277_v33, %v9719_v25  ;;  %v974_v4 = vadd.f32 %v718_v11, %v326_v19 }
 0x1c9   :  { %v2559_v23 = vadd.f32 %v9637_v5, %v2263_v51  ;;  %v2013_v0 = vmul.f32 %v6296_v62, %v9721_v34  ;;  %v2014_v48 = vmul.f32 %v6298_v38, %v9721_v34  ;;  %v3131_v58 = vadd.f32 %v2818_v53, %v2817_v18  ;;  %v9722_v51 = vld [vmem:[#allocation69_spill] sm:$0xff] }
 0x1ca   :  { %v2560_v16 = vadd.f32 %v9637_v5, %v2264_v63  ;;  %v1621_v31 = vadd.f32 %v1365_v21, %v973_v61  ;;  %v1622_v59 = vadd.f32 %v1366_v57, %v974_v4  ;;  %v3525_v19 = vperm.slane %v2989_v41, %v9722_v51  ;;  %v9734_v51 = vld [vmem:[#allocation64_spill] sm:$0xff] }
 0x1cb   :  { %v2815_v46 = vmax.f32 %v2559_v23, 0.0  ;;  %3132 = vadd.xlane.f32.xlu1 %v3131_v58  ;;  %v86_v38 = vsel %vm63_vm2, %v6355_v3, %v6370_v28  ;;  %v486_v18 = vsel %vm63_vm2, %v6377_v14, %v6392_v36  ;;  %v9725_v58 = vld [vmem:[#allocation55_spill] sm:$0xff]  ;;  %v9726_v57 = vperm.slane %v6259_v8, %v5985_v37 }
 0x1cc   :  { %v2816_v11 = vmax.f32 %v2560_v16, 0.0  ;;  %v2269_v62 = vadd.f32 %v2013_v0, %v1621_v31  ;;  %v2270_v53 = vadd.f32 %v2014_v48, %v1622_v59  ;;  %v3526_v21 = vsel %vm3500_vm8, %v3525_v19, %v6448_v44 }
 0x1cd   :  { %v6530_v63 = vperm.slane %v86_v38, 0  ;;  %v6532_v23 = vperm.slane %v86_v38, 1  ;;  %v6539_v41 = vsel %vm3504_vm10, %v9726_v57, %v3526_v21  ;;  %v6541_v0 = vperm.slane %v486_v18, 0 }
 0x1ce   :  { %v3128_v4 = vadd.f32 %v2816_v11, %v2815_v46  ;;  %v2565_v61 = vadd.f32 %v9725_v58, %v2269_v62  ;;  %v2566_v48 = vadd.f32 %v9725_v58, %v2270_v53  ;;  %v6548_v16 = vperm.slane %v486_v18, 1 }
 0x1cf   :  { %9723 = vst [vmem:[#allocation18_spill] sm:$0xff] %v6530_v63  ;;  %v333_v44 = vmul.f32 %v6530_v63, %v9661_v20  ;;  %v334_v38 = vmul.f32 %v6532_v23, %v9661_v20  ;;  %v725_v8 = vmul.f32 %v6541_v0, %v9662_v10  ;;  %v1134_v31 = vsel %vm63_vm2, %v6382_v27, %v6394_v6 }
 0x1d0   :  { %9724 = vst [vmem:[#allocation38_spill] sm:$0xff] %v6532_v23  ;;  %3129 = vadd.xlane.f32.xlu2 %v3128_v4  ;;  %v2821_v62 = vmax.f32 %v2565_v61, 0.0  ;;  %v1782_v46 = vsel %vm63_vm2, %v6387_v42, %v6396_v56  ;;  %v2822_v59 = vmax.f32 %v2566_v48, 0.0  ;;  %v726_v19 = vmul.f32 %v6548_v16, %v9662_v10 }
 0x1d1   :  { %9727 = vst [vmem:[#allocation26_spill] sm:$0xff] %v6541_v0  ;;  %v6560_v11 = vperm.slane %v1134_v31, 0  ;;  %v6562_v18 = vperm.slane %v1134_v31, 1  ;;  %v981_v53 = vadd.f32 %v725_v8, %v333_v44  ;;  %v6564_v21 = vperm.slane %v1782_v46, 0 }
 0x1d2   :  { %9728 = vst [vmem:[#allocation27_spill] sm:$0xff] %v6548_v16  ;;  %v6566_v4 = vperm.slane %v1782_v46, 1  ;;  %v309_v61 = vmul.f32 %v6097_v24, %v9717_v12  ;;  %v3137_v57 = vadd.f32 %v2822_v59, %v2821_v62  ;;  %v982_v50 = vadd.f32 %v726_v19, %v334_v38 }
 0x1d3   :  { %9729 = vst [vmem:[#allocation77_spill] sm:$0xff] %v6560_v11  ;;  %v1373_v48 = vmul.f32 %v6560_v11, %v9663_v60  ;;  %v1374_v37 = vmul.f32 %v6562_v18, %v9663_v60  ;;  %v2021_v44 = vmul.f32 %v6564_v21, %v9664_v55  ;;  %v310_v31 = vmul.f32 %v6099_v30, %v9717_v12  ;;  %v9735_v12 = vld [vmem:[#allocation65_spill] sm:$0xff] }
 0x1d4   :  { %9730 = vst [vmem:[#allocation80_spill] sm:$0xff] %v6562_v18  ;;  %v2022_v8 = vmul.f32 %v6566_v4, %v9664_v55  ;;  %v701_v62 = vmul.f32 %v6106_v2, %v9718_v17  ;;  %3138 = vadd.xlane.f32.xlu0 %v3137_v57  ;;  %v702_v59 = vmul.f32 %v6112_v45, %v9718_v17  ;;  %vm3762_vm2 = vcmask 523264  }
 0x1d5   :  { %9731 = vst [vmem:[#allocation95_spill] sm:$0xff] %v6564_v21  ;;  %v1629_v38 = vadd.f32 %v1373_v48, %v981_v53  ;;  %v1630_v46 = vadd.f32 %v1374_v37, %v982_v50  ;;  %v1349_v19 = vmul.f32 %v6114_v49, %v9719_v25  ;;  %v1350_v13 = vmul.f32 %v9733_v52, %v9719_v25 }
 0x1d6   :  { %9732 = vst [vmem:[#allocation96_spill] sm:$0xff] %v6566_v4  ;;  %v957_v24 = vadd.f32 %v701_v62, %v309_v61  ;;  %v1997_v33 = vmul.f32 %v9734_v51, %v9721_v34  ;;  %v1998_v30 = vmul.f32 %v9735_v12, %v9721_v34  ;;  %v958_v53 = vadd.f32 %v702_v59, %v310_v31 }
 0x1d7   :  { %v2277_v2 = vadd.f32 %v2021_v44, %v1629_v38  ;;  %v2278_v57 = vadd.f32 %v2022_v8, %v1630_v46  ;;  %v89_v37 = vsel %vm68_vm1, %v6355_v3, %v6370_v28  ;;  %v489_v61 = vsel %vm68_vm1, %v6377_v14, %v6392_v36  ;;  %v9752_v28 = vld [vmem:[#allocation29_spill] sm:$0xff] }
 0x1d8   :  { %v1605_v50 = vadd.f32 %v1349_v19, %v957_v24  ;;  %v90_v48 = vrot.slane %v89_v37, 2  ;;  %v1137_v62 = vsel %vm68_vm1, %v6382_v27, %v6394_v6  ;;  %v1606_v8 = vadd.f32 %v1350_v13, %v958_v53 }
 0x1d9   :  { %v2573_v25 = vadd.f32 %v5255_v39, %v2277_v2  ;;  %v2574_v44 = vadd.f32 %v5255_v39, %v2278_v57  ;;  %v490_v31 = vrot.slane %v489_v61, 2  ;;  %v1138_v24 = vrot.slane %v1137_v62, 2 }
 0x1da   :  { %v2253_v38 = vadd.f32 %v1997_v33, %v1605_v50  ;;  %v6605_v46 = vperm.slane %v90_v48, 0  ;;  %v6607_v59 = vperm.slane %v90_v48, 1  ;;  %v2254_v3 = vadd.f32 %v1998_v30, %v1606_v8  ;;  %v3004_v30 = vpop.xlane.xlu1 %3003 }
 0x1db   :  { %v2829_v19 = vmax.f32 %v2573_v25, 0.0  ;;  %v2830_v37 = vmax.f32 %v2574_v44, 0.0  ;;  %v6609_v14 = vperm.slane %v490_v31, 0  ;;  %v6616_v57 = vperm.slane %v490_v31, 1 }
 0x1dc   :  { %9736 = vst [vmem:[#allocation11_spill] sm:$0xff] %v6605_v46  ;;  %v2549_v36 = vadd.f32 %v9725_v58, %v2253_v38  ;;  %v365_v2 = vmul.f32 %v6605_v46, %v9661_v20  ;;  %v366_v13 = vmul.f32 %v6607_v59, %v9661_v20  ;;  %v2550_v53 = vadd.f32 %v9725_v58, %v2254_v3 }
 0x1dd   :  { %9737 = vst [vmem:[#allocation12_spill] sm:$0xff] %v6607_v59  ;;  %v3149_v33 = vadd.f32 %v2830_v37, %v2829_v19  ;;  %v757_v25 = vmul.f32 %v6609_v14, %v9662_v10  ;;  %v6621_v50 = vperm.slane %v1138_v24, 0  ;;  %v758_v61 = vmul.f32 %v6616_v57, %v9662_v10  ;;  %v2998_v19 = vpop.xlane.xlu2 %2997  ;;  %v9742_v37 = vld [vmem:[#allocation72_spill] sm:$0xff] }
 0x1de   :  { %9738 = vst [vmem:[#allocation37_spill] sm:$0xff] %v6609_v14  ;;  %v2805_v48 = vmax.f32 %v2549_v36, 0.0  ;;  %v6625_v62 = vperm.slane %v1138_v24, 1  ;;  %v1785_v44 = vsel %vm68_vm1, %v6387_v42, %v6396_v56  ;;  %v2806_v8 = vmax.f32 %v2550_v53, 0.0 }
 0x1df   :  { %9739 = vst [vmem:[#allocation60_spill] sm:$0xff] %v6616_v57  ;;  %3150 = vadd.xlane.f32.xlu1 %v3149_v33  ;;  %v1013_v31 = vadd.f32 %v757_v25, %v365_v2  ;;  %v1405_v3 = vmul.f32 %v6621_v50, %v9663_v60  ;;  %v1786_v38 = vrot.slane %v1785_v44, 2  ;;  %v3529_v36 = vperm.slane %v6570_v26, %v9742_v37  ;;  %v9745_v25 = vld [vmem:[#allocation63_spill] sm:$0xff] }
 0x1e0   :  { %9740 = vst [vmem:[#allocation46_spill] sm:$0xff] %v6621_v50  ;;  %v1014_v20 = vadd.f32 %v758_v61, %v366_v13  ;;  %v1406_v24 = vmul.f32 %v6625_v62, %v9663_v60  ;;  %v3535_v10 = vperm.slane %v3004_v30, %v6451_v43  ;;  %v3113_v27 = vadd.f32 %v2806_v8, %v2805_v48  ;;  %v9747_v8 = vld [vmem:[#allocation22_spill] sm:$0xff] }
 0x1e1   :  { %9741 = vst [vmem:[#allocation64_spill] sm:$0xff] %v6625_v62  ;;  %v1661_v6 = vadd.f32 %v1405_v3, %v1013_v31  ;;  %v6637_v42 = vperm.slane %v1786_v38, 0  ;;  %v6639_v33 = vperm.slane %v1786_v38, 1  ;;  %v3530_v53 = vsel %vm3508_vm11, %v3529_v36, %v6539_v41  ;;  %v9748_v3 = vld [vmem:[#allocation83_spill] sm:$0xff] }
 0x1e2   :  { %v1662_v2 = vadd.f32 %v1406_v24, %v1014_v20  ;;  %v3531_v44 = vperm.slane %v2998_v19, %v9745_v25  ;;  %v351_v26 = vmul.f32 %v6409_v22, %v9694_v47  ;;  %3114 = vadd.xlane.f32.xlu2 %v3113_v27  ;;  %v352_v48 = vmul.f32 %v6411_v9, %v9694_v47  ;;  %v9746_v20 = vld [vmem:[#allocation21_spill] sm:$0xff] }
 0x1e3   :  { %9743 = vst [vmem:[#allocation65_spill] sm:$0xff] %v6637_v42  ;;  %v2053_v13 = vmul.f32 %v6637_v42, %v9664_v55  ;;  %v2054_v30 = vmul.f32 %v6639_v33, %v9664_v55  ;;  %v743_v61 = vmul.f32 %v9746_v20, %v9695_v1  ;;  %v744_v31 = vmul.f32 %v9747_v8, %v9695_v1  ;;  %v9761_v25 = vld [vmem:[#allocation73_spill] sm:$0xff] }
 0x1e4   :  { %9744 = vst [vmem:[#allocation99_spill] sm:$0xff] %v6639_v33  ;;  %v3532_v41 = vsel %vm3512_vm12, %v3531_v44, %v3530_v53  ;;  %v1391_v27 = vmul.f32 %v9748_v3, %v9696_v40  ;;  %v1392_v38 = vmul.f32 %v6423_v35, %v9696_v40  ;;  %v9749_v24 = vperm.slane %v6462_v54, %v6291_v29  ;;  %v9751_v44 = vld [vmem:[#allocation86_spill] sm:$0xff] }
 0x1e5   :  { %v2309_v19 = vadd.f32 %v2053_v13, %v1661_v6  ;;  %v2310_v36 = vadd.f32 %v2054_v30, %v1662_v2  ;;  %v999_v60 = vadd.f32 %v743_v61, %v351_v26  ;;  %v1000_v53 = vadd.f32 %v744_v31, %v352_v48 }
 0x1e6   :  { %v3534_v55 = vsel %vm3516_vm13, %v9749_v24, %v3532_v41  ;;  %v2039_v58 = vmul.f32 %v9751_v44, %v9698_v15  ;;  %v2040_v34 = vmul.f32 %v9752_v28, %v9698_v15  ;;  %v335_v54 = vmul.f32 %v6530_v63, %v9694_v47 }
 0x1e7   :  { %v6666_v56 = vsel %vm3520_vm14, %v3535_v10, %v3534_v55  ;;  %v2605_v17 = vadd.f32 %v5255_v39, %v2309_v19  ;;  %v2606_v6 = vadd.f32 %v5255_v39, %v2310_v36  ;;  %v1647_v2 = vadd.f32 %v1391_v27, %v999_v60  ;;  %v6684_v60 = vpop.xlane.xlu0 %3018 }
 0x1e8   :  { %9750 = vst [vmem:[#allocation100_spill] sm:$0xff] %v6666_v56  ;;  %v1648_v13 = vadd.f32 %v1392_v38, %v1000_v53  ;;  %v336_v10 = vmul.f32 %v6532_v23, %v9694_v47  ;;  %v727_v55 = vmul.f32 %v6541_v0, %v9695_v1  ;;  %v728_v26 = vmul.f32 %v6548_v16, %v9695_v1  ;;  %v9753_v56 = vld [vmem:[#allocation9_spill] sm:$0xff] }
 0x1e9   :  { %v2861_v30 = vmax.f32 %v2605_v17, 0.0  ;;  %v2862_v48 = vmax.f32 %v2606_v6, 0.0  ;;  %v2295_v61 = vadd.f32 %v2039_v58, %v1647_v2  ;;  %v1375_v41 = vmul.f32 %v6560_v11, %v9696_v40 }
 0x1ea   :  { %v2296_v31 = vadd.f32 %v2040_v34, %v1648_v13  ;;  %v983_v27 = vadd.f32 %v727_v55, %v335_v54  ;;  %v984_v38 = vadd.f32 %v728_v26, %v336_v10  ;;  %v1376_v19 = vmul.f32 %v6562_v18, %v9696_v40  ;;  %v9754_v10 = vld [vmem:[#allocation24_spill] sm:$0xff]  ;;  %v9755_v55 = vld [vmem:[#allocation89_spill] sm:$0xff] }
 0x1eb   :  { %v3197_v36 = vadd.f32 %v2862_v48, %v2861_v30  ;;  %v2591_v24 = vadd.f32 %v9637_v5, %v2295_v61  ;;  %v2023_v53 = vmul.f32 %v6564_v21, %v9698_v15  ;;  %v2024_v17 = vmul.f32 %v6566_v4, %v9698_v15  ;;  %v9756_v30 = vld [vmem:[#allocation58_spill] sm:$0xff] }
 0x1ec   :  { %v2592_v58 = vadd.f32 %v9637_v5, %v2296_v31  ;;  %v1631_v6 = vadd.f32 %v1375_v41, %v983_v27  ;;  %v1632_v2 = vadd.f32 %v1376_v19, %v984_v38  ;;  %v327_v34 = vmul.f32 %v6255_v7, %v9753_v56  ;;  %v9757_v31 = vld [vmem:[#allocation67_spill] sm:$0xff]  ;;  %v6704_v38 = vpop.xlane.xlu1 %3012 }
 0x1ed   :  { %3198 = vadd.xlane.f32.xlu0 %v3197_v36  ;;  %v2847_v54 = vmax.f32 %v2591_v24, 0.0  ;;  %v328_v13 = vmul.f32 %v6257_v32, %v9753_v56  ;;  %v719_v26 = vmul.f32 %v9755_v55, %v9754_v10  ;;  %v720_v48 = vmul.f32 %v9756_v30, %v9754_v10  ;;  %v9758_v41 = vld [vmem:[#allocation59_spill] sm:$0xff]  ;;  %v9759_v24 = vld [vmem:[#allocation78_spill] sm:$0xff]  ;;  %v3007_v55 = vpop.xlane.xlu2 %3006 }
 0x1ee   :  { %v2848_v61 = vmax.f32 %v2592_v58, 0.0  ;;  %v2279_v39 = vadd.f32 %v2023_v53, %v1631_v6  ;;  %v2280_v29 = vadd.f32 %v2024_v17, %v1632_v2  ;;  %v1367_v27 = vmul.f32 %v9758_v41, %v9757_v31  ;;  %v9760_v32 = vld [vmem:[#allocation31_spill] sm:$0xff]  ;;  %v9762_v17 = vld [vmem:[#allocation90_spill] sm:$0xff]  ;;  %v9770_v6 = vld [vmem:[#allocation92_spill] sm:$0xff] }
 0x1ef   :  { %v975_v19 = vadd.f32 %v719_v26, %v327_v34  ;;  %v976_v36 = vadd.f32 %v720_v48, %v328_v13  ;;  %v1368_v7 = vmul.f32 %v9759_v24, %v9757_v31  ;;  %v2015_v28 = vmul.f32 %v9761_v25, %v9760_v32  ;;  %v9763_v13 = vld [vmem:[#allocation69_spill] sm:$0xff]  ;;  %v9764_v24 = vld [vmem:[#allocation47_spill] sm:$0xff] }
 0x1f0   :  { %v3176_v44 = vadd.f32 %v2848_v61, %v2847_v54  ;;  %v2575_v30 = vadd.f32 %v9637_v5, %v2279_v39  ;;  %v2576_v53 = vadd.f32 %v9637_v5, %v2280_v29  ;;  %v2016_v58 = vmul.f32 %v9762_v17, %v9760_v32  ;;  %v9765_v61 = vld [vmem:[#allocation14_spill] sm:$0xff]  ;;  %v9766_v5 = vld [vmem:[#allocation49_spill] sm:$0xff] }
 0x1f1   :  { %v1623_v2 = vadd.f32 %v1367_v27, %v975_v19  ;;  %v1624_v34 = vadd.f32 %v1368_v7, %v976_v36  ;;  %v3537_v54 = vperm.slane %v3007_v55, %v9764_v24  ;;  %v337_v39 = vmul.f32 %v6530_v63, %v9765_v61  ;;  %v6725_v7 = vpop.xlane.xlu0 %3027  ;;  %v9767_v36 = vld [vmem:[#allocation17_spill] sm:$0xff] }
 0x1f2   :  { %3177 = vadd.xlane.f32.xlu1 %v3176_v44  ;;  %v2831_v48 = vmax.f32 %v2575_v30, 0.0  ;;  %v2832_v25 = vmax.f32 %v2576_v53, 0.0  ;;  %v338_v17 = vmul.f32 %v6532_v23, %v9765_v61  ;;  %v729_v27 = vmul.f32 %v6541_v0, %v9766_v5  ;;  %v9768_v44 = vld [vmem:[#allocation48_spill] sm:$0xff] }
 0x1f3   :  { %v2271_v29 = vadd.f32 %v2015_v28, %v1623_v2  ;;  %v2272_v41 = vadd.f32 %v2016_v58, %v1624_v34  ;;  %v9769_v30 = vperm.slane %v9767_v36, %v9768_v44  ;;  %v730_v55 = vmul.f32 %v6548_v16, %v9766_v5  ;;  %v9771_v58 = vld [vmem:[#allocation42_spill] sm:$0xff] }
 0x1f4   :  { %v3152_v19 = vadd.f32 %v2832_v25, %v2831_v48  ;;  %v1377_v28 = vmul.f32 %v6560_v11, %v9770_v6  ;;  %v985_v26 = vadd.f32 %v729_v27, %v337_v39  ;;  %v1378_v24 = vmul.f32 %v6562_v18, %v9770_v6  ;;  %v9772_v48 = vld [vmem:[#allocation57_spill] sm:$0xff] }
 0x1f5   :  { %v3539_v53 = vsel %vm3496_vm6, %v9769_v30, %v3537_v54  ;;  %v2567_v2 = vadd.f32 %v9771_v58, %v2271_v29  ;;  %v2568_v34 = vadd.f32 %v9771_v58, %v2272_v41  ;;  %v986_v25 = vadd.f32 %v730_v55, %v338_v17  ;;  %v9773_v30 = vld [vmem:[#allocation41_spill] sm:$0xff]  ;;  %v9774_v41 = vld [vmem:[#allocation44_spill] sm:$0xff] }
 0x1f6   :  { %3153 = vadd.xlane.f32.xlu2 %v3152_v19  ;;  %v2025_v36 = vmul.f32 %v6564_v21, %v9772_v48  ;;  %v2026_v54 = vmul.f32 %v6566_v4, %v9772_v48  ;;  %v311_v44 = vmul.f32 %v9773_v30, %v9753_v56  ;;  %v1633_v29 = vadd.f32 %v1377_v28, %v985_v26  ;;  %v9775_v18 = vld [vmem:[#allocation45_spill] sm:$0xff] }
 0x1f7   :  { %v2823_v11 = vmax.f32 %v2567_v2, 0.0  ;;  %v2824_v16 = vmax.f32 %v2568_v34, 0.0  ;;  %v312_v39 = vmul.f32 %v9774_v41, %v9753_v56  ;;  %v1634_v27 = vadd.f32 %v1378_v24, %v986_v25  ;;  %v9776_v56 = vld [vmem:[#allocation54_spill] sm:$0xff] }
 0x1f8   :  { %v703_v19 = vmul.f32 %v9775_v18, %v9754_v10  ;;  %v704_v17 = vmul.f32 %v6112_v45, %v9754_v10  ;;  %v1351_v55 = vmul.f32 %v6114_v49, %v9757_v31  ;;  %v2281_v21 = vadd.f32 %v2025_v36, %v1633_v29 }
 0x1f9   :  { %v3140_v4 = vadd.f32 %v2824_v16, %v2823_v11  ;;  %v1352_v2 = vmul.f32 %v9733_v52, %v9757_v31  ;;  %v1999_v26 = vmul.f32 %v9734_v51, %v9760_v32  ;;  %v2282_v28 = vadd.f32 %v2026_v54, %v1634_v27 }
 0x1fa   :  { %v959_v34 = vadd.f32 %v703_v19, %v311_v44  ;;  %v960_v24 = vadd.f32 %v704_v17, %v312_v39  ;;  %v2000_v25 = vmul.f32 %v9735_v12, %v9760_v32  ;;  %v2577_v10 = vadd.f32 %v9776_v56, %v2281_v21  ;;  %v6773_v19 = vpop.xlane.xlu0 %3036 }
 0x1fb   :  { %3141 = vadd.xlane.f32.xlu0 %v3140_v4  ;;  %v369_v0 = vmul.f32 %v6605_v46, %v9765_v61  ;;  %v370_v16 = vmul.f32 %v6607_v59, %v9765_v61  ;;  %v761_v11 = vmul.f32 %v6609_v14, %v9766_v5  ;;  %v2578_v36 = vadd.f32 %v9776_v56, %v2282_v28  ;;  %v3016_v28 = vpop.xlane.xlu2 %3015 }
 0x1fc   :  { %v1607_v54 = vadd.f32 %v1351_v55, %v959_v34  ;;  %v1608_v44 = vadd.f32 %v1352_v2, %v960_v24  ;;  %v762_v29 = vmul.f32 %v6616_v57, %v9766_v5  ;;  %v2833_v39 = vmax.f32 %v2577_v10, 0.0 }
 0x1fd   :  { %v1017_v4 = vadd.f32 %v761_v11, %v369_v0  ;;  %v1409_v21 = vmul.f32 %v6621_v50, %v9770_v6  ;;  %v1410_v27 = vmul.f32 %v6625_v62, %v9770_v6  ;;  %v2834_v17 = vmax.f32 %v2578_v36, 0.0 }
 0x1fe   :  { %v2255_v32 = vadd.f32 %v1999_v26, %v1607_v54  ;;  %v2256_v31 = vadd.f32 %v2000_v25, %v1608_v44  ;;  %v1018_v23 = vadd.f32 %v762_v29, %v370_v16  ;;  %v2057_v0 = vmul.f32 %v6637_v42, %v9772_v48  ;;  %v9778_v44 = vld [vmem:[#allocation62_spill] sm:$0xff] }
 0x1ff   :  { %v1665_v2 = vadd.f32 %v1409_v21, %v1017_v4  ;;  %v2058_v10 = vmul.f32 %v6639_v33, %v9772_v48  ;;  %v3155_v34 = vadd.f32 %v2834_v17, %v2833_v39  ;;  %v9777_v16 = vperm.slane %v6704_v38, %v9763_v13 }
 0x200   :  { %v2551_v24 = vadd.f32 %v9771_v58, %v2255_v32  ;;  %v2552_v11 = vadd.f32 %v9771_v58, %v2256_v31  ;;  %v1666_v36 = vadd.f32 %v1410_v27, %v1018_v23  ;;  %v3542_v29 = vperm.slane %v3016_v28, %v9778_v44 }
 0x201   :  { %v2313_v25 = vadd.f32 %v2057_v0, %v1665_v2  ;;  %v3541_v54 = vsel %vm3500_vm8, %v9777_v16, %v3539_v53  ;;  %3156 = vadd.xlane.f32.xlu1 %v3155_v34  ;;  %v367_v32 = vmul.f32 %v6605_v46, %v9694_v47  ;;  %v368_v27 = vmul.f32 %v6607_v59, %v9694_v47 }
 0x202   :  { %v2807_v4 = vmax.f32 %v2551_v24, 0.0  ;;  %v2808_v21 = vmax.f32 %v2552_v11, 0.0  ;;  %v2314_v39 = vadd.f32 %v2058_v10, %v1666_v36  ;;  %v3543_v31 = vsel %vm3504_vm10, %v3542_v29, %v3541_v54 }
 0x203   :  { %v2609_v23 = vadd.f32 %v9776_v56, %v2313_v25  ;;  %v759_v38 = vmul.f32 %v6609_v14, %v9695_v1  ;;  %v9779_v28 = vperm.slane %v6684_v60, %v9742_v37  ;;  %v760_v0 = vmul.f32 %v6616_v57, %v9695_v1  ;;  %v9803_v57 = vld [vmem:[#allocation51_spill] sm:$0xff] }
 0x204   :  { %v3116_v53 = vadd.f32 %v2808_v21, %v2807_v4  ;;  %v2610_v17 = vadd.f32 %v9776_v56, %v2314_v39  ;;  %v1407_v24 = vmul.f32 %v6621_v50, %v9696_v40  ;;  %v1408_v11 = vmul.f32 %v6625_v62, %v9696_v40 }
 0x205   :  { %v3545_v2 = vsel %vm3508_vm11, %v9779_v28, %v3543_v31  ;;  %v2865_v10 = vmax.f32 %v2609_v23, 0.0  ;;  %v1015_v34 = vadd.f32 %v759_v38, %v367_v32  ;;  %v1016_v25 = vadd.f32 %v760_v0, %v368_v27 }
 0x206   :  { %3117 = vadd.xlane.f32.xlu2 %v3116_v53  ;;  %v2866_v36 = vmax.f32 %v2610_v17, 0.0  ;;  %v2055_v16 = vmul.f32 %v6637_v42, %v9698_v15  ;;  %v2056_v60 = vmul.f32 %v6639_v33, %v9698_v15  ;;  %v353_v29 = vmul.f32 %v6409_v22, %v9765_v61  ;;  %v9780_v17 = vld [vmem:[#allocation86_spill] sm:$0xff]  ;;  %v9786_v33 = vld [vmem:[#allocation43_spill] sm:$0xff] }
 0x207   :  { %v1663_v54 = vadd.f32 %v1407_v24, %v1015_v34  ;;  %v354_v4 = vmul.f32 %v6411_v9, %v9765_v61  ;;  %v745_v21 = vmul.f32 %v9746_v20, %v9766_v5  ;;  %v1664_v32 = vadd.f32 %v1408_v11, %v1016_v25  ;;  %v9782_v11 = vld [vmem:[#allocation36_spill] sm:$0xff]  ;;  %v9783_v25 = vld [vmem:[#allocation33_spill] sm:$0xff] }
 0x208   :  { %v3203_v39 = vadd.f32 %v2866_v36, %v2865_v10  ;;  %v746_v23 = vmul.f32 %v9747_v8, %v9766_v5  ;;  %v1393_v31 = vmul.f32 %v9748_v3, %v9770_v6  ;;  %v1394_v53 = vmul.f32 %v6423_v35, %v9770_v6  ;;  %v9781_v10 = vld [vmem:[#allocation29_spill] sm:$0xff] }
 0x209   :  { %v2311_v27 = vadd.f32 %v2055_v16, %v1663_v54  ;;  %v1001_v38 = vadd.f32 %v745_v21, %v353_v29  ;;  %v2041_v28 = vmul.f32 %v9780_v17, %v9772_v48  ;;  %v2312_v0 = vadd.f32 %v2056_v60, %v1664_v32  ;;  %v9784_v54 = vld [vmem:[#allocation76_spill] sm:$0xff]  ;;  %v3022_v21 = vpop.xlane.xlu1 %3021  ;;  %v9785_v32 = vld [vmem:[#allocation50_spill] sm:$0xff] }
 0x20a   :  { %3204 = vadd.xlane.f32.xlu0 %v3203_v39  ;;  %v1002_v34 = vadd.f32 %v746_v23, %v354_v4  ;;  %v2042_v24 = vmul.f32 %v9781_v10, %v9772_v48  ;;  %v315_v36 = vmul.f32 %v9773_v30, %v9782_v11  ;;  %v316_v16 = vmul.f32 %v9774_v41, %v9782_v11  ;;  %v6841_v48 = vpop.xlane.xlu0 %3045 }
 0x20b   :  { %v2607_v26 = vadd.f32 %v9783_v25, %v2311_v27  ;;  %v1649_v55 = vadd.f32 %v1393_v31, %v1001_v38  ;;  %v707_v29 = vmul.f32 %v9775_v18, %v9784_v54  ;;  %v2608_v39 = vadd.f32 %v9783_v25, %v2312_v0  ;;  %v3025_v0 = vpop.xlane.xlu2 %3024 }
 0x20c   :  { %v1650_v60 = vadd.f32 %v1394_v53, %v1002_v34  ;;  %v708_v4 = vmul.f32 %v6112_v45, %v9784_v54  ;;  %v1355_v23 = vmul.f32 %v6114_v49, %v9785_v32  ;;  %v1356_v11 = vmul.f32 %v9733_v52, %v9785_v32  ;;  %v9787_v34 = vld [vmem:[#allocation63_spill] sm:$0xff] }
 0x20d   :  { %v2863_v27 = vmax.f32 %v2607_v26, 0.0  ;;  %v2297_v31 = vadd.f32 %v2041_v28, %v1649_v55  ;;  %v963_v38 = vadd.f32 %v707_v29, %v315_v36  ;;  %v2864_v6 = vmax.f32 %v2608_v39, 0.0  ;;  %v9791_v55 = vld [vmem:[#allocation61_spill] sm:$0xff] }
 0x20e   :  { %v2298_v5 = vadd.f32 %v2042_v24, %v1650_v60  ;;  %v964_v61 = vadd.f32 %v708_v4, %v316_v16  ;;  %v2003_v53 = vmul.f32 %v9734_v51, %v9786_v33  ;;  %v3546_v54 = vperm.slane %v3022_v21, %v9787_v34  ;;  %v9788_v60 = vld [vmem:[#allocation79_spill] sm:$0xff] }
 0x20f   :  { %v2593_v42 = vadd.f32 %v9776_v56, %v2297_v31  ;;  %v1611_v62 = vadd.f32 %v1355_v23, %v963_v38  ;;  %v2004_v26 = vmul.f32 %v9735_v12, %v9786_v33  ;;  %v3200_v28 = vadd.f32 %v2864_v6, %v2863_v27  ;;  %v9789_v23 = vld [vmem:[#allocation23_spill] sm:$0xff]  ;;  %v9790_v33 = vld [vmem:[#allocation38_spill] sm:$0xff] }
 0x210   :  { %v2594_v36 = vadd.f32 %v9776_v56, %v2298_v5  ;;  %v1612_v24 = vadd.f32 %v1356_v11, %v964_v61  ;;  %v3547_v39 = vsel %vm3512_vm12, %v3546_v54, %v3545_v2  ;;  %v3548_v4 = vperm.slane %v3025_v0, %v9788_v60  ;;  %v9792_v61 = vld [vmem:[#allocation15_spill] sm:$0xff] }
 0x211   :  { %v2849_v16 = vmax.f32 %v2593_v42, 0.0  ;;  %v2259_v29 = vadd.f32 %v2003_v53, %v1611_v62  ;;  %3201 = vadd.xlane.f32.xlu1 %v3200_v28  ;;  %v339_v38 = vmul.f32 %v6530_v63, %v9789_v23  ;;  %v340_v32 = vmul.f32 %v9790_v33, %v9789_v23  ;;  %v9793_v42 = vld [vmem:[#allocation26_spill] sm:$0xff]  ;;  %v9794_v2 = vld [vmem:[#allocation27_spill] sm:$0xff]  ;;  %v9798_v28 = vld [vmem:[#allocation77_spill] sm:$0xff] }
 0x212   :  { %v2850_v21 = vmax.f32 %v2594_v36, 0.0  ;;  %v2260_v31 = vadd.f32 %v2004_v26, %v1612_v24  ;;  %v3549_v5 = vsel %vm3516_vm13, %v3548_v4, %v3547_v39  ;;  %v731_v62 = vmul.f32 %v9793_v42, %v9792_v61  ;;  %v9797_v26 = vld [vmem:[#allocation52_spill] sm:$0xff] }
 0x213   :  { %v2555_v6 = vadd.f32 %v9791_v55, %v2259_v29  ;;  %v732_v11 = vmul.f32 %v9794_v2, %v9792_v61  ;;  %v9795_v53 = vperm.slane %v6725_v7, %v6451_v43  ;;  %v1379_v36 = vmul.f32 %v9798_v28, %v9797_v26  ;;  %v9799_v4 = vld [vmem:[#allocation80_spill] sm:$0xff] }
 0x214   :  { %v3179_v54 = vadd.f32 %v2850_v21, %v2849_v16  ;;  %v2556_v27 = vadd.f32 %v9791_v55, %v2260_v31  ;;  %v987_v29 = vadd.f32 %v731_v62, %v339_v38  ;;  %v1380_v56 = vmul.f32 %v9799_v4, %v9797_v26  ;;  %v9800_v16 = vld [vmem:[#allocation97_spill] sm:$0xff]  ;;  %v9801_v21 = vld [vmem:[#allocation95_spill] sm:$0xff]  ;;  %v9802_v55 = vld [vmem:[#allocation96_spill] sm:$0xff] }
 0x215   :  { %v6871_v0 = vsel %vm3520_vm14, %v9795_v53, %v3549_v5  ;;  %v2811_v24 = vmax.f32 %v2555_v6, 0.0  ;;  %v988_v39 = vadd.f32 %v732_v11, %v340_v32  ;;  %v2027_v31 = vmul.f32 %v9801_v21, %v9800_v16  ;;  %v9804_v32 = vld [vmem:[#allocation25_spill] sm:$0xff]  ;;  %v9812_v43 = vld [vmem:[#allocation32_spill] sm:$0xff]  ;;  %v9814_v21 = vld [vmem:[#allocation35_spill] sm:$0xff] }
 0x216   :  { %9796 = vst [vmem:[#allocation17_spill] sm:$0xff] %v6871_v0  ;;  %3180 = vadd.xlane.f32.xlu2 %v3179_v54  ;;  %v2812_v50 = vmax.f32 %v2556_v27, 0.0  ;;  %v2028_v7 = vmul.f32 %v9802_v55, %v9800_v16  ;;  %v313_v5 = vmul.f32 %v9773_v30, %v9803_v57  ;;  %v1635_v53 = vadd.f32 %v1379_v36, %v987_v29  ;;  %v9805_v54 = vld [vmem:[#allocation53_spill] sm:$0xff] }
 0x217   :  { %v1636_v14 = vadd.f32 %v1380_v56, %v988_v39  ;;  %v314_v38 = vmul.f32 %v9774_v41, %v9803_v57  ;;  %v705_v6 = vmul.f32 %v9775_v18, %v9804_v32  ;;  %v706_v11 = vmul.f32 %v6112_v45, %v9804_v32  ;;  %v9806_v56 = vld [vmem:[#allocation81_spill] sm:$0xff] }
 0x218   :  { %v3122_v62 = vadd.f32 %v2812_v50, %v2811_v24  ;;  %v1353_v27 = vmul.f32 %v6114_v49, %v9805_v54  ;;  %v1354_v58 = vmul.f32 %v9733_v52, %v9805_v54  ;;  %v2283_v59 = vadd.f32 %v2027_v31, %v1635_v53  ;;  %v9807_v50 = vld [vmem:[#allocation8_spill] sm:$0xff]  ;;  %v9808_v24 = vld [vmem:[#allocation34_spill] sm:$0xff] }
 0x219   :  { %v2284_v30 = vadd.f32 %v2028_v7, %v1636_v14  ;;  %v961_v36 = vadd.f32 %v705_v6, %v313_v5  ;;  %v2001_v29 = vmul.f32 %v9734_v51, %v9806_v56  ;;  %v962_v41 = vadd.f32 %v706_v11, %v314_v38  ;;  %v9809_v31 = vld [vmem:[#allocation66_spill] sm:$0xff]  ;;  %v3031_v51 = vpop.xlane.xlu1 %3030 }
 0x21a   :  { %3123 = vadd.xlane.f32.xlu0 %v3122_v62  ;;  %v2002_v18 = vmul.f32 %v9735_v12, %v9806_v56  ;;  %v357_v45 = vmul.f32 %v6409_v22, %v9807_v50  ;;  %v358_v49 = vmul.f32 %v6411_v9, %v9807_v50  ;;  %v2579_v39 = vadd.f32 %v9808_v24, %v2283_v59  ;;  %v9810_v12 = vld [vmem:[#allocation19_spill] sm:$0xff]  ;;  %v6911_v62 = vpop.xlane.xlu0 %3054 }
 0x21b   :  { %v2580_v52 = vadd.f32 %v9808_v24, %v2284_v30  ;;  %v1609_v14 = vadd.f32 %v1353_v27, %v961_v36  ;;  %v749_v7 = vmul.f32 %v9746_v20, %v9809_v31  ;;  %v1610_v5 = vadd.f32 %v1354_v58, %v962_v41  ;;  %9811 = vst [vmem:[#allocation41_spill] sm:$0xff] %v6911_v62  ;;  %v3034_v36 = vpop.xlane.xlu2 %3033  ;;  %v9834_v62 = vld [vmem:[#allocation39_spill] sm:$0xff] }
 0x21c   :  { %v750_v53 = vmul.f32 %v9747_v8, %v9809_v31  ;;  %v1397_v38 = vmul.f32 %v9748_v3, %v9810_v12  ;;  %v1398_v6 = vmul.f32 %v6423_v35, %v9810_v12  ;;  %v2835_v59 = vmax.f32 %v2579_v39, 0.0  ;;  %v9813_v31 = vld [vmem:[#allocation47_spill] sm:$0xff] }
 0x21d   :  { %v2836_v11 = vmax.f32 %v2580_v52, 0.0  ;;  %v2257_v30 = vadd.f32 %v2001_v29, %v1609_v14  ;;  %v1005_v27 = vadd.f32 %v749_v7, %v357_v45  ;;  %v2258_v50 = vadd.f32 %v2002_v18, %v1610_v5  ;;  %v9815_v18 = vld [vmem:[#allocation48_spill] sm:$0xff]  ;;  %v9816_v7 = vld [vmem:[#allocation13_spill] sm:$0xff]  ;;  %v9817_v5 = vld [vmem:[#allocation91_spill] sm:$0xff] }
 0x21e   :  { %v1006_v46 = vadd.f32 %v750_v53, %v358_v49  ;;  %v2045_v58 = vmul.f32 %v9780_v17, %v9812_v43  ;;  %v2046_v41 = vmul.f32 %v9781_v10, %v9812_v43  ;;  %v3552_v0 = vperm.slane %v3031_v51, %v9813_v31  ;;  %v9818_v51 = vld [vmem:[#allocation94_spill] sm:$0xff] }
 0x21f   :  { %v3158_v55 = vadd.f32 %v2836_v11, %v2835_v59  ;;  %v2553_v12 = vadd.f32 %v9814_v21, %v2257_v30  ;;  %v1653_v4 = vadd.f32 %v1397_v38, %v1005_v27  ;;  %v2554_v29 = vadd.f32 %v9814_v21, %v2258_v50  ;;  %v9819_v59 = vld [vmem:[#allocation85_spill] sm:$0xff]  ;;  %v9820_v50 = vld [vmem:[#allocation55_spill] sm:$0xff] }
 0x220   :  { %v1654_v45 = vadd.f32 %v1398_v6, %v1006_v46  ;;  %v3553_v49 = vperm.slane %v3034_v36, %v9815_v18  ;;  %v91_v53 = vsel %vm71_vm3, %v9817_v5, %v9816_v7  ;;  %v491_v11 = vsel %vm71_vm3, %v9819_v59, %v9818_v51  ;;  %v9822_v6 = vld [vmem:[#allocation74_spill] sm:$0xff]  ;;  %v9823_v36 = vld [vmem:[#allocation93_spill] sm:$0xff] }
 0x221   :  { %3159 = vadd.xlane.f32.xlu1 %v3158_v55  ;;  %v2809_v52 = vmax.f32 %v2553_v12, 0.0  ;;  %v2301_v14 = vadd.f32 %v2045_v58, %v1653_v4  ;;  %v2810_v38 = vmax.f32 %v2554_v29, 0.0  ;;  %v92_v39 = vrot.slane %v91_v53, 3  ;;  %v9828_v59 = vld [vmem:[#allocation98_spill] sm:$0xff] }
 0x222   :  { %v2302_v30 = vadd.f32 %v2046_v41, %v1654_v45  ;;  %v3554_v27 = vsel %vm3496_vm6, %v3553_v49, %v3552_v0  ;;  %v9821_v55 = vperm.slane %v6773_v19, %v9763_v13  ;;  %v492_v12 = vrot.slane %v491_v11, 3 }
 0x223   :  { %v2597_v46 = vadd.f32 %v9820_v50, %v2301_v14  ;;  %v1139_v58 = vsel %vm71_vm3, %v9823_v36, %v9822_v6  ;;  %v3119_v5 = vadd.f32 %v2810_v38, %v2809_v52  ;;  %v6941_v41 = vperm.slane %v92_v39, 0  ;;  %v6956_v38 = vld [vmem:[%s8861_s0 + $0x70] sm:$0xff] }
 0x224   :  { %v6935_v4 = vsel %vm3500_vm8, %v9821_v55, %v3554_v27  ;;  %v2598_v29 = vadd.f32 %v9820_v50, %v2302_v30  ;;  %v6943_v0 = vperm.slane %v92_v39, 1  ;;  %v6945_v49 = vperm.slane %v492_v12, 0  ;;  %9829 = vst [vmem:[#allocation93_spill] sm:$0xff] %v6956_v38  ;;  %v9830_v39 = vld [vmem:[#allocation20_spill] sm:$0xff]  ;;  %v9831_v27 = vld [vmem:[#allocation10_spill] sm:$0xff]  ;;  %v6973_v50 = vpop.xlane.xlu1 %3039 }
 0x225   :  { %9824 = vst [vmem:[#allocation44_spill] sm:$0xff] %v6941_v41  ;;  %v2853_v45 = vmax.f32 %v2597_v46, 0.0  ;;  %v6947_v14 = vperm.slane %v492_v12, 1  ;;  %v1140_v19 = vrot.slane %v1139_v58, 3  ;;  %3120 = vadd.xlane.f32.xlu2 %v3119_v5  ;;  %v381_v11 = vmul.f32 %v6941_v41, %v9828_v59 }
 0x226   :  { %9825 = vst [vmem:[#allocation45_spill] sm:$0xff] %v6943_v0  ;;  %v2854_v53 = vmax.f32 %v2598_v29, 0.0  ;;  %v382_v52 = vmul.f32 %v6943_v0, %v9828_v59  ;;  %v1787_v30 = vsel %vm71_vm3, %v6956_v38, %v9830_v39  ;;  %v773_v46 = vmul.f32 %v6945_v49, %v9831_v27 }
 0x227   :  { %9826 = vst [vmem:[#allocation91_spill] sm:$0xff] %v6945_v49  ;;  %v774_v55 = vmul.f32 %v6947_v14, %v9831_v27  ;;  %v6965_v12 = vperm.slane %v1140_v19, 0  ;;  %v6967_v36 = vperm.slane %v1140_v19, 1  ;;  %v1788_v5 = vrot.slane %v1787_v30, 3 }
 0x228   :  { %9827 = vst [vmem:[#allocation85_spill] sm:$0xff] %v6947_v14  ;;  %v3185_v58 = vadd.f32 %v2854_v53, %v2853_v45  ;;  %v355_v29 = vmul.f32 %v6409_v22, %v9789_v23  ;;  %v356_v13 = vmul.f32 %v6411_v9, %v9789_v23  ;;  %v1029_v43 = vadd.f32 %v773_v46, %v381_v11 }
 0x229   :  { %9832 = vst [vmem:[#allocation101_spill] sm:$0xff] %v6965_v12  ;;  %v1030_v31 = vadd.f32 %v774_v55, %v382_v52  ;;  %v1421_v18 = vmul.f32 %v6965_v12, %v9834_v62  ;;  %v1422_v25 = vmul.f32 %v6967_v36, %v9834_v62  ;;  %v6979_v19 = vperm.slane %v1788_v5, 0  ;;  %v9837_v55 = vld [vmem:[#allocation82_spill] sm:$0xff] }
 0x22a   :  { %9833 = vst [vmem:[#allocation102_spill] sm:$0xff] %v6967_v36  ;;  %3186 = vadd.xlane.f32.xlu0 %v3185_v58  ;;  %v6981_v45 = vperm.slane %v1788_v5, 1  ;;  %v747_v53 = vmul.f32 %v9746_v20, %v9792_v61  ;;  %v748_v30 = vmul.f32 %v9747_v8, %v9792_v61  ;;  %v1395_v52 = vmul.f32 %v9748_v3, %v9797_v26  ;;  %v7018_v3 = vld [vmem:[%s8861_s0 + $0x60] sm:$0xff] }
 0x22b   :  { %9835 = vst [vmem:[#allocation103_spill] sm:$0xff] %v6979_v19  ;;  %v1677_v9 = vadd.f32 %v1421_v18, %v1029_v43  ;;  %v1678_v11 = vadd.f32 %v1422_v25, %v1030_v31  ;;  %v1396_v46 = vmul.f32 %v6423_v35, %v9797_v26  ;;  %v2069_v58 = vmul.f32 %v6979_v19, %v9837_v55  ;;  %v7002_v25 = vld [vmem:[%s8861_s0 + $0x40] sm:$0xff]  ;;  %v7010_v18 = vld [vmem:[%s8861_s0 + $0x50] sm:$0xff] }
 0x22c   :  { %9836 = vst [vmem:[#allocation104_spill] sm:$0xff] %v6981_v45  ;;  %v2070_v5 = vmul.f32 %v6981_v45, %v9837_v55  ;;  %v1003_v22 = vadd.f32 %v747_v53, %v355_v29  ;;  %v1004_v23 = vadd.f32 %v748_v30, %v356_v13  ;;  %v2043_v20 = vmul.f32 %v9780_v17, %v9800_v16 }
 0x22d   :  { %v2044_v43 = vmul.f32 %v9781_v10, %v9800_v16  ;;  %9838 = vst [vmem:[#allocation105_spill] sm:$0xff] %v7002_v25  ;;  %v93_v31 = vsel %vm74_vm4, %v7002_v25, %v9816_v7  ;;  %v493_v13 = vsel %vm74_vm4, %v7010_v18, %v9818_v51  ;;  %v2325_v29 = vadd.f32 %v2069_v58, %v1677_v9 }
 0x22e   :  { %9839 = vst [vmem:[#allocation106_spill] sm:$0xff] %v7010_v18  ;;  %v2326_v53 = vadd.f32 %v2070_v5, %v1678_v11  ;;  %v1651_v30 = vadd.f32 %v1395_v52, %v1003_v22  ;;  %v1652_v10 = vadd.f32 %v1396_v46, %v1004_v23  ;;  %v94_v17 = vrot.slane %v93_v31, 4  ;;  %v9841_v18 = vld [vmem:[#allocation56_spill] sm:$0xff] }
 0x22f   :  { %v494_v35 = vrot.slane %v493_v13, 4  ;;  %9840 = vst [vmem:[#allocation107_spill] sm:$0xff] %v7018_v3  ;;  %v1141_v8 = vsel %vm74_vm4, %v7018_v3, %v9822_v6  ;;  %v1789_v25 = vsel %vm74_vm4, %v6956_v38, %v9830_v39  ;;  %v2621_v9 = vadd.f32 %v9841_v18, %v2325_v29 }
 0x230   :  { %v2622_v22 = vadd.f32 %v9841_v18, %v2326_v53  ;;  %v2299_v23 = vadd.f32 %v2043_v20, %v1651_v30  ;;  %v2300_v11 = vadd.f32 %v2044_v43, %v1652_v10  ;;  %v7028_v52 = vperm.slane %v94_v17, 0 }
 0x231   :  { %v7030_v46 = vperm.slane %v94_v17, 1  ;;  %v7032_v58 = vperm.slane %v494_v35, 0  ;;  %v7034_v5 = vperm.slane %v494_v35, 1  ;;  %v2877_v31 = vmax.f32 %v2621_v9, 0.0  ;;  %v7046_v35 = vpop.xlane.xlu1 %3048 }
 0x232   :  { %9842 = vst [vmem:[#allocation108_spill] sm:$0xff] %v7028_v52  ;;  %v2878_v13 = vmax.f32 %v2622_v22, 0.0  ;;  %v2595_v3 = vadd.f32 %v9808_v24, %v2299_v23  ;;  %v2596_v38 = vadd.f32 %v9808_v24, %v2300_v11  ;;  %v397_v29 = vmul.f32 %v7028_v52, %v9828_v59  ;;  %v3043_v22 = vpop.xlane.xlu2 %3042 }
 0x233   :  { %9843 = vst [vmem:[#allocation109_spill] sm:$0xff] %v7030_v46  ;;  %v398_v20 = vmul.f32 %v7030_v46, %v9828_v59  ;;  %v789_v17 = vmul.f32 %v7032_v58, %v9831_v27  ;;  %v790_v10 = vmul.f32 %v7034_v5, %v9831_v27  ;;  %v1142_v9 = vrot.slane %v1141_v8, 4 }
 0x234   :  { %9844 = vst [vmem:[#allocation110_spill] sm:$0xff] %v7032_v58  ;;  %v3221_v43 = vadd.f32 %v2878_v13, %v2877_v31  ;;  %v2851_v53 = vmax.f32 %v2595_v3, 0.0  ;;  %v2852_v30 = vmax.f32 %v2596_v38, 0.0  ;;  %v3557_v23 = vperm.slane %v6973_v50, %v9778_v44  ;;  %v9850_v13 = vld [vmem:[#allocation71_spill] sm:$0xff] }
 0x235   :  { %9845 = vst [vmem:[#allocation111_spill] sm:$0xff] %v7034_v5  ;;  %v1045_v11 = vadd.f32 %v789_v17, %v397_v29  ;;  %v1046_v39 = vadd.f32 %v790_v10, %v398_v20  ;;  %v1790_v6 = vrot.slane %v1789_v25, 4  ;;  %v7050_v51 = vperm.slane %v1142_v9, 0  ;;  %v9851_v20 = vld [vmem:[#allocation88_spill] sm:$0xff]  ;;  %v9852_v10 = vld [vmem:[#allocation89_spill] sm:$0xff] }
 0x236   :  { %3222 = vadd.xlane.f32.xlu1 %v3221_v43  ;;  %v3182_v59 = vadd.f32 %v2852_v30, %v2851_v53  ;;  %v7052_v7 = vperm.slane %v1142_v9, 1  ;;  %v3558_v8 = vsel %vm3504_vm10, %v3557_v23, %v6935_v4  ;;  %v3559_v50 = vperm.slane %v3043_v22, %v9742_v37  ;;  %v9854_v23 = vld [vmem:[#allocation58_spill] sm:$0xff] }
 0x237   :  { %9846 = vst [vmem:[#allocation112_spill] sm:$0xff] %v7050_v51  ;;  %v7056_v31 = vperm.slane %v1790_v6, 0  ;;  %v7058_v3 = vperm.slane %v1790_v6, 1  ;;  %v1437_v38 = vmul.f32 %v7050_v51, %v9834_v62  ;;  %v329_v29 = vmul.f32 %v9850_v13, %v9803_v57 }
 0x238   :  { %9847 = vst [vmem:[#allocation113_spill] sm:$0xff] %v7052_v7  ;;  %3183 = vadd.xlane.f32.xlu2 %v3182_v59  ;;  %v1438_v25 = vmul.f32 %v7052_v7, %v9834_v62  ;;  %v330_v17 = vmul.f32 %v9851_v20, %v9803_v57  ;;  %v3560_v59 = vsel %vm3508_vm11, %v3559_v50, %v3558_v8  ;;  %v9855_v57 = vld [vmem:[#allocation59_spill] sm:$0xff]  ;;  %v9857_v50 = vld [vmem:[#allocation73_spill] sm:$0xff] }
 0x239   :  { %9848 = vst [vmem:[#allocation114_spill] sm:$0xff] %v7056_v31  ;;  %v2085_v6 = vmul.f32 %v7056_v31, %v9837_v55  ;;  %v2086_v4 = vmul.f32 %v7058_v3, %v9837_v55  ;;  %v721_v43 = vmul.f32 %v9852_v10, %v9804_v32  ;;  %v1693_v53 = vadd.f32 %v1437_v38, %v1045_v11  ;;  %v9856_v55 = vld [vmem:[#allocation78_spill] sm:$0xff] }
 0x23a   :  { %9849 = vst [vmem:[#allocation115_spill] sm:$0xff] %v7058_v3  ;;  %v1694_v30 = vadd.f32 %v1438_v25, %v1046_v39  ;;  %v9853_v9 = vperm.slane %v6841_v48, %v9787_v34  ;;  %v722_v27 = vmul.f32 %v9854_v23, %v9804_v32  ;;  %v1369_v20 = vmul.f32 %v9855_v57, %v9805_v54  ;;  %v9858_v48 = vld [vmem:[#allocation90_spill] sm:$0xff]  ;;  %v3052_v23 = vpop.xlane.xlu2 %3051  ;;  %v9871_v34 = vld [vmem:[#allocation41_spill] sm:$0xff] }
 0x23b   :  { %v977_v62 = vadd.f32 %v721_v43, %v329_v29  ;;  %v1370_v8 = vmul.f32 %v9856_v55, %v9805_v54  ;;  %v2017_v10 = vmul.f32 %v9857_v50, %v9806_v56  ;;  %v2341_v11 = vadd.f32 %v2085_v6, %v1693_v53 }
 0x23c   :  { %v3562_v22 = vsel %vm3512_vm12, %v9853_v9, %v3560_v59  ;;  %v2342_v39 = vadd.f32 %v2086_v4, %v1694_v30  ;;  %v978_v38 = vadd.f32 %v722_v27, %v330_v17  ;;  %v2018_v25 = vmul.f32 %v9858_v48, %v9806_v56 }
 0x23d   :  { %v1625_v59 = vadd.f32 %v1369_v20, %v977_v62  ;;  %v383_v9 = vmul.f32 %v6941_v41, %v9694_v47  ;;  %v384_v29 = vmul.f32 %v6943_v0, %v9694_v47  ;;  %v775_v43 = vmul.f32 %v6945_v49, %v9695_v1 }
 0x23e   :  { %v2637_v54 = vadd.f32 %v9841_v18, %v2341_v11  ;;  %v2638_v32 = vadd.f32 %v9841_v18, %v2342_v39  ;;  %v1626_v6 = vadd.f32 %v1370_v8, %v978_v38  ;;  %v776_v27 = vmul.f32 %v6947_v14, %v9695_v1  ;;  %v9864_v18 = vld [vmem:[#allocation31_spill] sm:$0xff] }
 0x23f   :  { %v2273_v17 = vadd.f32 %v2017_v10, %v1625_v59  ;;  %v1031_v4 = vadd.f32 %v775_v43, %v383_v9  ;;  %v1423_v62 = vmul.f32 %v6965_v12, %v9696_v40  ;;  %v1424_v20 = vmul.f32 %v6967_v36, %v9696_v40  ;;  %v9859_v9 = vld [vmem:[#allocation9_spill] sm:$0xff] }
 0x240   :  { %v2893_v53 = vmax.f32 %v2637_v54, 0.0  ;;  %v2894_v30 = vmax.f32 %v2638_v32, 0.0  ;;  %v2274_v56 = vadd.f32 %v2018_v25, %v1626_v6  ;;  %v1032_v48 = vadd.f32 %v776_v27, %v384_v29  ;;  %v9860_v29 = vld [vmem:[#allocation24_spill] sm:$0xff]  ;;  %v7118_v27 = vpop.xlane.xlu0 %3063 }
 0x241   :  { %v2569_v11 = vadd.f32 %v9814_v21, %v2273_v17  ;;  %v1679_v50 = vadd.f32 %v1423_v62, %v1031_v4  ;;  %v2071_v8 = vmul.f32 %v6979_v19, %v9698_v15  ;;  %v2072_v10 = vmul.f32 %v6981_v45, %v9698_v15 }
 0x242   :  { %v3245_v39 = vadd.f32 %v2894_v30, %v2893_v53  ;;  %v2570_v38 = vadd.f32 %v9814_v21, %v2274_v56  ;;  %v1680_v59 = vadd.f32 %v1424_v20, %v1032_v48  ;;  %v343_v43 = vmul.f32 %v6530_v63, %v9859_v9  ;;  %v9861_v48 = vld [vmem:[#allocation67_spill] sm:$0xff]  ;;  %v3058_v20 = vpop.xlane.xlu1 %3057  ;;  %v9862_v53 = vld [vmem:[#allocation33_spill] sm:$0xff] }
 0x243   :  { %v2825_v54 = vmax.f32 %v2569_v11, 0.0  ;;  %v2327_v32 = vadd.f32 %v2071_v8, %v1679_v50  ;;  %v344_v25 = vmul.f32 %v9790_v33, %v9859_v9  ;;  %v735_v6 = vmul.f32 %v9793_v42, %v9860_v29  ;;  %v9863_v11 = vld [vmem:[#allocation80_spill] sm:$0xff]  ;;  %v9865_v21 = vld [vmem:[#allocation95_spill] sm:$0xff] }
 0x244   :  { %3246 = vadd.xlane.f32.xlu0 %v3245_v39  ;;  %v2826_v17 = vmax.f32 %v2570_v38, 0.0  ;;  %v2328_v4 = vadd.f32 %v2072_v10, %v1680_v59  ;;  %v736_v56 = vmul.f32 %v9794_v2, %v9860_v29  ;;  %v1383_v62 = vmul.f32 %v9798_v28, %v9861_v48  ;;  %v9866_v38 = vld [vmem:[#allocation96_spill] sm:$0xff] }
 0x245   :  { %v2623_v50 = vadd.f32 %v9862_v53, %v2327_v32  ;;  %v991_v30 = vadd.f32 %v735_v6, %v343_v43  ;;  %v1384_v8 = vmul.f32 %v9863_v11, %v9861_v48  ;;  %v2031_v55 = vmul.f32 %v9865_v21, %v9864_v18  ;;  %v9867_v43 = vld [vmem:[#allocation48_spill] sm:$0xff] }
 0x246   :  { %v3143_v57 = vadd.f32 %v2826_v17, %v2825_v54  ;;  %v2624_v39 = vadd.f32 %v9862_v53, %v2328_v4  ;;  %v992_v10 = vadd.f32 %v736_v56, %v344_v25  ;;  %v2032_v59 = vmul.f32 %v9866_v38, %v9864_v18  ;;  %v9869_v25 = vld [vmem:[#allocation30_spill] sm:$0xff]  ;;  %v9870_v4 = vld [vmem:[#allocation100_spill] sm:$0xff]  ;;  %v9872_v53 = vld [vmem:[#allocation47_spill] sm:$0xff] }
 0x247   :  { %v2879_v29 = vmax.f32 %v2623_v50, 0.0  ;;  %v1639_v32 = vadd.f32 %v1383_v62, %v991_v30  ;;  %v3568_v6 = vperm.slane %v3058_v20, %v9867_v43  ;;  %v9868_v54 = vperm.slane %v7046_v35, %v9788_v60  ;;  %v9874_v20 = vld [vmem:[#allocation17_spill] sm:$0xff]  ;;  %v9875_v50 = vld [vmem:[#allocation87_spill] sm:$0xff] }
 0x248   :  { %3144 = vadd.xlane.f32.xlu1 %v3143_v57  ;;  %v2880_v48 = vmax.f32 %v2624_v39, 0.0  ;;  %v1640_v9 = vadd.f32 %v1384_v8, %v992_v10  ;;  %v3747_v56 = vsel %vm65_vm0, %v9870_v4, %v9869_v25  ;;  %v9873_v13 = vperm.slane %v9871_v34, %v9872_v53  ;;  %v9876_v39 = vld [vmem:[#allocation23_spill] sm:$0xff]  ;;  %v9881_v4 = vld [vmem:[#allocation60_spill] sm:$0xff]  ;;  %v9885_v53 = vld [vmem:[#allocation65_spill] sm:$0xff] }
 0x249   :  { %v3564_v17 = vsel %vm3516_vm13, %v9868_v54, %v3562_v22  ;;  %v2287_v18 = vadd.f32 %v2031_v55, %v1639_v32  ;;  %v3748_v57 = vsel %vm68_vm1, %v9874_v20, %v3747_v56  ;;  %v3565_v30 = vperm.slane %v3052_v23, %v9875_v50  ;;  %v9877_v22 = vld [vmem:[#allocation11_spill] sm:$0xff]  ;;  %v9878_v54 = vld [vmem:[#allocation12_spill] sm:$0xff]  ;;  %v9879_v55 = vld [vmem:[#allocation42_spill] sm:$0xff] }
 0x24a   :  { %v7146_v62 = vsel %vm3496_vm6, %v3568_v6, %v9873_v13  ;;  %v3224_v8 = vadd.f32 %v2880_v48, %v2879_v29  ;;  %v2288_v35 = vadd.f32 %v2032_v59, %v1640_v9  ;;  %v371_v10 = vmul.f32 %v9877_v22, %v9876_v39  ;;  %v9880_v13 = vld [vmem:[#allocation37_spill] sm:$0xff]  ;;  %v9883_v29 = vld [vmem:[#allocation46_spill] sm:$0xff]  ;;  %v9884_v59 = vld [vmem:[#allocation64_spill] sm:$0xff] }
 0x24b   :  { %v372_v25 = vmul.f32 %v9878_v54, %v9876_v39  ;;  %v2583_v32 = vadd.f32 %v9879_v55, %v2287_v18  ;;  %v3566_v34 = vsel %vm3520_vm14, %v3565_v30, %v3564_v17  ;;  %v763_v6 = vmul.f32 %v9880_v13, %v9792_v61  ;;  %v9888_v22 = vld [vmem:[#allocation66_spill] sm:$0xff] }
 0x24c   :  { %v764_v56 = vmul.f32 %v9881_v4, %v9792_v61  ;;  %3225 = vadd.xlane.f32.xlu2 %v3224_v8  ;;  %v2584_v23 = vadd.f32 %v9879_v55, %v2288_v35  ;;  %v7163_v9 = vsel %vm71_vm3, %v3566_v34, %v3748_v57  ;;  %v1411_v48 = vmul.f32 %v9883_v29, %v9797_v26  ;;  %v9886_v8 = vld [vmem:[#allocation99_spill] sm:$0xff]  ;;  %v9887_v35 = vld [vmem:[#allocation8_spill] sm:$0xff] }
 0x24d   :  { %9882 = vst [vmem:[#allocation30_spill] sm:$0xff] %v7163_v9  ;;  %v1412_v18 = vmul.f32 %v9884_v59, %v9797_v26  ;;  %v2839_v20 = vmax.f32 %v2583_v32, 0.0  ;;  %v1019_v17 = vadd.f32 %v763_v6, %v371_v10  ;;  %v2059_v13 = vmul.f32 %v9885_v53, %v9800_v16  ;;  %v9889_v6 = vld [vmem:[#allocation19_spill] sm:$0xff] }
 0x24e   :  { %v1020_v30 = vadd.f32 %v764_v56, %v372_v25  ;;  %v2840_v54 = vmax.f32 %v2584_v23, 0.0  ;;  %v2060_v4 = vmul.f32 %v9886_v8, %v9800_v16  ;;  %v341_v57 = vmul.f32 %v6530_v63, %v9887_v35  ;;  %v9890_v8 = vld [vmem:[#allocation32_spill] sm:$0xff] }
 0x24f   :  { %v342_v34 = vmul.f32 %v9790_v33, %v9887_v35  ;;  %v1667_v9 = vadd.f32 %v1411_v48, %v1019_v17  ;;  %v733_v32 = vmul.f32 %v9793_v42, %v9888_v22  ;;  %v734_v10 = vmul.f32 %v9794_v2, %v9888_v22 }
 0x250   :  { %v1668_v29 = vadd.f32 %v1412_v18, %v1020_v30  ;;  %v3164_v25 = vadd.f32 %v2840_v54, %v2839_v20  ;;  %v1381_v56 = vmul.f32 %v9798_v28, %v9889_v6  ;;  %v1382_v23 = vmul.f32 %v9863_v11, %v9889_v6 }
 0x251   :  { %v2029_v63 = vmul.f32 %v9865_v21, %v9890_v8  ;;  %v2315_v53 = vadd.f32 %v2059_v13, %v1667_v9  ;;  %v989_v48 = vadd.f32 %v733_v32, %v341_v57  ;;  %v990_v18 = vadd.f32 %v734_v10, %v342_v34  ;;  %v7205_v21 = vpop.xlane.xlu1 %3066 }
 0x252   :  { %v2316_v33 = vadd.f32 %v2060_v4, %v1668_v29  ;;  %3165 = vadd.xlane.f32.xlu0 %v3164_v25  ;;  %v2030_v17 = vmul.f32 %v9866_v38, %v9890_v8  ;;  %v387_v54 = vmul.f32 %v6941_v41, %v9876_v39  ;;  %v388_v20 = vmul.f32 %v6943_v0, %v9876_v39  ;;  %v7197_v29 = vpop.xlane.xlu0 %3072 }
 0x253   :  { %v779_v30 = vmul.f32 %v6945_v49, %v9792_v61  ;;  %v2611_v11 = vadd.f32 %v9808_v24, %v2315_v53  ;;  %v1637_v4 = vadd.f32 %v1381_v56, %v989_v48  ;;  %v1638_v9 = vadd.f32 %v1382_v23, %v990_v18 }
 0x254   :  { %v2612_v13 = vadd.f32 %v9808_v24, %v2316_v33  ;;  %v780_v57 = vmul.f32 %v6947_v14, %v9792_v61  ;;  %v1427_v32 = vmul.f32 %v6965_v12, %v9797_v26  ;;  %v1428_v10 = vmul.f32 %v6967_v36, %v9797_v26  ;;  %v3061_v33 = vpop.xlane.xlu2 %3060  ;;  %v9891_v26 = vld [vmem:[#allocation55_spill] sm:$0xff]  ;;  %v9899_v61 = vld [vmem:[#allocation105_spill] sm:$0xff] }
 0x255   :  { %v1035_v34 = vadd.f32 %v779_v30, %v387_v54  ;;  %v2867_v25 = vmax.f32 %v2611_v11, 0.0  ;;  %v2285_v38 = vadd.f32 %v2029_v63, %v1637_v4  ;;  %v2286_v53 = vadd.f32 %v2030_v17, %v1638_v9  ;;  %v9892_v4 = vld [vmem:[#allocation69_spill] sm:$0xff] }
 0x256   :  { %v2868_v39 = vmax.f32 %v2612_v13, 0.0  ;;  %v1036_v56 = vadd.f32 %v780_v57, %v388_v20  ;;  %v2075_v48 = vmul.f32 %v6979_v19, %v9800_v16  ;;  %v2076_v18 = vmul.f32 %v6981_v45, %v9800_v16 }
 0x257   :  { %v1683_v23 = vadd.f32 %v1427_v32, %v1035_v34  ;;  %v2581_v11 = vadd.f32 %v9891_v26, %v2285_v38  ;;  %v2582_v63 = vadd.f32 %v9891_v26, %v2286_v53  ;;  %v3570_v9 = vperm.slane %v3061_v33, %v9892_v4  ;;  %v9942_v26 = vld [vmem:[#allocation73_spill] sm:$0xff] }
 0x258   :  { %v3206_v30 = vadd.f32 %v2868_v39, %v2867_v25  ;;  %v1684_v17 = vadd.f32 %v1428_v10, %v1036_v56  ;;  %v399_v32 = vmul.f32 %v7028_v52, %v9694_v47  ;;  %v400_v39 = vmul.f32 %v7030_v46, %v9694_v47 }
 0x259   :  { %v2331_v13 = vadd.f32 %v2075_v48, %v1683_v23  ;;  %v2837_v57 = vmax.f32 %v2581_v11, 0.0  ;;  %v2838_v34 = vmax.f32 %v2582_v63, 0.0  ;;  %v3571_v10 = vsel %vm3500_vm8, %v3570_v9, %v7146_v62  ;;  %v9894_v9 = vld [vmem:[#allocation14_spill] sm:$0xff] }
 0x25a   :  { %3207 = vadd.xlane.f32.xlu1 %v3206_v30  ;;  %v2332_v25 = vadd.f32 %v2076_v18, %v1684_v17  ;;  %v791_v53 = vmul.f32 %v7032_v58, %v9695_v1  ;;  %v9893_v33 = vperm.slane %v7118_v27, %v9778_v44  ;;  %v792_v48 = vmul.f32 %v7034_v5, %v9695_v1 }
 0x25b   :  { %v2627_v38 = vadd.f32 %v9808_v24, %v2331_v13  ;;  %v3161_v56 = vadd.f32 %v2838_v34, %v2837_v57  ;;  %v1439_v18 = vmul.f32 %v7050_v51, %v9696_v40  ;;  %v1440_v63 = vmul.f32 %v7052_v7, %v9696_v40 }
 0x25c   :  { %v7231_v23 = vsel %vm3504_vm10, %v9893_v33, %v3571_v10  ;;  %v2628_v30 = vadd.f32 %v9808_v24, %v2332_v25  ;;  %v1047_v62 = vadd.f32 %v791_v53, %v399_v32  ;;  %v1048_v17 = vadd.f32 %v792_v48, %v400_v39  ;;  %v9895_v32 = vld [vmem:[#allocation49_spill] sm:$0xff] }
 0x25d   :  { %v2883_v11 = vmax.f32 %v2627_v38, 0.0  ;;  %3162 = vadd.xlane.f32.xlu2 %v3161_v56  ;;  %v2087_v27 = vmul.f32 %v7056_v31, %v9698_v15  ;;  %v2088_v13 = vmul.f32 %v7058_v3, %v9698_v15  ;;  %v385_v57 = vmul.f32 %v6941_v41, %v9894_v9  ;;  %v9896_v56 = vld [vmem:[#allocation92_spill] sm:$0xff] }
 0x25e   :  { %v2884_v34 = vmax.f32 %v2628_v30, 0.0  ;;  %v1695_v10 = vadd.f32 %v1439_v18, %v1047_v62  ;;  %v386_v25 = vmul.f32 %v6943_v0, %v9894_v9  ;;  %v777_v38 = vmul.f32 %v6945_v49, %v9895_v32  ;;  %v9897_v18 = vld [vmem:[#allocation57_spill] sm:$0xff] }
 0x25f   :  { %v1696_v53 = vadd.f32 %v1440_v63, %v1048_v17  ;;  %v778_v39 = vmul.f32 %v6947_v14, %v9895_v32  ;;  %v1425_v33 = vmul.f32 %v6965_v12, %v9896_v56  ;;  %v1426_v48 = vmul.f32 %v6967_v36, %v9896_v56  ;;  %v9898_v17 = vld [vmem:[#allocation13_spill] sm:$0xff] }
 0x260   :  { %v3230_v54 = vadd.f32 %v2884_v34, %v2883_v11  ;;  %v2343_v20 = vadd.f32 %v2087_v27, %v1695_v10  ;;  %v1033_v30 = vadd.f32 %v777_v38, %v385_v57  ;;  %v2073_v62 = vmul.f32 %v6979_v19, %v9897_v18  ;;  %v9900_v12 = vld [vmem:[#allocation33_spill] sm:$0xff]  ;;  %v9901_v11 = vld [vmem:[#allocation94_spill] sm:$0xff]  ;;  %v9904_v38 = vld [vmem:[#allocation107_spill] sm:$0xff] }
 0x261   :  { %v2344_v24 = vadd.f32 %v2088_v13, %v1696_v53  ;;  %v1034_v16 = vadd.f32 %v778_v39, %v386_v25  ;;  %v2074_v63 = vmul.f32 %v6981_v45, %v9897_v18  ;;  %v95_v14 = vsel %vm77_vm5, %v9899_v61, %v9898_v17  ;;  %v9902_v27 = vld [vmem:[#allocation106_spill] sm:$0xff]  ;;  %v9919_v17 = vld [vmem:[#allocation75_spill] sm:$0xff] }
 0x262   :  { %3231 = vadd.xlane.f32.xlu0 %v3230_v54  ;;  %v2639_v49 = vadd.f32 %v9900_v12, %v2343_v20  ;;  %v1681_v0 = vadd.f32 %v1425_v33, %v1033_v30  ;;  %v96_v36 = vrot.slane %v95_v14, 5  ;;  %v495_v57 = vsel %vm77_vm5, %v9902_v27, %v9901_v11  ;;  %v9903_v25 = vld [vmem:[#allocation74_spill] sm:$0xff]  ;;  %v3070_v11 = vpop.xlane.xlu2 %3069 }
 0x263   :  { %v2640_v34 = vadd.f32 %v9900_v12, %v2344_v24  ;;  %v1682_v13 = vadd.f32 %v1426_v48, %v1034_v16  ;;  %v496_v10 = vrot.slane %v495_v57, 5  ;;  %v1143_v53 = vsel %vm77_vm5, %v9904_v38, %v9903_v25  ;;  %v9909_v27 = vld [vmem:[#allocation54_spill] sm:$0xff]  ;;  %v9912_v38 = vld [vmem:[#allocation20_spill] sm:$0xff] }
 0x264   :  { %v2895_v39 = vmax.f32 %v2639_v49, 0.0  ;;  %v2329_v45 = vadd.f32 %v2073_v62, %v1681_v0  ;;  %v7271_v61 = vperm.slane %v96_v36, 0  ;;  %v7273_v54 = vperm.slane %v96_v36, 1  ;;  %v7284_v0 = vpop.xlane.xlu0 %3081 }
 0x265   :  { %v2896_v20 = vmax.f32 %v2640_v34, 0.0  ;;  %v2330_v14 = vadd.f32 %v2074_v63, %v1682_v13  ;;  %v7275_v33 = vperm.slane %v496_v10, 0  ;;  %v7277_v30 = vperm.slane %v496_v10, 1  ;;  %v3076_v34 = vpop.xlane.xlu1 %3075 }
 0x266   :  { %9905 = vst [vmem:[#allocation100_spill] sm:$0xff] %v7271_v61  ;;  %v2625_v24 = vadd.f32 %v9909_v27, %v2329_v45  ;;  %v415_v16 = vmul.f32 %v7271_v61, %v9694_v47  ;;  %v416_v48 = vmul.f32 %v7273_v54, %v9694_v47  ;;  %v1144_v49 = vrot.slane %v1143_v53, 5  ;;  %v9913_v47 = vld [vmem:[#allocation93_spill] sm:$0xff] }
 0x267   :  { %9906 = vst [vmem:[#allocation41_spill] sm:$0xff] %v7273_v54  ;;  %v3248_v62 = vadd.f32 %v2896_v20, %v2895_v39  ;;  %v2626_v36 = vadd.f32 %v9909_v27, %v2330_v14  ;;  %v807_v63 = vmul.f32 %v7275_v33, %v9695_v1  ;;  %v808_v57 = vmul.f32 %v7277_v30, %v9695_v1 }
 0x268   :  { %9907 = vst [vmem:[#allocation17_spill] sm:$0xff] %v7275_v33  ;;  %v2881_v45 = vmax.f32 %v2625_v24, 0.0  ;;  %v7291_v13 = vperm.slane %v1144_v49, 0  ;;  %v7293_v10 = vperm.slane %v1144_v49, 1  ;;  %v1791_v53 = vsel %vm77_vm5, %v9913_v47, %v9912_v38  ;;  %v9922_v38 = vld [vmem:[#allocation21_spill] sm:$0xff] }
 0x269   :  { %9908 = vst [vmem:[#allocation105_spill] sm:$0xff] %v7277_v30  ;;  %3249 = vadd.xlane.f32.xlu1 %v3248_v62  ;;  %v2882_v39 = vmax.f32 %v2626_v36, 0.0  ;;  %v1063_v20 = vadd.f32 %v807_v63, %v415_v16  ;;  %v1064_v14 = vadd.f32 %v808_v57, %v416_v48  ;;  %v1792_v25 = vrot.slane %v1791_v53, 5  ;;  %v9917_v63 = vld [vmem:[#allocation63_spill] sm:$0xff]  ;;  %v9918_v53 = vld [vmem:[#allocation9_spill] sm:$0xff] }
 0x26a   :  { %9910 = vst [vmem:[#allocation106_spill] sm:$0xff] %v7291_v13  ;;  %v1455_v24 = vmul.f32 %v7291_v13, %v9696_v40  ;;  %v1456_v49 = vmul.f32 %v7293_v10, %v9696_v40  ;;  %v3580_v1 = vperm.slane %v3076_v34, %v9875_v50  ;;  %v9916_v16 = vperm.slane %v7205_v21, %v9742_v37  ;;  %v9921_v21 = vld [vmem:[#allocation24_spill] sm:$0xff] }
 0x26b   :  { %9911 = vst [vmem:[#allocation107_spill] sm:$0xff] %v7293_v10  ;;  %v3227_v19 = vadd.f32 %v2882_v39, %v2881_v45  ;;  %v7305_v41 = vperm.slane %v1792_v25, 0  ;;  %v7307_v47 = vperm.slane %v1792_v25, 1  ;;  %v3576_v57 = vperm.slane %v3070_v11, %v9917_v63  ;;  %v9920_v45 = vld [vmem:[#allocation28_spill] sm:$0xff]  ;;  %v9923_v11 = vld [vmem:[#allocation22_spill] sm:$0xff] }
 0x26c   :  { %v3575_v48 = vsel %vm3508_vm11, %v9916_v16, %v7231_v23  ;;  %v1711_v62 = vadd.f32 %v1455_v24, %v1063_v20  ;;  %v1712_v36 = vadd.f32 %v1456_v49, %v1064_v14  ;;  %v359_v40 = vmul.f32 %v9919_v17, %v9918_v53  ;;  %v9924_v24 = vld [vmem:[#allocation67_spill] sm:$0xff]  ;;  %v9926_v16 = vld [vmem:[#allocation84_spill] sm:$0xff] }
 0x26d   :  { %9914 = vst [vmem:[#allocation93_spill] sm:$0xff] %v7305_v41  ;;  %3228 = vadd.xlane.f32.xlu2 %v3227_v19  ;;  %v2103_v34 = vmul.f32 %v7305_v41, %v9698_v15  ;;  %v2104_v25 = vmul.f32 %v7307_v47, %v9698_v15  ;;  %v360_v39 = vmul.f32 %v9920_v45, %v9918_v53  ;;  %v9925_v49 = vld [vmem:[#allocation83_spill] sm:$0xff] }
 0x26e   :  { %9915 = vst [vmem:[#allocation116_spill] sm:$0xff] %v7307_v47  ;;  %v751_v23 = vmul.f32 %v9922_v38, %v9921_v21  ;;  %v3577_v20 = vsel %vm3512_vm12, %v3576_v57, %v3575_v48  ;;  %v752_v14 = vmul.f32 %v9923_v11, %v9921_v21  ;;  %v1399_v19 = vmul.f32 %v9925_v49, %v9924_v24  ;;  %v9929_v57 = vld [vmem:[#allocation31_spill] sm:$0xff]  ;;  %v9930_v11 = vld [vmem:[#allocation86_spill] sm:$0xff]  ;;  %v9931_v49 = vld [vmem:[#allocation29_spill] sm:$0xff] }
 0x26f   :  { %v1400_v17 = vmul.f32 %v9926_v16, %v9924_v24  ;;  %v2359_v63 = vadd.f32 %v2103_v34, %v1711_v62  ;;  %v2360_v28 = vadd.f32 %v2104_v25, %v1712_v36  ;;  %v9927_v15 = vperm.slane %v7197_v29, %v9788_v60  ;;  %v9932_v34 = vld [vmem:[#allocation36_spill] sm:$0xff]  ;;  %v9933_v29 = vld [vmem:[#allocation71_spill] sm:$0xff] }
 0x270   :  { %v1007_v2 = vadd.f32 %v751_v23, %v359_v40  ;;  %v1008_v48 = vadd.f32 %v752_v14, %v360_v39  ;;  %v2047_v42 = vmul.f32 %v9930_v11, %v9929_v57  ;;  %v2048_v44 = vmul.f32 %v9931_v49, %v9929_v57  ;;  %v9934_v40 = vld [vmem:[#allocation88_spill] sm:$0xff]  ;;  %v9936_v39 = vld [vmem:[#allocation89_spill] sm:$0xff] }
 0x271   :  { %v3579_v45 = vsel %vm3516_vm13, %v9927_v15, %v3577_v20  ;;  %v2655_v16 = vadd.f32 %v9900_v12, %v2359_v63  ;;  %v2656_v62 = vadd.f32 %v9900_v12, %v2360_v28  ;;  %v331_v25 = vmul.f32 %v9933_v29, %v9932_v34  ;;  %v9937_v20 = vld [vmem:[#allocation58_spill] sm:$0xff] }
 0x272   :  { %v7337_v38 = vsel %vm3520_vm14, %v3580_v1, %v3579_v45  ;;  %v1655_v36 = vadd.f32 %v1399_v19, %v1007_v2  ;;  %v1656_v15 = vadd.f32 %v1400_v17, %v1008_v48  ;;  %v332_v1 = vmul.f32 %v9934_v40, %v9932_v34  ;;  %v9935_v45 = vld [vmem:[#allocation76_spill] sm:$0xff]  ;;  %v9938_v63 = vld [vmem:[#allocation50_spill] sm:$0xff]  ;;  %v7355_v2 = vpop.xlane.xlu0 %3090  ;;  %v9941_v34 = vld [vmem:[#allocation43_spill] sm:$0xff] }
 0x273   :  { %9928 = vst [vmem:[#allocation117_spill] sm:$0xff] %v7337_v38  ;;  %v723_v23 = vmul.f32 %v9936_v39, %v9935_v45  ;;  %v724_v14 = vmul.f32 %v9937_v20, %v9935_v45  ;;  %v2911_v11 = vmax.f32 %v2655_v16, 0.0  ;;  %v2912_v49 = vmax.f32 %v2656_v62, 0.0  ;;  %v9939_v38 = vld [vmem:[#allocation59_spill] sm:$0xff]  ;;  %v9940_v48 = vld [vmem:[#allocation78_spill] sm:$0xff]  ;;  %v9950_v45 = vld [vmem:[#allocation61_spill] sm:$0xff] }
 0x274   :  { %v2303_v60 = vadd.f32 %v2047_v42, %v1655_v36  ;;  %v1371_v28 = vmul.f32 %v9939_v38, %v9938_v63  ;;  %v2304_v19 = vadd.f32 %v2048_v44, %v1656_v15  ;;  %v1372_v40 = vmul.f32 %v9940_v48, %v9938_v63  ;;  %v9943_v16 = vld [vmem:[#allocation90_spill] sm:$0xff]  ;;  %v9944_v44 = vld [vmem:[#allocation11_spill] sm:$0xff] }
 0x275   :  { %v979_v29 = vadd.f32 %v723_v23, %v331_v25  ;;  %v980_v17 = vadd.f32 %v724_v14, %v332_v1  ;;  %v3272_v12 = vadd.f32 %v2912_v49, %v2911_v11  ;;  %v2019_v20 = vmul.f32 %v9942_v26, %v9941_v34  ;;  %v9945_v1 = vld [vmem:[#allocation12_spill] sm:$0xff] }
 0x276   :  { %v2599_v39 = vadd.f32 %v9879_v55, %v2303_v60  ;;  %v2020_v42 = vmul.f32 %v9943_v16, %v9941_v34  ;;  %v2600_v62 = vadd.f32 %v9879_v55, %v2304_v19  ;;  %v375_v25 = vmul.f32 %v9944_v44, %v9918_v53  ;;  %v9946_v60 = vld [vmem:[#allocation37_spill] sm:$0xff]  ;;  %v9947_v26 = vld [vmem:[#allocation60_spill] sm:$0xff]  ;;  %v3079_v34 = vpop.xlane.xlu2 %3078 }
 0x277   :  { %v1627_v38 = vadd.f32 %v1371_v28, %v979_v29  ;;  %v1628_v36 = vadd.f32 %v1372_v40, %v980_v17  ;;  %3273 = vadd.xlane.f32.xlu0 %v3272_v12  ;;  %v376_v11 = vmul.f32 %v9945_v1, %v9918_v53  ;;  %v767_v49 = vmul.f32 %v9946_v60, %v9921_v21  ;;  %v9948_v28 = vld [vmem:[#allocation46_spill] sm:$0xff]  ;;  %v7375_v29 = vpop.xlane.xlu1 %3084 }
 0x278   :  { %v2855_v15 = vmax.f32 %v2599_v39, 0.0  ;;  %v768_v23 = vmul.f32 %v9947_v26, %v9921_v21  ;;  %v2856_v14 = vmax.f32 %v2600_v62, 0.0  ;;  %v1415_v19 = vmul.f32 %v9948_v28, %v9924_v24  ;;  %v9949_v39 = vld [vmem:[#allocation65_spill] sm:$0xff] }
 0x279   :  { %v2275_v48 = vadd.f32 %v2019_v20, %v1627_v38  ;;  %v2276_v16 = vadd.f32 %v2020_v42, %v1628_v36  ;;  %v1023_v17 = vadd.f32 %v767_v49, %v375_v25  ;;  %v1416_v40 = vmul.f32 %v9884_v59, %v9924_v24  ;;  %v9951_v42 = vld [vmem:[#allocation99_spill] sm:$0xff] }
 0x27a   :  { %v1024_v12 = vadd.f32 %v768_v23, %v376_v11  ;;  %v2063_v53 = vmul.f32 %v9949_v39, %v9929_v57  ;;  %v3188_v63 = vadd.f32 %v2856_v14, %v2855_v15  ;;  %v2064_v62 = vmul.f32 %v9951_v42, %v9929_v57  ;;  %v9952_v24 = vld [vmem:[#allocation47_spill] sm:$0xff] }
 0x27b   :  { %v2571_v21 = vadd.f32 %v9950_v45, %v2275_v48  ;;  %v2572_v20 = vadd.f32 %v9950_v45, %v2276_v16  ;;  %v1671_v36 = vadd.f32 %v1415_v19, %v1023_v17  ;;  %v3582_v15 = vperm.slane %v3079_v34, %v9952_v24  ;;  %v7396_v17 = vpop.xlane.xlu0 %3099 }
 0x27c   :  { %v1672_v25 = vadd.f32 %v1416_v40, %v1024_v12  ;;  %3189 = vadd.xlane.f32.xlu1 %v3188_v63  ;;  %v401_v14 = vmul.f32 %v7028_v52, %v9894_v9  ;;  %v402_v57 = vmul.f32 %v7030_v46, %v9894_v9  ;;  %v793_v19 = vmul.f32 %v7032_v58, %v9895_v32 }
 0x27d   :  { %v2827_v49 = vmax.f32 %v2571_v21, 0.0  ;;  %v2828_v23 = vmax.f32 %v2572_v20, 0.0  ;;  %v2319_v48 = vadd.f32 %v2063_v53, %v1671_v36  ;;  %v9953_v21 = vperm.slane %v7284_v0, %v9867_v43 }
 0x27e   :  { %v2320_v16 = vadd.f32 %v2064_v62, %v1672_v25  ;;  %v794_v34 = vmul.f32 %v7034_v5, %v9895_v32  ;;  %v1441_v53 = vmul.f32 %v7050_v51, %v9896_v56  ;;  %v1049_v62 = vadd.f32 %v793_v19, %v401_v14 }
 0x27f   :  { %v3146_v12 = vadd.f32 %v2828_v23, %v2827_v49  ;;  %v3584_v63 = vsel %vm3496_vm6, %v9953_v21, %v3582_v15  ;;  %v2615_v40 = vadd.f32 %v9879_v55, %v2319_v48  ;;  %v1442_v36 = vmul.f32 %v7052_v7, %v9896_v56 }
 0x280   :  { %v2616_v20 = vadd.f32 %v9879_v55, %v2320_v16  ;;  %v1050_v25 = vadd.f32 %v794_v34, %v402_v57  ;;  %v2089_v0 = vmul.f32 %v7056_v31, %v9897_v18  ;;  %v2090_v49 = vmul.f32 %v7058_v3, %v9897_v18 }
 0x281   :  { %3147 = vadd.xlane.f32.xlu2 %v3146_v12  ;;  %v373_v23 = vmul.f32 %v9944_v44, %v9887_v35  ;;  %v2871_v15 = vmax.f32 %v2615_v40, 0.0  ;;  %v1697_v48 = vadd.f32 %v1441_v53, %v1049_v62  ;;  %v374_v14 = vmul.f32 %v9945_v1, %v9887_v35  ;;  %v9969_v44 = vld [vmem:[#allocation95_spill] sm:$0xff] }
 0x282   :  { %v2872_v21 = vmax.f32 %v2616_v20, 0.0  ;;  %v1698_v16 = vadd.f32 %v1442_v36, %v1050_v25  ;;  %v765_v19 = vmul.f32 %v9946_v60, %v9888_v22  ;;  %v766_v57 = vmul.f32 %v9947_v26, %v9888_v22  ;;  %v9967_v60 = vld [vmem:[#allocation80_spill] sm:$0xff] }
 0x283   :  { %v1413_v12 = vmul.f32 %v9948_v28, %v9889_v6  ;;  %v2345_v38 = vadd.f32 %v2089_v0, %v1697_v48  ;;  %v1414_v40 = vmul.f32 %v9884_v59, %v9889_v6  ;;  %v2061_v53 = vmul.f32 %v9949_v39, %v9890_v8 }
 0x284   :  { %v3212_v34 = vadd.f32 %v2872_v21, %v2871_v15  ;;  %v2346_v20 = vadd.f32 %v2090_v49, %v1698_v16  ;;  %v1021_v62 = vadd.f32 %v765_v19, %v373_v23  ;;  %v1022_v36 = vadd.f32 %v766_v57, %v374_v14  ;;  %v7444_v57 = vpop.xlane.xlu0 %3108 }
 0x285   :  { %v2062_v25 = vmul.f32 %v9951_v42, %v9890_v8  ;;  %v2641_v11 = vadd.f32 %v9909_v27, %v2345_v38  ;;  %v417_v28 = vmul.f32 %v7271_v61, %v9894_v9  ;;  %v418_v0 = vmul.f32 %v7273_v54, %v9894_v9  ;;  %9954 = vst [vmem:[#allocation71_spill] sm:$0xff] %v7444_v57 }
 0x286   :  { %3213 = vadd.xlane.f32.xlu0 %v3212_v34  ;;  %v809_v15 = vmul.f32 %v7275_v33, %v9895_v32  ;;  %v2642_v21 = vadd.f32 %v9909_v27, %v2346_v20  ;;  %v1669_v49 = vadd.f32 %v1413_v12, %v1021_v62  ;;  %v1670_v23 = vadd.f32 %v1414_v40, %v1022_v36  ;;  %v3088_v20 = vpop.xlane.xlu2 %3087  ;;  %v9955_v36 = vld [vmem:[#allocation55_spill] sm:$0xff] }
 0x287   :  { %v810_v48 = vmul.f32 %v7277_v30, %v9895_v32  ;;  %v2897_v14 = vmax.f32 %v2641_v11, 0.0  ;;  %v1457_v38 = vmul.f32 %v7291_v13, %v9896_v56  ;;  %v1458_v19 = vmul.f32 %v7293_v10, %v9896_v56 }
 0x288   :  { %v1065_v16 = vadd.f32 %v809_v15, %v417_v28  ;;  %v2898_v34 = vmax.f32 %v2642_v21, 0.0  ;;  %v2317_v42 = vadd.f32 %v2061_v53, %v1669_v49  ;;  %v2318_v39 = vadd.f32 %v2062_v25, %v1670_v23  ;;  %v9957_v23 = vld [vmem:[#allocation62_spill] sm:$0xff] }
 0x289   :  { %v1066_v59 = vadd.f32 %v810_v48, %v418_v0  ;;  %v2105_v28 = vmul.f32 %v7305_v41, %v9897_v18  ;;  %v2106_v11 = vmul.f32 %v7307_v47, %v9897_v18  ;;  %v9956_v0 = vperm.slane %v7375_v29, %v9892_v4  ;;  %v9962_v29 = vld [vmem:[#allocation26_spill] sm:$0xff] }
 0x28a   :  { %v1713_v40 = vadd.f32 %v1457_v38, %v1065_v16  ;;  %v3251_v62 = vadd.f32 %v2898_v34, %v2897_v14  ;;  %v2613_v15 = vadd.f32 %v9955_v36, %v2317_v42  ;;  %v2614_v26 = vadd.f32 %v9955_v36, %v2318_v39  ;;  %v9958_v34 = vld [vmem:[#allocation51_spill] sm:$0xff]  ;;  %v9959_v42 = vld [vmem:[#allocation18_spill] sm:$0xff] }
 0x28b   :  { %v1714_v21 = vadd.f32 %v1458_v19, %v1066_v59  ;;  %v3586_v49 = vsel %vm3500_vm8, %v9956_v0, %v3584_v63  ;;  %v3587_v48 = vperm.slane %v3088_v20, %v9957_v23  ;;  %v345_v12 = vmul.f32 %v9959_v42, %v9958_v34  ;;  %v9960_v19 = vld [vmem:[#allocation38_spill] sm:$0xff]  ;;  %v9965_v0 = vld [vmem:[#allocation53_spill] sm:$0xff] }
 0x28c   :  { %v2361_v25 = vadd.f32 %v2105_v28, %v1713_v40  ;;  %3252 = vadd.xlane.f32.xlu1 %v3251_v62  ;;  %v2869_v16 = vmax.f32 %v2613_v15, 0.0  ;;  %v2870_v38 = vmax.f32 %v2614_v26, 0.0  ;;  %v346_v40 = vmul.f32 %v9960_v19, %v9958_v34  ;;  %v9961_v28 = vld [vmem:[#allocation25_spill] sm:$0xff]  ;;  %v9964_v62 = vld [vmem:[#allocation27_spill] sm:$0xff] }
 0x28d   :  { %v2362_v14 = vadd.f32 %v2106_v11, %v1714_v21  ;;  %v3588_v39 = vsel %vm3504_vm10, %v3587_v48, %v3586_v49  ;;  %v737_v53 = vmul.f32 %v9962_v29, %v9961_v28  ;;  %v9963_v26 = vperm.slane %v7355_v2, %v9742_v37  ;;  %v9966_v49 = vld [vmem:[#allocation77_spill] sm:$0xff]  ;;  %v9970_v2 = vld [vmem:[#allocation96_spill] sm:$0xff]  ;;  %v9971_v37 = vld [vmem:[#allocation98_spill] sm:$0xff] }
 0x28e   :  { %v2657_v59 = vadd.f32 %v9909_v27, %v2361_v25  ;;  %v3209_v63 = vadd.f32 %v2870_v38, %v2869_v16  ;;  %v738_v15 = vmul.f32 %v9964_v62, %v9961_v28  ;;  %v1385_v48 = vmul.f32 %v9966_v49, %v9965_v0 }
 0x28f   :  { %v2658_v20 = vadd.f32 %v9909_v27, %v2362_v14  ;;  %v3590_v11 = vsel %vm3508_vm11, %v9963_v26, %v3588_v39  ;;  %v993_v25 = vadd.f32 %v737_v53, %v345_v12  ;;  %v1386_v1 = vmul.f32 %v9967_v60, %v9965_v0  ;;  %v9968_v14 = vld [vmem:[#allocation81_spill] sm:$0xff]  ;;  %v9972_v53 = vld [vmem:[#allocation10_spill] sm:$0xff] }
 0x290   :  { %v2913_v21 = vmax.f32 %v2657_v59, 0.0  ;;  %3210 = vadd.xlane.f32.xlu2 %v3209_v63  ;;  %v994_v38 = vadd.f32 %v738_v15, %v346_v40  ;;  %v2033_v27 = vmul.f32 %v9969_v44, %v9968_v14  ;;  %v2034_v39 = vmul.f32 %v9970_v2, %v9968_v14 }
 0x291   :  { %v2914_v16 = vmax.f32 %v2658_v20, 0.0  ;;  %v1641_v26 = vadd.f32 %v1385_v48, %v993_v25  ;;  %v413_v59 = vmul.f32 %v7271_v61, %v9971_v37  ;;  %v414_v12 = vmul.f32 %v7273_v54, %v9971_v37  ;;  %v9973_v20 = vld [vmem:[#allocation39_spill] sm:$0xff]  ;;  %v9974_v48 = vld [vmem:[#allocation82_spill] sm:$0xff] }
 0x292   :  { %v805_v4 = vmul.f32 %v7275_v33, %v9972_v53  ;;  %v1642_v63 = vadd.f32 %v1386_v1, %v994_v38  ;;  %v806_v40 = vmul.f32 %v7277_v30, %v9972_v53  ;;  %v1453_v15 = vmul.f32 %v7291_v13, %v9973_v20  ;;  %v9976_v38 = vld [vmem:[#allocation35_spill] sm:$0xff] }
 0x293   :  { %v3275_v57 = vadd.f32 %v2914_v16, %v2913_v21  ;;  %v2289_v18 = vadd.f32 %v2033_v27, %v1641_v26  ;;  %v1454_v25 = vmul.f32 %v7293_v10, %v9973_v20  ;;  %v2101_v61 = vmul.f32 %v7305_v41, %v9974_v48  ;;  %v9975_v21 = vld [vmem:[#allocation36_spill] sm:$0xff]  ;;  %v9980_v10 = vld [vmem:[#allocation43_spill] sm:$0xff] }
 0x294   :  { %v1061_v56 = vadd.f32 %v805_v4, %v413_v59  ;;  %v2290_v54 = vadd.f32 %v2034_v39, %v1642_v63  ;;  %v1062_v32 = vadd.f32 %v806_v40, %v414_v12  ;;  %v2102_v1 = vmul.f32 %v7307_v47, %v9974_v48  ;;  %v9977_v27 = vld [vmem:[#allocation76_spill] sm:$0xff]  ;;  %v3094_v59 = vpop.xlane.xlu1 %3093  ;;  %v9978_v63 = vld [vmem:[#allocation50_spill] sm:$0xff] }
 0x295   :  { %3276 = vadd.xlane.f32.xlu0 %v3275_v57  ;;  %v347_v16 = vmul.f32 %v9959_v42, %v9975_v21  ;;  %v2585_v30 = vadd.f32 %v9976_v38, %v2289_v18  ;;  %v348_v4 = vmul.f32 %v9960_v19, %v9975_v21  ;;  %v739_v26 = vmul.f32 %v9962_v29, %v9977_v27  ;;  %v7512_v42 = vpop.xlane.xlu0 %3111 }
 0x296   :  { %v1709_v13 = vadd.f32 %v1453_v15, %v1061_v56  ;;  %v2586_v57 = vadd.f32 %v9976_v38, %v2290_v54  ;;  %v1710_v39 = vadd.f32 %v1454_v25, %v1062_v32  ;;  %v740_v12 = vmul.f32 %v9964_v62, %v9977_v27  ;;  %9979 = vst [vmem:[#allocation88_spill] sm:$0xff] %v7512_v42  ;;  %v9981_v54 = vld [vmem:[#allocation63_spill] sm:$0xff]  ;;  %v9982_v62 = vld [vmem:[#allocation56_spill] sm:$0xff] }
 0x297   :  { %v1387_v40 = vmul.f32 %v9966_v49, %v9978_v63  ;;  %v2841_v18 = vmax.f32 %v2585_v30, 0.0  ;;  %v995_v15 = vadd.f32 %v739_v26, %v347_v16  ;;  %v1388_v19 = vmul.f32 %v9967_v60, %v9978_v63  ;;  %v3097_v30 = vpop.xlane.xlu2 %3096  ;;  %v9983_v26 = vld [vmem:[#allocation30_spill] sm:$0xff] }
 0x298   :  { %v2357_v56 = vadd.f32 %v2101_v61, %v1709_v13  ;;  %v2842_v47 = vmax.f32 %v2586_v57, 0.0  ;;  %v2358_v29 = vadd.f32 %v2102_v1, %v1710_v39  ;;  %v996_v41 = vadd.f32 %v740_v12, %v348_v4 }
 0x299   :  { %v2035_v32 = vmul.f32 %v9969_v44, %v9980_v10  ;;  %v3591_v25 = vperm.slane %v3094_v59, %v9981_v54  ;;  %v1643_v27 = vadd.f32 %v1387_v40, %v995_v15  ;;  %v2036_v49 = vmul.f32 %v9970_v2, %v9980_v10  ;;  %v9984_v59 = vld [vmem:[#allocation117_spill] sm:$0xff]  ;;  %v9985_v2 = vld [vmem:[#allocation79_spill] sm:$0xff] }
 0x29a   :  { %v2653_v33 = vadd.f32 %v9982_v62, %v2357_v56  ;;  %v3167_v13 = vadd.f32 %v2842_v47, %v2841_v18  ;;  %v2654_v60 = vadd.f32 %v9982_v62, %v2358_v29  ;;  %v1644_v1 = vadd.f32 %v1388_v19, %v996_v41  ;;  %v9986_v56 = vld [vmem:[#allocation44_spill] sm:$0xff]  ;;  %v9987_v41 = vld [vmem:[#allocation45_spill] sm:$0xff] }
 0x29b   :  { %v2291_v4 = vadd.f32 %v2035_v32, %v1643_v27  ;;  %v3592_v44 = vsel %vm3512_vm12, %v3591_v25, %v3590_v11  ;;  %v3750_v57 = vsel %vm74_vm4, %v9984_v59, %v9983_v26  ;;  %v3593_v40 = vperm.slane %v3097_v30, %v9985_v2  ;;  %v9988_v27 = vld [vmem:[#allocation91_spill] sm:$0xff]  ;;  %v9989_v18 = vld [vmem:[#allocation85_spill] sm:$0xff]  ;;  %v9995_v2 = vld [vmem:[#allocation104_spill] sm:$0xff] }
 0x29c   :  { %v2909_v16 = vmax.f32 %v2653_v33, 0.0  ;;  %3168 = vadd.xlane.f32.xlu1 %v3167_v13  ;;  %v2910_v39 = vmax.f32 %v2654_v60, 0.0  ;;  %v2292_v12 = vadd.f32 %v2036_v49, %v1644_v1  ;;  %v389_v15 = vmul.f32 %v9986_v56, %v9887_v35  ;;  %v9990_v49 = vld [vmem:[#allocation101_spill] sm:$0xff] }
 0x29d   :  { %v2587_v47 = vadd.f32 %v9950_v45, %v2291_v4  ;;  %v390_v33 = vmul.f32 %v9987_v41, %v9887_v35  ;;  %v781_v11 = vmul.f32 %v9988_v27, %v9888_v22  ;;  %v782_v19 = vmul.f32 %v9989_v18, %v9888_v22  ;;  %v10005_v35 = vld [vmem:[#allocation24_spill] sm:$0xff] }
 0x29e   :  { %v3269_v29 = vadd.f32 %v2910_v39, %v2909_v16  ;;  %v2588_v32 = vadd.f32 %v9950_v45, %v2292_v12  ;;  %v3594_v25 = vsel %vm3516_vm13, %v3593_v40, %v3592_v44  ;;  %v1429_v30 = vmul.f32 %v9990_v49, %v9889_v6  ;;  %v9993_v16 = vld [vmem:[#allocation102_spill] sm:$0xff]  ;;  %v9994_v44 = vld [vmem:[#allocation103_spill] sm:$0xff]  ;;  %v3103_v40 = vpop.xlane.xlu1 %3102 }
 0x29f   :  { %v2843_v13 = vmax.f32 %v2587_v47, 0.0  ;;  %v9991_v60 = vperm.slane %v7396_v17, %v9875_v50  ;;  %v1037_v4 = vadd.f32 %v781_v11, %v389_v15  ;;  %v1038_v26 = vadd.f32 %v782_v19, %v390_v33  ;;  %v9997_v33 = vld [vmem:[#allocation28_spill] sm:$0xff] }
 0x2a0   :  { %3270 = vadd.xlane.f32.xlu2 %v3269_v29  ;;  %v2844_v59 = vmax.f32 %v2588_v32, 0.0  ;;  %v1430_v39 = vmul.f32 %v9993_v16, %v9889_v6  ;;  %v2077_v12 = vmul.f32 %v9994_v44, %v9890_v8  ;;  %v2078_v17 = vmul.f32 %v9995_v2, %v9890_v8  ;;  %v9998_v29 = vld [vmem:[#allocation21_spill] sm:$0xff]  ;;  %v10001_v50 = vld [vmem:[#allocation84_spill] sm:$0xff]  ;;  %v10002_v8 = vld [vmem:[#allocation86_spill] sm:$0xff] }
 0x2a1   :  { %v3596_v1 = vsel %vm3520_vm14, %v9991_v60, %v3594_v25  ;;  %v1685_v47 = vadd.f32 %v1429_v30, %v1037_v4  ;;  %v9996_v25 = vld [vmem:[#allocation75_spill] sm:$0xff]  ;;  %v362_v11 = vmul.f32 %v9997_v33, %v9958_v34  ;;  %v753_v32 = vmul.f32 %v9998_v29, %v9961_v28  ;;  %v9999_v60 = vld [vmem:[#allocation22_spill] sm:$0xff] }
 0x2a2   :  { %v7548_v61 = vsel %vm77_vm5, %v3596_v1, %v3750_v57  ;;  %v361_v15 = vmul.f32 %v9996_v25, %v9958_v34  ;;  %v3170_v19 = vadd.f32 %v2844_v59, %v2843_v13  ;;  %v1686_v57 = vadd.f32 %v1430_v39, %v1038_v26  ;;  %v10000_v30 = vld [vmem:[#allocation83_spill] sm:$0xff]  ;;  %v10003_v59 = vld [vmem:[#allocation29_spill] sm:$0xff] }
 0x2a3   :  { %9992 = vst [vmem:[#allocation89_spill] sm:$0xff] %v7548_v61  ;;  %v754_v1 = vmul.f32 %v9999_v60, %v9961_v28  ;;  %v2333_v61 = vadd.f32 %v2077_v12, %v1685_v47  ;;  %v1401_v4 = vmul.f32 %v10000_v30, %v9965_v0  ;;  %v1402_v54 = vmul.f32 %v10001_v50, %v9965_v0  ;;  %v10004_v28 = vld [vmem:[#allocation9_spill] sm:$0xff] }
 0x2a4   :  { %v2049_v6 = vmul.f32 %v10002_v8, %v9968_v14  ;;  %3171 = vadd.xlane.f32.xlu0 %v3170_v19  ;;  %v2334_v34 = vadd.f32 %v2078_v17, %v1686_v57  ;;  %v1009_v13 = vadd.f32 %v753_v32, %v361_v15  ;;  %v2050_v39 = vmul.f32 %v10003_v59, %v9968_v14  ;;  %v10006_v32 = vld [vmem:[#allocation67_spill] sm:$0xff] }
 0x2a5   :  { %v1010_v26 = vadd.f32 %v754_v1, %v362_v11  ;;  %v2629_v22 = vadd.f32 %v9955_v36, %v2333_v61  ;;  %v391_v12 = vmul.f32 %v9986_v56, %v10004_v28  ;;  %v392_v47 = vmul.f32 %v9987_v41, %v10004_v28  ;;  %v7586_v56 = vpop.xlane.xlu0 %3135 }
 0x2a6   :  { %v783_v0 = vmul.f32 %v9988_v27, %v10005_v35  ;;  %v2630_v42 = vadd.f32 %v9955_v36, %v2334_v34  ;;  %v1657_v19 = vadd.f32 %v1401_v4, %v1009_v13  ;;  %v784_v15 = vmul.f32 %v9989_v18, %v10005_v35  ;;  %v3106_v34 = vpop.xlane.xlu2 %3105  ;;  %v10007_v13 = vld [vmem:[#allocation31_spill] sm:$0xff] }
 0x2a7   :  { %v1658_v17 = vadd.f32 %v1402_v54, %v1010_v26  ;;  %v2885_v11 = vmax.f32 %v2629_v22, 0.0  ;;  %v1431_v61 = vmul.f32 %v9990_v49, %v10006_v32  ;;  %v1432_v1 = vmul.f32 %v9993_v16, %v10006_v32 }
 0x2a8   :  { %v1039_v57 = vadd.f32 %v783_v0, %v391_v12  ;;  %v2886_v28 = vmax.f32 %v2630_v42, 0.0  ;;  %v2305_v41 = vadd.f32 %v2049_v6, %v1657_v19  ;;  %v1040_v14 = vadd.f32 %v784_v15, %v392_v47  ;;  %v7603_v47 = vld [vmem:[%s8861_s0 + $0x40] sm:$0xff]  ;;  %v10008_v19 = vld [vmem:[#allocation13_spill] sm:$0xff] }
 0x2a9   :  { %v2306_v27 = vadd.f32 %v2050_v39, %v1658_v17  ;;  %v3597_v54 = vperm.slane %v3103_v40, %v9952_v24  ;;  %v2079_v22 = vmul.f32 %v9994_v44, %v10007_v13  ;;  %v2080_v0 = vmul.f32 %v9995_v2, %v10007_v13  ;;  %v7597_v39 = vpop.xlane.xlu1 %3126 }
 0x2aa   :  { %v1687_v4 = vadd.f32 %v1431_v61, %v1039_v57  ;;  %v3233_v26 = vadd.f32 %v2886_v28, %v2885_v11  ;;  %v2601_v12 = vadd.f32 %v9976_v38, %v2305_v41  ;;  %v1688_v35 = vadd.f32 %v1432_v1, %v1040_v14  ;;  %v7615_v57 = vld [vmem:[%s8861_s0 + $0x50] sm:$0xff] }
 0x2ab   :  { %v2602_v32 = vadd.f32 %v9976_v38, %v2306_v27  ;;  %v3598_v40 = vperm.slane %v3106_v34, %v9867_v43  ;;  %v97_v28 = vsel %vm80_vm7, %v7603_v47, %v10008_v19  ;;  %10009 = vst [vmem:[#allocation58_spill] sm:$0xff] %v7615_v57  ;;  %v10010_v61 = vld [vmem:[#allocation94_spill] sm:$0xff] }
 0x2ac   :  { %v2335_v42 = vadd.f32 %v2079_v22, %v1687_v4  ;;  %3234 = vadd.xlane.f32.xlu1 %v3233_v26  ;;  %v2857_v41 = vmax.f32 %v2601_v12, 0.0  ;;  %v2336_v27 = vadd.f32 %v2080_v0, %v1688_v35  ;;  %v98_v17 = vrot.slane %v97_v28, 6  ;;  %v10012_v35 = vld [vmem:[#allocation74_spill] sm:$0xff]  ;;  %v10017_v22 = vld [vmem:[#allocation23_spill] sm:$0xff] }
 0x2ad   :  { %v2858_v14 = vmax.f32 %v2602_v32, 0.0  ;;  %v7610_v11 = vsel %vm3496_vm6, %v3598_v40, %v3597_v54  ;;  %v497_v1 = vsel %vm80_vm7, %v7615_v57, %v10010_v61  ;;  %v7623_v32 = vld [vmem:[%s8861_s0 + $0x60] sm:$0xff]  ;;  %v404_v2 = vmul.f32 %v7030_v46, %v10017_v22 }
 0x2ae   :  { %v2631_v15 = vadd.f32 %v9879_v55, %v2335_v42  ;;  %10011 = vst [vmem:[#allocation59_spill] sm:$0xff] %v7623_v32  ;;  %v1145_v34 = vsel %vm80_vm7, %v7623_v32, %v10012_v35  ;;  %v2632_v4 = vadd.f32 %v9879_v55, %v2336_v27  ;;  %v7631_v0 = vperm.slane %v98_v17, 0 }
 0x2af   :  { %v3191_v54 = vadd.f32 %v2858_v14, %v2857_v41  ;;  %v7633_v12 = vperm.slane %v98_v17, 1  ;;  %v498_v42 = vrot.slane %v497_v1, 6  ;;  %v1146_v40 = vrot.slane %v1145_v34, 6  ;;  %v7640_v41 = vld [vmem:[%s8861_s0 + $0x70] sm:$0xff]  ;;  %v10016_v14 = vld [vmem:[#allocation20_spill] sm:$0xff] }
 0x2b0   :  { %10013 = vst [vmem:[#allocation78_spill] sm:$0xff] %v7631_v0  ;;  %v2887_v26 = vmax.f32 %v2631_v15, 0.0  ;;  %v2888_v28 = vmax.f32 %v2632_v4, 0.0  ;;  %v429_v6 = vmul.f32 %v7631_v0, %v9971_v37  ;;  %v1793_v27 = vsel %vm80_vm7, %v7640_v41, %v10016_v14  ;;  %v10025_v14 = vld [vmem:[#allocation52_spill] sm:$0xff] }
 0x2b1   :  { %10014 = vst [vmem:[#allocation73_spill] sm:$0xff] %v7633_v12  ;;  %3192 = vadd.xlane.f32.xlu2 %v3191_v54  ;;  %v403_v17 = vmul.f32 %v7028_v52, %v10017_v22  ;;  %v430_v15 = vmul.f32 %v7633_v12, %v9971_v37  ;;  %v7649_v1 = vperm.slane %v498_v42, 0  ;;  %v7651_v34 = vperm.slane %v498_v42, 1  ;;  %v10022_v42 = vld [vmem:[#allocation15_spill] sm:$0xff] }
 0x2b2   :  { %10015 = vst [vmem:[#allocation90_spill] sm:$0xff] %v7640_v41  ;;  %v7653_v54 = vperm.slane %v1146_v40, 0  ;;  %v3236_v4 = vadd.f32 %v2888_v28, %v2887_v26  ;;  %v7655_v55 = vperm.slane %v1146_v40, 1  ;;  %v1794_v13 = vrot.slane %v1793_v27, 6 }
 0x2b3   :  { %10018 = vst [vmem:[#allocation61_spill] sm:$0xff] %v7649_v1  ;;  %v821_v44 = vmul.f32 %v7649_v1, %v9972_v53  ;;  %v822_v16 = vmul.f32 %v7651_v34, %v9972_v53  ;;  %v795_v18 = vmul.f32 %v7032_v58, %v10022_v42  ;;  %v796_v27 = vmul.f32 %v7034_v5, %v10022_v42  ;;  %v10026_v42 = vld [vmem:[#allocation97_spill] sm:$0xff] }
 0x2b4   :  { %10019 = vst [vmem:[#allocation18_spill] sm:$0xff] %v7651_v34  ;;  %v1469_v49 = vmul.f32 %v7653_v54, %v9973_v20  ;;  %3237 = vadd.xlane.f32.xlu0 %v3236_v4  ;;  %v1470_v26 = vmul.f32 %v7655_v55, %v9973_v20  ;;  %v7669_v40 = vperm.slane %v1794_v13, 0  ;;  %v7671_v28 = vperm.slane %v1794_v13, 1 }
 0x2b5   :  { %10020 = vst [vmem:[#allocation38_spill] sm:$0xff] %v7653_v54  ;;  %v1077_v37 = vadd.f32 %v821_v44, %v429_v6  ;;  %v1078_v22 = vadd.f32 %v822_v16, %v430_v15  ;;  %v1051_v53 = vadd.f32 %v795_v18, %v403_v17  ;;  %v1443_v41 = vmul.f32 %v7050_v51, %v10025_v14 }
 0x2b6   :  { %10021 = vst [vmem:[#allocation26_spill] sm:$0xff] %v7655_v55  ;;  %v2117_v35 = vmul.f32 %v7669_v40, %v9974_v48  ;;  %v2118_v4 = vmul.f32 %v7671_v28, %v9974_v48  ;;  %v1052_v20 = vadd.f32 %v796_v27, %v404_v2  ;;  %v1444_v13 = vmul.f32 %v7052_v7, %v10025_v14  ;;  %v10027_v14 = vld [vmem:[#allocation49_spill] sm:$0xff] }
 0x2b7   :  { %10023 = vst [vmem:[#allocation27_spill] sm:$0xff] %v7669_v40  ;;  %v1725_v32 = vadd.f32 %v1469_v49, %v1077_v37  ;;  %v1726_v61 = vadd.f32 %v1470_v26, %v1078_v22  ;;  %v1699_v57 = vadd.f32 %v1443_v41, %v1051_v53  ;;  %v2091_v16 = vmul.f32 %v7056_v31, %v10026_v42  ;;  %v7699_v26 = vpop.xlane.xlu0 %3174 }
 0x2b8   :  { %10024 = vst [vmem:[#allocation77_spill] sm:$0xff] %v7671_v28  ;;  %v1700_v18 = vadd.f32 %v1444_v13, %v1052_v20  ;;  %v2092_v44 = vmul.f32 %v7058_v3, %v10026_v42  ;;  %v433_v6 = vmul.f32 %v7631_v0, %v9894_v9  ;;  %v434_v17 = vmul.f32 %v7633_v12, %v9894_v9  ;;  %v10028_v20 = vld [vmem:[#allocation92_spill] sm:$0xff]  ;;  %v7709_v9 = vpop.xlane.xlu1 %3132 }
 0x2b9   :  { %v2373_v2 = vadd.f32 %v2117_v35, %v1725_v32  ;;  %v2374_v15 = vadd.f32 %v2118_v4, %v1726_v61  ;;  %v2347_v27 = vadd.f32 %v2091_v16, %v1699_v57  ;;  %v825_v37 = vmul.f32 %v7649_v1, %v10027_v14  ;;  %v10029_v57 = vld [vmem:[#allocation34_spill] sm:$0xff] }
 0x2ba   :  { %v2348_v53 = vadd.f32 %v2092_v44, %v1700_v18  ;;  %v826_v49 = vmul.f32 %v7651_v34, %v10027_v14  ;;  %v1473_v22 = vmul.f32 %v7653_v54, %v10028_v20  ;;  %v1474_v41 = vmul.f32 %v7655_v55, %v10028_v20  ;;  %v10030_v18 = vld [vmem:[#allocation57_spill] sm:$0xff]  ;;  %v3130_v20 = vpop.xlane.xlu2 %3129 }
 0x2bb   :  { %v2669_v13 = vadd.f32 %v9982_v62, %v2373_v2  ;;  %v2670_v61 = vadd.f32 %v9982_v62, %v2374_v15  ;;  %v2643_v32 = vadd.f32 %v10029_v57, %v2347_v27  ;;  %v1081_v35 = vadd.f32 %v825_v37, %v433_v6  ;;  %v10031_v6 = vld [vmem:[#allocation71_spill] sm:$0xff]  ;;  %v10032_v27 = vld [vmem:[#allocation69_spill] sm:$0xff]  ;;  %v10034_v15 = vld [vmem:[#allocation76_spill] sm:$0xff] }
 0x2bc   :  { %v2644_v4 = vadd.f32 %v10029_v57, %v2348_v53  ;;  %v1082_v16 = vadd.f32 %v826_v49, %v434_v17  ;;  %v2121_v44 = vmul.f32 %v7669_v40, %v10030_v18  ;;  %v2122_v14 = vmul.f32 %v7671_v28, %v10030_v18 }
 0x2bd   :  { %v2925_v42 = vmax.f32 %v2669_v13, 0.0  ;;  %v2926_v48 = vmax.f32 %v2670_v61, 0.0  ;;  %v2899_v2 = vmax.f32 %v2643_v32, 0.0  ;;  %v1729_v19 = vadd.f32 %v1473_v22, %v1081_v35  ;;  %v10046_v13 = vld [vmem:[#allocation64_spill] sm:$0xff] }
 0x2be   :  { %v10033_v17 = vperm.slane %v10031_v6, %v10032_v27  ;;  %v2900_v53 = vmax.f32 %v2644_v4, 0.0  ;;  %v1730_v49 = vadd.f32 %v1474_v41, %v1082_v16  ;;  %v3613_v61 = vperm.slane %v3130_v20, %v9867_v43 }
 0x2bf   :  { %v3293_v18 = vadd.f32 %v2926_v48, %v2925_v42  ;;  %v2377_v57 = vadd.f32 %v2121_v44, %v1729_v19  ;;  %v363_v35 = vmul.f32 %v9996_v25, %v9975_v21  ;;  %v755_v6 = vmul.f32 %v9998_v29, %v10034_v15 }
 0x2c0   :  { %v7718_v37 = vsel %vm3500_vm8, %v10033_v17, %v7610_v11  ;;  %v3254_v22 = vadd.f32 %v2900_v53, %v2899_v2  ;;  %v2378_v32 = vadd.f32 %v2122_v14, %v1730_v49  ;;  %v10035_v11 = vld [vmem:[#allocation54_spill] sm:$0xff]  ;;  %v364_v48 = vmul.f32 %v9997_v33, %v9975_v21  ;;  %v10038_v53 = vld [vmem:[#allocation16_spill] sm:$0xff] }
 0x2c1   :  { %3294 = vadd.xlane.f32.xlu1 %v3293_v18  ;;  %v2673_v17 = vadd.f32 %v10035_v11, %v2377_v57  ;;  %v756_v19 = vmul.f32 %v9999_v60, %v10034_v15  ;;  %v1403_v42 = vmul.f32 %v10000_v30, %v9978_v63  ;;  %v10036_v25 = vperm.slane %v7597_v39, %v9952_v24  ;;  %v10037_v18 = vld [vmem:[#allocation68_spill] sm:$0xff] }
 0x2c2   :  { %3255 = vadd.xlane.f32.xlu2 %v3254_v22  ;;  %v2674_v14 = vadd.f32 %v10035_v11, %v2378_v32  ;;  %v1011_v20 = vadd.f32 %v755_v6, %v363_v35  ;;  %v1404_v41 = vmul.f32 %v10001_v50, %v9978_v63  ;;  %v2051_v60 = vmul.f32 %v10002_v8, %v9980_v10  ;;  %v10040_v35 = vld [vmem:[#allocation70_spill] sm:$0xff] }
 0x2c3   :  { %v3614_v29 = vsel %vm3496_vm6, %v3613_v61, %v10036_v25  ;;  %v2929_v57 = vmax.f32 %v2673_v17, 0.0  ;;  %v1012_v33 = vadd.f32 %v756_v19, %v364_v48  ;;  %v2052_v30 = vmul.f32 %v10003_v59, %v9980_v10  ;;  %v10039_v61 = vld [vmem:[#allocation40_spill] sm:$0xff]  ;;  %v10041_v25 = vld [vmem:[#allocation11_spill] sm:$0xff] }
 0x2c4   :  { %v2930_v4 = vmax.f32 %v2674_v14, 0.0  ;;  %v1659_v16 = vadd.f32 %v1403_v42, %v1011_v20  ;;  %v431_v44 = vmul.f32 %v7631_v0, %v10037_v18  ;;  %v432_v39 = vmul.f32 %v7633_v12, %v10037_v18 }
 0x2c5   :  { %v1660_v2 = vadd.f32 %v1404_v41, %v1012_v33  ;;  %v823_v50 = vmul.f32 %v7649_v1, %v10038_v53  ;;  %v824_v49 = vmul.f32 %v7651_v34, %v10038_v53  ;;  %v1471_v8 = vmul.f32 %v7653_v54, %v10039_v61  ;;  %v10042_v41 = vld [vmem:[#allocation12_spill] sm:$0xff]  ;;  %v10043_v33 = vld [vmem:[#allocation37_spill] sm:$0xff]  ;;  %v3115_v34 = vpop.xlane.xlu2 %3114 }
 0x2c6   :  { %v3299_v22 = vadd.f32 %v2930_v4, %v2929_v57  ;;  %v2307_v59 = vadd.f32 %v2051_v60, %v1659_v16  ;;  %v1472_v32 = vmul.f32 %v7655_v55, %v10039_v61  ;;  %v2119_v6 = vmul.f32 %v7669_v40, %v10040_v35  ;;  %v7768_v4 = vpop.xlane.xlu0 %3138  ;;  %v10047_v1 = vld [vmem:[#allocation72_spill] sm:$0xff] }
 0x2c7   :  { %v2308_v17 = vadd.f32 %v2052_v30, %v1660_v2  ;;  %v1079_v48 = vadd.f32 %v823_v50, %v431_v44  ;;  %v1080_v19 = vadd.f32 %v824_v49, %v432_v39  ;;  %v2120_v42 = vmul.f32 %v7671_v28, %v10040_v35  ;;  %v10044_v39 = vld [vmem:[#allocation60_spill] sm:$0xff] }
 0x2c8   :  { %3300 = vadd.xlane.f32.xlu0 %v3299_v22  ;;  %v2603_v14 = vadd.f32 %v9950_v45, %v2307_v59  ;;  %v379_v20 = vmul.f32 %v10041_v25, %v9975_v21  ;;  %v380_v57 = vmul.f32 %v10042_v41, %v9975_v21  ;;  %v771_v60 = vmul.f32 %v10043_v33, %v10034_v15  ;;  %v10045_v22 = vld [vmem:[#allocation46_spill] sm:$0xff] }
 0x2c9   :  { %v2604_v30 = vadd.f32 %v9950_v45, %v2308_v17  ;;  %v1727_v16 = vadd.f32 %v1471_v8, %v1079_v48  ;;  %v1728_v44 = vadd.f32 %v1472_v32, %v1080_v19  ;;  %v772_v2 = vmul.f32 %v10044_v39, %v10034_v15  ;;  %v10048_v17 = vld [vmem:[#allocation65_spill] sm:$0xff]  ;;  %v10049_v19 = vld [vmem:[#allocation99_spill] sm:$0xff] }
 0x2ca   :  { %v2859_v50 = vmax.f32 %v2603_v14, 0.0  ;;  %v1027_v49 = vadd.f32 %v771_v60, %v379_v20  ;;  %v1419_v59 = vmul.f32 %v10045_v22, %v9978_v63  ;;  %v1420_v11 = vmul.f32 %v10046_v13, %v9978_v63  ;;  %v10050_v60 = vld [vmem:[#allocation33_spill] sm:$0xff] }
 0x2cb   :  { %v2860_v28 = vmax.f32 %v2604_v30, 0.0  ;;  %v2375_v40 = vadd.f32 %v2119_v6, %v1727_v16  ;;  %v2376_v55 = vadd.f32 %v2120_v42, %v1728_v44  ;;  %v1028_v54 = vadd.f32 %v772_v2, %v380_v57  ;;  %v10052_v16 = vld [vmem:[#allocation88_spill] sm:$0xff] }
 0x2cc   :  { %v1675_v32 = vadd.f32 %v1419_v59, %v1027_v49  ;;  %v2067_v48 = vmul.f32 %v10048_v17, %v9980_v10  ;;  %v2068_v14 = vmul.f32 %v10049_v19, %v9980_v10  ;;  %v10051_v6 = vperm.slane %v7709_v9, %v10032_v27 }
 0x2cd   :  { %v3194_v20 = vadd.f32 %v2860_v28, %v2859_v50  ;;  %v2671_v12 = vadd.f32 %v10050_v60, %v2375_v40  ;;  %v2672_v0 = vadd.f32 %v10050_v60, %v2376_v55  ;;  %v1676_v30 = vadd.f32 %v1420_v11, %v1028_v54  ;;  %v7797_v54 = vpop.xlane.xlu1 %3150  ;;  %v10054_v11 = vld [vmem:[#allocation8_spill] sm:$0xff] }
 0x2ce   :  { %v7789_v42 = vsel %vm3500_vm8, %v10051_v6, %v3614_v29  ;;  %v2323_v57 = vadd.f32 %v2067_v48, %v1675_v32  ;;  %v10053_v44 = vperm.slane %v10052_v16, %v9957_v23  ;;  %v3604_v28 = vperm.slane %v3115_v34, %v10047_v1  ;;  %v10057_v48 = vld [vmem:[#allocation19_spill] sm:$0xff] }
 0x2cf   :  { %3195 = vadd.xlane.f32.xlu1 %v3194_v20  ;;  %v2927_v40 = vmax.f32 %v2671_v12, 0.0  ;;  %v2928_v50 = vmax.f32 %v2672_v0, 0.0  ;;  %v2324_v55 = vadd.f32 %v2068_v14, %v1676_v30  ;;  %v405_v9 = vmul.f32 %v7028_v52, %v10054_v11 }
 0x2d0   :  { %v3603_v2 = vsel %vm3504_vm10, %v10053_v44, %v7718_v37  ;;  %v2619_v29 = vadd.f32 %v9950_v45, %v2323_v57  ;;  %v406_v59 = vmul.f32 %v7030_v46, %v10054_v11  ;;  %v10056_v37 = vld [vmem:[#allocation66_spill] sm:$0xff]  ;;  %v1445_v14 = vmul.f32 %v7050_v51, %v10057_v48  ;;  %v10058_v57 = vld [vmem:[#allocation32_spill] sm:$0xff] }
 0x2d1   :  { %v7803_v49 = vsel %vm3508_vm11, %v3604_v28, %v3603_v2  ;;  %v797_v34 = vmul.f32 %v7032_v58, %v10056_v37  ;;  %v3296_v32 = vadd.f32 %v2928_v50, %v2927_v40  ;;  %v2620_v0 = vadd.f32 %v9950_v45, %v2324_v55  ;;  %v7818_v2 = vpop.xlane.xlu0 %3198  ;;  %v10059_v50 = vld [vmem:[#allocation51_spill] sm:$0xff] }
 0x2d2   :  { %10055 = vst [vmem:[#allocation80_spill] sm:$0xff] %v7803_v49  ;;  %v798_v12 = vmul.f32 %v7034_v5, %v10056_v37  ;;  %v2875_v20 = vmax.f32 %v2619_v29, 0.0  ;;  %v1446_v6 = vmul.f32 %v7052_v7, %v10057_v48  ;;  %v2093_v16 = vmul.f32 %v7056_v31, %v10058_v57  ;;  %v10060_v29 = vld [vmem:[#allocation25_spill] sm:$0xff] }
 0x2d3   :  { %v1053_v30 = vadd.f32 %v797_v34, %v405_v9  ;;  %3297 = vadd.xlane.f32.xlu2 %v3296_v32  ;;  %v2876_v44 = vmax.f32 %v2620_v0, 0.0  ;;  %v2094_v40 = vmul.f32 %v7058_v3, %v10058_v57  ;;  %v377_v55 = vmul.f32 %v10041_v25, %v10059_v50  ;;  %v10061_v31 = vld [vmem:[#allocation53_spill] sm:$0xff] }
 0x2d4   :  { %v1054_v28 = vadd.f32 %v798_v12, %v406_v59  ;;  %v378_v9 = vmul.f32 %v10042_v41, %v10059_v50  ;;  %v769_v34 = vmul.f32 %v10043_v33, %v10060_v29  ;;  %v770_v32 = vmul.f32 %v10044_v39, %v10060_v29  ;;  %v10063_v39 = vld [vmem:[#allocation100_spill] sm:$0xff] }
 0x2d5   :  { %v1701_v8 = vadd.f32 %v1445_v14, %v1053_v30  ;;  %v3218_v0 = vadd.f32 %v2876_v44, %v2875_v20  ;;  %v1417_v59 = vmul.f32 %v10045_v22, %v10061_v31  ;;  %v1418_v12 = vmul.f32 %v10046_v13, %v10061_v31  ;;  %v10062_v30 = vld [vmem:[#allocation81_spill] sm:$0xff] }
 0x2d6   :  { %v1702_v49 = vadd.f32 %v1446_v6, %v1054_v28  ;;  %v1025_v25 = vadd.f32 %v769_v34, %v377_v55  ;;  %v1026_v14 = vadd.f32 %v770_v32, %v378_v9  ;;  %v2065_v41 = vmul.f32 %v10048_v17, %v10062_v30  ;;  %v10064_v6 = vld [vmem:[#allocation41_spill] sm:$0xff]  ;;  %v10068_v9 = vld [vmem:[#allocation107_spill] sm:$0xff]  ;;  %v3178_v32 = vpop.xlane.xlu1 %3177 }
 0x2d7   :  { %v2349_v3 = vadd.f32 %v2093_v16, %v1701_v8  ;;  %3219 = vadd.xlane.f32.xlu0 %v3218_v0  ;;  %v2066_v33 = vmul.f32 %v10049_v19, %v10062_v30  ;;  %v421_v20 = vmul.f32 %v10063_v39, %v10054_v11  ;;  %v422_v22 = vmul.f32 %v10064_v6, %v10054_v11  ;;  %v10065_v16 = vld [vmem:[#allocation17_spill] sm:$0xff]  ;;  %v10067_v19 = vld [vmem:[#allocation106_spill] sm:$0xff] }
 0x2d8   :  { %v2350_v7 = vadd.f32 %v2094_v40, %v1702_v49  ;;  %v1673_v13 = vadd.f32 %v1417_v59, %v1025_v25  ;;  %v1674_v8 = vadd.f32 %v1418_v12, %v1026_v14  ;;  %v813_v28 = vmul.f32 %v10065_v16, %v10056_v37  ;;  %v10066_v49 = vld [vmem:[#allocation105_spill] sm:$0xff] }
 0x2d9   :  { %v2645_v44 = vadd.f32 %v9955_v36, %v2349_v3  ;;  %v814_v40 = vmul.f32 %v10066_v49, %v10056_v37  ;;  %v1461_v55 = vmul.f32 %v10067_v19, %v10057_v48  ;;  %v1462_v34 = vmul.f32 %v10068_v9, %v10057_v48  ;;  %v10069_v14 = vld [vmem:[#allocation93_spill] sm:$0xff]  ;;  %v3154_v37 = vpop.xlane.xlu2 %3153 }
 0x2da   :  { %v2646_v17 = vadd.f32 %v9955_v36, %v2350_v7  ;;  %v2321_v51 = vadd.f32 %v2065_v41, %v1673_v13  ;;  %v2322_v3 = vadd.f32 %v2066_v33, %v1674_v8  ;;  %v1069_v59 = vadd.f32 %v813_v28, %v421_v20  ;;  %v10070_v7 = vld [vmem:[#allocation116_spill] sm:$0xff] }
 0x2db   :  { %v2901_v0 = vmax.f32 %v2645_v44, 0.0  ;;  %v1070_v25 = vadd.f32 %v814_v40, %v422_v22  ;;  %v2109_v5 = vmul.f32 %v10069_v14, %v10058_v57  ;;  %v2110_v58 = vmul.f32 %v10070_v7, %v10058_v57  ;;  %v7863_v44 = vpop.xlane.xlu0 %3141 }
 0x2dc   :  { %v2902_v12 = vmax.f32 %v2646_v17, 0.0  ;;  %v2617_v46 = vadd.f32 %v9976_v38, %v2321_v51  ;;  %v2618_v52 = vadd.f32 %v9976_v38, %v2322_v3  ;;  %v1717_v60 = vadd.f32 %v1461_v55, %v1069_v59  ;;  %v10078_v3 = vld [vmem:[#allocation59_spill] sm:$0xff]  ;;  %v10079_v59 = vld [vmem:[#allocation74_spill] sm:$0xff] }
 0x2dd   :  { %v3643_v48 = vperm.slane %v3178_v32, %v9867_v43  ;;  %v3627_v41 = vperm.slane %v7797_v54, %v9952_v24  ;;  %v1718_v22 = vadd.f32 %v1462_v34, %v1070_v25  ;;  %v10071_v51 = vperm.slane %v7699_v26, %v9952_v24 }
 0x2de   :  { %v3257_v20 = vadd.f32 %v2902_v12, %v2901_v0  ;;  %v2873_v13 = vmax.f32 %v2617_v46, 0.0  ;;  %v2874_v8 = vmax.f32 %v2618_v52, 0.0  ;;  %v2365_v28 = vadd.f32 %v2109_v5, %v1717_v60  ;;  %v10074_v52 = vld [vmem:[#allocation13_spill] sm:$0xff]  ;;  %v10075_v60 = vld [vmem:[#allocation63_spill] sm:$0xff]  ;;  %v10077_v0 = vld [vmem:[#allocation94_spill] sm:$0xff] }
 0x2df   :  { %v7869_v17 = vsel %vm3496_vm6, %v3643_v48, %v10071_v51  ;;  %v2366_v40 = vadd.f32 %v2110_v58, %v1718_v22  ;;  %v10073_v54 = vperm.slane %v7586_v56, %v9957_v23  ;;  %v3628_v34 = vperm.slane %v3154_v37, %v9867_v43  ;;  %v10087_v23 = vld [vmem:[#allocation82_spill] sm:$0xff] }
 0x2e0   :  { %10072 = vst [vmem:[#allocation95_spill] sm:$0xff] %v7869_v17  ;;  %3258 = vadd.xlane.f32.xlu1 %v3257_v20  ;;  %v99_v46 = vsel %vm83_vm9, %v10074_v52, %v7603_v47  ;;  %v3215_v5 = vadd.f32 %v2874_v8, %v2873_v13  ;;  %v2661_v26 = vadd.f32 %v9955_v36, %v2365_v28  ;;  %v10080_v28 = vld [vmem:[#allocation90_spill] sm:$0xff] }
 0x2e1   :  { %v7876_v55 = vsel %vm3504_vm10, %v10073_v54, %v7789_v42  ;;  %v100_v58 = vrot.slane %v99_v46, 7  ;;  %v2662_v32 = vadd.f32 %v9955_v36, %v2366_v40  ;;  %v7887_v56 = vsel %vm3496_vm6, %v3628_v34, %v3627_v41  ;;  %v10076_v42 = vld [vmem:[#allocation58_spill] sm:$0xff]  ;;  %v10081_v41 = vld [vmem:[#allocation20_spill] sm:$0xff]  ;;  %v10082_v40 = vld [vmem:[#allocation23_spill] sm:$0xff] }
 0x2e2   :  { %v499_v37 = vsel %vm83_vm9, %v10077_v0, %v10076_v42  ;;  %v1147_v47 = vsel %vm83_vm9, %v10079_v59, %v10078_v3  ;;  %3216 = vadd.xlane.f32.xlu2 %v3215_v5  ;;  %v2917_v12 = vmax.f32 %v2661_v26, 0.0  ;;  %v1795_v51 = vsel %vm83_vm9, %v10081_v41, %v10080_v28  ;;  %v10083_v34 = vld [vmem:[#allocation98_spill] sm:$0xff]  ;;  %v10085_v28 = vld [vmem:[#allocation15_spill] sm:$0xff] }
 0x2e3   :  { %v7895_v25 = vperm.slane %v100_v58, 0  ;;  %v7897_v20 = vperm.slane %v100_v58, 1  ;;  %v500_v22 = vrot.slane %v499_v37, 7  ;;  %v2918_v13 = vmax.f32 %v2662_v32, 0.0  ;;  %v10084_v37 = vld [vmem:[#allocation10_spill] sm:$0xff] }
 0x2e4   :  { %v1148_v8 = vrot.slane %v1147_v47, 7  ;;  %v419_v54 = vmul.f32 %v10063_v39, %v10082_v40  ;;  %v1796_v0 = vrot.slane %v1795_v51, 7  ;;  %v420_v47 = vmul.f32 %v10064_v6, %v10082_v40  ;;  %v10088_v6 = vld [vmem:[#allocation52_spill] sm:$0xff] }
 0x2e5   :  { %v445_v52 = vmul.f32 %v7895_v25, %v10083_v34  ;;  %v446_v46 = vmul.f32 %v7897_v20, %v10083_v34  ;;  %v7908_v5 = vperm.slane %v500_v22, 0  ;;  %v7910_v26 = vperm.slane %v500_v22, 1  ;;  %v10086_v22 = vld [vmem:[#allocation39_spill] sm:$0xff] }
 0x2e6   :  { %v3281_v58 = vadd.f32 %v2918_v13, %v2917_v12  ;;  %v7912_v32 = vperm.slane %v1148_v8, 0  ;;  %v7914_v42 = vperm.slane %v1148_v8, 1  ;;  %v811_v41 = vmul.f32 %v10065_v16, %v10085_v28 }
 0x2e7   :  { %v837_v3 = vmul.f32 %v7908_v5, %v10084_v37  ;;  %v838_v59 = vmul.f32 %v7910_v26, %v10084_v37  ;;  %v7928_v8 = vperm.slane %v1796_v0, 0  ;;  %v7930_v51 = vperm.slane %v1796_v0, 1 }
 0x2e8   :  { %3282 = vadd.xlane.f32.xlu0 %v3281_v58  ;;  %v1485_v12 = vmul.f32 %v7912_v32, %v10086_v22  ;;  %v1486_v13 = vmul.f32 %v7914_v42, %v10086_v22  ;;  %v812_v37 = vmul.f32 %v10066_v49, %v10085_v28  ;;  %v1067_v48 = vadd.f32 %v811_v41, %v419_v54  ;;  %v10090_v41 = vld [vmem:[#allocation44_spill] sm:$0xff] }
 0x2e9   :  { %v1093_v34 = vadd.f32 %v837_v3, %v445_v52  ;;  %v1094_v33 = vadd.f32 %v838_v59, %v446_v46  ;;  %v2133_v16 = vmul.f32 %v7928_v8, %v10087_v23  ;;  %v2134_v58 = vmul.f32 %v7930_v51, %v10087_v23  ;;  %v10089_v46 = vld [vmem:[#allocation97_spill] sm:$0xff] }
 0x2ea   :  { %v1459_v39 = vmul.f32 %v10067_v19, %v10088_v6  ;;  %v1460_v22 = vmul.f32 %v10068_v9, %v10088_v6  ;;  %v1068_v52 = vadd.f32 %v812_v37, %v420_v47  ;;  %v2107_v3 = vmul.f32 %v10069_v14, %v10089_v46  ;;  %v10091_v23 = vld [vmem:[#allocation45_spill] sm:$0xff]  ;;  %v10095_v37 = vld [vmem:[#allocation102_spill] sm:$0xff] }
 0x2eb   :  { %v1741_v0 = vadd.f32 %v1485_v12, %v1093_v34  ;;  %v1742_v40 = vadd.f32 %v1486_v13, %v1094_v33  ;;  %v2108_v54 = vmul.f32 %v10070_v7, %v10089_v46  ;;  %v395_v49 = vmul.f32 %v10090_v41, %v9975_v21  ;;  %v10092_v12 = vld [vmem:[#allocation91_spill] sm:$0xff]  ;;  %v10093_v13 = vld [vmem:[#allocation85_spill] sm:$0xff] }
 0x2ec   :  { %v1715_v59 = vadd.f32 %v1459_v39, %v1067_v48  ;;  %v396_v28 = vmul.f32 %v10091_v23, %v9975_v21  ;;  %v1716_v36 = vadd.f32 %v1460_v22, %v1068_v52  ;;  %v787_v33 = vmul.f32 %v10092_v12, %v10034_v15  ;;  %v10094_v39 = vld [vmem:[#allocation101_spill] sm:$0xff]  ;;  %v10096_v22 = vld [vmem:[#allocation34_spill] sm:$0xff] }
 0x2ed   :  { %v2389_v19 = vadd.f32 %v2133_v16, %v1741_v0  ;;  %v2390_v17 = vadd.f32 %v2134_v58, %v1742_v40  ;;  %v788_v34 = vmul.f32 %v10093_v13, %v10034_v15  ;;  %v1435_v48 = vmul.f32 %v10094_v39, %v9978_v63  ;;  %v3157_v58 = vpop.xlane.xlu1 %3156  ;;  %v10098_v15 = vld [vmem:[#allocation104_spill] sm:$0xff] }
 0x2ee   :  { %v2363_v47 = vadd.f32 %v2107_v3, %v1715_v59  ;;  %v1436_v7 = vmul.f32 %v10095_v37, %v9978_v63  ;;  %v2364_v16 = vadd.f32 %v2108_v54, %v1716_v36  ;;  %v1043_v40 = vadd.f32 %v787_v33, %v395_v49  ;;  %v10097_v3 = vld [vmem:[#allocation103_spill] sm:$0xff] }
 0x2ef   :  { %v2685_v14 = vadd.f32 %v9982_v62, %v2389_v19  ;;  %v2686_v21 = vadd.f32 %v9982_v62, %v2390_v17  ;;  %v1044_v52 = vadd.f32 %v788_v34, %v396_v28  ;;  %v2083_v59 = vmul.f32 %v10097_v3, %v9980_v10  ;;  %v7972_v28 = vpop.xlane.xlu0 %3204 }
 0x2f0   :  { %v2659_v0 = vadd.f32 %v10096_v22, %v2363_v47  ;;  %v2084_v9 = vmul.f32 %v10098_v15, %v9980_v10  ;;  %v2660_v63 = vadd.f32 %v10096_v22, %v2364_v16  ;;  %v1691_v24 = vadd.f32 %v1435_v48, %v1043_v40  ;;  %10100 = vst [vmem:[#allocation96_spill] sm:$0xff] %v7972_v28  ;;  %v10131_v28 = vld [vmem:[#allocation113_spill] sm:$0xff] }
 0x2f1   :  { %v2941_v46 = vmax.f32 %v2685_v14, 0.0  ;;  %v2942_v6 = vmax.f32 %v2686_v21, 0.0  ;;  %v10099_v36 = vperm.slane %v7768_v4, %v10047_v1  ;;  %v1692_v19 = vadd.f32 %v1436_v7, %v1044_v52 }
 0x2f2   :  { %v2915_v49 = vmax.f32 %v2659_v0, 0.0  ;;  %v3630_v17 = vperm.slane %v3157_v58, %v10032_v27  ;;  %v10101_v54 = vperm.slane %v7863_v44, %v10075_v60  ;;  %v2916_v33 = vmax.f32 %v2660_v63, 0.0  ;;  %v7991_v63 = vpop.xlane.xlu2 %3117 }
 0x2f3   :  { %v3620_v62 = vsel %vm3508_vm11, %v10099_v36, %v7876_v55  ;;  %v3317_v14 = vadd.f32 %v2942_v6, %v2941_v46  ;;  %v2339_v47 = vadd.f32 %v2083_v59, %v1691_v24  ;;  %v2340_v34 = vadd.f32 %v2084_v9, %v1692_v19 }
 0x2f4   :  { %v7978_v21 = vsel %vm3512_vm12, %v10101_v54, %v3620_v62  ;;  %v7982_v4 = vsel %vm3500_vm8, %v3630_v17, %v7887_v56  ;;  %v393_v7 = vmul.f32 %v10090_v41, %v10059_v50  ;;  %v394_v55 = vmul.f32 %v10091_v23, %v10059_v50 }
 0x2f5   :  { %10102 = vst [vmem:[#allocation43_spill] sm:$0xff] %v7978_v21  ;;  %3318 = vadd.xlane.f32.xlu1 %v3317_v14  ;;  %v3278_v48 = vadd.f32 %v2916_v33, %v2915_v49  ;;  %v2635_v44 = vadd.f32 %v9950_v45, %v2339_v47  ;;  %v785_v24 = vmul.f32 %v10092_v12, %v10060_v29  ;;  %v10104_v47 = vld [vmem:[#allocation73_spill] sm:$0xff]  ;;  %v10127_v21 = vld [vmem:[#allocation110_spill] sm:$0xff] }
 0x2f6   :  { %v2636_v9 = vadd.f32 %v9950_v45, %v2340_v34  ;;  %v786_v56 = vmul.f32 %v10093_v13, %v10060_v29  ;;  %v1433_v46 = vmul.f32 %v10094_v39, %v10061_v31  ;;  %v1434_v41 = vmul.f32 %v10095_v37, %v10061_v31 }
 0x2f7   :  { %3279 = vadd.xlane.f32.xlu2 %v3278_v48  ;;  %v2891_v23 = vmax.f32 %v2635_v44, 0.0  ;;  %v1041_v16 = vadd.f32 %v785_v24, %v393_v7  ;;  %v2081_v40 = vmul.f32 %v10097_v3, %v10062_v30  ;;  %v2082_v12 = vmul.f32 %v10098_v15, %v10062_v30  ;;  %v10105_v7 = vld [vmem:[#allocation66_spill] sm:$0xff] }
 0x2f8   :  { %v2892_v58 = vmax.f32 %v2636_v9, 0.0  ;;  %v1042_v0 = vadd.f32 %v786_v56, %v394_v55  ;;  %v447_v13 = vmul.f32 %v7895_v25, %v10037_v18  ;;  %v448_v39 = vmul.f32 %v7897_v20, %v10037_v18  ;;  %v10106_v55 = vld [vmem:[#allocation61_spill] sm:$0xff]  ;;  %v10107_v9 = vld [vmem:[#allocation18_spill] sm:$0xff] }
 0x2f9   :  { %v1689_v52 = vadd.f32 %v1433_v46, %v1041_v16  ;;  %v839_v37 = vmul.f32 %v7908_v5, %v10038_v53  ;;  %v840_v59 = vmul.f32 %v7910_v26, %v10038_v53  ;;  %v1487_v3 = vmul.f32 %v7912_v32, %v10039_v61  ;;  %v10103_v53 = vld [vmem:[#allocation78_spill] sm:$0xff] }
 0x2fa   :  { %v3242_v36 = vadd.f32 %v2892_v58, %v2891_v23  ;;  %v1690_v15 = vadd.f32 %v1434_v41, %v1042_v0  ;;  %v1488_v62 = vmul.f32 %v7914_v42, %v10039_v61  ;;  %v2135_v49 = vmul.f32 %v7928_v8, %v10040_v35  ;;  %v10108_v41 = vld [vmem:[#allocation19_spill] sm:$0xff]  ;;  %v10109_v23 = vld [vmem:[#allocation38_spill] sm:$0xff]  ;;  %v3202_v58 = vpop.xlane.xlu1 %3201 }
 0x2fb   :  { %v2337_v19 = vadd.f32 %v2081_v40, %v1689_v52  ;;  %v1095_v18 = vadd.f32 %v839_v37, %v447_v13  ;;  %v1096_v17 = vadd.f32 %v840_v59, %v448_v39  ;;  %v2136_v54 = vmul.f32 %v7930_v51, %v10040_v35  ;;  %v10110_v40 = vld [vmem:[#allocation26_spill] sm:$0xff]  ;;  %v3181_v37 = vpop.xlane.xlu2 %3180 }
 0x2fc   :  { %3243 = vadd.xlane.f32.xlu0 %v3242_v36  ;;  %v2338_v14 = vadd.f32 %v2082_v12, %v1690_v15  ;;  %v437_v33 = vmul.f32 %v10103_v53, %v10054_v11  ;;  %v438_v34 = vmul.f32 %v10104_v47, %v10054_v11  ;;  %v829_v61 = vmul.f32 %v10106_v55, %v10105_v7  ;;  %v10111_v36 = vld [vmem:[#allocation27_spill] sm:$0xff] }
 0x2fd   :  { %v2633_v48 = vadd.f32 %v9976_v38, %v2337_v19  ;;  %v1743_v44 = vadd.f32 %v1487_v3, %v1095_v18  ;;  %v1744_v24 = vadd.f32 %v1488_v62, %v1096_v17  ;;  %v830_v56 = vmul.f32 %v10107_v9, %v10105_v7  ;;  %v10112_v62 = vld [vmem:[#allocation77_spill] sm:$0xff] }
 0x2fe   :  { %v2634_v35 = vadd.f32 %v9976_v38, %v2338_v14  ;;  %v1085_v46 = vadd.f32 %v829_v61, %v437_v33  ;;  %v1477_v16 = vmul.f32 %v10109_v23, %v10108_v41  ;;  %v1478_v12 = vmul.f32 %v10110_v40, %v10108_v41  ;;  %v10113_v18 = vld [vmem:[#allocation33_spill] sm:$0xff]  ;;  %v10128_v41 = vld [vmem:[#allocation111_spill] sm:$0xff] }
 0x2ff   :  { %v2889_v0 = vmax.f32 %v2633_v48, 0.0  ;;  %v2391_v13 = vadd.f32 %v2135_v49, %v1743_v44  ;;  %v2392_v39 = vadd.f32 %v2136_v54, %v1744_v24  ;;  %v1086_v52 = vadd.f32 %v830_v56, %v438_v34 }
 0x300   :  { %v2890_v59 = vmax.f32 %v2634_v35, 0.0  ;;  %v1733_v3 = vadd.f32 %v1477_v16, %v1085_v46  ;;  %v2125_v15 = vmul.f32 %v10111_v36, %v10058_v57  ;;  %v2126_v19 = vmul.f32 %v10112_v62, %v10058_v57  ;;  %v10114_v35 = vld [vmem:[#allocation47_spill] sm:$0xff] }
 0x301   :  { %v2687_v17 = vadd.f32 %v10113_v18, %v2391_v13  ;;  %v2688_v14 = vadd.f32 %v10113_v18, %v2392_v39  ;;  %v1734_v33 = vadd.f32 %v1478_v12, %v1086_v52  ;;  %v3658_v61 = vperm.slane %v3202_v58, %v9867_v43  ;;  %v10117_v12 = vld [vmem:[#allocation55_spill] sm:$0xff]  ;;  %v10121_v18 = vld [vmem:[#allocation52_spill] sm:$0xff]  ;;  %v10133_v43 = vld [vmem:[#allocation114_spill] sm:$0xff] }
 0x302   :  { %v3606_v49 = vperm.slane %v7991_v63, %v10075_v60  ;;  %v3239_v54 = vadd.f32 %v2890_v59, %v2889_v0  ;;  %v2381_v34 = vadd.f32 %v2125_v15, %v1733_v3  ;;  %v3645_v48 = vperm.slane %v3181_v37, %v10032_v27  ;;  %v10118_v58 = vld [vmem:[#allocation95_spill] sm:$0xff] }
 0x303   :  { %v2943_v44 = vmax.f32 %v2687_v17, 0.0  ;;  %v2944_v24 = vmax.f32 %v2688_v14, 0.0  ;;  %v2382_v56 = vadd.f32 %v2126_v19, %v1734_v33  ;;  %v10115_v46 = vperm.slane %v7818_v2, %v10114_v35  ;;  %v10119_v63 = vld [vmem:[#allocation23_spill] sm:$0xff]  ;;  %v10122_v33 = vld [vmem:[#allocation97_spill] sm:$0xff] }
 0x304   :  { %3240 = vadd.xlane.f32.xlu1 %v3239_v54  ;;  %v2677_v13 = vadd.f32 %v10117_v12, %v2381_v34  ;;  %v8055_v39 = vsel %vm3500_vm8, %v3645_v48, %v10118_v58  ;;  %v435_v0 = vmul.f32 %v10103_v53, %v10119_v63  ;;  %v436_v52 = vmul.f32 %v10104_v47, %v10119_v63  ;;  %v10120_v2 = vld [vmem:[#allocation15_spill] sm:$0xff]  ;;  %v8072_v34 = vpop.xlane.xlu0 %3123  ;;  %v10125_v58 = vld [vmem:[#allocation109_spill] sm:$0xff] }
 0x305   :  { %v8050_v16 = vsel %vm3496_vm6, %v3658_v61, %v10115_v46  ;;  %v3320_v37 = vadd.f32 %v2944_v24, %v2943_v44  ;;  %v2678_v59 = vadd.f32 %v10117_v12, %v2382_v56  ;;  %v827_v3 = vmul.f32 %v10106_v55, %v10120_v2  ;;  %v10123_v56 = vld [vmem:[#allocation9_spill] sm:$0xff]  ;;  %v10124_v46 = vld [vmem:[#allocation108_spill] sm:$0xff]  ;;  %v10132_v60 = vld [vmem:[#allocation31_spill] sm:$0xff] }
 0x306   :  { %10116 = vst [vmem:[#allocation56_spill] sm:$0xff] %v8050_v16  ;;  %v828_v15 = vmul.f32 %v10107_v9, %v10120_v2  ;;  %v2933_v19 = vmax.f32 %v2677_v13, 0.0  ;;  %v1475_v17 = vmul.f32 %v10109_v23, %v10121_v18  ;;  %v1476_v14 = vmul.f32 %v10110_v40, %v10121_v18  ;;  %v10126_v12 = vld [vmem:[#allocation24_spill] sm:$0xff]  ;;  %v10134_v40 = vld [vmem:[#allocation115_spill] sm:$0xff] }
 0x307   :  { %v2123_v61 = vmul.f32 %v10111_v36, %v10122_v33  ;;  %3321 = vadd.xlane.f32.xlu2 %v3320_v37  ;;  %v2934_v54 = vmax.f32 %v2678_v59, 0.0  ;;  %v1083_v48 = vadd.f32 %v827_v3, %v435_v0  ;;  %v2124_v24 = vmul.f32 %v10112_v62, %v10122_v33  ;;  %v10129_v0 = vld [vmem:[#allocation67_spill] sm:$0xff] }
 0x308   :  { %v1084_v44 = vadd.f32 %v828_v15, %v436_v52  ;;  %v407_v13 = vmul.f32 %v10124_v46, %v10123_v56  ;;  %v408_v6 = vmul.f32 %v10125_v58, %v10123_v56  ;;  %v799_v57 = vmul.f32 %v10127_v21, %v10126_v12  ;;  %v10130_v52 = vld [vmem:[#allocation112_spill] sm:$0xff]  ;;  %v10146_v33 = vld [vmem:[#allocation79_spill] sm:$0xff] }
 0x309   :  { %v800_v37 = vmul.f32 %v10128_v41, %v10126_v12  ;;  %v3305_v59 = vadd.f32 %v2934_v54, %v2933_v19  ;;  %v1731_v7 = vadd.f32 %v1475_v17, %v1083_v48  ;;  %v1447_v3 = vmul.f32 %v10130_v52, %v10129_v0  ;;  %v10135_v19 = vld [vmem:[#allocation100_spill] sm:$0xff]  ;;  %v10137_v48 = vld [vmem:[#allocation17_spill] sm:$0xff] }
 0x30a   :  { %v1732_v11 = vadd.f32 %v1476_v14, %v1084_v44  ;;  %v1055_v15 = vadd.f32 %v799_v57, %v407_v13  ;;  %v1448_v16 = vmul.f32 %v10131_v28, %v10129_v0  ;;  %v2095_v62 = vmul.f32 %v10133_v43, %v10132_v60  ;;  %v10136_v57 = vld [vmem:[#allocation41_spill] sm:$0xff]  ;;  %v10138_v13 = vld [vmem:[#allocation80_spill] sm:$0xff] }
 0x30b   :  { %v1056_v27 = vadd.f32 %v800_v37, %v408_v6  ;;  %3306 = vadd.xlane.f32.xlu0 %v3305_v59  ;;  %v2379_v35 = vadd.f32 %v2123_v61, %v1731_v7  ;;  %v2096_v23 = vmul.f32 %v10134_v40, %v10132_v60  ;;  %v425_v17 = vmul.f32 %v10135_v19, %v10059_v50  ;;  %v10139_v61 = vld [vmem:[#allocation105_spill] sm:$0xff]  ;;  %v10141_v60 = vld [vmem:[#allocation107_spill] sm:$0xff] }
 0x30c   :  { %v2380_v36 = vadd.f32 %v2124_v24, %v1732_v11  ;;  %v1703_v14 = vadd.f32 %v1447_v3, %v1055_v15  ;;  %v426_v6 = vmul.f32 %v10136_v57, %v10059_v50  ;;  %v817_v44 = vmul.f32 %v10137_v48, %v10060_v29  ;;  %v3160_v15 = vpop.xlane.xlu1 %3159 }
 0x30d   :  { %v1704_v54 = vadd.f32 %v1448_v16, %v1056_v27  ;;  %v3607_v37 = vsel %vm3512_vm12, %v3606_v49, %v10138_v13  ;;  %v2675_v7 = vadd.f32 %v10096_v22, %v2379_v35  ;;  %v818_v24 = vmul.f32 %v10139_v61, %v10060_v29  ;;  %v10140_v27 = vld [vmem:[#allocation106_spill] sm:$0xff]  ;;  %v3121_v13 = vpop.xlane.xlu2 %3120 }
 0x30e   :  { %v2676_v11 = vadd.f32 %v10096_v22, %v2380_v36  ;;  %v2351_v59 = vadd.f32 %v2095_v62, %v1703_v14  ;;  %v1073_v3 = vadd.f32 %v817_v44, %v425_v17  ;;  %v1465_v16 = vmul.f32 %v10140_v27, %v10061_v31  ;;  %v10142_v35 = vld [vmem:[#allocation42_spill] sm:$0xff]  ;;  %v10143_v62 = vld [vmem:[#allocation93_spill] sm:$0xff] }
 0x30f   :  { %v2352_v9 = vadd.f32 %v2096_v23, %v1704_v54  ;;  %v2931_v55 = vmax.f32 %v2675_v7, 0.0  ;;  %v1074_v53 = vadd.f32 %v818_v24, %v426_v6  ;;  %v1466_v49 = vmul.f32 %v10141_v60, %v10061_v31  ;;  %v10144_v54 = vld [vmem:[#allocation116_spill] sm:$0xff]  ;;  %v10145_v7 = vld [vmem:[#allocation62_spill] sm:$0xff]  ;;  %v8115_v6 = vpop.xlane.xlu0 %3186 }
 0x310   :  { %v2932_v47 = vmax.f32 %v2676_v11, 0.0  ;;  %v2647_v0 = vadd.f32 %v10142_v35, %v2351_v59  ;;  %v1721_v22 = vadd.f32 %v1465_v16, %v1073_v3  ;;  %v2113_v23 = vmul.f32 %v10143_v62, %v10062_v30 }
 0x311   :  { %v2648_v36 = vadd.f32 %v10142_v35, %v2352_v9  ;;  %v1722_v14 = vadd.f32 %v1466_v49, %v1074_v53  ;;  %v2114_v44 = vmul.f32 %v10144_v54, %v10062_v30  ;;  %v3632_v11 = vperm.slane %v3160_v15, %v10145_v7 }
 0x312   :  { %v3302_v17 = vadd.f32 %v2932_v47, %v2931_v55  ;;  %v2903_v24 = vmax.f32 %v2647_v0, 0.0  ;;  %v2369_v56 = vadd.f32 %v2113_v23, %v1721_v22  ;;  %v3608_v59 = vperm.slane %v3121_v13, %v10146_v33  ;;  %v10148_v55 = vld [vmem:[#allocation87_spill] sm:$0xff] }
 0x313   :  { %v2904_v12 = vmax.f32 %v2648_v36, 0.0  ;;  %v2370_v9 = vadd.f32 %v2114_v44, %v1722_v14  ;;  %v8120_v3 = vsel %vm3504_vm10, %v3632_v11, %v7982_v4  ;;  %v409_v53 = vmul.f32 %v10124_v46, %v10059_v50  ;;  %v10149_v44 = vld [vmem:[#allocation14_spill] sm:$0xff] }
 0x314   :  { %3303 = vadd.xlane.f32.xlu1 %v3302_v17  ;;  %10147 = vst [vmem:[#allocation30_spill] sm:$0xff] %v8120_v3  ;;  %v410_v47 = vmul.f32 %v10125_v58, %v10059_v50  ;;  %v3610_v16 = vperm.slane %v8072_v34, %v10148_v55  ;;  %v2665_v22 = vadd.f32 %v9976_v38, %v2369_v56 }
 0x315   :  { %v3260_v0 = vadd.f32 %v2904_v12, %v2903_v24  ;;  %v801_v15 = vmul.f32 %v10127_v21, %v10060_v29  ;;  %v2666_v49 = vadd.f32 %v9976_v38, %v2370_v9  ;;  %v3609_v4 = vsel %vm3516_vm13, %v3608_v59, %v3607_v37  ;;  %v10150_v9 = vld [vmem:[#allocation49_spill] sm:$0xff] }
 0x316   :  { %v802_v13 = vmul.f32 %v10128_v41, %v10060_v29  ;;  %v1449_v36 = vmul.f32 %v10130_v52, %v10061_v31  ;;  %v2921_v23 = vmax.f32 %v2665_v22, 0.0  ;;  %v1450_v12 = vmul.f32 %v10131_v28, %v10061_v31 }
 0x317   :  { %3261 = vadd.xlane.f32.xlu2 %v3260_v0  ;;  %v1057_v17 = vadd.f32 %v801_v15, %v409_v53  ;;  %v2097_v34 = vmul.f32 %v10133_v43, %v10062_v30  ;;  %v2922_v56 = vmax.f32 %v2666_v49, 0.0  ;;  %v2098_v37 = vmul.f32 %v10134_v40, %v10062_v30  ;;  %v10151_v49 = vld [vmem:[#allocation92_spill] sm:$0xff]  ;;  %v10156_v40 = vld [vmem:[#allocation54_spill] sm:$0xff] }
 0x318   :  { %v1058_v14 = vadd.f32 %v802_v13, %v410_v47  ;;  %v449_v11 = vmul.f32 %v7895_v25, %v10149_v44  ;;  %v450_v59 = vmul.f32 %v7897_v20, %v10149_v44  ;;  %v841_v53 = vmul.f32 %v7908_v5, %v10150_v9 }
 0x319   :  { %v1705_v24 = vadd.f32 %v1449_v36, %v1057_v17  ;;  %v842_v0 = vmul.f32 %v7910_v26, %v10150_v9  ;;  %v3287_v22 = vadd.f32 %v2922_v56, %v2921_v23  ;;  %v1489_v47 = vmul.f32 %v7912_v32, %v10151_v49  ;;  %v10152_v17 = vld [vmem:[#allocation57_spill] sm:$0xff]  ;;  %v10153_v9 = vld [vmem:[#allocation36_spill] sm:$0xff]  ;;  %v8163_v56 = vpop.xlane.xlu1 %3222 }
 0x31a   :  { %v1706_v15 = vadd.f32 %v1450_v12, %v1058_v14  ;;  %v1490_v13 = vmul.f32 %v7914_v42, %v10151_v49  ;;  %v1097_v30 = vadd.f32 %v841_v53, %v449_v11  ;;  %v2137_v44 = vmul.f32 %v7928_v8, %v10152_v17  ;;  %v8165_v14 = vpop.xlane.xlu0 %3246  ;;  %v3184_v53 = vpop.xlane.xlu2 %3183 }
 0x31b   :  { %v2353_v55 = vadd.f32 %v2097_v34, %v1705_v24  ;;  %v1098_v36 = vadd.f32 %v842_v0, %v450_v59  ;;  %3288 = vadd.xlane.f32.xlu0 %v3287_v22  ;;  %v2138_v29 = vmul.f32 %v7930_v51, %v10152_v17  ;;  %v427_v23 = vmul.f32 %v10135_v19, %v10153_v9  ;;  %v10154_v59 = vld [vmem:[#allocation76_spill] sm:$0xff] }
 0x31c   :  { %v2354_v31 = vadd.f32 %v2098_v37, %v1706_v15  ;;  %v428_v12 = vmul.f32 %v10136_v57, %v10153_v9  ;;  %v1745_v11 = vadd.f32 %v1489_v47, %v1097_v30  ;;  %v819_v37 = vmul.f32 %v10137_v48, %v10154_v59  ;;  %v10155_v15 = vld [vmem:[#allocation50_spill] sm:$0xff] }
 0x31d   :  { %v2649_v34 = vadd.f32 %v9976_v38, %v2353_v55  ;;  %v1746_v24 = vadd.f32 %v1490_v13, %v1098_v36  ;;  %v820_v22 = vmul.f32 %v10139_v61, %v10154_v59  ;;  %v1467_v49 = vmul.f32 %v10140_v27, %v10155_v15 }
 0x31e   :  { %v2650_v0 = vadd.f32 %v9976_v38, %v2354_v31  ;;  %v1468_v17 = vmul.f32 %v10141_v60, %v10155_v15  ;;  %v2393_v50 = vadd.f32 %v2137_v44, %v1745_v11  ;;  %v1075_v30 = vadd.f32 %v819_v37, %v427_v23  ;;  %v10172_v38 = vld [vmem:[#allocation77_spill] sm:$0xff] }
 0x31f   :  { %v2905_v3 = vmax.f32 %v2649_v34, 0.0  ;;  %v2394_v55 = vadd.f32 %v2138_v29, %v1746_v24  ;;  %v1076_v13 = vadd.f32 %v820_v22, %v428_v12  ;;  %v2115_v36 = vmul.f32 %v10143_v62, %v9980_v10  ;;  %v10158_v22 = vld [vmem:[#allocation97_spill] sm:$0xff] }
 0x320   :  { %v2906_v47 = vmax.f32 %v2650_v0, 0.0  ;;  %v2116_v31 = vmul.f32 %v10144_v54, %v9980_v10  ;;  %v2689_v43 = vadd.f32 %v10156_v40, %v2393_v50  ;;  %v1723_v52 = vadd.f32 %v1467_v49, %v1075_v30 }
 0x321   :  { %v2690_v28 = vadd.f32 %v10156_v40, %v2394_v55  ;;  %v8186_v44 = vsel %vm3520_vm14, %v3610_v16, %v3609_v4  ;;  %v1724_v23 = vadd.f32 %v1468_v17, %v1076_v13  ;;  %v3647_v12 = vperm.slane %v3184_v53, %v10145_v7  ;;  %v8209_v49 = vpop.xlane.xlu1 %3144 }
 0x322   :  { %10157 = vst [vmem:[#allocation117_spill] sm:$0xff] %v8186_v44  ;;  %v3263_v29 = vadd.f32 %v2906_v47, %v2905_v3  ;;  %v2945_v34 = vmax.f32 %v2689_v43, 0.0  ;;  %v2371_v24 = vadd.f32 %v2115_v36, %v1723_v52  ;;  %v451_v37 = vmul.f32 %v7895_v25, %v10119_v63  ;;  %v8211_v17 = vpop.xlane.xlu0 %3165  ;;  %v10159_v47 = vld [vmem:[#allocation9_spill] sm:$0xff]  ;;  %v3226_v36 = vpop.xlane.xlu2 %3225 }
 0x323   :  { %v2946_v11 = vmax.f32 %v2690_v28, 0.0  ;;  %v2372_v0 = vadd.f32 %v2116_v31, %v1724_v23  ;;  %v8193_v50 = vsel %vm3504_vm10, %v3647_v12, %v8055_v39  ;;  %v452_v40 = vmul.f32 %v7897_v20, %v10119_v63  ;;  %v10160_v23 = vld [vmem:[#allocation24_spill] sm:$0xff] }
 0x324   :  { %3264 = vadd.xlane.f32.xlu1 %v3263_v29  ;;  %v843_v3 = vmul.f32 %v7908_v5, %v10120_v2  ;;  %v2667_v43 = vadd.f32 %v9950_v45, %v2371_v24  ;;  %v844_v28 = vmul.f32 %v7910_v26, %v10120_v2  ;;  %v1491_v52 = vmul.f32 %v7912_v32, %v10121_v18  ;;  %v10161_v24 = vld [vmem:[#allocation67_spill] sm:$0xff] }
 0x325   :  { %v3323_v16 = vadd.f32 %v2946_v11, %v2945_v34  ;;  %v2668_v4 = vadd.f32 %v9950_v45, %v2372_v0  ;;  %v1492_v39 = vmul.f32 %v7914_v42, %v10121_v18  ;;  %v2139_v63 = vmul.f32 %v7928_v8, %v10158_v22 }
 0x326   :  { %v1099_v53 = vadd.f32 %v843_v3, %v451_v37  ;;  %v2923_v55 = vmax.f32 %v2667_v43, 0.0  ;;  %v1100_v30 = vadd.f32 %v844_v28, %v452_v40  ;;  %v2140_v2 = vmul.f32 %v7930_v51, %v10158_v22  ;;  %v10166_v22 = vld [vmem:[#allocation61_spill] sm:$0xff] }
 0x327   :  { %3324 = vadd.xlane.f32.xlu2 %v3323_v16  ;;  %v423_v13 = vmul.f32 %v10135_v19, %v10159_v47  ;;  %v2924_v31 = vmax.f32 %v2668_v4, 0.0  ;;  %v424_v18 = vmul.f32 %v10136_v57, %v10159_v47  ;;  %v815_v12 = vmul.f32 %v10137_v48, %v10160_v23  ;;  %v10162_v16 = vld [vmem:[#allocation31_spill] sm:$0xff]  ;;  %v10164_v4 = vld [vmem:[#allocation34_spill] sm:$0xff] }
 0x328   :  { %v1747_v29 = vadd.f32 %v1491_v52, %v1099_v53  ;;  %v1748_v34 = vadd.f32 %v1492_v39, %v1100_v30  ;;  %v816_v11 = vmul.f32 %v10139_v61, %v10160_v23  ;;  %v1463_v37 = vmul.f32 %v10140_v27, %v10161_v24  ;;  %v10163_v52 = vld [vmem:[#allocation78_spill] sm:$0xff] }
 0x329   :  { %v1464_v0 = vmul.f32 %v10141_v60, %v10161_v24  ;;  %v3290_v19 = vadd.f32 %v2924_v31, %v2923_v55  ;;  %v1071_v3 = vadd.f32 %v815_v12, %v423_v13  ;;  %v2111_v43 = vmul.f32 %v10143_v62, %v10162_v16  ;;  %v10165_v60 = vld [vmem:[#allocation73_spill] sm:$0xff]  ;;  %v10167_v30 = vld [vmem:[#allocation18_spill] sm:$0xff] }
 0x32a   :  { %v2395_v40 = vadd.f32 %v2139_v63, %v1747_v29  ;;  %v2396_v57 = vadd.f32 %v2140_v2, %v1748_v34  ;;  %v1072_v28 = vadd.f32 %v816_v11, %v424_v18  ;;  %v2112_v48 = vmul.f32 %v10144_v54, %v10162_v16  ;;  %v10168_v54 = vld [vmem:[#allocation38_spill] sm:$0xff] }
 0x32b   :  { %v443_v61 = vmul.f32 %v10163_v52, %v10153_v9  ;;  %3291 = vadd.xlane.f32.xlu0 %v3290_v19  ;;  %v1719_v53 = vadd.f32 %v1463_v37, %v1071_v3  ;;  %v444_v39 = vmul.f32 %v10165_v60, %v10153_v9  ;;  %v835_v63 = vmul.f32 %v10166_v22, %v10154_v59  ;;  %v10169_v12 = vld [vmem:[#allocation26_spill] sm:$0xff] }
 0x32c   :  { %v2691_v27 = vadd.f32 %v10164_v4, %v2395_v40  ;;  %v2692_v62 = vadd.f32 %v10164_v4, %v2396_v57  ;;  %v1720_v55 = vadd.f32 %v1464_v0, %v1072_v28  ;;  %v836_v2 = vmul.f32 %v10167_v30, %v10154_v59  ;;  %v10170_v40 = vld [vmem:[#allocation27_spill] sm:$0xff] }
 0x32d   :  { %v1483_v13 = vmul.f32 %v10168_v54, %v10155_v15  ;;  %v2367_v29 = vadd.f32 %v2111_v43, %v1719_v53  ;;  %v1091_v18 = vadd.f32 %v835_v63, %v443_v61  ;;  %v1484_v34 = vmul.f32 %v10169_v12, %v10155_v15  ;;  %v10171_v57 = vld [vmem:[#allocation47_spill] sm:$0xff]  ;;  %v3208_v43 = vpop.xlane.xlu1 %3207  ;;  %v8252_v61 = vpop.xlane.xlu0 %3231 }
 0x32e   :  { %v2947_v31 = vmax.f32 %v2691_v27, 0.0  ;;  %v2948_v11 = vmax.f32 %v2692_v62, 0.0  ;;  %v2368_v37 = vadd.f32 %v2112_v48, %v1720_v55  ;;  %v1092_v19 = vadd.f32 %v836_v2, %v444_v39  ;;  %10173 = vst [vmem:[#allocation75_spill] sm:$0xff] %v8252_v61  ;;  %v3163_v62 = vpop.xlane.xlu2 %3162 }
 0x32f   :  { %v2131_v3 = vmul.f32 %v10170_v40, %v9980_v10  ;;  %v3672_v0 = vperm.slane %v8163_v56, %v10171_v57  ;;  %v2663_v28 = vadd.f32 %v10142_v35, %v2367_v29  ;;  %v1739_v4 = vadd.f32 %v1483_v13, %v1091_v18  ;;  %v10174_v13 = vld [vmem:[#allocation48_spill] sm:$0xff] }
 0x330   :  { %v2132_v27 = vmul.f32 %v10172_v38, %v9980_v10  ;;  %v3326_v48 = vadd.f32 %v2948_v11, %v2947_v31  ;;  %v2664_v39 = vadd.f32 %v10142_v35, %v2368_v37  ;;  %v1740_v63 = vadd.f32 %v1484_v34, %v1092_v19 }
 0x331   :  { %v2919_v55 = vmax.f32 %v2663_v28, 0.0  ;;  %v2387_v2 = vadd.f32 %v2131_v3, %v1739_v4  ;;  %v3673_v29 = vperm.slane %v3226_v36, %v10174_v13  ;;  %v439_v61 = vmul.f32 %v10163_v52, %v10159_v47 }
 0x332   :  { %3327 = vadd.xlane.f32.xlu1 %v3326_v48  ;;  %v2920_v18 = vmax.f32 %v2664_v39, 0.0  ;;  %v2388_v44 = vadd.f32 %v2132_v27, %v1740_v63  ;;  %v440_v31 = vmul.f32 %v10165_v60, %v10159_v47  ;;  %v831_v37 = vmul.f32 %v10166_v22, %v10160_v23 }
 0x333   :  { %v2683_v11 = vadd.f32 %v9950_v45, %v2387_v2  ;;  %v8266_v34 = vsel %vm3496_vm6, %v3673_v29, %v3672_v0  ;;  %v832_v36 = vmul.f32 %v10167_v30, %v10160_v23  ;;  %v1479_v28 = vmul.f32 %v10168_v54, %v10161_v24 }
 0x334   :  { %v3284_v19 = vadd.f32 %v2920_v18, %v2919_v55  ;;  %v2684_v3 = vadd.f32 %v9950_v45, %v2388_v44  ;;  %v1480_v4 = vmul.f32 %v10169_v12, %v10161_v24  ;;  %v1087_v48 = vadd.f32 %v831_v37, %v439_v61  ;;  %v10175_v37 = vld [vmem:[#allocation112_spill] sm:$0xff] }
 0x335   :  { %v2939_v27 = vmax.f32 %v2683_v11, 0.0  ;;  %v1088_v39 = vadd.f32 %v832_v36, %v440_v31  ;;  %v2127_v0 = vmul.f32 %v10170_v40, %v10162_v16  ;;  %v2128_v2 = vmul.f32 %v10172_v38, %v10162_v16 }
 0x336   :  { %3285 = vadd.xlane.f32.xlu2 %v3284_v19  ;;  %v2940_v63 = vmax.f32 %v2684_v3, 0.0  ;;  %v411_v44 = vmul.f32 %v10124_v46, %v10153_v9  ;;  %v412_v55 = vmul.f32 %v10125_v58, %v10153_v9  ;;  %v1735_v29 = vadd.f32 %v1479_v28, %v1087_v48  ;;  %v10176_v19 = vld [vmem:[#allocation113_spill] sm:$0xff]  ;;  %v10177_v46 = vld [vmem:[#allocation114_spill] sm:$0xff]  ;;  %v8295_v48 = vpop.xlane.xlu1 %3249 }
 0x337   :  { %v1736_v18 = vadd.f32 %v1480_v4, %v1088_v39  ;;  %v803_v61 = vmul.f32 %v10127_v21, %v10154_v59  ;;  %v804_v31 = vmul.f32 %v10128_v41, %v10154_v59  ;;  %v1451_v36 = vmul.f32 %v10175_v37, %v10155_v15  ;;  %v8297_v21 = vpop.xlane.xlu0 %3273  ;;  %v10178_v41 = vld [vmem:[#allocation63_spill] sm:$0xff]  ;;  %v10180_v37 = vld [vmem:[#allocation56_spill] sm:$0xff] }
 0x338   :  { %v3314_v11 = vadd.f32 %v2940_v63, %v2939_v27  ;;  %v1452_v3 = vmul.f32 %v10176_v19, %v10155_v15  ;;  %v2099_v53 = vmul.f32 %v10177_v46, %v9980_v10  ;;  %v2383_v56 = vadd.f32 %v2127_v0, %v1735_v29  ;;  %v10179_v39 = vld [vmem:[#allocation115_spill] sm:$0xff]  ;;  %v10181_v19 = vld [vmem:[#allocation96_spill] sm:$0xff]  ;;  %v10182_v15 = vld [vmem:[#allocation69_spill] sm:$0xff] }
 0x339   :  { %v2384_v58 = vadd.f32 %v2128_v2, %v1736_v18  ;;  %v1059_v28 = vadd.f32 %v803_v61, %v411_v44  ;;  %v1060_v4 = vadd.f32 %v804_v31, %v412_v55  ;;  %v2100_v63 = vmul.f32 %v10179_v39, %v9980_v10  ;;  %v3229_v44 = vpop.xlane.xlu2 %3228  ;;  %v10184_v46 = vld [vmem:[#allocation51_spill] sm:$0xff] }
 0x33a   :  { %3315 = vadd.xlane.f32.xlu0 %v3314_v11  ;;  %v10183_v59 = vperm.slane %v10181_v19, %v10182_v15  ;;  %v3662_v2 = vperm.slane %v3208_v43, %v10145_v7  ;;  %v2679_v55 = vadd.f32 %v10142_v35, %v2383_v56  ;;  %v3634_v11 = vperm.slane %v3163_v62, %v10047_v1  ;;  %v10185_v56 = vld [vmem:[#allocation30_spill] sm:$0xff] }
 0x33b   :  { %v2680_v29 = vadd.f32 %v10142_v35, %v2384_v58  ;;  %v1707_v18 = vadd.f32 %v1451_v36, %v1059_v28  ;;  %v1708_v61 = vadd.f32 %v1452_v3, %v1060_v4  ;;  %v441_v39 = vmul.f32 %v10163_v52, %v10184_v46  ;;  %v10186_v36 = vld [vmem:[#allocation25_spill] sm:$0xff] }
 0x33c   :  { %v3661_v0 = vsel %vm3500_vm8, %v10183_v59, %v10180_v37  ;;  %v442_v59 = vmul.f32 %v10165_v60, %v10184_v46  ;;  %v2935_v37 = vmax.f32 %v2679_v55, 0.0  ;;  %v8321_v58 = vsel %vm3508_vm11, %v3634_v11, %v10185_v56  ;;  %v10187_v28 = vld [vmem:[#allocation53_spill] sm:$0xff]  ;;  %v10192_v56 = vld [vmem:[#allocation32_spill] sm:$0xff] }
 0x33d   :  { %v8312_v31 = vsel %vm3504_vm10, %v3662_v2, %v3661_v0  ;;  %v2936_v43 = vmax.f32 %v2680_v29, 0.0  ;;  %v2355_v19 = vadd.f32 %v2099_v53, %v1707_v18  ;;  %v2356_v27 = vadd.f32 %v2100_v63, %v1708_v61  ;;  %v10188_v55 = vld [vmem:[#allocation81_spill] sm:$0xff] }
 0x33e   :  { %v833_v3 = vmul.f32 %v10166_v22, %v10186_v36  ;;  %v834_v62 = vmul.f32 %v10167_v30, %v10186_v36  ;;  %v1481_v52 = vmul.f32 %v10168_v54, %v10187_v28  ;;  %v1482_v53 = vmul.f32 %v10169_v12, %v10187_v28  ;;  %v10189_v54 = vld [vmem:[#allocation8_spill] sm:$0xff]  ;;  %v10190_v12 = vld [vmem:[#allocation66_spill] sm:$0xff] }
 0x33f   :  { %v3308_v4 = vadd.f32 %v2936_v43, %v2935_v37  ;;  %v2651_v60 = vadd.f32 %v9950_v45, %v2355_v19  ;;  %v2652_v0 = vadd.f32 %v9950_v45, %v2356_v27  ;;  %v2129_v29 = vmul.f32 %v10170_v40, %v10188_v55  ;;  %v10191_v43 = vld [vmem:[#allocation19_spill] sm:$0xff] }
 0x340   :  { %v1089_v63 = vadd.f32 %v833_v3, %v441_v39  ;;  %v1090_v2 = vadd.f32 %v834_v62, %v442_v59  ;;  %v2130_v22 = vmul.f32 %v10172_v38, %v10188_v55  ;;  %v453_v61 = vmul.f32 %v7895_v25, %v10189_v54  ;;  %v8351_v62 = vpop.xlane.xlu1 %3189 }
 0x341   :  { %3309 = vadd.xlane.f32.xlu1 %v3308_v4  ;;  %v2907_v30 = vmax.f32 %v2651_v60, 0.0  ;;  %v2908_v18 = vmax.f32 %v2652_v0, 0.0  ;;  %v454_v27 = vmul.f32 %v7897_v20, %v10189_v54  ;;  %v845_v39 = vmul.f32 %v7908_v5, %v10190_v12 }
 0x342   :  { %v1737_v11 = vadd.f32 %v1481_v52, %v1089_v63  ;;  %v1738_v37 = vadd.f32 %v1482_v53, %v1090_v2  ;;  %v846_v40 = vmul.f32 %v7910_v26, %v10190_v12  ;;  %v1493_v38 = vmul.f32 %v7912_v32, %v10191_v43  ;;  %v8353_v52 = vpop.xlane.xlu0 %3213  ;;  %v3355_v63 = vld [vmem:[#allocation2 + $0x70] sm:$0xff]  ;;  %v3353_v2 = vld [vmem:[#allocation2 + $0x60] sm:$0xff] }
 0x343   :  { %v3266_v59 = vadd.f32 %v2908_v18, %v2907_v30  ;;  %v1494_v19 = vmul.f32 %v7914_v42, %v10191_v43  ;;  %v2141_v3 = vmul.f32 %v7928_v8, %v10192_v56  ;;  %v1101_v0 = vadd.f32 %v845_v39, %v453_v61  ;;  %v8355_v30 = vpop.xlane.xlu2 %3147  ;;  %v10193_v18 = vld [vmem:[#allocation43_spill] sm:$0xff] }
 0x344   :  { %v2385_v4 = vadd.f32 %v2129_v29, %v1737_v11  ;;  %v2386_v60 = vadd.f32 %v2130_v22, %v1738_v37  ;;  %v1102_v53 = vadd.f32 %v846_v40, %v454_v27  ;;  %v10194_v54 = vperm.slane %v8209_v49, %v10146_v33  ;;  %v10195_v61 = vld [vmem:[#allocation35_spill] sm:$0xff]  ;;  %v3351_v40 = vld [vmem:[#allocation2 + $0x50] sm:$0xff] }
 0x345   :  { %3267 = vadd.xlane.f32.xlu2 %v3266_v59  ;;  %v2142_v43 = vmul.f32 %v7930_v51, %v10192_v56  ;;  %v3688_v29 = vperm.slane %v8295_v48, %v10174_v13  ;;  %v3675_v22 = vperm.slane %v3229_v44, %v10182_v15  ;;  %v1749_v37 = vadd.f32 %v1493_v38, %v1101_v0 }
 0x346   :  { %v8362_v12 = vsel %vm3516_vm13, %v10194_v54, %v10193_v18  ;;  %v2681_v27 = vadd.f32 %v10195_v61, %v2385_v4  ;;  %v2682_v11 = vadd.f32 %v10195_v61, %v2386_v60  ;;  %v1750_v39 = vadd.f32 %v1494_v19, %v1102_v53  ;;  %v10197_v54 = vld [vmem:[#allocation55_spill] sm:$0xff] }
 0x347   :  { %v10196_v49 = vperm.slane %v8165_v14, %v10171_v57  ;;  %v8379_v56 = vsel %vm3500_vm8, %v3675_v22, %v8266_v34  ;;  %v8381_v48 = vand.u32 4294901760, %v3355_v63  ;;  %v8383_v44 = vand.u32 4294901760, %v3353_v2 }
 0x348   :  { %v2937_v4 = vmax.f32 %v2681_v27, 0.0  ;;  %v2938_v18 = vmax.f32 %v2682_v11, 0.0  ;;  %v2397_v60 = vadd.f32 %v2141_v3, %v1749_v37  ;;  %v2398_v38 = vadd.f32 %v2142_v43, %v1750_v39 }
 0x349   :  { %v8375_v59 = vsel %vm3496_vm6, %v3688_v29, %v10196_v49  ;;  %v8386_v19 = vsub.f32 %v3355_v63, %v8381_v48  ;;  %v8389_v14 = vsub.f32 %v3353_v2, %v8383_v44  ;;  %v8391_v0 = vand.u32 4294901760, %v3351_v40  ;;  %3925 = vmatpush.msra.mxu3 %v8381_v48  ;;  %3776 = vmatpush.msra.mxu0 %v8381_v48 }
 0x34a   :  { %v457_v34 = vmul.f32 %v7895_v25, %v10184_v46  ;;  %v3311_v53 = vadd.f32 %v2938_v18, %v2937_v4  ;;  %v2693_v29 = vadd.f32 %v10197_v54, %v2397_v60  ;;  %v2694_v3 = vadd.f32 %v10197_v54, %v2398_v38  ;;  %v8426_v60 = vpop.xlane.xlu0 %3276 }
 0x34b   :  { %v458_v63 = vmul.f32 %v7897_v20, %v10184_v46  ;;  %v9417_v2 = vand.u32 4294901760, %v8386_v19  ;;  %v9416_v43 = vand.u32 4294901760, %v8389_v14  ;;  %3883 = vmatpush.msra.mxu2 %v8386_v19  ;;  %v8405_v22 = vsub.f32 %v3351_v40, %v8391_v0  ;;  %3927 = vmatpush.msra.mxu3 %v8383_v44 }
 0x34c   :  { %v849_v27 = vmul.f32 %v7908_v5, %v10186_v36  ;;  %3312 = vadd.xlane.f32.xlu1 %v3311_v53  ;;  %v2949_v11 = vmax.f32 %v2693_v29, 0.0  ;;  %v2950_v37 = vmax.f32 %v2694_v3, 0.0  ;;  %v850_v46 = vmul.f32 %v7910_v26, %v10186_v36  ;;  %3778 = vmatpush.msra.mxu0 %v8383_v44  ;;  %v8424_v36 = vpop.xlane.xlu1 %3252  ;;  %v8433_v3 = vpop.xlane.xlu2 %3210 }
 0x34d   :  { %v1497_v39 = vmul.f32 %v7912_v32, %v10187_v28  ;;  %v3819_v40 = vsub.f32 %v8386_v19, %v9417_v2  ;;  %v3825_v49 = vsub.f32 %v8389_v14, %v9416_v43  ;;  %v9418_v4 = vand.u32 4294901760, %v8405_v22  ;;  %3886 = vmatpush.msra.mxu2 %v8389_v14  ;;  %3929 = vmatpush.msra.mxu3 %v8391_v0 }
 0x34e   :  { %v1105_v18 = vadd.f32 %v849_v27, %v457_v34  ;;  %v3329_v38 = vadd.f32 %v2950_v37, %v2949_v11  ;;  %v1106_v53 = vadd.f32 %v850_v46, %v458_v63  ;;  %v1498_v54 = vmul.f32 %v7914_v42, %v10187_v28  ;;  %3780 = vmatpush.msra.mxu0 %v8391_v0 }
 0x34f   :  { %v2145_v29 = vmul.f32 %v7928_v8, %v10188_v55  ;;  %v3820_v43 = vand.u32 4294901760, %v3819_v40  ;;  %v3826_v34 = vand.u32 4294901760, %v3825_v49  ;;  %v3831_v27 = vsub.f32 %v8405_v22, %v9418_v4  ;;  %3889 = vmatpush.msra.mxu2 %v8405_v22  ;;  %v3345_v4 = vld [vmem:[#allocation2 + $0x20] sm:$0xff] }
 0x350   :  { %v1753_v2 = vadd.f32 %v1497_v39, %v1105_v18  ;;  %3330 = vadd.xlane.f32.xlu2 %v3329_v38  ;;  %v1754_v63 = vadd.f32 %v1498_v54, %v1106_v53  ;;  %v2146_v28 = vmul.f32 %v7930_v51, %v10188_v55  ;;  %v455_v11 = vmul.f32 %v7895_v25, %v10159_v47  ;;  %v3349_v18 = vld [vmem:[#allocation2 + $0x40] sm:$0xff] }
 0x351   :  { %v456_v37 = vmul.f32 %v7897_v20, %v10159_v47  ;;  %3821 = vmatpush.msra.mxu1 %v3820_v43  ;;  %v3832_v46 = vand.u32 4294901760, %v3831_v27  ;;  %v847_v49 = vmul.f32 %v7908_v5, %v10160_v23  ;;  %v848_v39 = vmul.f32 %v7910_v26, %v10160_v23 }
 0x352   :  { %v2401_v40 = vadd.f32 %v2145_v29, %v1753_v2  ;;  %v2402_v38 = vadd.f32 %v2146_v28, %v1754_v63  ;;  %v1495_v55 = vmul.f32 %v7912_v32, %v10161_v24  ;;  %v1496_v53 = vmul.f32 %v7914_v42, %v10161_v24  ;;  %v10199_v28 = vld [vmem:[#allocation75_spill] sm:$0xff] }
 0x353   :  { %v2143_v47 = vmul.f32 %v7928_v8, %v10162_v16  ;;  %3827 = vmatpush.msra.mxu1 %v3826_v34  ;;  %v1103_v43 = vadd.f32 %v847_v49, %v455_v11  ;;  %v1104_v54 = vadd.f32 %v848_v39, %v456_v37  ;;  %v2144_v29 = vmul.f32 %v7930_v51, %v10162_v16  ;;  %v3347_v49 = vld [vmem:[#allocation2 + $0x30] sm:$0xff] }
 0x354   :  { %v2697_v2 = vadd.f32 %v10195_v61, %v2401_v40  ;;  %v2698_v23 = vadd.f32 %v10195_v61, %v2402_v38  ;;  %v8459_v27 = vand.u32 4294901760, %v3349_v18  ;;  %v10198_v63 = vperm.slane %v8115_v6, %v10047_v1  ;;  %v8470_v61 = vpop.xlane.xlu1 %3168 }
 0x355   :  { %v3651_v34 = vperm.slane %v8351_v62, %v10178_v41  ;;  %3833 = vmatpush.msra.mxu1 %v3832_v46  ;;  %v1751_v40 = vadd.f32 %v1495_v55, %v1103_v43  ;;  %v1752_v16 = vadd.f32 %v1496_v53, %v1104_v54  ;;  %v3343_v46 = vld [vmem:[#allocation2 + $0x10] sm:$0xff]  ;;  %v8483_v55 = vpop.xlane.xlu2 %3270  ;;  %v8485_v43 = vpop.xlane.xlu0 %3171 }
 0x356   :  { %v3650_v24 = vsel %vm3508_vm11, %v10198_v63, %v8193_v50  ;;  %v2953_v37 = vmax.f32 %v2697_v2, 0.0  ;;  %v2954_v39 = vmax.f32 %v2698_v23, 0.0  ;;  %v8473_v38 = vsub.f32 %v3349_v18, %v8459_v27  ;;  %v10200_v50 = vld [vmem:[#allocation89_spill] sm:$0xff]  ;;  %3931 = vmatpush.msra.mxu3 %v8459_v27  ;;  %3782 = vmatpush.msra.mxu0 %v8459_v27  ;;  %v3341_v18 = vld [vmem:[#allocation2] sm:$0xff] }
 0x357   :  { %v8476_v6 = vsel %vm3512_vm12, %v3651_v34, %v3650_v24  ;;  %v10201_v63 = vld [vmem:[#allocation117_spill] sm:$0xff]  ;;  %v2399_v53 = vadd.f32 %v2143_v47, %v1751_v40  ;;  %v2400_v2 = vadd.f32 %v2144_v29, %v1752_v16  ;;  %v10202_v24 = vld [vmem:[#allocation87_spill] sm:$0xff]  ;;  %v8495_v29 = vand.u32 4294901760, %v3345_v4 }
 0x358   :  { %v3752_v62 = vsel %vm80_vm7, %v10201_v63, %v10200_v50  ;;  %v3335_v54 = vadd.f32 %v2954_v39, %v2953_v37  ;;  %v9419_v23 = vand.u32 4294901760, %v8473_v38  ;;  %v3625_v34 = vperm.slane %v8355_v30, %v10202_v24  ;;  %3892 = vmatpush.msra.mxu2 %v8473_v38 }
 0x359   :  { %v8490_v50 = vand.u32 4294901760, %v3347_v49  ;;  %v2695_v63 = vadd.f32 %v10142_v35, %v2399_v53  ;;  %v2696_v47 = vadd.f32 %v10142_v35, %v2400_v2  ;;  %10204 = vst [vmem:[#allocation21_spill] sm:$0xff] %v8495_v29  ;;  %v8497_v40 = vand.u32 4294901760, %v3343_v46 }
 0x35a   :  { %3336 = vadd.xlane.f32.xlu1 %v3335_v54  ;;  %v3837_v37 = vsub.f32 %v8473_v38, %v9419_v23  ;;  %v3626_v30 = vsel %vm3520_vm14, %v3625_v34, %v8362_v12  ;;  %v8508_v39 = vand.u32 4294901760, %v3341_v18  ;;  %v8512_v54 = vsub.f32 %v3345_v4, %v8495_v29 }
 0x35b   :  { %10203 = vst [vmem:[#allocation28_spill] sm:$0xff] %v8490_v50  ;;  %v8505_v16 = vsub.f32 %v3347_v49, %v8490_v50  ;;  %3933 = vmatpush.msra.mxu3 %v8490_v50  ;;  %v2951_v35 = vmax.f32 %v2695_v63, 0.0  ;;  %v2952_v53 = vmax.f32 %v2696_v47, 0.0  ;;  %v3754_v2 = vsel %vm3753_vm15, %v3626_v30, %v3752_v62  ;;  %3784 = vmatpush.msra.mxu0 %v8490_v50 }
 0x35c   :  { %v3838_v23 = vand.u32 4294901760, %v3837_v37  ;;  %v3763_v11 = vsel %vm3762_vm2, %v3754_v2, 0  ;;  %v8519_v49 = vsub.f32 %v3343_v46, %v8497_v40  ;;  %v3848_v4 = vand.u32 4294901760, %v8512_v54  ;;  %v8528_v47 = vpop.xlane.xlu1 %3234 }
 0x35d   :  { %v9420_v12 = vand.u32 4294901760, %v8505_v16  ;;  %3895 = vmatpush.msra.mxu2 %v8505_v16  ;;  %3935 = vmatpush.msra.mxu3 %v8495_v29  ;;  %v3332_v34 = vadd.f32 %v2952_v53, %v2951_v35  ;;  %v8522_v63 = vand.u32 4294901760, %v3763_v11  ;;  %v459_v62 = vmul.f32 %v7895_v25, %v10153_v9  ;;  %v10205_v35 = vld [vmem:[#allocation76_spill] sm:$0xff]  ;;  %v8539_v25 = vpop.xlane.xlu2 %3192 }
 0x35e   :  { %3786 = vmatpush.msra.mxu0 %v8495_v29  ;;  %3839 = vmatpush.msra.mxu1 %v3838_v23  ;;  %v460_v30 = vmul.f32 %v7897_v20, %v10153_v9  ;;  %v851_v53 = vmul.f32 %v7908_v5, %v10205_v35  ;;  %v3849_v23 = vsub.f32 %v8512_v54, %v3848_v4  ;;  %v10207_v9 = vand.u32 4294901760, %v8519_v49 }
 0x35f   :  { %v3843_v46 = vsub.f32 %v8505_v16, %v9420_v12  ;;  %3898 = vmatpush.msra.mxu2 %v8512_v54  ;;  %3333 = vadd.xlane.f32.xlu2 %v3332_v34  ;;  %v852_v2 = vmul.f32 %v7910_v26, %v10205_v35  ;;  %v10206_v12 = vld [vmem:[#allocation50_spill] sm:$0xff]  ;;  %v2147_v34 = vmul.f32 %v7928_v8, %v9980_v10 }
 0x360   :  { %v1499_v37 = vmul.f32 %v7912_v32, %v10206_v12  ;;  %v1500_v29 = vmul.f32 %v7914_v42, %v10206_v12  ;;  %v3855_v5 = vsub.f32 %v8519_v49, %v10207_v9  ;;  %v1107_v50 = vadd.f32 %v851_v53, %v459_v62  ;;  %3937 = vmatpush.msra.mxu3 %v8497_v40  ;;  %v8563_v12 = vpop.xlane.xlu0 %3237 }
 0x361   :  { %v3844_v20 = vand.u32 4294901760, %v3843_v46  ;;  %3901 = vmatpush.msra.mxu2 %v8519_v49  ;;  %v3850_v26 = vand.u32 4294901760, %v3849_v23  ;;  %v1108_v35 = vadd.f32 %v852_v2, %v460_v30  ;;  %v2148_v32 = vmul.f32 %v7930_v51, %v9980_v10  ;;  %3788 = vmatpush.msra.mxu0 %v8497_v40 }
 0x362   :  { %v8560_v42 = vsub.f32 %v3341_v18, %v8508_v39  ;;  %v3703_v62 = vperm.slane %v8297_v21, %v10174_v13  ;;  %v3856_v8 = vand.u32 4294901760, %v3855_v5  ;;  %v1755_v46 = vadd.f32 %v1499_v37, %v1107_v50  ;;  %3939 = vmatpush.msra.mxu3 %v8508_v39 }
 0x363   :  { %3845 = vmatpush.msra.mxu1 %v3844_v20  ;;  %v3690_v53 = vperm.slane %v8424_v36, %v10182_v15  ;;  %v1756_v30 = vadd.f32 %v1500_v29, %v1108_v35  ;;  %v3664_v51 = vperm.slane %v8433_v3, %v10047_v1  ;;  %v8575_v18 = vsub.f32 %v3763_v11, %v8522_v63 }
 0x364   :  { %v3860_v10 = vand.u32 4294901760, %v8560_v42  ;;  %3904 = vmatpush.msra.mxu2 %v8560_v42  ;;  %3790 = vmatpush.msra.mxu0 %v8508_v39  ;;  %v2403_v21 = vadd.f32 %v2147_v34, %v1755_v46  ;;  %v10208_v50 = vperm.slane %v8211_v17, %v10178_v41  ;;  %v3638_v3 = vperm.slane %v8470_v61, %v10146_v33  ;;  %v3295_v2 = vpop.xlane.xlu1 %3294 }
 0x365   :  { %3851 = vmatpush.msra.mxu1 %v3850_v26  ;;  %v3691_v36 = vsel %vm3500_vm8, %v3690_v53, %v8375_v59  ;;  %v2404_v37 = vadd.f32 %v2148_v32, %v1756_v30  ;;  %v3665_v23 = vsel %vm3508_vm11, %v3664_v51, %v8312_v31  ;;  %3907 = vmatmul.f32.vlgmr.msra.gmra.mxu2 %v8575_v18  ;;  %v8594_v59 = vand.u32 4294901760, %v8575_v18  ;;  %v3256_v9 = vpop.xlane.xlu2 %3255 }
 0x366   :  { %v3637_v29 = vsel %vm3512_vm12, %v10208_v50, %v8321_v58  ;;  %v3861_v11 = vsub.f32 %v8560_v42, %v3860_v10  ;;  %v10209_v17 = vand.u32 4294901760, %v8386_v19  ;;  %v2699_v58 = vadd.f32 %v9950_v45, %v2403_v21 }
 0x367   :  { %3857 = vmatpush.msra.mxu1 %v3856_v8  ;;  %v3639_v61 = vsel %vm3516_vm13, %v3638_v3, %v3637_v29  ;;  %v3640_v20 = vperm.slane %v8485_v43, %v10202_v24  ;;  %v3702_v31 = vperm.slane %v8483_v55, %v10171_v57  ;;  %v2700_v5 = vadd.f32 %v9950_v45, %v2404_v37 }
 0x368   :  { %3964 = vmatpush.msrb.mxu0 %v10209_v17  ;;  %v3862_v34 = vand.u32 4294901760, %v3861_v11  ;;  %3943 = vmatmul.f32.vlgmr.msra.gmra.mxu3 %v8594_v59  ;;  %v3794_v19 = vsub.f32 %v8575_v18, %v8594_v59  ;;  %v10210_v26 = vperm.slane %v10199_v28, %v10145_v7  ;;  %v10211_v43 = vand.u32 4294901760, %v8389_v14  ;;  %v8635_v21 = vpop.xlane.xlu0 %3300 }
 0x369   :  { %v2955_v32 = vmax.f32 %v2699_v58, 0.0  ;;  %v3641_v55 = vsel %vm3520_vm14, %v3640_v20, %v3639_v61  ;;  %v3704_v45 = vsel %vm3496_vm6, %v3703_v62, %v3702_v31  ;;  %v3679_v8 = vperm.slane %v8528_v47, %v10047_v1  ;;  %v10217_v58 = vld [vmem:[#allocation21_spill] sm:$0xff] }
 0x36a   :  { %v3678_v35 = vsel %vm3504_vm10, %v10210_v26, %v8379_v56  ;;  %3968 = vmatpush.msrb.mxu0 %v10211_v43  ;;  %v3666_v46 = vperm.slane %v8353_v52, %v10178_v41  ;;  %v2956_v53 = vmax.f32 %v2700_v5, 0.0  ;;  %3863 = vmatpush.msra.mxu1 %v3862_v34  ;;  %v8621_v30 = vand.u32 4294901760, %v3794_v19 }
 0x36b   :  { %v3653_v56 = vperm.slane %v8539_v25, %v10146_v33  ;;  %v10212_v14 = vand.u32 4294901760, %v8405_v22  ;;  %v3705_v28 = vperm.slane %v8426_v60, %v10182_v15  ;;  %3865 = vmatmul.f32.vlgmr.msra.gmra.mxu1 %v8522_v63  ;;  %v3680_v47 = vsel %vm3508_vm11, %v3679_v8, %v3678_v35 }
 0x36c   :  { %v3692_v62 = vperm.slane %v3256_v9, %v10145_v7  ;;  %v3338_v52 = vadd.f32 %v2956_v53, %v2955_v32  ;;  %3796 = vmatmul.f32.vlgmr.msra.gmra.mxu0 %v8621_v30  ;;  %v3667_v22 = vsel %vm3512_vm12, %v3666_v46, %v3665_v23  ;;  %4011 = vmatpush.msrb.mxu1 %v8381_v48  ;;  %v10213_v50 = vand.u32 4294901760, %v8473_v38  ;;  %v3196_v29 = vpop.xlane.xlu1 %3195 }
 0x36d   :  { %3972 = vmatpush.msrb.mxu0 %v10212_v14  ;;  %v3654_v51 = vsel %vm3516_vm13, %v3653_v56, %v8476_v6  ;;  %v3706_v60 = vsel %vm3500_vm8, %v3705_v28, %v3704_v45  ;;  %v3655_v3 = vperm.slane %v3196_v29, %v10202_v24  ;;  %v3298_v37 = vpop.xlane.xlu2 %3297  ;;  %v10214_v6 = vand.u32 4294901760, %v8505_v16  ;;  %v10216_v16 = vld [vmem:[#allocation28_spill] sm:$0xff] }
 0x36e   :  { %v8639_v25 = vsel %vm3504_vm10, %v3692_v62, %v3691_v36  ;;  %3339 = vadd.xlane.f32.xlu2 %v3338_v52  ;;  %4013 = vmatpush.msrb.mxu1 %v8383_v44  ;;  %v3717_v36 = vperm.slane %v3295_v2, %v10171_v57  ;;  %v3718_v11 = vperm.slane %v3298_v37, %v10174_v13  ;;  %v10215_v44 = vand.u32 4294901760, %v8519_v49 }
 0x36f   :  { %3976 = vmatpush.msrb.mxu0 %v10213_v50  ;;  %v3656_v23 = vsel %vm3520_vm14, %v3655_v3, %v3654_v51  ;;  %v3681_v9 = vperm.slane %v8563_v12, %v10178_v41 }
 0x370   :  { %4015 = vmatpush.msrb.mxu1 %v8391_v0  ;;  %v3755_v48 = vsel %vm65_vm0, %v3656_v23, %v3641_v55  ;;  %v3719_v38 = vsel %vm3496_vm6, %v3718_v11, %v3717_v36  ;;  %v3220_v2 = vpop.xlane.xlu0 %3219 }
 0x371   :  { %3980 = vmatpush.msrb.mxu0 %v10214_v6 }
 0x372   :  { %4017 = vmatpush.msrb.mxu1 %v8459_v27 }
 0x373   :  { %3984 = vmatpush.msrb.mxu0 %v3848_v4  ;;  %v3670_v4 = vperm.slane %v3220_v2, %v10202_v24 }
 0x374   :  { %4019 = vmatpush.msrb.mxu1 %v10216_v16  ;;  %v3259_v17 = vpop.xlane.xlu1 %3258  ;;  %v3720_v16 = vperm.slane %v8635_v21, %v10182_v15 }
 0x375   :  { %3988 = vmatpush.msrb.mxu0 %v10215_v44  ;;  %v3217_v0 = vpop.xlane.xlu2 %3216  ;;  %v3694_v52 = vperm.slane %v3259_v17, %v10047_v1 }
 0x376   :  { %4021 = vmatpush.msrb.mxu1 %v10217_v58  ;;  %v3668_v54 = vperm.slane %v3217_v0, %v10146_v33 }
 0x377   :  { %3992 = vmatpush.msrb.mxu0 %v3860_v10 }
 0x378   :  { %4023 = vmatpush.msrb.mxu1 %v8497_v40  ;;  %v3669_v27 = vsel %vm3516_vm13, %v3668_v54, %v3667_v22  ;;  %v3283_v61 = vpop.xlane.xlu0 %3282  ;;  %v3682_v40 = vsel %vm3512_vm12, %v3681_v9, %v3680_v47 }
 0x379   :  { %v3671_v49 = vsel %vm3520_vm14, %v3670_v4, %v3669_v27  ;;  %v3709_v62 = vperm.slane %v3283_v61, %v10047_v1 }
 0x37a   :  { %4025 = vmatpush.msrb.mxu1 %v8508_v39  ;;  %v3756_v42 = vsel %vm68_vm1, %v3671_v49, %v3755_v48 }
 0x37c   :  { %v8671_v10 = vpop.xlane.xlu1 %3318 }
 0x37d   :  { %v3280_v20 = vpop.xlane.xlu2 %3279 }
 0x37e   :  { %v3707_v56 = vperm.slane %v3280_v20, %v10145_v7 }
 0x380   :  { %v3244_v34 = vpop.xlane.xlu0 %3243  ;;  %v3708_v28 = vsel %vm3504_vm10, %v3707_v56, %v3706_v60  ;;  %v3695_v60 = vsel %vm3508_vm11, %v3694_v52, %v8639_v25  ;;  %v3721_v25 = vsel %vm3500_vm8, %v3720_v16, %v3719_v38 }
 0x381   :  { %v3685_v39 = vperm.slane %v3244_v34, %v10202_v24  ;;  %v3710_v50 = vsel %vm3508_vm11, %v3709_v62, %v3708_v28  ;;  %v3348_v28 = vld [vmem:[#allocation2 + $0x38] sm:$0xff] }
 0x384   :  { %v3241_v31 = vpop.xlane.xlu1 %3240 }
 0x385   :  { %v3683_v5 = vperm.slane %v3241_v31, %v10146_v33  ;;  %v8677_v19 = vpop.xlane.xlu2 %3321 }
 0x387   :  { %v3684_v26 = vsel %vm3516_vm13, %v3683_v5, %v3682_v40 }
 0x388   :  { %v3686_v35 = vsel %vm3520_vm14, %v3685_v39, %v3684_v26  ;;  %v3307_v45 = vpop.xlane.xlu0 %3306  ;;  %v3356_v26 = vld [vmem:[#allocation2 + $0x78] sm:$0xff]  ;;  %v3354_v39 = vld [vmem:[#allocation2 + $0x68] sm:$0xff] }
 0x389   :  { %v3757_v32 = vsel %vm71_vm3, %v3686_v35, %v3756_v42  ;;  %v3724_v21 = vperm.slane %v3307_v45, %v10047_v1  ;;  %v3352_v35 = vld [vmem:[#allocation2 + $0x58] sm:$0xff]  ;;  %v3350_v45 = vld [vmem:[#allocation2 + $0x48] sm:$0xff] }
 0x38a   :  { %v8737_v56 = vand.u32 4294901760, %v3350_v45 }
 0x38c   :  { %v3304_v43 = vpop.xlane.xlu1 %3303 }
 0x38d   :  { %v3262_v55 = vpop.xlane.xlu2 %3261  ;;  %v3722_v11 = vperm.slane %v3304_v43, %v10145_v7  ;;  %v8724_v43 = vand.u32 4294901760, %v3356_v26 }
 0x38e   :  { %v3696_v22 = vperm.slane %v3262_v55, %v10178_v41  ;;  %v8728_v55 = vand.u32 4294901760, %v3352_v35 }
 0x38f   :  { %v3723_v4 = vsel %vm3504_vm10, %v3722_v11, %v3721_v25  ;;  %4044 = vmatpush.msrb.mxu2 %v8724_v43  ;;  %4193 = vmatpush.msra.mxu1 %v8724_v43  ;;  %v3342_v25 = vld [vmem:[#allocation2 + $0x8] sm:$0xff] }
 0x390   :  { %v3289_v46 = vpop.xlane.xlu0 %3288  ;;  %v3697_v23 = vsel %vm3512_vm12, %v3696_v22, %v3695_v60  ;;  %v3725_v20 = vsel %vm3508_vm11, %v3724_v21, %v3723_v4 }
 0x391   :  { %v3713_v6 = vperm.slane %v3289_v46, %v10146_v33 }
 0x397   :  { %v3265_v8 = vpop.xlane.xlu1 %3264 }
 0x398   :  { %v3698_v3 = vperm.slane %v3265_v8, %v10146_v33  ;;  %v8732_v8 = vsub.f32 %v3356_v26, %v8724_v43 }
 0x39a   :  { %v8683_v12 = vpop.xlane.xlu2 %3324  ;;  %v3699_v2 = vsel %vm3516_vm13, %v3698_v3, %v3697_v23  ;;  %v3344_v3 = vld [vmem:[#allocation2 + $0x18] sm:$0xff]  ;;  %4151 = vmatpush.msra.mxu0 %v8732_v8 }
 0x39e   :  { %v3292_v51 = vpop.xlane.xlu0 %3291 }
 0x39f   :  { %v3715_v17 = vperm.slane %v3292_v51, %v10202_v24  ;;  %v8747_v51 = vand.u32 4294901760, %v3348_v28 }
 0x3a1   :  { %v8769_v23 = vsub.f32 %v3348_v28, %v8747_v51 }
 0x3a5   :  { %v8685_v53 = vpop.xlane.xlu1 %3327 }
 0x3a9   :  { %v3286_v14 = vpop.xlane.xlu2 %3285 }
 0x3aa   :  { %v3711_v47 = vperm.slane %v3286_v14, %v10178_v41  ;;  %v8740_v14 = vsub.f32 %v3352_v35, %v8728_v55  ;;  %v3735_v35 = vperm.slane %v8683_v12, %v10182_v15 }
 0x3ac   :  { %v3712_v37 = vsel %vm3512_vm12, %v3711_v47, %v3710_v50  ;;  %v4086_v47 = vand.u32 4294901760, %v8732_v8  ;;  %v4098_v52 = vand.u32 4294901760, %v8740_v14  ;;  %v8753_v50 = vsub.f32 %v3350_v45, %v8737_v56 }
 0x3ad   :  { %v3714_v48 = vsel %vm3516_vm13, %v3713_v6, %v3712_v37  ;;  %v3316_v42 = vpop.xlane.xlu0 %3315  ;;  %v3732_v45 = vperm.slane %v8671_v10, %v10171_v57 }
 0x3ae   :  { %v3716_v58 = vsel %vm3520_vm14, %v3715_v17, %v3714_v48  ;;  %v3730_v38 = vperm.slane %v3316_v42, %v10202_v24  ;;  %v4087_v37 = vsub.f32 %v8732_v8, %v4086_v47  ;;  %v4099_v60 = vsub.f32 %v8740_v14, %v4098_v52 }
 0x3af   :  { %v4104_v11 = vand.u32 4294901760, %v8753_v50  ;;  %v8771_v48 = vand.u32 4294901760, %v3344_v3  ;;  %v3737_v8 = vperm.slane %v8685_v53, %v10145_v7 }
 0x3b1   :  { %v4105_v17 = vsub.f32 %v8753_v50, %v4104_v11 }
 0x3b3   :  { %v4106_v42 = vand.u32 4294901760, %v4105_v17 }
 0x3b4   :  { %v3310_v29 = vpop.xlane.xlu1 %3309 }
 0x3b5   :  { %v3726_v27 = vperm.slane %v3310_v29, %v10178_v41  ;;  %v3346_v29 = vld [vmem:[#allocation2 + $0x28] sm:$0xff] }
 0x3b7   :  { %v3727_v9 = vsel %vm3512_vm12, %v3726_v27, %v3725_v20  ;;  %v8789_v27 = vand.u32 4294901760, %v3342_v25 }
 0x3b8   :  { %v3268_v36 = vpop.xlane.xlu2 %3267 }
 0x3b9   :  { %v3700_v44 = vperm.slane %v3268_v36, %v10202_v24  ;;  %v8764_v36 = vand.u32 4294901760, %v3346_v29  ;;  %v4127_v20 = vsub.f32 %v3342_v25, %v8789_v27 }
 0x3bb   :  { %v3701_v0 = vsel %vm3520_vm14, %v3700_v44, %v3699_v2  ;;  %v4088_v44 = vand.u32 4294901760, %v4087_v37  ;;  %v8776_v2 = vsub.f32 %v3346_v29, %v8764_v36 }
 0x3bc   :  { %v3758_v54 = vsel %vm74_vm4, %v3701_v0, %v3757_v32  ;;  %v8726_v32 = vand.u32 4294901760, %v3354_v39  ;;  %v4110_v0 = vand.u32 4294901760, %v8769_v23 }
 0x3bd   :  { %v3759_v49 = vsel %vm77_vm5, %v3716_v58, %v3758_v54  ;;  %v8784_v58 = vsub.f32 %v3344_v3, %v8771_v48  ;;  %4089 = vmatpush.msrb.mxu3 %v4088_v44  ;;  %v4100_v54 = vand.u32 4294901760, %v4099_v60  ;;  %v4116_v4 = vand.u32 4294901760, %v8776_v2 }
 0x3be   :  { %v8735_v46 = vsub.f32 %v3354_v39, %v8726_v32  ;;  %4046 = vmatpush.msrb.mxu2 %v8726_v32  ;;  %4195 = vmatpush.msra.mxu1 %v8726_v32 }
 0x3bf   :  { %v3313_v61 = vpop.xlane.xlu1 %3312  ;;  %v4122_v21 = vand.u32 4294901760, %v8784_v58 }
 0x3c0   :  { %v3728_v31 = vperm.slane %v3313_v61, %v10146_v33  ;;  %v4092_v62 = vand.u32 4294901760, %v8735_v46  ;;  %4048 = vmatpush.msrb.mxu2 %v8728_v55  ;;  %4197 = vmatpush.msra.mxu1 %v8728_v55  ;;  %v4117_v61 = vsub.f32 %v8776_v2, %v4116_v4 }
 0x3c1   :  { %4154 = vmatpush.msra.mxu0 %v8735_v46 }
 0x3c2   :  { %v3729_v5 = vsel %vm3516_vm13, %v3728_v31, %v3727_v9  ;;  %v4093_v6 = vsub.f32 %v8735_v46, %v4092_v62  ;;  %4050 = vmatpush.msrb.mxu2 %v8737_v56  ;;  %4199 = vmatpush.msra.mxu1 %v8737_v56  ;;  %v4128_v9 = vand.u32 4294901760, %v4127_v20  ;;  %v4118_v26 = vand.u32 4294901760, %v4117_v61 }
 0x3c3   :  { %v3731_v34 = vsel %vm3520_vm14, %v3730_v38, %v3729_v5  ;;  %v8750_v22 = vpop.xlane.xlu2 %3330  ;;  %4157 = vmatpush.msra.mxu0 %v8740_v14  ;;  %v4123_v38 = vsub.f32 %v8784_v58, %v4122_v21 }
 0x3c4   :  { %v8722_v40 = vsel %vm80_vm7, %v3731_v34, %v3759_v49  ;;  %v4094_v16 = vand.u32 4294901760, %v4093_v6  ;;  %4052 = vmatpush.msrb.mxu2 %v8747_v51  ;;  %v4111_v49 = vsub.f32 %v8769_v23, %v4110_v0  ;;  %4201 = vmatpush.msra.mxu1 %v8747_v51  ;;  %v3733_v34 = vperm.slane %v8677_v19, %v10174_v13 }
 0x3c5   :  { %4160 = vmatpush.msra.mxu0 %v8753_v50  ;;  %v4129_v39 = vsub.f32 %v4127_v20, %v4128_v9  ;;  %v4124_v28 = vand.u32 4294901760, %v4123_v38  ;;  %v3739_v13 = vperm.slane %v8750_v22, %v10047_v1 }
 0x3c6   :  { %4095 = vmatpush.msrb.mxu3 %v4094_v16  ;;  %4054 = vmatpush.msrb.mxu2 %v8764_v36  ;;  %v4112_v31 = vand.u32 4294901760, %v4111_v49  ;;  %v3734_v15 = vsel %vm3496_vm6, %v3733_v34, %v3732_v45 }
 0x3c7   :  { %4203 = vmatpush.msra.mxu1 %v8764_v36  ;;  %4163 = vmatpush.msra.mxu0 %v8769_v23  ;;  %v4130_v57 = vand.u32 4294901760, %v4129_v39  ;;  %v3736_v7 = vsel %vm3500_vm8, %v3735_v35, %v3734_v15 }
 0x3c8   :  { %4101 = vmatpush.msrb.mxu3 %v4100_v54  ;;  %4056 = vmatpush.msrb.mxu2 %v8771_v48  ;;  %v3738_v10 = vsel %vm3504_vm10, %v3737_v8, %v3736_v7 }
 0x3c9   :  { %4205 = vmatpush.msra.mxu1 %v8771_v48  ;;  %4166 = vmatpush.msra.mxu0 %v8776_v2  ;;  %v3740_v1 = vsel %vm3508_vm11, %v3739_v13, %v3738_v10 }
 0x3ca   :  { %4107 = vmatpush.msrb.mxu3 %v4106_v42  ;;  %4058 = vmatpush.msrb.mxu2 %v8789_v27 }
 0x3cb   :  { %4207 = vmatpush.msra.mxu1 %v8789_v27  ;;  %4169 = vmatpush.msra.mxu0 %v8784_v58 }
 0x3cc   :  { %4232 = vmatpush.msra.mxu2 %v4086_v47  ;;  %4113 = vmatpush.msrb.mxu3 %v4112_v31 }
 0x3cd   :  { %v3337_v19 = vpop.xlane.xlu1 %3336  ;;  %4172 = vmatpush.msra.mxu0 %v4127_v20 }
 0x3ce   :  { %4236 = vmatpush.msra.mxu2 %v4092_v62  ;;  %4119 = vmatpush.msrb.mxu3 %v4118_v26  ;;  %v3743_v53 = vperm.slane %v3337_v19, %v10146_v33 }
 0x3d0   :  { %4240 = vmatpush.msra.mxu2 %v4098_v52  ;;  %4125 = vmatpush.msrb.mxu3 %v4124_v28 }
 0x3d2   :  { %v3334_v5 = vpop.xlane.xlu2 %3333  ;;  %4244 = vmatpush.msra.mxu2 %v4104_v11  ;;  %4131 = vmatpush.msrb.mxu3 %v4130_v57 }
 0x3d3   :  { %v3741_v12 = vperm.slane %v3334_v5, %v10178_v41 }
 0x3d4   :  { %4279 = vmatpush.msra.mxu3 %v8724_v43  ;;  %4248 = vmatpush.msra.mxu2 %v4110_v0 }
 0x3d5   :  { %v3742_v41 = vsel %vm3512_vm12, %v3741_v12, %v3740_v1 }
 0x3d6   :  { %v3744_v47 = vsel %vm3516_vm13, %v3743_v53, %v3742_v41  ;;  %4281 = vmatpush.msra.mxu3 %v8726_v32  ;;  %4252 = vmatpush.msra.mxu2 %v4116_v4 }
 0x3d8   :  { %4283 = vmatpush.msra.mxu3 %v8728_v55  ;;  %4256 = vmatpush.msra.mxu2 %v4122_v21  ;;  %v3357_v55 = vld [vmem:[%s8865_s4] sm:$0x3]  ;;  %s4427_s4 = smov [#allocation5]  }
 0x3d9   :  { %s4315_s17 = sshll.u32 %s4427_s4, 4  ;;  %s4316_s17 = int_to_ptr.vmem [resolvable:$true] %s4315_s17 }
 0x3da   :  { %4285 = vmatpush.msra.mxu3 %v8737_v56  ;;  %4260 = vmatpush.msra.mxu2 %v4128_v9  ;;  %v3359_v56 = vperm.slane %v3357_v55, 0 }
 0x3dc   :  { %4287 = vmatpush.msra.mxu3 %v8747_v51 }
 0x3de   :  { %4289 = vmatpush.msra.mxu3 %v8764_v36 }
 0x3e0   :  { %4291 = vmatpush.msra.mxu3 %v8771_v48 }
 0x3e1   :  { %v3340_v46 = vpop.xlane.xlu2 %3339 }
 0x3e2   :  { %v3745_v14 = vperm.slane %v3340_v46, %v10202_v24  ;;  %4293 = vmatpush.msra.mxu3 %v8789_v27  ;;  %v3360_v27 = vperm.slane %v3357_v55, 1 }
 0x3e4   :  { %v3746_v62 = vsel %vm3520_vm14, %v3745_v14, %v3744_v47 }
 0x3e5   :  { %v3761_v33 = vsel %vm3753_vm15, %v3746_v62, %v8722_v40 }
 0x3e6   :  { %v3765_v52 = vsel %vm3762_vm2, %v3761_v33, 0 }
 0x3e7   :  { %v3799_v22 = vand.u32 4294901760, %v3765_v52 }
 0x3e8   :  { %v3908_v50 = vpop.f32.mrf.mxu2 }
 0x3e9   :  { %3869 = vmatmul.f32.gmra.mxu1 %v3799_v22  ;;  %v3800_v24 = vsub.f32 %v3765_v52, %v3799_v22  ;;  %v3797_v51 = vpop.f32.mrf.mxu0 }
 0x3ea   :  { %v3798_v3 = vadd.f32 %v3797_v51, %v3359_v56 }
 0x3eb   :  { %3912 = vmatmul.f32.gmra.mxu2 %v3800_v24  ;;  %v3801_v43 = vand.u32 4294901760, %v3800_v24  ;;  %v3944_v29 = vpop.f32.mrf.mxu3 }
 0x3ed   :  { %3949 = vmatmul.f32.gmra.mxu3 %v3801_v43  ;;  %v3802_v32 = vsub.f32 %v3800_v24, %v3801_v43 }
 0x3ef   :  { %v3803_v40 = vand.u32 4294901760, %v3802_v32 }
 0x3f1   :  { %3804 = vmatmul.f32.gmra.mxu0 %v3803_v40  ;;  %4027 = vmatmul.f32.vlgmr.msrb.gmra.mxu1 %v8522_v63 }
 0x3f3   :  { %4064 = vmatmul.f32.vlgmr.msrb.gmra.mxu2 %v8621_v30  ;;  %v3866_v30 = vpop.f32.mrf.mxu1 }
 0x3f4   :  { %v3867_v37 = vadd.f32 %v3866_v30, %v3798_v3 }
 0x3f5   :  { %4133 = vmatmul.f32.vlgmr.msrb.gmra.mxu3 %v8522_v63 }
 0x3f9   :  { %3994 = vmatmul.f32.vlgmr.msrb.gmra.mxu0 %v8522_v63  ;;  %4031 = vmatmul.f32.gmra.mxu1 %v3799_v22 }
 0x3fb   :  { %4072 = vmatmul.f32.gmra.mxu2 %v3803_v40 }
 0x3fd   :  { %4137 = vmatmul.f32.gmra.mxu3 %v3799_v22 }
 0x401   :  { %3998 = vmatmul.f32.gmra.mxu0 %v3799_v22  ;;  %4211 = vmatmul.f32.vlgmr.msra.gmra.mxu1 %v8594_v59 }
 0x403   :  { %4262 = vmatmul.f32.vlgmr.msra.gmra.mxu2 %v8522_v63 }
 0x405   :  { %4295 = vmatmul.f32.vlgmr.msra.gmra.mxu3 %v8522_v63 }
 0x409   :  { %4175 = vmatmul.f32.vlgmr.msra.gmra.mxu0 %v8575_v18  ;;  %4217 = vmatmul.f32.gmra.mxu1 %v3801_v43  ;;  %v3909_v18 = vadd.f32 %v3908_v50, %v3867_v37 }
 0x40b   :  { %4266 = vmatmul.f32.gmra.mxu2 %v3799_v22  ;;  %v3945_v23 = vadd.f32 %v3944_v29, %v3909_v18 }
 0x40d   :  { %4299 = vmatmul.f32.gmra.mxu3 %v3799_v22 }
 0x411   :  { %4180 = vmatmul.f32.gmra.mxu0 %v3800_v24 }
 0x466   :  { %v3870_v59 = vpop.f32.mrf.mxu1 }
 0x46e   :  { %v3805_v6 = vpop.f32.mrf.mxu0  ;;  %v3913_v63 = vpop.f32.mrf.mxu2 }
 0x46f   :  { %v3806_v36 = vadd.f32 %v3805_v6, %v3359_v56  ;;  %v4028_v11 = vpop.f32.mrf.mxu1 }
 0x470   :  { %v3950_v60 = vpop.f32.mrf.mxu3 }
 0x471   :  { %v3871_v48 = vadd.f32 %v3870_v59, %v3806_v36 }
 0x473   :  { %v3914_v0 = vadd.f32 %v3913_v63, %v3871_v48 }
 0x475   :  { %v3951_v4 = vadd.f32 %v3950_v60, %v3914_v0 }
 0x476   :  { %v3995_v44 = vpop.f32.mrf.mxu0  ;;  %v4065_v16 = vpop.f32.mrf.mxu2 }
 0x477   :  { %v3996_v2 = vadd.f32 %v3995_v44, %v3945_v23  ;;  %v4032_v54 = vpop.f32.mrf.mxu1  ;;  %v4066_v20 = vadd.f32 %v4065_v16, %v3360_v27 }
 0x478   :  { %v4134_v17 = vpop.f32.mrf.mxu3 }
 0x479   :  { %v4029_v25 = vadd.f32 %v4028_v11, %v3996_v2  ;;  %v4135_v9 = vadd.f32 %v4134_v17, %v4066_v20 }
 0x47b   :  { %v4303_v58 = vmax.f32 %v4029_v25, 0.0 }
 0x47d   :  { %4307 = vst [vmem:[#allocation5] sm:$0xff] %v4303_v58 }
 0x47e   :  { %v3999_v49 = vpop.f32.mrf.mxu0  ;;  %v4073_v21 = vpop.f32.mrf.mxu2 }
 0x47f   :  { %v4000_v42 = vadd.f32 %v3999_v49, %v3951_v4  ;;  %v4212_v5 = vpop.f32.mrf.mxu1  ;;  %v4074_v35 = vadd.f32 %v4073_v21, %v3360_v27 }
 0x480   :  { %v4138_v61 = vpop.f32.mrf.mxu3 }
 0x481   :  { %v4033_v31 = vadd.f32 %v4032_v54, %v4000_v42  ;;  %v4139_v13 = vadd.f32 %v4138_v61, %v4074_v35 }
 0x483   :  { %v4305_v38 = vmax.f32 %v4033_v31, 0.0 }
 0x485   :  { %4309 = vst [vmem:[#allocation5 + $0x10] sm:$0xff] %v4305_v38 }
 0x486   :  { %v4176_v34 = vpop.f32.mrf.mxu0  ;;  %v4263_v39 = vpop.f32.mrf.mxu2 }
 0x487   :  { %v4177_v26 = vadd.f32 %v4176_v34, %v4135_v9  ;;  %v4218_v7 = vpop.f32.mrf.mxu1 }
 0x488   :  { %v4296_v8 = vpop.f32.mrf.mxu3 }
 0x489   :  { %v4213_v45 = vadd.f32 %v4212_v5, %v4177_v26 }
 0x48b   :  { %v4264_v28 = vadd.f32 %v4263_v39, %v4213_v45 }
 0x48d   :  { %v4297_v15 = vadd.f32 %v4296_v8, %v4264_v28 }
 0x48e   :  { %v4181_v19 = vpop.f32.mrf.mxu0  ;;  %v4267_v1 = vpop.f32.mrf.mxu2 }
 0x48f   :  { %v4304_v12 = vmax.f32 %v4297_v15, 0.0  ;;  %v4182_v57 = vadd.f32 %v4181_v19, %v4139_v13 }
 0x490   :  { %v4300_v41 = vpop.f32.mrf.mxu3 }
 0x491   :  { %4308 = vst [vmem:[#allocation5 + $0x8] sm:$0xff] %v4304_v12  ;;  %v4219_v10 = vadd.f32 %v4218_v7, %v4182_v57 }
 0x493   :  { %v4268_v53 = vadd.f32 %v4267_v1, %v4219_v10 }
 0x495   :  { %v4301_v46 = vadd.f32 %v4300_v41, %v4268_v53 }
 0x497   :  { %v4306_v14 = vmax.f32 %v4301_v46, 0.0 }
 0x499   :  { %4310 = vst [vmem:[#allocation5 + $0x18] sm:$0xff] %v4306_v14 }
 0x49a   :  { %4323 = dma.vmem_to_hbm [thread:$0]  %s4316_s17, 512, %s4318_s20, [#allocation4], %s4421_s23, %s4421_s23, %s4422_s24  }
 0x49b   :  { %4418 = dma.done.wait [#allocation4], 512  }
 0x49c   :  { %4419 = vsyncadd [#allocation4], 4294966784 }
 0x49d   :  { %4328 = vsyncpa [#allocation3], 1 }
 0x49e   :  { %4329 = vsyncpa [#allocation4], 1 }

</bundles_post_ra>
